<compile_context>
chip_gen: v7x
topology: tpu7x:2x2x1
jax: 0.10.0
libtpu: 0.0.40
codegen_flags: <defaults>
</compile_context>

<pallas_src>
import jax
import jax.numpy as jnp
from jax import lax
from jax.experimental import pallas as pl
from jax.experimental.pallas import tpu as pltpu


def _round_up(x, m):
    return ((x + m - 1) // m) * m


def _make_kernel(n_u, n_x, n_y, slot, t_block):
    """Builds the kernel for one time block of `t_block` steps (static unroll)."""
    S = slot

    def kernel(u_ref, x0_ref, w1x_ref, w1u_ref, b1_ref, w2t_ref, b2_ref,
               c_ref, x_out_ref, y_out_ref, x_state):
        # u_ref     : (n_pad, t_block*S)   packed inputs, lane = s*S + k
        # x0_ref    : (n_pad, n_x)         initial state
        # w1x_ref   : (n_x, H),  w1u_ref: (n_u, H),  b1_ref: (1, H)
        # w2t_ref   : (n_x, H)   (= W2^T, so row j is W2[:, j])
        # b2_ref    : (1, n_x)
        # c_ref     : (n_x, S)   (C zero-padded to the slot width)
        # x_out_ref : (n_pad, t_block*S)   recorded states (lane = s*S + j)
        # y_out_ref : (n_pad, t_block*S)   outputs          (lane = s*S + j)
        # x_state   : (n_pad, n_x)         persistent carried state (VMEM)

        # Initialize the carried state on the first time block only.
        @pl.when(pl.program_id(0) == 0)
        def _():
            x_state[...] = x0_ref[...]

        # Hoist all loop-invariant weight rows once per block.
        b1 = b1_ref[...]                                          # (1, H)
        w1x_rows = [w1x_ref[k:k + 1, :] for k in range(n_x)]      # (1, H)
        w1u_rows = [w1u_ref[k:k + 1, :] for k in range(n_u)]      # (1, H)
        w2t_rows = [w2t_ref[j:j + 1, :] for j in range(n_x)]      # (1, H)
        b2_cols = [b2_ref[:, j:j + 1] for j in range(n_x)]        # (1, 1)
        c_rows = [c_ref[k:k + 1, :] for k in range(n_x)]          # (1, S)

        # State carried as per-feature columns (n_pad, 1): keeps the serial
        # chain on single-vreg VPU ops with no per-step lane extraction.
        xcols = [x_state[:, j:j + 1] for j in range(n_x)]

        # Fully static time loop: every lane offset below is a compile-time
        # constant, so all loads/stores are plain static slices.
        for s in range(t_block):
            base = s * S

            # --- record state BEFORE the update, and y_t = x_t @ C ----------
            y_slot = xcols[0] * c_rows[0]
            for k in range(1, n_x):
                y_slot = y_slot + xcols[k] * c_rows[k]            # 4 VPU FMAs
            y_out_ref[:, base:base + S] = y_slot
            for j in range(n_x):
                x_out_ref[:, base + j:base + j + 1] = xcols[j]

            # --- hidden pre-activation: b1 + x@W1x + u_t@W1u (VPU FMAs) -----
            pre = b1 + xcols[0] * w1x_rows[0]
            for k in range(1, n_x):
                pre = pre + xcols[k] * w1x_rows[k]
            for k in range(n_u):
                u_col = u_ref[:, base + k:base + k + 1]           # (n_pad, 1)
                pre = pre + u_col * w1u_rows[k]
            h = jnp.tanh(pre)                                     # (n_pad, H) EUP

            # --- state update: x_{t+1} = x_t + h @ W2 + b2 ------------------
            # one (n_pad, H) multiply + lane reduction per output column.
            new_cols = []
            for j in range(n_x):
                dxj = jnp.sum(h * w2t_rows[j], axis=1, keepdims=True)
                new_cols.append(xcols[j] + dxj + b2_cols[j])
            xcols = new_cols

        # Persist the state for the next time block.
        for j in range(n_x):
            x_state[:, j:j + 1] = xcols[j]

    return kernel


def _tile_bytes(shape, dtype_bytes=4):
    """VMEM footprint of an f32 array with (8, 128) vreg tile padding."""
    if len(shape) == 1:
        shape = (1,) + tuple(shape)
    lead = 1
    for d in shape[:-2]:
        lead *= d
    return dtype_bytes * lead * _round_up(shape[-2], 8) * _round_up(shape[-1], 128)


def _full_spec(shape):
    nd = len(shape)
    return pl.BlockSpec(shape, lambda i, _nd=nd: (0,) * _nd)


def sim_discrete(u_batch, x0_batch, params, *, t_block=64):
    """u_batch: (N, T, n_u), x0_batch: (N, n_x) -> (X (N,T,n_x), Y (N,T,n_y))."""
    w1x, w1u, b1, w2, b2, c = [jnp.asarray(p, jnp.float32) for p in params]
    N, T, n_u = u_batch.shape
    n_x = x0_batch.shape[1]
    hidden = w1x.shape[1]
    n_y = c.shape[1]

    n_pad = _round_up(N, 8)                      # full sublane group (f32)

    # Per-timestep lane slot: power of two covering every feature width, so
    # step offsets never straddle a 128-lane tile boundary.
    S = 1 << (max(n_x, n_u, n_y) - 1).bit_length()
    assert 128 % S == 0, "feature slot must divide the 128-lane tile"
    lane_quantum = 128 // S                      # steps per 128-lane tile

    t_block = max(lane_quantum, _round_up(int(t_block), lane_quantum))
    t_block = min(t_block, _round_up(T, lane_quantum))   # don't over-pad tiny T
    t_pad = _round_up(T, t_block)
    num_blocks = t_pad // t_block
    blk = t_block * S                            # block lane width (mult of 128)

    # ---- pack inputs: natural batch-major layout, no transposes ------------
    u_pack = jnp.zeros((n_pad, t_pad, S), jnp.float32)
    u_pack = u_pack.at[:N, :T, :n_u].set(jnp.asarray(u_batch, jnp.float32))
    u_flat = u_pack.reshape(n_pad, t_pad * S)

    x0 = jnp.zeros((n_pad, n_x), jnp.float32)
    x0 = x0.at[:N].set(jnp.asarray(x0_batch, jnp.float32))

    w2t = w2.T                                                  # (n_x, H)
    c_slot = jnp.zeros((n_x, S), jnp.float32).at[:, :n_y].set(c)

    kernel = _make_kernel(n_u, n_x, n_y, S, t_block)

    # ---- (8,128)-tile-padded VMEM accounting (review item) -----------------
    io_bytes = 3 * 2 * _tile_bytes((n_pad, blk))               # u, X, Y x2 buf
    wt_bytes = 2 * sum(_tile_bytes(s) for s in
                       [(n_pad, n_x), w1x.shape, w1u.shape, b1.shape,
                        w2t.shape, b2.shape, c_slot.shape])
    scratch_bytes = _tile_bytes((n_pad, n_x))
    vmem_need = io_bytes + wt_bytes + scratch_bytes
    # generous headroom for compiler-internal scratch, capped at 32 MiB (v7x-safe)
    vmem_limit = int(min(max(8 * vmem_need, 16 << 20), 32 << 20))

    grid_spec = pltpu.PrefetchScalarGridSpec(
        num_scalar_prefetch=0,
        grid=(num_blocks,),
        in_specs=[
            pl.BlockSpec((n_pad, blk), lambda i: (0, i)),        # u chunk
            _full_spec((n_pad, n_x)),                            # x0
            _full_spec(w1x.shape),
            _full_spec(w1u.shape),
            _full_spec(b1.shape),
            _full_spec(w2t.shape),
            _full_spec(b2.shape),
            _full_spec(c_slot.shape),
        ],
        out_specs=(
            pl.BlockSpec((n_pad, blk), lambda i: (0, i)),        # X chunk
            pl.BlockSpec((n_pad, blk), lambda i: (0, i)),        # Y chunk
        ),
        scratch_shapes=[
            pltpu.VMEM((n_pad, n_x), jnp.float32),               # carried state
        ],
    )

    x_flat, y_flat = pl.pallas_call(
        kernel,
        out_shape=(
            jax.ShapeDtypeStruct((n_pad, t_pad * S), jnp.float32),
            jax.ShapeDtypeStruct((n_pad, t_pad * S), jnp.float32),
        ),
        grid_spec=grid_spec,
        compiler_params=pltpu.CompilerParams(
            dimension_semantics=("arbitrary",),   # sequential recurrence in T
            vmem_limit_bytes=vmem_limit,
        ),
    )(u_flat, x0, w1x, w1u, b1, w2t, b2, c_slot)

    X_sim = x_flat.reshape(n_pad, t_pad, S)[:N, :T, :n_x]
    Y_sim = y_flat.reshape(n_pad, t_pad, S)[:N, :T, :n_y]
    return X_sim, Y_sim


def sim_discrete_ref(u_batch, x0_batch, params):
    """Pure-JAX reference matching the PyTorch forward semantics."""
    w1x, w1u, b1, w2, b2, c = params

    def step(x, u):
        y = x @ c
        h = jnp.tanh(x @ w1x + u @ w1u + b1)
        x_next = x + h @ w2 + b2
        return x_next, (x, y)

    u_tm = jnp.transpose(u_batch, (1, 0, 2))
    _, (xs, ys) = lax.scan(step, x0_batch, u_tm)
    return jnp.transpose(xs, (1, 0, 2)), jnp.transpose(ys, (1, 0, 2))


def init_params(key, n_x, n_u, n_y, hidden, scale=0.05):
    ks = jax.random.split(key, 6)
    w1x = scale * jax.random.normal(ks[0], (n_x, hidden), jnp.float32)
    w1u = scale * jax.random.normal(ks[1], (n_u, hidden), jnp.float32)
    b1 = scale * jax.random.normal(ks[2], (1, hidden), jnp.float32)
    w2 = scale * jax.random.normal(ks[3], (hidden, n_x), jnp.float32)
    b2 = scale * jax.random.normal(ks[4], (1, n_x), jnp.float32)
    c = scale * jax.random.normal(ks[5], (n_x, n_y), jnp.float32)
    return (w1x, w1u, b1, w2, b2, c)


if __name__ == "__main__":
    key = jax.random.PRNGKey(0)
    n_u, n_x, n_y, hidden = 2, 4, 1, 32
    params = init_params(jax.random.fold_in(key, 2), n_x, n_u, n_y, hidden)

    # Case 1: module-sized shapes (batch=2, seq=8) -> single time block.
    N1, T1 = 2, 8
    k_u, k_x0 = jax.random.split(jax.random.fold_in(key, 0))
    u1 = jax.random.normal(k_u, (N1, T1, n_u), jnp.float32)
    x01 = jax.random.normal(k_x0, (N1, n_x), jnp.float32)

    X1, Y1 = sim_discrete(u1, x01, params)
    jax.block_until_ready((X1, Y1))
    X1r, Y1r = sim_discrete_ref(u1, x01, params)
    assert X1.shape == (N1, T1, n_x)
    assert Y1.shape == (N1, T1, n_y)
    assert jnp.allclose(X1, X1r, atol=1e-4), "state mismatch (case 1)"
    assert jnp.allclose(Y1, Y1r, atol=1e-4), "output mismatch (case 1)"

    # Case 2: non-aligned batch/seq -> exercises the multi-block grid, the
    # carried-state scratch across blocks, and batch/time padding.
    N2, T2 = 3, 150
    k_u2, k_x02 = jax.random.split(jax.random.fold_in(key, 1))
    u2 = jax.random.normal(k_u2, (N2, T2, n_u), jnp.float32)
    x02 = jax.random.normal(k_x02, (N2, n_x), jnp.float32)

    X2, Y2 = sim_discrete(u2, x02, params, t_block=64)
    jax.block_until_ready((X2, Y2))
    X2r, Y2r = sim_discrete_ref(u2, x02, params)
    assert jnp.allclose(X2, X2r, atol=1e-3, rtol=1e-3), "state mismatch (case 2)"
    assert jnp.allclose(Y2, Y2r, atol=1e-3, rtol=1e-3), "output mismatch (case 2)"

    print("KERNEL_OK")
</pallas_src>

<mosaic_0001>
module attributes {stable_mosaic.version = 11 : i64} {
  func.func @kernel(%arg0: i32, %arg1: memref<8x128xf32, #tpu.memory_space<vmem>>, %arg2: memref<8x4xf32, #tpu.memory_space<vmem>>, %arg3: memref<4x32xf32, #tpu.memory_space<vmem>>, %arg4: memref<2x32xf32, #tpu.memory_space<vmem>>, %arg5: memref<1x32xf32, #tpu.memory_space<vmem>>, %arg6: memref<4x32xf32, #tpu.memory_space<vmem>>, %arg7: memref<1x4xf32, #tpu.memory_space<vmem>>, %arg8: memref<4x4xf32, #tpu.memory_space<vmem>>, %arg9: memref<8x128xf32, #tpu.memory_space<vmem>>, %arg10: memref<8x128xf32, #tpu.memory_space<vmem>>, %arg11: memref<8x4xf32, #tpu.memory_space<vmem>>) attributes {dimension_semantics = [#tpu.dimension_semantics<arbitrary>], iteration_bounds = array<i64: 1>, scalar_prefetch = 0 : i64, scratch_operands = 1 : i64, tpu.core_type = #tpu.core_type<tc>, window_params = [{transform_indices = @transform_0, window_bounds = array<i64: 8, 128>}, {pipeline_mode = #tpu.pipeline_mode<synchronous>, transform_indices = @transform_1, window_bounds = array<i64: 8, 4>}, {pipeline_mode = #tpu.pipeline_mode<synchronous>, transform_indices = @transform_2, window_bounds = array<i64: 4, 32>}, {pipeline_mode = #tpu.pipeline_mode<synchronous>, transform_indices = @transform_3, window_bounds = array<i64: 2, 32>}, {pipeline_mode = #tpu.pipeline_mode<synchronous>, transform_indices = @transform_4, window_bounds = array<i64: 1, 32>}, {pipeline_mode = #tpu.pipeline_mode<synchronous>, transform_indices = @transform_5, window_bounds = array<i64: 4, 32>}, {pipeline_mode = #tpu.pipeline_mode<synchronous>, transform_indices = @transform_6, window_bounds = array<i64: 1, 4>}, {pipeline_mode = #tpu.pipeline_mode<synchronous>, transform_indices = @transform_7, window_bounds = array<i64: 4, 4>}, {transform_indices = @transform_8, window_bounds = array<i64: 8, 128>}, {transform_indices = @transform_9, window_bounds = array<i64: 8, 128>}]} {
    %c0_i32 = arith.constant 0 : i32
    %0 = arith.cmpi eq, %arg0, %c0_i32 : i32
    %1 = arith.extui %0 : i1 to i32
    %c0_i32_0 = arith.constant 0 : i32
    %2 = arith.cmpi ne, %1, %c0_i32_0 : i32
    scf.if %2 {
      %c0_502 = arith.constant 0 : index
      %c0_503 = arith.constant 0 : index
      %2462 = vector.load %arg2[%c0_502, %c0_503] : memref<8x4xf32, #tpu.memory_space<vmem>>, vector<8x4xf32>
      %c0_504 = arith.constant 0 : index
      %c0_505 = arith.constant 0 : index
      %2463 = vector.load %arg11[%c0_504, %c0_505] : memref<8x4xf32, #tpu.memory_space<vmem>>, vector<8x4xf32>
      tpu.vector_store %arg11[%c0_504, %c0_505], %2462 {strides = array<i32>} : memref<8x4xf32, #tpu.memory_space<vmem>>, vector<8x4xf32>,
    } else {
    }
    %c0 = arith.constant 0 : index
    %c0_1 = arith.constant 0 : index
    %3 = vector.load %arg5[%c0, %c0_1] : memref<1x32xf32, #tpu.memory_space<vmem>>, vector<1x32xf32>
    %c0_2 = arith.constant 0 : index
    %c0_3 = arith.constant 0 : index
    %4 = vector.load %arg3[%c0_2, %c0_3] : memref<4x32xf32, #tpu.memory_space<vmem>>, vector<1x32xf32>
    %c1 = arith.constant 1 : index
    %c0_4 = arith.constant 0 : index
    %5 = vector.load %arg3[%c1, %c0_4] : memref<4x32xf32, #tpu.memory_space<vmem>>, vector<1x32xf32>
    %c2 = arith.constant 2 : index
    %c0_5 = arith.constant 0 : index
    %6 = vector.load %arg3[%c2, %c0_5] : memref<4x32xf32, #tpu.memory_space<vmem>>, vector<1x32xf32>
    %c3 = arith.constant 3 : index
    %c0_6 = arith.constant 0 : index
    %7 = vector.load %arg3[%c3, %c0_6] : memref<4x32xf32, #tpu.memory_space<vmem>>, vector<1x32xf32>
    %c0_7 = arith.constant 0 : index
    %c0_8 = arith.constant 0 : index
    %8 = vector.load %arg4[%c0_7, %c0_8] : memref<2x32xf32, #tpu.memory_space<vmem>>, vector<1x32xf32>
    %c1_9 = arith.constant 1 : index
    %c0_10 = arith.constant 0 : index
    %9 = vector.load %arg4[%c1_9, %c0_10] : memref<2x32xf32, #tpu.memory_space<vmem>>, vector<1x32xf32>
    %c0_11 = arith.constant 0 : index
    %c0_12 = arith.constant 0 : index
    %10 = vector.load %arg6[%c0_11, %c0_12] : memref<4x32xf32, #tpu.memory_space<vmem>>, vector<1x32xf32>
    %c1_13 = arith.constant 1 : index
    %c0_14 = arith.constant 0 : index
    %11 = vector.load %arg6[%c1_13, %c0_14] : memref<4x32xf32, #tpu.memory_space<vmem>>, vector<1x32xf32>
    %c2_15 = arith.constant 2 : index
    %c0_16 = arith.constant 0 : index
    %12 = vector.load %arg6[%c2_15, %c0_16] : memref<4x32xf32, #tpu.memory_space<vmem>>, vector<1x32xf32>
    %c3_17 = arith.constant 3 : index
    %c0_18 = arith.constant 0 : index
    %13 = vector.load %arg6[%c3_17, %c0_18] : memref<4x32xf32, #tpu.memory_space<vmem>>, vector<1x32xf32>
    %c0_19 = arith.constant 0 : index
    %c0_20 = arith.constant 0 : index
    %14 = vector.load %arg7[%c0_19, %c0_20] : memref<1x4xf32, #tpu.memory_space<vmem>>, vector<1x1xf32>
    %c0_21 = arith.constant 0 : index
    %c1_22 = arith.constant 1 : index
    %15 = vector.load %arg7[%c0_21, %c1_22] : memref<1x4xf32, #tpu.memory_space<vmem>>, vector<1x1xf32>
    %c0_23 = arith.constant 0 : index
    %c2_24 = arith.constant 2 : index
    %16 = vector.load %arg7[%c0_23, %c2_24] : memref<1x4xf32, #tpu.memory_space<vmem>>, vector<1x1xf32>
    %c0_25 = arith.constant 0 : index
    %c3_26 = arith.constant 3 : index
    %17 = vector.load %arg7[%c0_25, %c3_26] : memref<1x4xf32, #tpu.memory_space<vmem>>, vector<1x1xf32>
    %c0_27 = arith.constant 0 : index
    %c0_28 = arith.constant 0 : index
    %18 = vector.load %arg8[%c0_27, %c0_28] : memref<4x4xf32, #tpu.memory_space<vmem>>, vector<1x4xf32>
    %c1_29 = arith.constant 1 : index
    %c0_30 = arith.constant 0 : index
    %19 = vector.load %arg8[%c1_29, %c0_30] : memref<4x4xf32, #tpu.memory_space<vmem>>, vector<1x4xf32>
    %c2_31 = arith.constant 2 : index
    %c0_32 = arith.constant 0 : index
    %20 = vector.load %arg8[%c2_31, %c0_32] : memref<4x4xf32, #tpu.memory_space<vmem>>, vector<1x4xf32>
    %c3_33 = arith.constant 3 : index
    %c0_34 = arith.constant 0 : index
    %21 = vector.load %arg8[%c3_33, %c0_34] : memref<4x4xf32, #tpu.memory_space<vmem>>, vector<1x4xf32>
    %c0_35 = arith.constant 0 : index
    %c0_36 = arith.constant 0 : index
    %22 = vector.load %arg11[%c0_35, %c0_36] : memref<8x4xf32, #tpu.memory_space<vmem>>, vector<8x1xf32>
    %c0_37 = arith.constant 0 : index
    %c1_38 = arith.constant 1 : index
    %23 = vector.load %arg11[%c0_37, %c1_38] : memref<8x4xf32, #tpu.memory_space<vmem>>, vector<8x1xf32>
    %c0_39 = arith.constant 0 : index
    %c2_40 = arith.constant 2 : index
    %24 = vector.load %arg11[%c0_39, %c2_40] : memref<8x4xf32, #tpu.memory_space<vmem>>, vector<8x1xf32>
    %c0_41 = arith.constant 0 : index
    %c3_42 = arith.constant 3 : index
    %25 = vector.load %arg11[%c0_41, %c3_42] : memref<8x4xf32, #tpu.memory_space<vmem>>, vector<8x1xf32>
    %26 = vector.broadcast %22 : vector<8x1xf32> to vector<8x4xf32>
    %27 = vector.broadcast %18 : vector<1x4xf32> to vector<8x4xf32>
    %28 = arith.mulf %26, %27 : vector<8x4xf32>
    %29 = vector.broadcast %23 : vector<8x1xf32> to vector<8x4xf32>
    %30 = vector.broadcast %19 : vector<1x4xf32> to vector<8x4xf32>
    %31 = arith.mulf %29, %30 : vector<8x4xf32>
    %32 = arith.addf %28, %31 : vector<8x4xf32>
    %33 = vector.broadcast %24 : vector<8x1xf32> to vector<8x4xf32>
    %34 = vector.broadcast %20 : vector<1x4xf32> to vector<8x4xf32>
    %35 = arith.mulf %33, %34 : vector<8x4xf32>
    %36 = arith.addf %32, %35 : vector<8x4xf32>
    %37 = vector.broadcast %25 : vector<8x1xf32> to vector<8x4xf32>
    %38 = vector.broadcast %21 : vector<1x4xf32> to vector<8x4xf32>
    %39 = arith.mulf %37, %38 : vector<8x4xf32>
    %40 = arith.addf %36, %39 : vector<8x4xf32>
    %c0_43 = arith.constant 0 : index
    %c0_44 = arith.constant 0 : index
    %41 = vector.load %arg10[%c0_43, %c0_44] : memref<8x128xf32, #tpu.memory_space<vmem>>, vector<8x4xf32>
    tpu.vector_store %arg10[%c0_43, %c0_44], %40 {strides = array<i32>} : memref<8x128xf32, #tpu.memory_space<vmem>>, vector<8x4xf32>,
    %c0_45 = arith.constant 0 : index
    %c0_46 = arith.constant 0 : index
    %42 = vector.load %arg9[%c0_45, %c0_46] : memref<8x128xf32, #tpu.memory_space<vmem>>, vector<8x1xf32>
    tpu.vector_store %arg9[%c0_45, %c0_46], %22 {strides = array<i32>} : memref<8x128xf32, #tpu.memory_space<vmem>>, vector<8x1xf32>,
    %c0_47 = arith.constant 0 : index
    %c1_48 = arith.constant 1 : index
    %43 = vector.load %arg9[%c0_47, %c1_48] : memref<8x128xf32, #tpu.memory_space<vmem>>, vector<8x1xf32>
    tpu.vector_store %arg9[%c0_47, %c1_48], %23 {strides = array<i32>} : memref<8x128xf32, #tpu.memory_space<vmem>>, vector<8x1xf32>,
    %c0_49 = arith.constant 0 : index
    %c2_50 = arith.constant 2 : index
    %44 = vector.load %arg9[%c0_49, %c2_50] : memref<8x128xf32, #tpu.memory_space<vmem>>, vector<8x1xf32>
    tpu.vector_store %arg9[%c0_49, %c2_50], %24 {strides = array<i32>} : memref<8x128xf32, #tpu.memory_space<vmem>>, vector<8x1xf32>,
    %c0_51 = arith.constant 0 : index
    %c3_52 = arith.constant 3 : index
    %45 = vector.load %arg9[%c0_51, %c3_52] : memref<8x128xf32, #tpu.memory_space<vmem>>, vector<8x1xf32>
    tpu.vector_store %arg9[%c0_51, %c3_52], %25 {strides = array<i32>} : memref<8x128xf32, #tpu.memory_space<vmem>>, vector<8x1xf32>,
    %46 = vector.broadcast %22 : vector<8x1xf32> to vector<8x32xf32>
    %47 = vector.broadcast %4 : vector<1x32xf32> to vector<8x32xf32>
    %48 = arith.mulf %46, %47 : vector<8x32xf32>
    %49 = vector.broadcast %3 : vector<1x32xf32> to vector<8x32xf32>
    %50 = arith.addf %49, %48 : vector<8x32xf32>
    %51 = vector.broadcast %23 : vector<8x1xf32> to vector<8x32xf32>
    %52 = vector.broadcast %5 : vector<1x32xf32> to vector<8x32xf32>
    %53 = arith.mulf %51, %52 : vector<8x32xf32>
    %54 = arith.addf %50, %53 : vector<8x32xf32>
    %55 = vector.broadcast %24 : vector<8x1xf32> to vector<8x32xf32>
    %56 = vector.broadcast %6 : vector<1x32xf32> to vector<8x32xf32>
    %57 = arith.mulf %55, %56 : vector<8x32xf32>
    %58 = arith.addf %54, %57 : vector<8x32xf32>
    %59 = vector.broadcast %25 : vector<8x1xf32> to vector<8x32xf32>
    %60 = vector.broadcast %7 : vector<1x32xf32> to vector<8x32xf32>
    %61 = arith.mulf %59, %60 : vector<8x32xf32>
    %62 = arith.addf %58, %61 : vector<8x32xf32>
    %c0_53 = arith.constant 0 : index
    %c0_54 = arith.constant 0 : index
    %63 = vector.load %arg1[%c0_53, %c0_54] : memref<8x128xf32, #tpu.memory_space<vmem>>, vector<8x1xf32>
    %64 = vector.broadcast %63 : vector<8x1xf32> to vector<8x32xf32>
    %65 = vector.broadcast %8 : vector<1x32xf32> to vector<8x32xf32>
    %66 = arith.mulf %64, %65 : vector<8x32xf32>
    %67 = arith.addf %62, %66 : vector<8x32xf32>
    %c0_55 = arith.constant 0 : index
    %c1_56 = arith.constant 1 : index
    %68 = vector.load %arg1[%c0_55, %c1_56] : memref<8x128xf32, #tpu.memory_space<vmem>>, vector<8x1xf32>
    %69 = vector.broadcast %68 : vector<8x1xf32> to vector<8x32xf32>
    %70 = vector.broadcast %9 : vector<1x32xf32> to vector<8x32xf32>
    %71 = arith.mulf %69, %70 : vector<8x32xf32>
    %72 = arith.addf %67, %71 : vector<8x32xf32>
    %73 = math.tanh %72 : vector<8x32xf32>
    %74 = vector.broadcast %10 : vector<1x32xf32> to vector<8x32xf32>
    %75 = arith.mulf %73, %74 : vector<8x32xf32>
    %cst = arith.constant dense<0.000000e+00> : vector<8xf32>
    %76 = vector.multi_reduction <add>, %75, %cst [1] : vector<8x32xf32> to vector<8xf32>
    %77 = vector.shape_cast %76 : vector<8xf32> to vector<8x1xf32>
    %78 = arith.addf %22, %77 : vector<8x1xf32>
    %79 = vector.broadcast %14 : vector<1x1xf32> to vector<8x1xf32>
    %80 = arith.addf %78, %79 : vector<8x1xf32>
    %81 = vector.broadcast %11 : vector<1x32xf32> to vector<8x32xf32>
    %82 = arith.mulf %73, %81 : vector<8x32xf32>
    %cst_57 = arith.constant dense<0.000000e+00> : vector<8xf32>
    %83 = vector.multi_reduction <add>, %82, %cst_57 [1] : vector<8x32xf32> to vector<8xf32>
    %84 = vector.shape_cast %83 : vector<8xf32> to vector<8x1xf32>
    %85 = arith.addf %23, %84 : vector<8x1xf32>
    %86 = vector.broadcast %15 : vector<1x1xf32> to vector<8x1xf32>
    %87 = arith.addf %85, %86 : vector<8x1xf32>
    %88 = vector.broadcast %12 : vector<1x32xf32> to vector<8x32xf32>
    %89 = arith.mulf %73, %88 : vector<8x32xf32>
    %cst_58 = arith.constant dense<0.000000e+00> : vector<8xf32>
    %90 = vector.multi_reduction <add>, %89, %cst_58 [1] : vector<8x32xf32> to vector<8xf32>
    %91 = vector.shape_cast %90 : vector<8xf32> to vector<8x1xf32>
    %92 = arith.addf %24, %91 : vector<8x1xf32>
    %93 = vector.broadcast %16 : vector<1x1xf32> to vector<8x1xf32>
    %94 = arith.addf %92, %93 : vector<8x1xf32>
    %95 = vector.broadcast %13 : vector<1x32xf32> to vector<8x32xf32>
    %96 = arith.mulf %73, %95 : vector<8x32xf32>
    %cst_59 = arith.constant dense<0.000000e+00> : vector<8xf32>
    %97 = vector.multi_reduction <add>, %96, %cst_59 [1] : vector<8x32xf32> to vector<8xf32>
    %98 = vector.shape_cast %97 : vector<8xf32> to vector<8x1xf32>
    %99 = arith.addf %25, %98 : vector<8x1xf32>
    %100 = vector.broadcast %17 : vector<1x1xf32> to vector<8x1xf32>
    %101 = arith.addf %99, %100 : vector<8x1xf32>
    %102 = vector.broadcast %80 : vector<8x1xf32> to vector<8x4xf32>
    %103 = vector.broadcast %18 : vector<1x4xf32> to vector<8x4xf32>
    %104 = arith.mulf %102, %103 : vector<8x4xf32>
    %105 = vector.broadcast %87 : vector<8x1xf32> to vector<8x4xf32>
    %106 = vector.broadcast %19 : vector<1x4xf32> to vector<8x4xf32>
    %107 = arith.mulf %105, %106 : vector<8x4xf32>
    %108 = arith.addf %104, %107 : vector<8x4xf32>
    %109 = vector.broadcast %94 : vector<8x1xf32> to vector<8x4xf32>
    %110 = vector.broadcast %20 : vector<1x4xf32> to vector<8x4xf32>
    %111 = arith.mulf %109, %110 : vector<8x4xf32>
    %112 = arith.addf %108, %111 : vector<8x4xf32>
    %113 = vector.broadcast %101 : vector<8x1xf32> to vector<8x4xf32>
    %114 = vector.broadcast %21 : vector<1x4xf32> to vector<8x4xf32>
    %115 = arith.mulf %113, %114 : vector<8x4xf32>
    %116 = arith.addf %112, %115 : vector<8x4xf32>
    %c0_60 = arith.constant 0 : index
    %c4 = arith.constant 4 : index
    %117 = vector.load %arg10[%c0_60, %c4] : memref<8x128xf32, #tpu.memory_space<vmem>>, vector<8x4xf32>
    tpu.vector_store %arg10[%c0_60, %c4], %116 {strides = array<i32>} : memref<8x128xf32, #tpu.memory_space<vmem>>, vector<8x4xf32>,
    %c0_61 = arith.constant 0 : index
    %c4_62 = arith.constant 4 : index
    %118 = vector.load %arg9[%c0_61, %c4_62] : memref<8x128xf32, #tpu.memory_space<vmem>>, vector<8x1xf32>
    tpu.vector_store %arg9[%c0_61, %c4_62], %80 {strides = array<i32>} : memref<8x128xf32, #tpu.memory_space<vmem>>, vector<8x1xf32>,
    %c0_63 = arith.constant 0 : index
    %c5 = arith.constant 5 : index
    %119 = vector.load %arg9[%c0_63, %c5] : memref<8x128xf32, #tpu.memory_space<vmem>>, vector<8x1xf32>
    tpu.vector_store %arg9[%c0_63, %c5], %87 {strides = array<i32>} : memref<8x128xf32, #tpu.memory_space<vmem>>, vector<8x1xf32>,
    %c0_64 = arith.constant 0 : index
    %c6 = arith.constant 6 : index
    %120 = vector.load %arg9[%c0_64, %c6] : memref<8x128xf32, #tpu.memory_space<vmem>>, vector<8x1xf32>
    tpu.vector_store %arg9[%c0_64, %c6], %94 {strides = array<i32>} : memref<8x128xf32, #tpu.memory_space<vmem>>, vector<8x1xf32>,
    %c0_65 = arith.constant 0 : index
    %c7 = arith.constant 7 : index
    %121 = vector.load %arg9[%c0_65, %c7] : memref<8x128xf32, #tpu.memory_space<vmem>>, vector<8x1xf32>
    tpu.vector_store %arg9[%c0_65, %c7], %101 {strides = array<i32>} : memref<8x128xf32, #tpu.memory_space<vmem>>, vector<8x1xf32>,
    %122 = vector.broadcast %80 : vector<8x1xf32> to vector<8x32xf32>
    %123 = vector.broadcast %4 : vector<1x32xf32> to vector<8x32xf32>
    %124 = arith.mulf %122, %123 : vector<8x32xf32>
    %125 = vector.broadcast %3 : vector<1x32xf32> to vector<8x32xf32>
    %126 = arith.addf %125, %124 : vector<8x32xf32>
    %127 = vector.broadcast %87 : vector<8x1xf32> to vector<8x32xf32>
    %128 = vector.broadcast %5 : vector<1x32xf32> to vector<8x32xf32>
    %129 = arith.mulf %127, %128 : vector<8x32xf32>
    %130 = arith.addf %126, %129 : vector<8x32xf32>
    %131 = vector.broadcast %94 : vector<8x1xf32> to vector<8x32xf32>
    %132 = vector.broadcast %6 : vector<1x32xf32> to vector<8x32xf32>
    %133 = arith.mulf %131, %132 : vector<8x32xf32>
    %134 = arith.addf %130, %133 : vector<8x32xf32>
    %135 = vector.broadcast %101 : vector<8x1xf32> to vector<8x32xf32>
    %136 = vector.broadcast %7 : vector<1x32xf32> to vector<8x32xf32>
    %137 = arith.mulf %135, %136 : vector<8x32xf32>
    %138 = arith.addf %134, %137 : vector<8x32xf32>
    %c0_66 = arith.constant 0 : index
    %c4_67 = arith.constant 4 : index
    %139 = vector.load %arg1[%c0_66, %c4_67] : memref<8x128xf32, #tpu.memory_space<vmem>>, vector<8x1xf32>
    %140 = vector.broadcast %139 : vector<8x1xf32> to vector<8x32xf32>
    %141 = vector.broadcast %8 : vector<1x32xf32> to vector<8x32xf32>
    %142 = arith.mulf %140, %141 : vector<8x32xf32>
    %143 = arith.addf %138, %142 : vector<8x32xf32>
    %c0_68 = arith.constant 0 : index
    %c5_69 = arith.constant 5 : index
    %144 = vector.load %arg1[%c0_68, %c5_69] : memref<8x128xf32, #tpu.memory_space<vmem>>, vector<8x1xf32>
    %145 = vector.broadcast %144 : vector<8x1xf32> to vector<8x32xf32>
    %146 = vector.broadcast %9 : vector<1x32xf32> to vector<8x32xf32>
    %147 = arith.mulf %145, %146 : vector<8x32xf32>
    %148 = arith.addf %143, %147 : vector<8x32xf32>
    %149 = math.tanh %148 : vector<8x32xf32>
    %150 = vector.broadcast %10 : vector<1x32xf32> to vector<8x32xf32>
    %151 = arith.mulf %149, %150 : vector<8x32xf32>
    %cst_70 = arith.constant dense<0.000000e+00> : vector<8xf32>
    %152 = vector.multi_reduction <add>, %151, %cst_70 [1] : vector<8x32xf32> to vector<8xf32>
    %153 = vector.shape_cast %152 : vector<8xf32> to vector<8x1xf32>
    %154 = arith.addf %80, %153 : vector<8x1xf32>
    %155 = vector.broadcast %14 : vector<1x1xf32> to vector<8x1xf32>
    %156 = arith.addf %154, %155 : vector<8x1xf32>
    %157 = vector.broadcast %11 : vector<1x32xf32> to vector<8x32xf32>
    %158 = arith.mulf %149, %157 : vector<8x32xf32>
    %cst_71 = arith.constant dense<0.000000e+00> : vector<8xf32>
    %159 = vector.multi_reduction <add>, %158, %cst_71 [1] : vector<8x32xf32> to vector<8xf32>
    %160 = vector.shape_cast %159 : vector<8xf32> to vector<8x1xf32>
    %161 = arith.addf %87, %160 : vector<8x1xf32>
    %162 = vector.broadcast %15 : vector<1x1xf32> to vector<8x1xf32>
    %163 = arith.addf %161, %162 : vector<8x1xf32>
    %164 = vector.broadcast %12 : vector<1x32xf32> to vector<8x32xf32>
    %165 = arith.mulf %149, %164 : vector<8x32xf32>
    %cst_72 = arith.constant dense<0.000000e+00> : vector<8xf32>
    %166 = vector.multi_reduction <add>, %165, %cst_72 [1] : vector<8x32xf32> to vector<8xf32>
    %167 = vector.shape_cast %166 : vector<8xf32> to vector<8x1xf32>
    %168 = arith.addf %94, %167 : vector<8x1xf32>
    %169 = vector.broadcast %16 : vector<1x1xf32> to vector<8x1xf32>
    %170 = arith.addf %168, %169 : vector<8x1xf32>
    %171 = vector.broadcast %13 : vector<1x32xf32> to vector<8x32xf32>
    %172 = arith.mulf %149, %171 : vector<8x32xf32>
    %cst_73 = arith.constant dense<0.000000e+00> : vector<8xf32>
    %173 = vector.multi_reduction <add>, %172, %cst_73 [1] : vector<8x32xf32> to vector<8xf32>
    %174 = vector.shape_cast %173 : vector<8xf32> to vector<8x1xf32>
    %175 = arith.addf %101, %174 : vector<8x1xf32>
    %176 = vector.broadcast %17 : vector<1x1xf32> to vector<8x1xf32>
    %177 = arith.addf %175, %176 : vector<8x1xf32>
    %178 = vector.broadcast %156 : vector<8x1xf32> to vector<8x4xf32>
    %179 = vector.broadcast %18 : vector<1x4xf32> to vector<8x4xf32>
    %180 = arith.mulf %178, %179 : vector<8x4xf32>
    %181 = vector.broadcast %163 : vector<8x1xf32> to vector<8x4xf32>
    %182 = vector.broadcast %19 : vector<1x4xf32> to vector<8x4xf32>
    %183 = arith.mulf %181, %182 : vector<8x4xf32>
    %184 = arith.addf %180, %183 : vector<8x4xf32>
    %185 = vector.broadcast %170 : vector<8x1xf32> to vector<8x4xf32>
    %186 = vector.broadcast %20 : vector<1x4xf32> to vector<8x4xf32>
    %187 = arith.mulf %185, %186 : vector<8x4xf32>
    %188 = arith.addf %184, %187 : vector<8x4xf32>
    %189 = vector.broadcast %177 : vector<8x1xf32> to vector<8x4xf32>
    %190 = vector.broadcast %21 : vector<1x4xf32> to vector<8x4xf32>
    %191 = arith.mulf %189, %190 : vector<8x4xf32>
    %192 = arith.addf %188, %191 : vector<8x4xf32>
    %c0_74 = arith.constant 0 : index
    %c8 = arith.constant 8 : index
    %193 = vector.load %arg10[%c0_74, %c8] : memref<8x128xf32, #tpu.memory_space<vmem>>, vector<8x4xf32>
    tpu.vector_store %arg10[%c0_74, %c8], %192 {strides = array<i32>} : memref<8x128xf32, #tpu.memory_space<vmem>>, vector<8x4xf32>,
    %c0_75 = arith.constant 0 : index
    %c8_76 = arith.constant 8 : index
    %194 = vector.load %arg9[%c0_75, %c8_76] : memref<8x128xf32, #tpu.memory_space<vmem>>, vector<8x1xf32>
    tpu.vector_store %arg9[%c0_75, %c8_76], %156 {strides = array<i32>} : memref<8x128xf32, #tpu.memory_space<vmem>>, vector<8x1xf32>,
    %c0_77 = arith.constant 0 : index
    %c9 = arith.constant 9 : index
    %195 = vector.load %arg9[%c0_77, %c9] : memref<8x128xf32, #tpu.memory_space<vmem>>, vector<8x1xf32>
    tpu.vector_store %arg9[%c0_77, %c9], %163 {strides = array<i32>} : memref<8x128xf32, #tpu.memory_space<vmem>>, vector<8x1xf32>,
    %c0_78 = arith.constant 0 : index
    %c10 = arith.constant 10 : index
    %196 = vector.load %arg9[%c0_78, %c10] : memref<8x128xf32, #tpu.memory_space<vmem>>, vector<8x1xf32>
    tpu.vector_store %arg9[%c0_78, %c10], %170 {strides = array<i32>} : memref<8x128xf32, #tpu.memory_space<vmem>>, vector<8x1xf32>,
    %c0_79 = arith.constant 0 : index
    %c11 = arith.constant 11 : index
    %197 = vector.load %arg9[%c0_79, %c11] : memref<8x128xf32, #tpu.memory_space<vmem>>, vector<8x1xf32>
    tpu.vector_store %arg9[%c0_79, %c11], %177 {strides = array<i32>} : memref<8x128xf32, #tpu.memory_space<vmem>>, vector<8x1xf32>,
    %198 = vector.broadcast %156 : vector<8x1xf32> to vector<8x32xf32>
    %199 = vector.broadcast %4 : vector<1x32xf32> to vector<8x32xf32>
    %200 = arith.mulf %198, %199 : vector<8x32xf32>
    %201 = vector.broadcast %3 : vector<1x32xf32> to vector<8x32xf32>
    %202 = arith.addf %201, %200 : vector<8x32xf32>
    %203 = vector.broadcast %163 : vector<8x1xf32> to vector<8x32xf32>
    %204 = vector.broadcast %5 : vector<1x32xf32> to vector<8x32xf32>
    %205 = arith.mulf %203, %204 : vector<8x32xf32>
    %206 = arith.addf %202, %205 : vector<8x32xf32>
    %207 = vector.broadcast %170 : vector<8x1xf32> to vector<8x32xf32>
    %208 = vector.broadcast %6 : vector<1x32xf32> to vector<8x32xf32>
    %209 = arith.mulf %207, %208 : vector<8x32xf32>
    %210 = arith.addf %206, %209 : vector<8x32xf32>
    %211 = vector.broadcast %177 : vector<8x1xf32> to vector<8x32xf32>
    %212 = vector.broadcast %7 : vector<1x32xf32> to vector<8x32xf32>
    %213 = arith.mulf %211, %212 : vector<8x32xf32>
    %214 = arith.addf %210, %213 : vector<8x32xf32>
    %c0_80 = arith.constant 0 : index
    %c8_81 = arith.constant 8 : index
    %215 = vector.load %arg1[%c0_80, %c8_81] : memref<8x128xf32, #tpu.memory_space<vmem>>, vector<8x1xf32>
    %216 = vector.broadcast %215 : vector<8x1xf32> to vector<8x32xf32>
    %217 = vector.broadcast %8 : vector<1x32xf32> to vector<8x32xf32>
    %218 = arith.mulf %216, %217 : vector<8x32xf32>
    %219 = arith.addf %214, %218 : vector<8x32xf32>
    %c0_82 = arith.constant 0 : index
    %c9_83 = arith.constant 9 : index
    %220 = vector.load %arg1[%c0_82, %c9_83] : memref<8x128xf32, #tpu.memory_space<vmem>>, vector<8x1xf32>
    %221 = vector.broadcast %220 : vector<8x1xf32> to vector<8x32xf32>
    %222 = vector.broadcast %9 : vector<1x32xf32> to vector<8x32xf32>
    %223 = arith.mulf %221, %222 : vector<8x32xf32>
    %224 = arith.addf %219, %223 : vector<8x32xf32>
    %225 = math.tanh %224 : vector<8x32xf32>
    %226 = vector.broadcast %10 : vector<1x32xf32> to vector<8x32xf32>
    %227 = arith.mulf %225, %226 : vector<8x32xf32>
    %cst_84 = arith.constant dense<0.000000e+00> : vector<8xf32>
    %228 = vector.multi_reduction <add>, %227, %cst_84 [1] : vector<8x32xf32> to vector<8xf32>
    %229 = vector.shape_cast %228 : vector<8xf32> to vector<8x1xf32>
    %230 = arith.addf %156, %229 : vector<8x1xf32>
    %231 = vector.broadcast %14 : vector<1x1xf32> to vector<8x1xf32>
    %232 = arith.addf %230, %231 : vector<8x1xf32>
    %233 = vector.broadcast %11 : vector<1x32xf32> to vector<8x32xf32>
    %234 = arith.mulf %225, %233 : vector<8x32xf32>
    %cst_85 = arith.constant dense<0.000000e+00> : vector<8xf32>
    %235 = vector.multi_reduction <add>, %234, %cst_85 [1] : vector<8x32xf32> to vector<8xf32>
    %236 = vector.shape_cast %235 : vector<8xf32> to vector<8x1xf32>
    %237 = arith.addf %163, %236 : vector<8x1xf32>
    %238 = vector.broadcast %15 : vector<1x1xf32> to vector<8x1xf32>
    %239 = arith.addf %237, %238 : vector<8x1xf32>
    %240 = vector.broadcast %12 : vector<1x32xf32> to vector<8x32xf32>
    %241 = arith.mulf %225, %240 : vector<8x32xf32>
    %cst_86 = arith.constant dense<0.000000e+00> : vector<8xf32>
    %242 = vector.multi_reduction <add>, %241, %cst_86 [1] : vector<8x32xf32> to vector<8xf32>
    %243 = vector.shape_cast %242 : vector<8xf32> to vector<8x1xf32>
    %244 = arith.addf %170, %243 : vector<8x1xf32>
    %245 = vector.broadcast %16 : vector<1x1xf32> to vector<8x1xf32>
    %246 = arith.addf %244, %245 : vector<8x1xf32>
    %247 = vector.broadcast %13 : vector<1x32xf32> to vector<8x32xf32>
    %248 = arith.mulf %225, %247 : vector<8x32xf32>
    %cst_87 = arith.constant dense<0.000000e+00> : vector<8xf32>
    %249 = vector.multi_reduction <add>, %248, %cst_87 [1] : vector<8x32xf32> to vector<8xf32>
    %250 = vector.shape_cast %249 : vector<8xf32> to vector<8x1xf32>
    %251 = arith.addf %177, %250 : vector<8x1xf32>
    %252 = vector.broadcast %17 : vector<1x1xf32> to vector<8x1xf32>
    %253 = arith.addf %251, %252 : vector<8x1xf32>
    %254 = vector.broadcast %232 : vector<8x1xf32> to vector<8x4xf32>
    %255 = vector.broadcast %18 : vector<1x4xf32> to vector<8x4xf32>
    %256 = arith.mulf %254, %255 : vector<8x4xf32>
    %257 = vector.broadcast %239 : vector<8x1xf32> to vector<8x4xf32>
    %258 = vector.broadcast %19 : vector<1x4xf32> to vector<8x4xf32>
    %259 = arith.mulf %257, %258 : vector<8x4xf32>
    %260 = arith.addf %256, %259 : vector<8x4xf32>
    %261 = vector.broadcast %246 : vector<8x1xf32> to vector<8x4xf32>
    %262 = vector.broadcast %20 : vector<1x4xf32> to vector<8x4xf32>
    %263 = arith.mulf %261, %262 : vector<8x4xf32>
    %264 = arith.addf %260, %263 : vector<8x4xf32>
    %265 = vector.broadcast %253 : vector<8x1xf32> to vector<8x4xf32>
    %266 = vector.broadcast %21 : vector<1x4xf32> to vector<8x4xf32>
    %267 = arith.mulf %265, %266 : vector<8x4xf32>
    %268 = arith.addf %264, %267 : vector<8x4xf32>
    %c0_88 = arith.constant 0 : index
    %c12 = arith.constant 12 : index
    %269 = vector.load %arg10[%c0_88, %c12] : memref<8x128xf32, #tpu.memory_space<vmem>>, vector<8x4xf32>
    tpu.vector_store %arg10[%c0_88, %c12], %268 {strides = array<i32>} : memref<8x128xf32, #tpu.memory_space<vmem>>, vector<8x4xf32>,
    %c0_89 = arith.constant 0 : index
    %c12_90 = arith.constant 12 : index
    %270 = vector.load %arg9[%c0_89, %c12_90] : memref<8x128xf32, #tpu.memory_space<vmem>>, vector<8x1xf32>
    tpu.vector_store %arg9[%c0_89, %c12_90], %232 {strides = array<i32>} : memref<8x128xf32, #tpu.memory_space<vmem>>, vector<8x1xf32>,
    %c0_91 = arith.constant 0 : index
    %c13 = arith.constant 13 : index
    %271 = vector.load %arg9[%c0_91, %c13] : memref<8x128xf32, #tpu.memory_space<vmem>>, vector<8x1xf32>
    tpu.vector_store %arg9[%c0_91, %c13], %239 {strides = array<i32>} : memref<8x128xf32, #tpu.memory_space<vmem>>, vector<8x1xf32>,
    %c0_92 = arith.constant 0 : index
    %c14 = arith.constant 14 : index
    %272 = vector.load %arg9[%c0_92, %c14] : memref<8x128xf32, #tpu.memory_space<vmem>>, vector<8x1xf32>
    tpu.vector_store %arg9[%c0_92, %c14], %246 {strides = array<i32>} : memref<8x128xf32, #tpu.memory_space<vmem>>, vector<8x1xf32>,
    %c0_93 = arith.constant 0 : index
    %c15 = arith.constant 15 : index
    %273 = vector.load %arg9[%c0_93, %c15] : memref<8x128xf32, #tpu.memory_space<vmem>>, vector<8x1xf32>
    tpu.vector_store %arg9[%c0_93, %c15], %253 {strides = array<i32>} : memref<8x128xf32, #tpu.memory_space<vmem>>, vector<8x1xf32>,
    %274 = vector.broadcast %232 : vector<8x1xf32> to vector<8x32xf32>
    %275 = vector.broadcast %4 : vector<1x32xf32> to vector<8x32xf32>
    %276 = arith.mulf %274, %275 : vector<8x32xf32>
    %277 = vector.broadcast %3 : vector<1x32xf32> to vector<8x32xf32>
    %278 = arith.addf %277, %276 : vector<8x32xf32>
    %279 = vector.broadcast %239 : vector<8x1xf32> to vector<8x32xf32>
    %280 = vector.broadcast %5 : vector<1x32xf32> to vector<8x32xf32>
    %281 = arith.mulf %279, %280 : vector<8x32xf32>
    %282 = arith.addf %278, %281 : vector<8x32xf32>
    %283 = vector.broadcast %246 : vector<8x1xf32> to vector<8x32xf32>
    %284 = vector.broadcast %6 : vector<1x32xf32> to vector<8x32xf32>
    %285 = arith.mulf %283, %284 : vector<8x32xf32>
    %286 = arith.addf %282, %285 : vector<8x32xf32>
    %287 = vector.broadcast %253 : vector<8x1xf32> to vector<8x32xf32>
    %288 = vector.broadcast %7 : vector<1x32xf32> to vector<8x32xf32>
    %289 = arith.mulf %287, %288 : vector<8x32xf32>
    %290 = arith.addf %286, %289 : vector<8x32xf32>
    %c0_94 = arith.constant 0 : index
    %c12_95 = arith.constant 12 : index
    %291 = vector.load %arg1[%c0_94, %c12_95] : memref<8x128xf32, #tpu.memory_space<vmem>>, vector<8x1xf32>
    %292 = vector.broadcast %291 : vector<8x1xf32> to vector<8x32xf32>
    %293 = vector.broadcast %8 : vector<1x32xf32> to vector<8x32xf32>
    %294 = arith.mulf %292, %293 : vector<8x32xf32>
    %295 = arith.addf %290, %294 : vector<8x32xf32>
    %c0_96 = arith.constant 0 : index
    %c13_97 = arith.constant 13 : index
    %296 = vector.load %arg1[%c0_96, %c13_97] : memref<8x128xf32, #tpu.memory_space<vmem>>, vector<8x1xf32>
    %297 = vector.broadcast %296 : vector<8x1xf32> to vector<8x32xf32>
    %298 = vector.broadcast %9 : vector<1x32xf32> to vector<8x32xf32>
    %299 = arith.mulf %297, %298 : vector<8x32xf32>
    %300 = arith.addf %295, %299 : vector<8x32xf32>
    %301 = math.tanh %300 : vector<8x32xf32>
    %302 = vector.broadcast %10 : vector<1x32xf32> to vector<8x32xf32>
    %303 = arith.mulf %301, %302 : vector<8x32xf32>
    %cst_98 = arith.constant dense<0.000000e+00> : vector<8xf32>
    %304 = vector.multi_reduction <add>, %303, %cst_98 [1] : vector<8x32xf32> to vector<8xf32>
    %305 = vector.shape_cast %304 : vector<8xf32> to vector<8x1xf32>
    %306 = arith.addf %232, %305 : vector<8x1xf32>
    %307 = vector.broadcast %14 : vector<1x1xf32> to vector<8x1xf32>
    %308 = arith.addf %306, %307 : vector<8x1xf32>
    %309 = vector.broadcast %11 : vector<1x32xf32> to vector<8x32xf32>
    %310 = arith.mulf %301, %309 : vector<8x32xf32>
    %cst_99 = arith.constant dense<0.000000e+00> : vector<8xf32>
    %311 = vector.multi_reduction <add>, %310, %cst_99 [1] : vector<8x32xf32> to vector<8xf32>
    %312 = vector.shape_cast %311 : vector<8xf32> to vector<8x1xf32>
    %313 = arith.addf %239, %312 : vector<8x1xf32>
    %314 = vector.broadcast %15 : vector<1x1xf32> to vector<8x1xf32>
    %315 = arith.addf %313, %314 : vector<8x1xf32>
    %316 = vector.broadcast %12 : vector<1x32xf32> to vector<8x32xf32>
    %317 = arith.mulf %301, %316 : vector<8x32xf32>
    %cst_100 = arith.constant dense<0.000000e+00> : vector<8xf32>
    %318 = vector.multi_reduction <add>, %317, %cst_100 [1] : vector<8x32xf32> to vector<8xf32>
    %319 = vector.shape_cast %318 : vector<8xf32> to vector<8x1xf32>
    %320 = arith.addf %246, %319 : vector<8x1xf32>
    %321 = vector.broadcast %16 : vector<1x1xf32> to vector<8x1xf32>
    %322 = arith.addf %320, %321 : vector<8x1xf32>
    %323 = vector.broadcast %13 : vector<1x32xf32> to vector<8x32xf32>
    %324 = arith.mulf %301, %323 : vector<8x32xf32>
    %cst_101 = arith.constant dense<0.000000e+00> : vector<8xf32>
    %325 = vector.multi_reduction <add>, %324, %cst_101 [1] : vector<8x32xf32> to vector<8xf32>
    %326 = vector.shape_cast %325 : vector<8xf32> to vector<8x1xf32>
    %327 = arith.addf %253, %326 : vector<8x1xf32>
    %328 = vector.broadcast %17 : vector<1x1xf32> to vector<8x1xf32>
    %329 = arith.addf %327, %328 : vector<8x1xf32>
    %330 = vector.broadcast %308 : vector<8x1xf32> to vector<8x4xf32>
    %331 = vector.broadcast %18 : vector<1x4xf32> to vector<8x4xf32>
    %332 = arith.mulf %330, %331 : vector<8x4xf32>
    %333 = vector.broadcast %315 : vector<8x1xf32> to vector<8x4xf32>
    %334 = vector.broadcast %19 : vector<1x4xf32> to vector<8x4xf32>
    %335 = arith.mulf %333, %334 : vector<8x4xf32>
    %336 = arith.addf %332, %335 : vector<8x4xf32>
    %337 = vector.broadcast %322 : vector<8x1xf32> to vector<8x4xf32>
    %338 = vector.broadcast %20 : vector<1x4xf32> to vector<8x4xf32>
    %339 = arith.mulf %337, %338 : vector<8x4xf32>
    %340 = arith.addf %336, %339 : vector<8x4xf32>
    %341 = vector.broadcast %329 : vector<8x1xf32> to vector<8x4xf32>
    %342 = vector.broadcast %21 : vector<1x4xf32> to vector<8x4xf32>
    %343 = arith.mulf %341, %342 : vector<8x4xf32>
    %344 = arith.addf %340, %343 : vector<8x4xf32>
    %c0_102 = arith.constant 0 : index
    %c16 = arith.constant 16 : index
    %345 = vector.load %arg10[%c0_102, %c16] : memref<8x128xf32, #tpu.memory_space<vmem>>, vector<8x4xf32>
    tpu.vector_store %arg10[%c0_102, %c16], %344 {strides = array<i32>} : memref<8x128xf32, #tpu.memory_space<vmem>>, vector<8x4xf32>,
    %c0_103 = arith.constant 0 : index
    %c16_104 = arith.constant 16 : index
    %346 = vector.load %arg9[%c0_103, %c16_104] : memref<8x128xf32, #tpu.memory_space<vmem>>, vector<8x1xf32>
    tpu.vector_store %arg9[%c0_103, %c16_104], %308 {strides = array<i32>} : memref<8x128xf32, #tpu.memory_space<vmem>>, vector<8x1xf32>,
    %c0_105 = arith.constant 0 : index
    %c17 = arith.constant 17 : index
    %347 = vector.load %arg9[%c0_105, %c17] : memref<8x128xf32, #tpu.memory_space<vmem>>, vector<8x1xf32>
    tpu.vector_store %arg9[%c0_105, %c17], %315 {strides = array<i32>} : memref<8x128xf32, #tpu.memory_space<vmem>>, vector<8x1xf32>,
    %c0_106 = arith.constant 0 : index
    %c18 = arith.constant 18 : index
    %348 = vector.load %arg9[%c0_106, %c18] : memref<8x128xf32, #tpu.memory_space<vmem>>, vector<8x1xf32>
    tpu.vector_store %arg9[%c0_106, %c18], %322 {strides = array<i32>} : memref<8x128xf32, #tpu.memory_space<vmem>>, vector<8x1xf32>,
    %c0_107 = arith.constant 0 : index
    %c19 = arith.constant 19 : index
    %349 = vector.load %arg9[%c0_107, %c19] : memref<8x128xf32, #tpu.memory_space<vmem>>, vector<8x1xf32>
    tpu.vector_store %arg9[%c0_107, %c19], %329 {strides = array<i32>} : memref<8x128xf32, #tpu.memory_space<vmem>>, vector<8x1xf32>,
    %350 = vector.broadcast %308 : vector<8x1xf32> to vector<8x32xf32>
    %351 = vector.broadcast %4 : vector<1x32xf32> to vector<8x32xf32>
    %352 = arith.mulf %350, %351 : vector<8x32xf32>
    %353 = vector.broadcast %3 : vector<1x32xf32> to vector<8x32xf32>
    %354 = arith.addf %353, %352 : vector<8x32xf32>
    %355 = vector.broadcast %315 : vector<8x1xf32> to vector<8x32xf32>
    %356 = vector.broadcast %5 : vector<1x32xf32> to vector<8x32xf32>
    %357 = arith.mulf %355, %356 : vector<8x32xf32>
    %358 = arith.addf %354, %357 : vector<8x32xf32>
    %359 = vector.broadcast %322 : vector<8x1xf32> to vector<8x32xf32>
    %360 = vector.broadcast %6 : vector<1x32xf32> to vector<8x32xf32>
    %361 = arith.mulf %359, %360 : vector<8x32xf32>
    %362 = arith.addf %358, %361 : vector<8x32xf32>
    %363 = vector.broadcast %329 : vector<8x1xf32> to vector<8x32xf32>
    %364 = vector.broadcast %7 : vector<1x32xf32> to vector<8x32xf32>
    %365 = arith.mulf %363, %364 : vector<8x32xf32>
    %366 = arith.addf %362, %365 : vector<8x32xf32>
    %c0_108 = arith.constant 0 : index
    %c16_109 = arith.constant 16 : index
    %367 = vector.load %arg1[%c0_108, %c16_109] : memref<8x128xf32, #tpu.memory_space<vmem>>, vector<8x1xf32>
    %368 = vector.broadcast %367 : vector<8x1xf32> to vector<8x32xf32>
    %369 = vector.broadcast %8 : vector<1x32xf32> to vector<8x32xf32>
    %370 = arith.mulf %368, %369 : vector<8x32xf32>
    %371 = arith.addf %366, %370 : vector<8x32xf32>
    %c0_110 = arith.constant 0 : index
    %c17_111 = arith.constant 17 : index
    %372 = vector.load %arg1[%c0_110, %c17_111] : memref<8x128xf32, #tpu.memory_space<vmem>>, vector<8x1xf32>
    %373 = vector.broadcast %372 : vector<8x1xf32> to vector<8x32xf32>
    %374 = vector.broadcast %9 : vector<1x32xf32> to vector<8x32xf32>
    %375 = arith.mulf %373, %374 : vector<8x32xf32>
    %376 = arith.addf %371, %375 : vector<8x32xf32>
    %377 = math.tanh %376 : vector<8x32xf32>
    %378 = vector.broadcast %10 : vector<1x32xf32> to vector<8x32xf32>
    %379 = arith.mulf %377, %378 : vector<8x32xf32>
    %cst_112 = arith.constant dense<0.000000e+00> : vector<8xf32>
    %380 = vector.multi_reduction <add>, %379, %cst_112 [1] : vector<8x32xf32> to vector<8xf32>
    %381 = vector.shape_cast %380 : vector<8xf32> to vector<8x1xf32>
    %382 = arith.addf %308, %381 : vector<8x1xf32>
    %383 = vector.broadcast %14 : vector<1x1xf32> to vector<8x1xf32>
    %384 = arith.addf %382, %383 : vector<8x1xf32>
    %385 = vector.broadcast %11 : vector<1x32xf32> to vector<8x32xf32>
    %386 = arith.mulf %377, %385 : vector<8x32xf32>
    %cst_113 = arith.constant dense<0.000000e+00> : vector<8xf32>
    %387 = vector.multi_reduction <add>, %386, %cst_113 [1] : vector<8x32xf32> to vector<8xf32>
    %388 = vector.shape_cast %387 : vector<8xf32> to vector<8x1xf32>
    %389 = arith.addf %315, %388 : vector<8x1xf32>
    %390 = vector.broadcast %15 : vector<1x1xf32> to vector<8x1xf32>
    %391 = arith.addf %389, %390 : vector<8x1xf32>
    %392 = vector.broadcast %12 : vector<1x32xf32> to vector<8x32xf32>
    %393 = arith.mulf %377, %392 : vector<8x32xf32>
    %cst_114 = arith.constant dense<0.000000e+00> : vector<8xf32>
    %394 = vector.multi_reduction <add>, %393, %cst_114 [1] : vector<8x32xf32> to vector<8xf32>
    %395 = vector.shape_cast %394 : vector<8xf32> to vector<8x1xf32>
    %396 = arith.addf %322, %395 : vector<8x1xf32>
    %397 = vector.broadcast %16 : vector<1x1xf32> to vector<8x1xf32>
    %398 = arith.addf %396, %397 : vector<8x1xf32>
    %399 = vector.broadcast %13 : vector<1x32xf32> to vector<8x32xf32>
    %400 = arith.mulf %377, %399 : vector<8x32xf32>
    %cst_115 = arith.constant dense<0.000000e+00> : vector<8xf32>
    %401 = vector.multi_reduction <add>, %400, %cst_115 [1] : vector<8x32xf32> to vector<8xf32>
    %402 = vector.shape_cast %401 : vector<8xf32> to vector<8x1xf32>
    %403 = arith.addf %329, %402 : vector<8x1xf32>
    %404 = vector.broadcast %17 : vector<1x1xf32> to vector<8x1xf32>
    %405 = arith.addf %403, %404 : vector<8x1xf32>
    %406 = vector.broadcast %384 : vector<8x1xf32> to vector<8x4xf32>
    %407 = vector.broadcast %18 : vector<1x4xf32> to vector<8x4xf32>
    %408 = arith.mulf %406, %407 : vector<8x4xf32>
    %409 = vector.broadcast %391 : vector<8x1xf32> to vector<8x4xf32>
    %410 = vector.broadcast %19 : vector<1x4xf32> to vector<8x4xf32>
    %411 = arith.mulf %409, %410 : vector<8x4xf32>
    %412 = arith.addf %408, %411 : vector<8x4xf32>
    %413 = vector.broadcast %398 : vector<8x1xf32> to vector<8x4xf32>
    %414 = vector.broadcast %20 : vector<1x4xf32> to vector<8x4xf32>
    %415 = arith.mulf %413, %414 : vector<8x4xf32>
    %416 = arith.addf %412, %415 : vector<8x4xf32>
    %417 = vector.broadcast %405 : vector<8x1xf32> to vector<8x4xf32>
    %418 = vector.broadcast %21 : vector<1x4xf32> to vector<8x4xf32>
    %419 = arith.mulf %417, %418 : vector<8x4xf32>
    %420 = arith.addf %416, %419 : vector<8x4xf32>
    %c0_116 = arith.constant 0 : index
    %c20 = arith.constant 20 : index
    %421 = vector.load %arg10[%c0_116, %c20] : memref<8x128xf32, #tpu.memory_space<vmem>>, vector<8x4xf32>
    tpu.vector_store %arg10[%c0_116, %c20], %420 {strides = array<i32>} : memref<8x128xf32, #tpu.memory_space<vmem>>, vector<8x4xf32>,
    %c0_117 = arith.constant 0 : index
    %c20_118 = arith.constant 20 : index
    %422 = vector.load %arg9[%c0_117, %c20_118] : memref<8x128xf32, #tpu.memory_space<vmem>>, vector<8x1xf32>
    tpu.vector_store %arg9[%c0_117, %c20_118], %384 {strides = array<i32>} : memref<8x128xf32, #tpu.memory_space<vmem>>, vector<8x1xf32>,
    %c0_119 = arith.constant 0 : index
    %c21 = arith.constant 21 : index
    %423 = vector.load %arg9[%c0_119, %c21] : memref<8x128xf32, #tpu.memory_space<vmem>>, vector<8x1xf32>
    tpu.vector_store %arg9[%c0_119, %c21], %391 {strides = array<i32>} : memref<8x128xf32, #tpu.memory_space<vmem>>, vector<8x1xf32>,
    %c0_120 = arith.constant 0 : index
    %c22 = arith.constant 22 : index
    %424 = vector.load %arg9[%c0_120, %c22] : memref<8x128xf32, #tpu.memory_space<vmem>>, vector<8x1xf32>
    tpu.vector_store %arg9[%c0_120, %c22], %398 {strides = array<i32>} : memref<8x128xf32, #tpu.memory_space<vmem>>, vector<8x1xf32>,
    %c0_121 = arith.constant 0 : index
    %c23 = arith.constant 23 : index
    %425 = vector.load %arg9[%c0_121, %c23] : memref<8x128xf32, #tpu.memory_space<vmem>>, vector<8x1xf32>
    tpu.vector_store %arg9[%c0_121, %c23], %405 {strides = array<i32>} : memref<8x128xf32, #tpu.memory_space<vmem>>, vector<8x1xf32>,
    %426 = vector.broadcast %384 : vector<8x1xf32> to vector<8x32xf32>
    %427 = vector.broadcast %4 : vector<1x32xf32> to vector<8x32xf32>
    %428 = arith.mulf %426, %427 : vector<8x32xf32>
    %429 = vector.broadcast %3 : vector<1x32xf32> to vector<8x32xf32>
    %430 = arith.addf %429, %428 : vector<8x32xf32>
    %431 = vector.broadcast %391 : vector<8x1xf32> to vector<8x32xf32>
    %432 = vector.broadcast %5 : vector<1x32xf32> to vector<8x32xf32>
    %433 = arith.mulf %431, %432 : vector<8x32xf32>
    %434 = arith.addf %430, %433 : vector<8x32xf32>
    %435 = vector.broadcast %398 : vector<8x1xf32> to vector<8x32xf32>
    %436 = vector.broadcast %6 : vector<1x32xf32> to vector<8x32xf32>
    %437 = arith.mulf %435, %436 : vector<8x32xf32>
    %438 = arith.addf %434, %437 : vector<8x32xf32>
    %439 = vector.broadcast %405 : vector<8x1xf32> to vector<8x32xf32>
    %440 = vector.broadcast %7 : vector<1x32xf32> to vector<8x32xf32>
    %441 = arith.mulf %439, %440 : vector<8x32xf32>
    %442 = arith.addf %438, %441 : vector<8x32xf32>
    %c0_122 = arith.constant 0 : index
    %c20_123 = arith.constant 20 : index
    %443 = vector.load %arg1[%c0_122, %c20_123] : memref<8x128xf32, #tpu.memory_space<vmem>>, vector<8x1xf32>
    %444 = vector.broadcast %443 : vector<8x1xf32> to vector<8x32xf32>
    %445 = vector.broadcast %8 : vector<1x32xf32> to vector<8x32xf32>
    %446 = arith.mulf %444, %445 : vector<8x32xf32>
    %447 = arith.addf %442, %446 : vector<8x32xf32>
    %c0_124 = arith.constant 0 : index
    %c21_125 = arith.constant 21 : index
    %448 = vector.load %arg1[%c0_124, %c21_125] : memref<8x128xf32, #tpu.memory_space<vmem>>, vector<8x1xf32>
    %449 = vector.broadcast %448 : vector<8x1xf32> to vector<8x32xf32>
    %450 = vector.broadcast %9 : vector<1x32xf32> to vector<8x32xf32>
    %451 = arith.mulf %449, %450 : vector<8x32xf32>
    %452 = arith.addf %447, %451 : vector<8x32xf32>
    %453 = math.tanh %452 : vector<8x32xf32>
    %454 = vector.broadcast %10 : vector<1x32xf32> to vector<8x32xf32>
    %455 = arith.mulf %453, %454 : vector<8x32xf32>
    %cst_126 = arith.constant dense<0.000000e+00> : vector<8xf32>
    %456 = vector.multi_reduction <add>, %455, %cst_126 [1] : vector<8x32xf32> to vector<8xf32>
    %457 = vector.shape_cast %456 : vector<8xf32> to vector<8x1xf32>
    %458 = arith.addf %384, %457 : vector<8x1xf32>
    %459 = vector.broadcast %14 : vector<1x1xf32> to vector<8x1xf32>
    %460 = arith.addf %458, %459 : vector<8x1xf32>
    %461 = vector.broadcast %11 : vector<1x32xf32> to vector<8x32xf32>
    %462 = arith.mulf %453, %461 : vector<8x32xf32>
    %cst_127 = arith.constant dense<0.000000e+00> : vector<8xf32>
    %463 = vector.multi_reduction <add>, %462, %cst_127 [1] : vector<8x32xf32> to vector<8xf32>
    %464 = vector.shape_cast %463 : vector<8xf32> to vector<8x1xf32>
    %465 = arith.addf %391, %464 : vector<8x1xf32>
    %466 = vector.broadcast %15 : vector<1x1xf32> to vector<8x1xf32>
    %467 = arith.addf %465, %466 : vector<8x1xf32>
    %468 = vector.broadcast %12 : vector<1x32xf32> to vector<8x32xf32>
    %469 = arith.mulf %453, %468 : vector<8x32xf32>
    %cst_128 = arith.constant dense<0.000000e+00> : vector<8xf32>
    %470 = vector.multi_reduction <add>, %469, %cst_128 [1] : vector<8x32xf32> to vector<8xf32>
    %471 = vector.shape_cast %470 : vector<8xf32> to vector<8x1xf32>
    %472 = arith.addf %398, %471 : vector<8x1xf32>
    %473 = vector.broadcast %16 : vector<1x1xf32> to vector<8x1xf32>
    %474 = arith.addf %472, %473 : vector<8x1xf32>
    %475 = vector.broadcast %13 : vector<1x32xf32> to vector<8x32xf32>
    %476 = arith.mulf %453, %475 : vector<8x32xf32>
    %cst_129 = arith.constant dense<0.000000e+00> : vector<8xf32>
    %477 = vector.multi_reduction <add>, %476, %cst_129 [1] : vector<8x32xf32> to vector<8xf32>
    %478 = vector.shape_cast %477 : vector<8xf32> to vector<8x1xf32>
    %479 = arith.addf %405, %478 : vector<8x1xf32>
    %480 = vector.broadcast %17 : vector<1x1xf32> to vector<8x1xf32>
    %481 = arith.addf %479, %480 : vector<8x1xf32>
    %482 = vector.broadcast %460 : vector<8x1xf32> to vector<8x4xf32>
    %483 = vector.broadcast %18 : vector<1x4xf32> to vector<8x4xf32>
    %484 = arith.mulf %482, %483 : vector<8x4xf32>
    %485 = vector.broadcast %467 : vector<8x1xf32> to vector<8x4xf32>
    %486 = vector.broadcast %19 : vector<1x4xf32> to vector<8x4xf32>
    %487 = arith.mulf %485, %486 : vector<8x4xf32>
    %488 = arith.addf %484, %487 : vector<8x4xf32>
    %489 = vector.broadcast %474 : vector<8x1xf32> to vector<8x4xf32>
    %490 = vector.broadcast %20 : vector<1x4xf32> to vector<8x4xf32>
    %491 = arith.mulf %489, %490 : vector<8x4xf32>
    %492 = arith.addf %488, %491 : vector<8x4xf32>
    %493 = vector.broadcast %481 : vector<8x1xf32> to vector<8x4xf32>
    %494 = vector.broadcast %21 : vector<1x4xf32> to vector<8x4xf32>
    %495 = arith.mulf %493, %494 : vector<8x4xf32>
    %496 = arith.addf %492, %495 : vector<8x4xf32>
    %c0_130 = arith.constant 0 : index
    %c24 = arith.constant 24 : index
    %497 = vector.load %arg10[%c0_130, %c24] : memref<8x128xf32, #tpu.memory_space<vmem>>, vector<8x4xf32>
    tpu.vector_store %arg10[%c0_130, %c24], %496 {strides = array<i32>} : memref<8x128xf32, #tpu.memory_space<vmem>>, vector<8x4xf32>,
    %c0_131 = arith.constant 0 : index
    %c24_132 = arith.constant 24 : index
    %498 = vector.load %arg9[%c0_131, %c24_132] : memref<8x128xf32, #tpu.memory_space<vmem>>, vector<8x1xf32>
    tpu.vector_store %arg9[%c0_131, %c24_132], %460 {strides = array<i32>} : memref<8x128xf32, #tpu.memory_space<vmem>>, vector<8x1xf32>,
    %c0_133 = arith.constant 0 : index
    %c25 = arith.constant 25 : index
    %499 = vector.load %arg9[%c0_133, %c25] : memref<8x128xf32, #tpu.memory_space<vmem>>, vector<8x1xf32>
    tpu.vector_store %arg9[%c0_133, %c25], %467 {strides = array<i32>} : memref<8x128xf32, #tpu.memory_space<vmem>>, vector<8x1xf32>,
    %c0_134 = arith.constant 0 : index
    %c26 = arith.constant 26 : index
    %500 = vector.load %arg9[%c0_134, %c26] : memref<8x128xf32, #tpu.memory_space<vmem>>, vector<8x1xf32>
    tpu.vector_store %arg9[%c0_134, %c26], %474 {strides = array<i32>} : memref<8x128xf32, #tpu.memory_space<vmem>>, vector<8x1xf32>,
    %c0_135 = arith.constant 0 : index
    %c27 = arith.constant 27 : index
    %501 = vector.load %arg9[%c0_135, %c27] : memref<8x128xf32, #tpu.memory_space<vmem>>, vector<8x1xf32>
    tpu.vector_store %arg9[%c0_135, %c27], %481 {strides = array<i32>} : memref<8x128xf32, #tpu.memory_space<vmem>>, vector<8x1xf32>,
    %502 = vector.broadcast %460 : vector<8x1xf32> to vector<8x32xf32>
    %503 = vector.broadcast %4 : vector<1x32xf32> to vector<8x32xf32>
    %504 = arith.mulf %502, %503 : vector<8x32xf32>
    %505 = vector.broadcast %3 : vector<1x32xf32> to vector<8x32xf32>
    %506 = arith.addf %505, %504 : vector<8x32xf32>
    %507 = vector.broadcast %467 : vector<8x1xf32> to vector<8x32xf32>
    %508 = vector.broadcast %5 : vector<1x32xf32> to vector<8x32xf32>
    %509 = arith.mulf %507, %508 : vector<8x32xf32>
    %510 = arith.addf %506, %509 : vector<8x32xf32>
    %511 = vector.broadcast %474 : vector<8x1xf32> to vector<8x32xf32>
    %512 = vector.broadcast %6 : vector<1x32xf32> to vector<8x32xf32>
    %513 = arith.mulf %511, %512 : vector<8x32xf32>
    %514 = arith.addf %510, %513 : vector<8x32xf32>
    %515 = vector.broadcast %481 : vector<8x1xf32> to vector<8x32xf32>
    %516 = vector.broadcast %7 : vector<1x32xf32> to vector<8x32xf32>
    %517 = arith.mulf %515, %516 : vector<8x32xf32>
    %518 = arith.addf %514, %517 : vector<8x32xf32>
    %c0_136 = arith.constant 0 : index
    %c24_137 = arith.constant 24 : index
    %519 = vector.load %arg1[%c0_136, %c24_137] : memref<8x128xf32, #tpu.memory_space<vmem>>, vector<8x1xf32>
    %520 = vector.broadcast %519 : vector<8x1xf32> to vector<8x32xf32>
    %521 = vector.broadcast %8 : vector<1x32xf32> to vector<8x32xf32>
    %522 = arith.mulf %520, %521 : vector<8x32xf32>
    %523 = arith.addf %518, %522 : vector<8x32xf32>
    %c0_138 = arith.constant 0 : index
    %c25_139 = arith.constant 25 : index
    %524 = vector.load %arg1[%c0_138, %c25_139] : memref<8x128xf32, #tpu.memory_space<vmem>>, vector<8x1xf32>
    %525 = vector.broadcast %524 : vector<8x1xf32> to vector<8x32xf32>
    %526 = vector.broadcast %9 : vector<1x32xf32> to vector<8x32xf32>
    %527 = arith.mulf %525, %526 : vector<8x32xf32>
    %528 = arith.addf %523, %527 : vector<8x32xf32>
    %529 = math.tanh %528 : vector<8x32xf32>
    %530 = vector.broadcast %10 : vector<1x32xf32> to vector<8x32xf32>
    %531 = arith.mulf %529, %530 : vector<8x32xf32>
    %cst_140 = arith.constant dense<0.000000e+00> : vector<8xf32>
    %532 = vector.multi_reduction <add>, %531, %cst_140 [1] : vector<8x32xf32> to vector<8xf32>
    %533 = vector.shape_cast %532 : vector<8xf32> to vector<8x1xf32>
    %534 = arith.addf %460, %533 : vector<8x1xf32>
    %535 = vector.broadcast %14 : vector<1x1xf32> to vector<8x1xf32>
    %536 = arith.addf %534, %535 : vector<8x1xf32>
    %537 = vector.broadcast %11 : vector<1x32xf32> to vector<8x32xf32>
    %538 = arith.mulf %529, %537 : vector<8x32xf32>
    %cst_141 = arith.constant dense<0.000000e+00> : vector<8xf32>
    %539 = vector.multi_reduction <add>, %538, %cst_141 [1] : vector<8x32xf32> to vector<8xf32>
    %540 = vector.shape_cast %539 : vector<8xf32> to vector<8x1xf32>
    %541 = arith.addf %467, %540 : vector<8x1xf32>
    %542 = vector.broadcast %15 : vector<1x1xf32> to vector<8x1xf32>
    %543 = arith.addf %541, %542 : vector<8x1xf32>
    %544 = vector.broadcast %12 : vector<1x32xf32> to vector<8x32xf32>
    %545 = arith.mulf %529, %544 : vector<8x32xf32>
    %cst_142 = arith.constant dense<0.000000e+00> : vector<8xf32>
    %546 = vector.multi_reduction <add>, %545, %cst_142 [1] : vector<8x32xf32> to vector<8xf32>
    %547 = vector.shape_cast %546 : vector<8xf32> to vector<8x1xf32>
    %548 = arith.addf %474, %547 : vector<8x1xf32>
    %549 = vector.broadcast %16 : vector<1x1xf32> to vector<8x1xf32>
    %550 = arith.addf %548, %549 : vector<8x1xf32>
    %551 = vector.broadcast %13 : vector<1x32xf32> to vector<8x32xf32>
    %552 = arith.mulf %529, %551 : vector<8x32xf32>
    %cst_143 = arith.constant dense<0.000000e+00> : vector<8xf32>
    %553 = vector.multi_reduction <add>, %552, %cst_143 [1] : vector<8x32xf32> to vector<8xf32>
    %554 = vector.shape_cast %553 : vector<8xf32> to vector<8x1xf32>
    %555 = arith.addf %481, %554 : vector<8x1xf32>
    %556 = vector.broadcast %17 : vector<1x1xf32> to vector<8x1xf32>
    %557 = arith.addf %555, %556 : vector<8x1xf32>
    %558 = vector.broadcast %536 : vector<8x1xf32> to vector<8x4xf32>
    %559 = vector.broadcast %18 : vector<1x4xf32> to vector<8x4xf32>
    %560 = arith.mulf %558, %559 : vector<8x4xf32>
    %561 = vector.broadcast %543 : vector<8x1xf32> to vector<8x4xf32>
    %562 = vector.broadcast %19 : vector<1x4xf32> to vector<8x4xf32>
    %563 = arith.mulf %561, %562 : vector<8x4xf32>
    %564 = arith.addf %560, %563 : vector<8x4xf32>
    %565 = vector.broadcast %550 : vector<8x1xf32> to vector<8x4xf32>
    %566 = vector.broadcast %20 : vector<1x4xf32> to vector<8x4xf32>
    %567 = arith.mulf %565, %566 : vector<8x4xf32>
    %568 = arith.addf %564, %567 : vector<8x4xf32>
    %569 = vector.broadcast %557 : vector<8x1xf32> to vector<8x4xf32>
    %570 = vector.broadcast %21 : vector<1x4xf32> to vector<8x4xf32>
    %571 = arith.mulf %569, %570 : vector<8x4xf32>
    %572 = arith.addf %568, %571 : vector<8x4xf32>
    %c0_144 = arith.constant 0 : index
    %c28 = arith.constant 28 : index
    %573 = vector.load %arg10[%c0_144, %c28] : memref<8x128xf32, #tpu.memory_space<vmem>>, vector<8x4xf32>
    tpu.vector_store %arg10[%c0_144, %c28], %572 {strides = array<i32>} : memref<8x128xf32, #tpu.memory_space<vmem>>, vector<8x4xf32>,
    %c0_145 = arith.constant 0 : index
    %c28_146 = arith.constant 28 : index
    %574 = vector.load %arg9[%c0_145, %c28_146] : memref<8x128xf32, #tpu.memory_space<vmem>>, vector<8x1xf32>
    tpu.vector_store %arg9[%c0_145, %c28_146], %536 {strides = array<i32>} : memref<8x128xf32, #tpu.memory_space<vmem>>, vector<8x1xf32>,
    %c0_147 = arith.constant 0 : index
    %c29 = arith.constant 29 : index
    %575 = vector.load %arg9[%c0_147, %c29] : memref<8x128xf32, #tpu.memory_space<vmem>>, vector<8x1xf32>
    tpu.vector_store %arg9[%c0_147, %c29], %543 {strides = array<i32>} : memref<8x128xf32, #tpu.memory_space<vmem>>, vector<8x1xf32>,
    %c0_148 = arith.constant 0 : index
    %c30 = arith.constant 30 : index
    %576 = vector.load %arg9[%c0_148, %c30] : memref<8x128xf32, #tpu.memory_space<vmem>>, vector<8x1xf32>
    tpu.vector_store %arg9[%c0_148, %c30], %550 {strides = array<i32>} : memref<8x128xf32, #tpu.memory_space<vmem>>, vector<8x1xf32>,
    %c0_149 = arith.constant 0 : index
    %c31 = arith.constant 31 : index
    %577 = vector.load %arg9[%c0_149, %c31] : memref<8x128xf32, #tpu.memory_space<vmem>>, vector<8x1xf32>
    tpu.vector_store %arg9[%c0_149, %c31], %557 {strides = array<i32>} : memref<8x128xf32, #tpu.memory_space<vmem>>, vector<8x1xf32>,
    %578 = vector.broadcast %536 : vector<8x1xf32> to vector<8x32xf32>
    %579 = vector.broadcast %4 : vector<1x32xf32> to vector<8x32xf32>
    %580 = arith.mulf %578, %579 : vector<8x32xf32>
    %581 = vector.broadcast %3 : vector<1x32xf32> to vector<8x32xf32>
    %582 = arith.addf %581, %580 : vector<8x32xf32>
    %583 = vector.broadcast %543 : vector<8x1xf32> to vector<8x32xf32>
    %584 = vector.broadcast %5 : vector<1x32xf32> to vector<8x32xf32>
    %585 = arith.mulf %583, %584 : vector<8x32xf32>
    %586 = arith.addf %582, %585 : vector<8x32xf32>
    %587 = vector.broadcast %550 : vector<8x1xf32> to vector<8x32xf32>
    %588 = vector.broadcast %6 : vector<1x32xf32> to vector<8x32xf32>
    %589 = arith.mulf %587, %588 : vector<8x32xf32>
    %590 = arith.addf %586, %589 : vector<8x32xf32>
    %591 = vector.broadcast %557 : vector<8x1xf32> to vector<8x32xf32>
    %592 = vector.broadcast %7 : vector<1x32xf32> to vector<8x32xf32>
    %593 = arith.mulf %591, %592 : vector<8x32xf32>
    %594 = arith.addf %590, %593 : vector<8x32xf32>
    %c0_150 = arith.constant 0 : index
    %c28_151 = arith.constant 28 : index
    %595 = vector.load %arg1[%c0_150, %c28_151] : memref<8x128xf32, #tpu.memory_space<vmem>>, vector<8x1xf32>
    %596 = vector.broadcast %595 : vector<8x1xf32> to vector<8x32xf32>
    %597 = vector.broadcast %8 : vector<1x32xf32> to vector<8x32xf32>
    %598 = arith.mulf %596, %597 : vector<8x32xf32>
    %599 = arith.addf %594, %598 : vector<8x32xf32>
    %c0_152 = arith.constant 0 : index
    %c29_153 = arith.constant 29 : index
    %600 = vector.load %arg1[%c0_152, %c29_153] : memref<8x128xf32, #tpu.memory_space<vmem>>, vector<8x1xf32>
    %601 = vector.broadcast %600 : vector<8x1xf32> to vector<8x32xf32>
    %602 = vector.broadcast %9 : vector<1x32xf32> to vector<8x32xf32>
    %603 = arith.mulf %601, %602 : vector<8x32xf32>
    %604 = arith.addf %599, %603 : vector<8x32xf32>
    %605 = math.tanh %604 : vector<8x32xf32>
    %606 = vector.broadcast %10 : vector<1x32xf32> to vector<8x32xf32>
    %607 = arith.mulf %605, %606 : vector<8x32xf32>
    %cst_154 = arith.constant dense<0.000000e+00> : vector<8xf32>
    %608 = vector.multi_reduction <add>, %607, %cst_154 [1] : vector<8x32xf32> to vector<8xf32>
    %609 = vector.shape_cast %608 : vector<8xf32> to vector<8x1xf32>
    %610 = arith.addf %536, %609 : vector<8x1xf32>
    %611 = vector.broadcast %14 : vector<1x1xf32> to vector<8x1xf32>
    %612 = arith.addf %610, %611 : vector<8x1xf32>
    %613 = vector.broadcast %11 : vector<1x32xf32> to vector<8x32xf32>
    %614 = arith.mulf %605, %613 : vector<8x32xf32>
    %cst_155 = arith.constant dense<0.000000e+00> : vector<8xf32>
    %615 = vector.multi_reduction <add>, %614, %cst_155 [1] : vector<8x32xf32> to vector<8xf32>
    %616 = vector.shape_cast %615 : vector<8xf32> to vector<8x1xf32>
    %617 = arith.addf %543, %616 : vector<8x1xf32>
    %618 = vector.broadcast %15 : vector<1x1xf32> to vector<8x1xf32>
    %619 = arith.addf %617, %618 : vector<8x1xf32>
    %620 = vector.broadcast %12 : vector<1x32xf32> to vector<8x32xf32>
    %621 = arith.mulf %605, %620 : vector<8x32xf32>
    %cst_156 = arith.constant dense<0.000000e+00> : vector<8xf32>
    %622 = vector.multi_reduction <add>, %621, %cst_156 [1] : vector<8x32xf32> to vector<8xf32>
    %623 = vector.shape_cast %622 : vector<8xf32> to vector<8x1xf32>
    %624 = arith.addf %550, %623 : vector<8x1xf32>
    %625 = vector.broadcast %16 : vector<1x1xf32> to vector<8x1xf32>
    %626 = arith.addf %624, %625 : vector<8x1xf32>
    %627 = vector.broadcast %13 : vector<1x32xf32> to vector<8x32xf32>
    %628 = arith.mulf %605, %627 : vector<8x32xf32>
    %cst_157 = arith.constant dense<0.000000e+00> : vector<8xf32>
    %629 = vector.multi_reduction <add>, %628, %cst_157 [1] : vector<8x32xf32> to vector<8xf32>
    %630 = vector.shape_cast %629 : vector<8xf32> to vector<8x1xf32>
    %631 = arith.addf %557, %630 : vector<8x1xf32>
    %632 = vector.broadcast %17 : vector<1x1xf32> to vector<8x1xf32>
    %633 = arith.addf %631, %632 : vector<8x1xf32>
    %634 = vector.broadcast %612 : vector<8x1xf32> to vector<8x4xf32>
    %635 = vector.broadcast %18 : vector<1x4xf32> to vector<8x4xf32>
    %636 = arith.mulf %634, %635 : vector<8x4xf32>
    %637 = vector.broadcast %619 : vector<8x1xf32> to vector<8x4xf32>
    %638 = vector.broadcast %19 : vector<1x4xf32> to vector<8x4xf32>
    %639 = arith.mulf %637, %638 : vector<8x4xf32>
    %640 = arith.addf %636, %639 : vector<8x4xf32>
    %641 = vector.broadcast %626 : vector<8x1xf32> to vector<8x4xf32>
    %642 = vector.broadcast %20 : vector<1x4xf32> to vector<8x4xf32>
    %643 = arith.mulf %641, %642 : vector<8x4xf32>
    %644 = arith.addf %640, %643 : vector<8x4xf32>
    %645 = vector.broadcast %633 : vector<8x1xf32> to vector<8x4xf32>
    %646 = vector.broadcast %21 : vector<1x4xf32> to vector<8x4xf32>
    %647 = arith.mulf %645, %646 : vector<8x4xf32>
    %648 = arith.addf %644, %647 : vector<8x4xf32>
    %c0_158 = arith.constant 0 : index
    %c32 = arith.constant 32 : index
    %649 = vector.load %arg10[%c0_158, %c32] : memref<8x128xf32, #tpu.memory_space<vmem>>, vector<8x4xf32>
    tpu.vector_store %arg10[%c0_158, %c32], %648 {strides = array<i32>} : memref<8x128xf32, #tpu.memory_space<vmem>>, vector<8x4xf32>,
    %c0_159 = arith.constant 0 : index
    %c32_160 = arith.constant 32 : index
    %650 = vector.load %arg9[%c0_159, %c32_160] : memref<8x128xf32, #tpu.memory_space<vmem>>, vector<8x1xf32>
    tpu.vector_store %arg9[%c0_159, %c32_160], %612 {strides = array<i32>} : memref<8x128xf32, #tpu.memory_space<vmem>>, vector<8x1xf32>,
    %c0_161 = arith.constant 0 : index
    %c33 = arith.constant 33 : index
    %651 = vector.load %arg9[%c0_161, %c33] : memref<8x128xf32, #tpu.memory_space<vmem>>, vector<8x1xf32>
    tpu.vector_store %arg9[%c0_161, %c33], %619 {strides = array<i32>} : memref<8x128xf32, #tpu.memory_space<vmem>>, vector<8x1xf32>,
    %c0_162 = arith.constant 0 : index
    %c34 = arith.constant 34 : index
    %652 = vector.load %arg9[%c0_162, %c34] : memref<8x128xf32, #tpu.memory_space<vmem>>, vector<8x1xf32>
    tpu.vector_store %arg9[%c0_162, %c34], %626 {strides = array<i32>} : memref<8x128xf32, #tpu.memory_space<vmem>>, vector<8x1xf32>,
    %c0_163 = arith.constant 0 : index
    %c35 = arith.constant 35 : index
    %653 = vector.load %arg9[%c0_163, %c35] : memref<8x128xf32, #tpu.memory_space<vmem>>, vector<8x1xf32>
    tpu.vector_store %arg9[%c0_163, %c35], %633 {strides = array<i32>} : memref<8x128xf32, #tpu.memory_space<vmem>>, vector<8x1xf32>,
    %654 = vector.broadcast %612 : vector<8x1xf32> to vector<8x32xf32>
    %655 = vector.broadcast %4 : vector<1x32xf32> to vector<8x32xf32>
    %656 = arith.mulf %654, %655 : vector<8x32xf32>
    %657 = vector.broadcast %3 : vector<1x32xf32> to vector<8x32xf32>
    %658 = arith.addf %657, %656 : vector<8x32xf32>
    %659 = vector.broadcast %619 : vector<8x1xf32> to vector<8x32xf32>
    %660 = vector.broadcast %5 : vector<1x32xf32> to vector<8x32xf32>
    %661 = arith.mulf %659, %660 : vector<8x32xf32>
    %662 = arith.addf %658, %661 : vector<8x32xf32>
    %663 = vector.broadcast %626 : vector<8x1xf32> to vector<8x32xf32>
    %664 = vector.broadcast %6 : vector<1x32xf32> to vector<8x32xf32>
    %665 = arith.mulf %663, %664 : vector<8x32xf32>
    %666 = arith.addf %662, %665 : vector<8x32xf32>
    %667 = vector.broadcast %633 : vector<8x1xf32> to vector<8x32xf32>
    %668 = vector.broadcast %7 : vector<1x32xf32> to vector<8x32xf32>
    %669 = arith.mulf %667, %668 : vector<8x32xf32>
    %670 = arith.addf %666, %669 : vector<8x32xf32>
    %c0_164 = arith.constant 0 : index
    %c32_165 = arith.constant 32 : index
    %671 = vector.load %arg1[%c0_164, %c32_165] : memref<8x128xf32, #tpu.memory_space<vmem>>, vector<8x1xf32>
    %672 = vector.broadcast %671 : vector<8x1xf32> to vector<8x32xf32>
    %673 = vector.broadcast %8 : vector<1x32xf32> to vector<8x32xf32>
    %674 = arith.mulf %672, %673 : vector<8x32xf32>
    %675 = arith.addf %670, %674 : vector<8x32xf32>
    %c0_166 = arith.constant 0 : index
    %c33_167 = arith.constant 33 : index
    %676 = vector.load %arg1[%c0_166, %c33_167] : memref<8x128xf32, #tpu.memory_space<vmem>>, vector<8x1xf32>
    %677 = vector.broadcast %676 : vector<8x1xf32> to vector<8x32xf32>
    %678 = vector.broadcast %9 : vector<1x32xf32> to vector<8x32xf32>
    %679 = arith.mulf %677, %678 : vector<8x32xf32>
    %680 = arith.addf %675, %679 : vector<8x32xf32>
    %681 = math.tanh %680 : vector<8x32xf32>
    %682 = vector.broadcast %10 : vector<1x32xf32> to vector<8x32xf32>
    %683 = arith.mulf %681, %682 : vector<8x32xf32>
    %cst_168 = arith.constant dense<0.000000e+00> : vector<8xf32>
    %684 = vector.multi_reduction <add>, %683, %cst_168 [1] : vector<8x32xf32> to vector<8xf32>
    %685 = vector.shape_cast %684 : vector<8xf32> to vector<8x1xf32>
    %686 = arith.addf %612, %685 : vector<8x1xf32>
    %687 = vector.broadcast %14 : vector<1x1xf32> to vector<8x1xf32>
    %688 = arith.addf %686, %687 : vector<8x1xf32>
    %689 = vector.broadcast %11 : vector<1x32xf32> to vector<8x32xf32>
    %690 = arith.mulf %681, %689 : vector<8x32xf32>
    %cst_169 = arith.constant dense<0.000000e+00> : vector<8xf32>
    %691 = vector.multi_reduction <add>, %690, %cst_169 [1] : vector<8x32xf32> to vector<8xf32>
    %692 = vector.shape_cast %691 : vector<8xf32> to vector<8x1xf32>
    %693 = arith.addf %619, %692 : vector<8x1xf32>
    %694 = vector.broadcast %15 : vector<1x1xf32> to vector<8x1xf32>
    %695 = arith.addf %693, %694 : vector<8x1xf32>
    %696 = vector.broadcast %12 : vector<1x32xf32> to vector<8x32xf32>
    %697 = arith.mulf %681, %696 : vector<8x32xf32>
    %cst_170 = arith.constant dense<0.000000e+00> : vector<8xf32>
    %698 = vector.multi_reduction <add>, %697, %cst_170 [1] : vector<8x32xf32> to vector<8xf32>
    %699 = vector.shape_cast %698 : vector<8xf32> to vector<8x1xf32>
    %700 = arith.addf %626, %699 : vector<8x1xf32>
    %701 = vector.broadcast %16 : vector<1x1xf32> to vector<8x1xf32>
    %702 = arith.addf %700, %701 : vector<8x1xf32>
    %703 = vector.broadcast %13 : vector<1x32xf32> to vector<8x32xf32>
    %704 = arith.mulf %681, %703 : vector<8x32xf32>
    %cst_171 = arith.constant dense<0.000000e+00> : vector<8xf32>
    %705 = vector.multi_reduction <add>, %704, %cst_171 [1] : vector<8x32xf32> to vector<8xf32>
    %706 = vector.shape_cast %705 : vector<8xf32> to vector<8x1xf32>
    %707 = arith.addf %633, %706 : vector<8x1xf32>
    %708 = vector.broadcast %17 : vector<1x1xf32> to vector<8x1xf32>
    %709 = arith.addf %707, %708 : vector<8x1xf32>
    %710 = vector.broadcast %688 : vector<8x1xf32> to vector<8x4xf32>
    %711 = vector.broadcast %18 : vector<1x4xf32> to vector<8x4xf32>
    %712 = arith.mulf %710, %711 : vector<8x4xf32>
    %713 = vector.broadcast %695 : vector<8x1xf32> to vector<8x4xf32>
    %714 = vector.broadcast %19 : vector<1x4xf32> to vector<8x4xf32>
    %715 = arith.mulf %713, %714 : vector<8x4xf32>
    %716 = arith.addf %712, %715 : vector<8x4xf32>
    %717 = vector.broadcast %702 : vector<8x1xf32> to vector<8x4xf32>
    %718 = vector.broadcast %20 : vector<1x4xf32> to vector<8x4xf32>
    %719 = arith.mulf %717, %718 : vector<8x4xf32>
    %720 = arith.addf %716, %719 : vector<8x4xf32>
    %721 = vector.broadcast %709 : vector<8x1xf32> to vector<8x4xf32>
    %722 = vector.broadcast %21 : vector<1x4xf32> to vector<8x4xf32>
    %723 = arith.mulf %721, %722 : vector<8x4xf32>
    %724 = arith.addf %720, %723 : vector<8x4xf32>
    %c0_172 = arith.constant 0 : index
    %c36 = arith.constant 36 : index
    %725 = vector.load %arg10[%c0_172, %c36] : memref<8x128xf32, #tpu.memory_space<vmem>>, vector<8x4xf32>
    tpu.vector_store %arg10[%c0_172, %c36], %724 {strides = array<i32>} : memref<8x128xf32, #tpu.memory_space<vmem>>, vector<8x4xf32>,
    %c0_173 = arith.constant 0 : index
    %c36_174 = arith.constant 36 : index
    %726 = vector.load %arg9[%c0_173, %c36_174] : memref<8x128xf32, #tpu.memory_space<vmem>>, vector<8x1xf32>
    tpu.vector_store %arg9[%c0_173, %c36_174], %688 {strides = array<i32>} : memref<8x128xf32, #tpu.memory_space<vmem>>, vector<8x1xf32>,
    %c0_175 = arith.constant 0 : index
    %c37 = arith.constant 37 : index
    %727 = vector.load %arg9[%c0_175, %c37] : memref<8x128xf32, #tpu.memory_space<vmem>>, vector<8x1xf32>
    tpu.vector_store %arg9[%c0_175, %c37], %695 {strides = array<i32>} : memref<8x128xf32, #tpu.memory_space<vmem>>, vector<8x1xf32>,
    %c0_176 = arith.constant 0 : index
    %c38 = arith.constant 38 : index
    %728 = vector.load %arg9[%c0_176, %c38] : memref<8x128xf32, #tpu.memory_space<vmem>>, vector<8x1xf32>
    tpu.vector_store %arg9[%c0_176, %c38], %702 {strides = array<i32>} : memref<8x128xf32, #tpu.memory_space<vmem>>, vector<8x1xf32>,
    %c0_177 = arith.constant 0 : index
    %c39 = arith.constant 39 : index
    %729 = vector.load %arg9[%c0_177, %c39] : memref<8x128xf32, #tpu.memory_space<vmem>>, vector<8x1xf32>
    tpu.vector_store %arg9[%c0_177, %c39], %709 {strides = array<i32>} : memref<8x128xf32, #tpu.memory_space<vmem>>, vector<8x1xf32>,
    %730 = vector.broadcast %688 : vector<8x1xf32> to vector<8x32xf32>
    %731 = vector.broadcast %4 : vector<1x32xf32> to vector<8x32xf32>
    %732 = arith.mulf %730, %731 : vector<8x32xf32>
    %733 = vector.broadcast %3 : vector<1x32xf32> to vector<8x32xf32>
    %734 = arith.addf %733, %732 : vector<8x32xf32>
    %735 = vector.broadcast %695 : vector<8x1xf32> to vector<8x32xf32>
    %736 = vector.broadcast %5 : vector<1x32xf32> to vector<8x32xf32>
    %737 = arith.mulf %735, %736 : vector<8x32xf32>
    %738 = arith.addf %734, %737 : vector<8x32xf32>
    %739 = vector.broadcast %702 : vector<8x1xf32> to vector<8x32xf32>
    %740 = vector.broadcast %6 : vector<1x32xf32> to vector<8x32xf32>
    %741 = arith.mulf %739, %740 : vector<8x32xf32>
    %742 = arith.addf %738, %741 : vector<8x32xf32>
    %743 = vector.broadcast %709 : vector<8x1xf32> to vector<8x32xf32>
    %744 = vector.broadcast %7 : vector<1x32xf32> to vector<8x32xf32>
    %745 = arith.mulf %743, %744 : vector<8x32xf32>
    %746 = arith.addf %742, %745 : vector<8x32xf32>
    %c0_178 = arith.constant 0 : index
    %c36_179 = arith.constant 36 : index
    %747 = vector.load %arg1[%c0_178, %c36_179] : memref<8x128xf32, #tpu.memory_space<vmem>>, vector<8x1xf32>
    %748 = vector.broadcast %747 : vector<8x1xf32> to vector<8x32xf32>
    %749 = vector.broadcast %8 : vector<1x32xf32> to vector<8x32xf32>
    %750 = arith.mulf %748, %749 : vector<8x32xf32>
    %751 = arith.addf %746, %750 : vector<8x32xf32>
    %c0_180 = arith.constant 0 : index
    %c37_181 = arith.constant 37 : index
    %752 = vector.load %arg1[%c0_180, %c37_181] : memref<8x128xf32, #tpu.memory_space<vmem>>, vector<8x1xf32>
    %753 = vector.broadcast %752 : vector<8x1xf32> to vector<8x32xf32>
    %754 = vector.broadcast %9 : vector<1x32xf32> to vector<8x32xf32>
    %755 = arith.mulf %753, %754 : vector<8x32xf32>
    %756 = arith.addf %751, %755 : vector<8x32xf32>
    %757 = math.tanh %756 : vector<8x32xf32>
    %758 = vector.broadcast %10 : vector<1x32xf32> to vector<8x32xf32>
    %759 = arith.mulf %757, %758 : vector<8x32xf32>
    %cst_182 = arith.constant dense<0.000000e+00> : vector<8xf32>
    %760 = vector.multi_reduction <add>, %759, %cst_182 [1] : vector<8x32xf32> to vector<8xf32>
    %761 = vector.shape_cast %760 : vector<8xf32> to vector<8x1xf32>
    %762 = arith.addf %688, %761 : vector<8x1xf32>
    %763 = vector.broadcast %14 : vector<1x1xf32> to vector<8x1xf32>
    %764 = arith.addf %762, %763 : vector<8x1xf32>
    %765 = vector.broadcast %11 : vector<1x32xf32> to vector<8x32xf32>
    %766 = arith.mulf %757, %765 : vector<8x32xf32>
    %cst_183 = arith.constant dense<0.000000e+00> : vector<8xf32>
    %767 = vector.multi_reduction <add>, %766, %cst_183 [1] : vector<8x32xf32> to vector<8xf32>
    %768 = vector.shape_cast %767 : vector<8xf32> to vector<8x1xf32>
    %769 = arith.addf %695, %768 : vector<8x1xf32>
    %770 = vector.broadcast %15 : vector<1x1xf32> to vector<8x1xf32>
    %771 = arith.addf %769, %770 : vector<8x1xf32>
    %772 = vector.broadcast %12 : vector<1x32xf32> to vector<8x32xf32>
    %773 = arith.mulf %757, %772 : vector<8x32xf32>
    %cst_184 = arith.constant dense<0.000000e+00> : vector<8xf32>
    %774 = vector.multi_reduction <add>, %773, %cst_184 [1] : vector<8x32xf32> to vector<8xf32>
    %775 = vector.shape_cast %774 : vector<8xf32> to vector<8x1xf32>
    %776 = arith.addf %702, %775 : vector<8x1xf32>
    %777 = vector.broadcast %16 : vector<1x1xf32> to vector<8x1xf32>
    %778 = arith.addf %776, %777 : vector<8x1xf32>
    %779 = vector.broadcast %13 : vector<1x32xf32> to vector<8x32xf32>
    %780 = arith.mulf %757, %779 : vector<8x32xf32>
    %cst_185 = arith.constant dense<0.000000e+00> : vector<8xf32>
    %781 = vector.multi_reduction <add>, %780, %cst_185 [1] : vector<8x32xf32> to vector<8xf32>
    %782 = vector.shape_cast %781 : vector<8xf32> to vector<8x1xf32>
    %783 = arith.addf %709, %782 : vector<8x1xf32>
    %784 = vector.broadcast %17 : vector<1x1xf32> to vector<8x1xf32>
    %785 = arith.addf %783, %784 : vector<8x1xf32>
    %786 = vector.broadcast %764 : vector<8x1xf32> to vector<8x4xf32>
    %787 = vector.broadcast %18 : vector<1x4xf32> to vector<8x4xf32>
    %788 = arith.mulf %786, %787 : vector<8x4xf32>
    %789 = vector.broadcast %771 : vector<8x1xf32> to vector<8x4xf32>
    %790 = vector.broadcast %19 : vector<1x4xf32> to vector<8x4xf32>
    %791 = arith.mulf %789, %790 : vector<8x4xf32>
    %792 = arith.addf %788, %791 : vector<8x4xf32>
    %793 = vector.broadcast %778 : vector<8x1xf32> to vector<8x4xf32>
    %794 = vector.broadcast %20 : vector<1x4xf32> to vector<8x4xf32>
    %795 = arith.mulf %793, %794 : vector<8x4xf32>
    %796 = arith.addf %792, %795 : vector<8x4xf32>
    %797 = vector.broadcast %785 : vector<8x1xf32> to vector<8x4xf32>
    %798 = vector.broadcast %21 : vector<1x4xf32> to vector<8x4xf32>
    %799 = arith.mulf %797, %798 : vector<8x4xf32>
    %800 = arith.addf %796, %799 : vector<8x4xf32>
    %c0_186 = arith.constant 0 : index
    %c40 = arith.constant 40 : index
    %801 = vector.load %arg10[%c0_186, %c40] : memref<8x128xf32, #tpu.memory_space<vmem>>, vector<8x4xf32>
    tpu.vector_store %arg10[%c0_186, %c40], %800 {strides = array<i32>} : memref<8x128xf32, #tpu.memory_space<vmem>>, vector<8x4xf32>,
    %c0_187 = arith.constant 0 : index
    %c40_188 = arith.constant 40 : index
    %802 = vector.load %arg9[%c0_187, %c40_188] : memref<8x128xf32, #tpu.memory_space<vmem>>, vector<8x1xf32>
    tpu.vector_store %arg9[%c0_187, %c40_188], %764 {strides = array<i32>} : memref<8x128xf32, #tpu.memory_space<vmem>>, vector<8x1xf32>,
    %c0_189 = arith.constant 0 : index
    %c41 = arith.constant 41 : index
    %803 = vector.load %arg9[%c0_189, %c41] : memref<8x128xf32, #tpu.memory_space<vmem>>, vector<8x1xf32>
    tpu.vector_store %arg9[%c0_189, %c41], %771 {strides = array<i32>} : memref<8x128xf32, #tpu.memory_space<vmem>>, vector<8x1xf32>,
    %c0_190 = arith.constant 0 : index
    %c42 = arith.constant 42 : index
    %804 = vector.load %arg9[%c0_190, %c42] : memref<8x128xf32, #tpu.memory_space<vmem>>, vector<8x1xf32>
    tpu.vector_store %arg9[%c0_190, %c42], %778 {strides = array<i32>} : memref<8x128xf32, #tpu.memory_space<vmem>>, vector<8x1xf32>,
    %c0_191 = arith.constant 0 : index
    %c43 = arith.constant 43 : index
    %805 = vector.load %arg9[%c0_191, %c43] : memref<8x128xf32, #tpu.memory_space<vmem>>, vector<8x1xf32>
    tpu.vector_store %arg9[%c0_191, %c43], %785 {strides = array<i32>} : memref<8x128xf32, #tpu.memory_space<vmem>>, vector<8x1xf32>,
    %806 = vector.broadcast %764 : vector<8x1xf32> to vector<8x32xf32>
    %807 = vector.broadcast %4 : vector<1x32xf32> to vector<8x32xf32>
    %808 = arith.mulf %806, %807 : vector<8x32xf32>
    %809 = vector.broadcast %3 : vector<1x32xf32> to vector<8x32xf32>
    %810 = arith.addf %809, %808 : vector<8x32xf32>
    %811 = vector.broadcast %771 : vector<8x1xf32> to vector<8x32xf32>
    %812 = vector.broadcast %5 : vector<1x32xf32> to vector<8x32xf32>
    %813 = arith.mulf %811, %812 : vector<8x32xf32>
    %814 = arith.addf %810, %813 : vector<8x32xf32>
    %815 = vector.broadcast %778 : vector<8x1xf32> to vector<8x32xf32>
    %816 = vector.broadcast %6 : vector<1x32xf32> to vector<8x32xf32>
    %817 = arith.mulf %815, %816 : vector<8x32xf32>
    %818 = arith.addf %814, %817 : vector<8x32xf32>
    %819 = vector.broadcast %785 : vector<8x1xf32> to vector<8x32xf32>
    %820 = vector.broadcast %7 : vector<1x32xf32> to vector<8x32xf32>
    %821 = arith.mulf %819, %820 : vector<8x32xf32>
    %822 = arith.addf %818, %821 : vector<8x32xf32>
    %c0_192 = arith.constant 0 : index
    %c40_193 = arith.constant 40 : index
    %823 = vector.load %arg1[%c0_192, %c40_193] : memref<8x128xf32, #tpu.memory_space<vmem>>, vector<8x1xf32>
    %824 = vector.broadcast %823 : vector<8x1xf32> to vector<8x32xf32>
    %825 = vector.broadcast %8 : vector<1x32xf32> to vector<8x32xf32>
    %826 = arith.mulf %824, %825 : vector<8x32xf32>
    %827 = arith.addf %822, %826 : vector<8x32xf32>
    %c0_194 = arith.constant 0 : index
    %c41_195 = arith.constant 41 : index
    %828 = vector.load %arg1[%c0_194, %c41_195] : memref<8x128xf32, #tpu.memory_space<vmem>>, vector<8x1xf32>
    %829 = vector.broadcast %828 : vector<8x1xf32> to vector<8x32xf32>
    %830 = vector.broadcast %9 : vector<1x32xf32> to vector<8x32xf32>
    %831 = arith.mulf %829, %830 : vector<8x32xf32>
    %832 = arith.addf %827, %831 : vector<8x32xf32>
    %833 = math.tanh %832 : vector<8x32xf32>
    %834 = vector.broadcast %10 : vector<1x32xf32> to vector<8x32xf32>
    %835 = arith.mulf %833, %834 : vector<8x32xf32>
    %cst_196 = arith.constant dense<0.000000e+00> : vector<8xf32>
    %836 = vector.multi_reduction <add>, %835, %cst_196 [1] : vector<8x32xf32> to vector<8xf32>
    %837 = vector.shape_cast %836 : vector<8xf32> to vector<8x1xf32>
    %838 = arith.addf %764, %837 : vector<8x1xf32>
    %839 = vector.broadcast %14 : vector<1x1xf32> to vector<8x1xf32>
    %840 = arith.addf %838, %839 : vector<8x1xf32>
    %841 = vector.broadcast %11 : vector<1x32xf32> to vector<8x32xf32>
    %842 = arith.mulf %833, %841 : vector<8x32xf32>
    %cst_197 = arith.constant dense<0.000000e+00> : vector<8xf32>
    %843 = vector.multi_reduction <add>, %842, %cst_197 [1] : vector<8x32xf32> to vector<8xf32>
    %844 = vector.shape_cast %843 : vector<8xf32> to vector<8x1xf32>
    %845 = arith.addf %771, %844 : vector<8x1xf32>
    %846 = vector.broadcast %15 : vector<1x1xf32> to vector<8x1xf32>
    %847 = arith.addf %845, %846 : vector<8x1xf32>
    %848 = vector.broadcast %12 : vector<1x32xf32> to vector<8x32xf32>
    %849 = arith.mulf %833, %848 : vector<8x32xf32>
    %cst_198 = arith.constant dense<0.000000e+00> : vector<8xf32>
    %850 = vector.multi_reduction <add>, %849, %cst_198 [1] : vector<8x32xf32> to vector<8xf32>
    %851 = vector.shape_cast %850 : vector<8xf32> to vector<8x1xf32>
    %852 = arith.addf %778, %851 : vector<8x1xf32>
    %853 = vector.broadcast %16 : vector<1x1xf32> to vector<8x1xf32>
    %854 = arith.addf %852, %853 : vector<8x1xf32>
    %855 = vector.broadcast %13 : vector<1x32xf32> to vector<8x32xf32>
    %856 = arith.mulf %833, %855 : vector<8x32xf32>
    %cst_199 = arith.constant dense<0.000000e+00> : vector<8xf32>
    %857 = vector.multi_reduction <add>, %856, %cst_199 [1] : vector<8x32xf32> to vector<8xf32>
    %858 = vector.shape_cast %857 : vector<8xf32> to vector<8x1xf32>
    %859 = arith.addf %785, %858 : vector<8x1xf32>
    %860 = vector.broadcast %17 : vector<1x1xf32> to vector<8x1xf32>
    %861 = arith.addf %859, %860 : vector<8x1xf32>
    %862 = vector.broadcast %840 : vector<8x1xf32> to vector<8x4xf32>
    %863 = vector.broadcast %18 : vector<1x4xf32> to vector<8x4xf32>
    %864 = arith.mulf %862, %863 : vector<8x4xf32>
    %865 = vector.broadcast %847 : vector<8x1xf32> to vector<8x4xf32>
    %866 = vector.broadcast %19 : vector<1x4xf32> to vector<8x4xf32>
    %867 = arith.mulf %865, %866 : vector<8x4xf32>
    %868 = arith.addf %864, %867 : vector<8x4xf32>
    %869 = vector.broadcast %854 : vector<8x1xf32> to vector<8x4xf32>
    %870 = vector.broadcast %20 : vector<1x4xf32> to vector<8x4xf32>
    %871 = arith.mulf %869, %870 : vector<8x4xf32>
    %872 = arith.addf %868, %871 : vector<8x4xf32>
    %873 = vector.broadcast %861 : vector<8x1xf32> to vector<8x4xf32>
    %874 = vector.broadcast %21 : vector<1x4xf32> to vector<8x4xf32>
    %875 = arith.mulf %873, %874 : vector<8x4xf32>
    %876 = arith.addf %872, %875 : vector<8x4xf32>
    %c0_200 = arith.constant 0 : index
    %c44 = arith.constant 44 : index
    %877 = vector.load %arg10[%c0_200, %c44] : memref<8x128xf32, #tpu.memory_space<vmem>>, vector<8x4xf32>
    tpu.vector_store %arg10[%c0_200, %c44], %876 {strides = array<i32>} : memref<8x128xf32, #tpu.memory_space<vmem>>, vector<8x4xf32>,
    %c0_201 = arith.constant 0 : index
    %c44_202 = arith.constant 44 : index
    %878 = vector.load %arg9[%c0_201, %c44_202] : memref<8x128xf32, #tpu.memory_space<vmem>>, vector<8x1xf32>
    tpu.vector_store %arg9[%c0_201, %c44_202], %840 {strides = array<i32>} : memref<8x128xf32, #tpu.memory_space<vmem>>, vector<8x1xf32>,
    %c0_203 = arith.constant 0 : index
    %c45 = arith.constant 45 : index
    %879 = vector.load %arg9[%c0_203, %c45] : memref<8x128xf32, #tpu.memory_space<vmem>>, vector<8x1xf32>
    tpu.vector_store %arg9[%c0_203, %c45], %847 {strides = array<i32>} : memref<8x128xf32, #tpu.memory_space<vmem>>, vector<8x1xf32>,
    %c0_204 = arith.constant 0 : index
    %c46 = arith.constant 46 : index
    %880 = vector.load %arg9[%c0_204, %c46] : memref<8x128xf32, #tpu.memory_space<vmem>>, vector<8x1xf32>
    tpu.vector_store %arg9[%c0_204, %c46], %854 {strides = array<i32>} : memref<8x128xf32, #tpu.memory_space<vmem>>, vector<8x1xf32>,
    %c0_205 = arith.constant 0 : index
    %c47 = arith.constant 47 : index
    %881 = vector.load %arg9[%c0_205, %c47] : memref<8x128xf32, #tpu.memory_space<vmem>>, vector<8x1xf32>
    tpu.vector_store %arg9[%c0_205, %c47], %861 {strides = array<i32>} : memref<8x128xf32, #tpu.memory_space<vmem>>, vector<8x1xf32>,
    %882 = vector.broadcast %840 : vector<8x1xf32> to vector<8x32xf32>
    %883 = vector.broadcast %4 : vector<1x32xf32> to vector<8x32xf32>
    %884 = arith.mulf %882, %883 : vector<8x32xf32>
    %885 = vector.broadcast %3 : vector<1x32xf32> to vector<8x32xf32>
    %886 = arith.addf %885, %884 : vector<8x32xf32>
    %887 = vector.broadcast %847 : vector<8x1xf32> to vector<8x32xf32>
    %888 = vector.broadcast %5 : vector<1x32xf32> to vector<8x32xf32>
    %889 = arith.mulf %887, %888 : vector<8x32xf32>
    %890 = arith.addf %886, %889 : vector<8x32xf32>
    %891 = vector.broadcast %854 : vector<8x1xf32> to vector<8x32xf32>
    %892 = vector.broadcast %6 : vector<1x32xf32> to vector<8x32xf32>
    %893 = arith.mulf %891, %892 : vector<8x32xf32>
    %894 = arith.addf %890, %893 : vector<8x32xf32>
    %895 = vector.broadcast %861 : vector<8x1xf32> to vector<8x32xf32>
    %896 = vector.broadcast %7 : vector<1x32xf32> to vector<8x32xf32>
    %897 = arith.mulf %895, %896 : vector<8x32xf32>
    %898 = arith.addf %894, %897 : vector<8x32xf32>
    %c0_206 = arith.constant 0 : index
    %c44_207 = arith.constant 44 : index
    %899 = vector.load %arg1[%c0_206, %c44_207] : memref<8x128xf32, #tpu.memory_space<vmem>>, vector<8x1xf32>
    %900 = vector.broadcast %899 : vector<8x1xf32> to vector<8x32xf32>
    %901 = vector.broadcast %8 : vector<1x32xf32> to vector<8x32xf32>
    %902 = arith.mulf %900, %901 : vector<8x32xf32>
    %903 = arith.addf %898, %902 : vector<8x32xf32>
    %c0_208 = arith.constant 0 : index
    %c45_209 = arith.constant 45 : index
    %904 = vector.load %arg1[%c0_208, %c45_209] : memref<8x128xf32, #tpu.memory_space<vmem>>, vector<8x1xf32>
    %905 = vector.broadcast %904 : vector<8x1xf32> to vector<8x32xf32>
    %906 = vector.broadcast %9 : vector<1x32xf32> to vector<8x32xf32>
    %907 = arith.mulf %905, %906 : vector<8x32xf32>
    %908 = arith.addf %903, %907 : vector<8x32xf32>
    %909 = math.tanh %908 : vector<8x32xf32>
    %910 = vector.broadcast %10 : vector<1x32xf32> to vector<8x32xf32>
    %911 = arith.mulf %909, %910 : vector<8x32xf32>
    %cst_210 = arith.constant dense<0.000000e+00> : vector<8xf32>
    %912 = vector.multi_reduction <add>, %911, %cst_210 [1] : vector<8x32xf32> to vector<8xf32>
    %913 = vector.shape_cast %912 : vector<8xf32> to vector<8x1xf32>
    %914 = arith.addf %840, %913 : vector<8x1xf32>
    %915 = vector.broadcast %14 : vector<1x1xf32> to vector<8x1xf32>
    %916 = arith.addf %914, %915 : vector<8x1xf32>
    %917 = vector.broadcast %11 : vector<1x32xf32> to vector<8x32xf32>
    %918 = arith.mulf %909, %917 : vector<8x32xf32>
    %cst_211 = arith.constant dense<0.000000e+00> : vector<8xf32>
    %919 = vector.multi_reduction <add>, %918, %cst_211 [1] : vector<8x32xf32> to vector<8xf32>
    %920 = vector.shape_cast %919 : vector<8xf32> to vector<8x1xf32>
    %921 = arith.addf %847, %920 : vector<8x1xf32>
    %922 = vector.broadcast %15 : vector<1x1xf32> to vector<8x1xf32>
    %923 = arith.addf %921, %922 : vector<8x1xf32>
    %924 = vector.broadcast %12 : vector<1x32xf32> to vector<8x32xf32>
    %925 = arith.mulf %909, %924 : vector<8x32xf32>
    %cst_212 = arith.constant dense<0.000000e+00> : vector<8xf32>
    %926 = vector.multi_reduction <add>, %925, %cst_212 [1] : vector<8x32xf32> to vector<8xf32>
    %927 = vector.shape_cast %926 : vector<8xf32> to vector<8x1xf32>
    %928 = arith.addf %854, %927 : vector<8x1xf32>
    %929 = vector.broadcast %16 : vector<1x1xf32> to vector<8x1xf32>
    %930 = arith.addf %928, %929 : vector<8x1xf32>
    %931 = vector.broadcast %13 : vector<1x32xf32> to vector<8x32xf32>
    %932 = arith.mulf %909, %931 : vector<8x32xf32>
    %cst_213 = arith.constant dense<0.000000e+00> : vector<8xf32>
    %933 = vector.multi_reduction <add>, %932, %cst_213 [1] : vector<8x32xf32> to vector<8xf32>
    %934 = vector.shape_cast %933 : vector<8xf32> to vector<8x1xf32>
    %935 = arith.addf %861, %934 : vector<8x1xf32>
    %936 = vector.broadcast %17 : vector<1x1xf32> to vector<8x1xf32>
    %937 = arith.addf %935, %936 : vector<8x1xf32>
    %938 = vector.broadcast %916 : vector<8x1xf32> to vector<8x4xf32>
    %939 = vector.broadcast %18 : vector<1x4xf32> to vector<8x4xf32>
    %940 = arith.mulf %938, %939 : vector<8x4xf32>
    %941 = vector.broadcast %923 : vector<8x1xf32> to vector<8x4xf32>
    %942 = vector.broadcast %19 : vector<1x4xf32> to vector<8x4xf32>
    %943 = arith.mulf %941, %942 : vector<8x4xf32>
    %944 = arith.addf %940, %943 : vector<8x4xf32>
    %945 = vector.broadcast %930 : vector<8x1xf32> to vector<8x4xf32>
    %946 = vector.broadcast %20 : vector<1x4xf32> to vector<8x4xf32>
    %947 = arith.mulf %945, %946 : vector<8x4xf32>
    %948 = arith.addf %944, %947 : vector<8x4xf32>
    %949 = vector.broadcast %937 : vector<8x1xf32> to vector<8x4xf32>
    %950 = vector.broadcast %21 : vector<1x4xf32> to vector<8x4xf32>
    %951 = arith.mulf %949, %950 : vector<8x4xf32>
    %952 = arith.addf %948, %951 : vector<8x4xf32>
    %c0_214 = arith.constant 0 : index
    %c48 = arith.constant 48 : index
    %953 = vector.load %arg10[%c0_214, %c48] : memref<8x128xf32, #tpu.memory_space<vmem>>, vector<8x4xf32>
    tpu.vector_store %arg10[%c0_214, %c48], %952 {strides = array<i32>} : memref<8x128xf32, #tpu.memory_space<vmem>>, vector<8x4xf32>,
    %c0_215 = arith.constant 0 : index
    %c48_216 = arith.constant 48 : index
    %954 = vector.load %arg9[%c0_215, %c48_216] : memref<8x128xf32, #tpu.memory_space<vmem>>, vector<8x1xf32>
    tpu.vector_store %arg9[%c0_215, %c48_216], %916 {strides = array<i32>} : memref<8x128xf32, #tpu.memory_space<vmem>>, vector<8x1xf32>,
    %c0_217 = arith.constant 0 : index
    %c49 = arith.constant 49 : index
    %955 = vector.load %arg9[%c0_217, %c49] : memref<8x128xf32, #tpu.memory_space<vmem>>, vector<8x1xf32>
    tpu.vector_store %arg9[%c0_217, %c49], %923 {strides = array<i32>} : memref<8x128xf32, #tpu.memory_space<vmem>>, vector<8x1xf32>,
    %c0_218 = arith.constant 0 : index
    %c50 = arith.constant 50 : index
    %956 = vector.load %arg9[%c0_218, %c50] : memref<8x128xf32, #tpu.memory_space<vmem>>, vector<8x1xf32>
    tpu.vector_store %arg9[%c0_218, %c50], %930 {strides = array<i32>} : memref<8x128xf32, #tpu.memory_space<vmem>>, vector<8x1xf32>,
    %c0_219 = arith.constant 0 : index
    %c51 = arith.constant 51 : index
    %957 = vector.load %arg9[%c0_219, %c51] : memref<8x128xf32, #tpu.memory_space<vmem>>, vector<8x1xf32>
    tpu.vector_store %arg9[%c0_219, %c51], %937 {strides = array<i32>} : memref<8x128xf32, #tpu.memory_space<vmem>>, vector<8x1xf32>,
    %958 = vector.broadcast %916 : vector<8x1xf32> to vector<8x32xf32>
    %959 = vector.broadcast %4 : vector<1x32xf32> to vector<8x32xf32>
    %960 = arith.mulf %958, %959 : vector<8x32xf32>
    %961 = vector.broadcast %3 : vector<1x32xf32> to vector<8x32xf32>
    %962 = arith.addf %961, %960 : vector<8x32xf32>
    %963 = vector.broadcast %923 : vector<8x1xf32> to vector<8x32xf32>
    %964 = vector.broadcast %5 : vector<1x32xf32> to vector<8x32xf32>
    %965 = arith.mulf %963, %964 : vector<8x32xf32>
    %966 = arith.addf %962, %965 : vector<8x32xf32>
    %967 = vector.broadcast %930 : vector<8x1xf32> to vector<8x32xf32>
    %968 = vector.broadcast %6 : vector<1x32xf32> to vector<8x32xf32>
    %969 = arith.mulf %967, %968 : vector<8x32xf32>
    %970 = arith.addf %966, %969 : vector<8x32xf32>
    %971 = vector.broadcast %937 : vector<8x1xf32> to vector<8x32xf32>
    %972 = vector.broadcast %7 : vector<1x32xf32> to vector<8x32xf32>
    %973 = arith.mulf %971, %972 : vector<8x32xf32>
    %974 = arith.addf %970, %973 : vector<8x32xf32>
    %c0_220 = arith.constant 0 : index
    %c48_221 = arith.constant 48 : index
    %975 = vector.load %arg1[%c0_220, %c48_221] : memref<8x128xf32, #tpu.memory_space<vmem>>, vector<8x1xf32>
    %976 = vector.broadcast %975 : vector<8x1xf32> to vector<8x32xf32>
    %977 = vector.broadcast %8 : vector<1x32xf32> to vector<8x32xf32>
    %978 = arith.mulf %976, %977 : vector<8x32xf32>
    %979 = arith.addf %974, %978 : vector<8x32xf32>
    %c0_222 = arith.constant 0 : index
    %c49_223 = arith.constant 49 : index
    %980 = vector.load %arg1[%c0_222, %c49_223] : memref<8x128xf32, #tpu.memory_space<vmem>>, vector<8x1xf32>
    %981 = vector.broadcast %980 : vector<8x1xf32> to vector<8x32xf32>
    %982 = vector.broadcast %9 : vector<1x32xf32> to vector<8x32xf32>
    %983 = arith.mulf %981, %982 : vector<8x32xf32>
    %984 = arith.addf %979, %983 : vector<8x32xf32>
    %985 = math.tanh %984 : vector<8x32xf32>
    %986 = vector.broadcast %10 : vector<1x32xf32> to vector<8x32xf32>
    %987 = arith.mulf %985, %986 : vector<8x32xf32>
    %cst_224 = arith.constant dense<0.000000e+00> : vector<8xf32>
    %988 = vector.multi_reduction <add>, %987, %cst_224 [1] : vector<8x32xf32> to vector<8xf32>
    %989 = vector.shape_cast %988 : vector<8xf32> to vector<8x1xf32>
    %990 = arith.addf %916, %989 : vector<8x1xf32>
    %991 = vector.broadcast %14 : vector<1x1xf32> to vector<8x1xf32>
    %992 = arith.addf %990, %991 : vector<8x1xf32>
    %993 = vector.broadcast %11 : vector<1x32xf32> to vector<8x32xf32>
    %994 = arith.mulf %985, %993 : vector<8x32xf32>
    %cst_225 = arith.constant dense<0.000000e+00> : vector<8xf32>
    %995 = vector.multi_reduction <add>, %994, %cst_225 [1] : vector<8x32xf32> to vector<8xf32>
    %996 = vector.shape_cast %995 : vector<8xf32> to vector<8x1xf32>
    %997 = arith.addf %923, %996 : vector<8x1xf32>
    %998 = vector.broadcast %15 : vector<1x1xf32> to vector<8x1xf32>
    %999 = arith.addf %997, %998 : vector<8x1xf32>
    %1000 = vector.broadcast %12 : vector<1x32xf32> to vector<8x32xf32>
    %1001 = arith.mulf %985, %1000 : vector<8x32xf32>
    %cst_226 = arith.constant dense<0.000000e+00> : vector<8xf32>
    %1002 = vector.multi_reduction <add>, %1001, %cst_226 [1] : vector<8x32xf32> to vector<8xf32>
    %1003 = vector.shape_cast %1002 : vector<8xf32> to vector<8x1xf32>
    %1004 = arith.addf %930, %1003 : vector<8x1xf32>
    %1005 = vector.broadcast %16 : vector<1x1xf32> to vector<8x1xf32>
    %1006 = arith.addf %1004, %1005 : vector<8x1xf32>
    %1007 = vector.broadcast %13 : vector<1x32xf32> to vector<8x32xf32>
    %1008 = arith.mulf %985, %1007 : vector<8x32xf32>
    %cst_227 = arith.constant dense<0.000000e+00> : vector<8xf32>
    %1009 = vector.multi_reduction <add>, %1008, %cst_227 [1] : vector<8x32xf32> to vector<8xf32>
    %1010 = vector.shape_cast %1009 : vector<8xf32> to vector<8x1xf32>
    %1011 = arith.addf %937, %1010 : vector<8x1xf32>
    %1012 = vector.broadcast %17 : vector<1x1xf32> to vector<8x1xf32>
    %1013 = arith.addf %1011, %1012 : vector<8x1xf32>
    %1014 = vector.broadcast %992 : vector<8x1xf32> to vector<8x4xf32>
    %1015 = vector.broadcast %18 : vector<1x4xf32> to vector<8x4xf32>
    %1016 = arith.mulf %1014, %1015 : vector<8x4xf32>
    %1017 = vector.broadcast %999 : vector<8x1xf32> to vector<8x4xf32>
    %1018 = vector.broadcast %19 : vector<1x4xf32> to vector<8x4xf32>
    %1019 = arith.mulf %1017, %1018 : vector<8x4xf32>
    %1020 = arith.addf %1016, %1019 : vector<8x4xf32>
    %1021 = vector.broadcast %1006 : vector<8x1xf32> to vector<8x4xf32>
    %1022 = vector.broadcast %20 : vector<1x4xf32> to vector<8x4xf32>
    %1023 = arith.mulf %1021, %1022 : vector<8x4xf32>
    %1024 = arith.addf %1020, %1023 : vector<8x4xf32>
    %1025 = vector.broadcast %1013 : vector<8x1xf32> to vector<8x4xf32>
    %1026 = vector.broadcast %21 : vector<1x4xf32> to vector<8x4xf32>
    %1027 = arith.mulf %1025, %1026 : vector<8x4xf32>
    %1028 = arith.addf %1024, %1027 : vector<8x4xf32>
    %c0_228 = arith.constant 0 : index
    %c52 = arith.constant 52 : index
    %1029 = vector.load %arg10[%c0_228, %c52] : memref<8x128xf32, #tpu.memory_space<vmem>>, vector<8x4xf32>
    tpu.vector_store %arg10[%c0_228, %c52], %1028 {strides = array<i32>} : memref<8x128xf32, #tpu.memory_space<vmem>>, vector<8x4xf32>,
    %c0_229 = arith.constant 0 : index
    %c52_230 = arith.constant 52 : index
    %1030 = vector.load %arg9[%c0_229, %c52_230] : memref<8x128xf32, #tpu.memory_space<vmem>>, vector<8x1xf32>
    tpu.vector_store %arg9[%c0_229, %c52_230], %992 {strides = array<i32>} : memref<8x128xf32, #tpu.memory_space<vmem>>, vector<8x1xf32>,
    %c0_231 = arith.constant 0 : index
    %c53 = arith.constant 53 : index
    %1031 = vector.load %arg9[%c0_231, %c53] : memref<8x128xf32, #tpu.memory_space<vmem>>, vector<8x1xf32>
    tpu.vector_store %arg9[%c0_231, %c53], %999 {strides = array<i32>} : memref<8x128xf32, #tpu.memory_space<vmem>>, vector<8x1xf32>,
    %c0_232 = arith.constant 0 : index
    %c54 = arith.constant 54 : index
    %1032 = vector.load %arg9[%c0_232, %c54] : memref<8x128xf32, #tpu.memory_space<vmem>>, vector<8x1xf32>
    tpu.vector_store %arg9[%c0_232, %c54], %1006 {strides = array<i32>} : memref<8x128xf32, #tpu.memory_space<vmem>>, vector<8x1xf32>,
    %c0_233 = arith.constant 0 : index
    %c55 = arith.constant 55 : index
    %1033 = vector.load %arg9[%c0_233, %c55] : memref<8x128xf32, #tpu.memory_space<vmem>>, vector<8x1xf32>
    tpu.vector_store %arg9[%c0_233, %c55], %1013 {strides = array<i32>} : memref<8x128xf32, #tpu.memory_space<vmem>>, vector<8x1xf32>,
    %1034 = vector.broadcast %992 : vector<8x1xf32> to vector<8x32xf32>
    %1035 = vector.broadcast %4 : vector<1x32xf32> to vector<8x32xf32>
    %1036 = arith.mulf %1034, %1035 : vector<8x32xf32>
    %1037 = vector.broadcast %3 : vector<1x32xf32> to vector<8x32xf32>
    %1038 = arith.addf %1037, %1036 : vector<8x32xf32>
    %1039 = vector.broadcast %999 : vector<8x1xf32> to vector<8x32xf32>
    %1040 = vector.broadcast %5 : vector<1x32xf32> to vector<8x32xf32>
    %1041 = arith.mulf %1039, %1040 : vector<8x32xf32>
    %1042 = arith.addf %1038, %1041 : vector<8x32xf32>
    %1043 = vector.broadcast %1006 : vector<8x1xf32> to vector<8x32xf32>
    %1044 = vector.broadcast %6 : vector<1x32xf32> to vector<8x32xf32>
    %1045 = arith.mulf %1043, %1044 : vector<8x32xf32>
    %1046 = arith.addf %1042, %1045 : vector<8x32xf32>
    %1047 = vector.broadcast %1013 : vector<8x1xf32> to vector<8x32xf32>
    %1048 = vector.broadcast %7 : vector<1x32xf32> to vector<8x32xf32>
    %1049 = arith.mulf %1047, %1048 : vector<8x32xf32>
    %1050 = arith.addf %1046, %1049 : vector<8x32xf32>
    %c0_234 = arith.constant 0 : index
    %c52_235 = arith.constant 52 : index
    %1051 = vector.load %arg1[%c0_234, %c52_235] : memref<8x128xf32, #tpu.memory_space<vmem>>, vector<8x1xf32>
    %1052 = vector.broadcast %1051 : vector<8x1xf32> to vector<8x32xf32>
    %1053 = vector.broadcast %8 : vector<1x32xf32> to vector<8x32xf32>
    %1054 = arith.mulf %1052, %1053 : vector<8x32xf32>
    %1055 = arith.addf %1050, %1054 : vector<8x32xf32>
    %c0_236 = arith.constant 0 : index
    %c53_237 = arith.constant 53 : index
    %1056 = vector.load %arg1[%c0_236, %c53_237] : memref<8x128xf32, #tpu.memory_space<vmem>>, vector<8x1xf32>
    %1057 = vector.broadcast %1056 : vector<8x1xf32> to vector<8x32xf32>
    %1058 = vector.broadcast %9 : vector<1x32xf32> to vector<8x32xf32>
    %1059 = arith.mulf %1057, %1058 : vector<8x32xf32>
    %1060 = arith.addf %1055, %1059 : vector<8x32xf32>
    %1061 = math.tanh %1060 : vector<8x32xf32>
    %1062 = vector.broadcast %10 : vector<1x32xf32> to vector<8x32xf32>
    %1063 = arith.mulf %1061, %1062 : vector<8x32xf32>
    %cst_238 = arith.constant dense<0.000000e+00> : vector<8xf32>
    %1064 = vector.multi_reduction <add>, %1063, %cst_238 [1] : vector<8x32xf32> to vector<8xf32>
    %1065 = vector.shape_cast %1064 : vector<8xf32> to vector<8x1xf32>
    %1066 = arith.addf %992, %1065 : vector<8x1xf32>
    %1067 = vector.broadcast %14 : vector<1x1xf32> to vector<8x1xf32>
    %1068 = arith.addf %1066, %1067 : vector<8x1xf32>
    %1069 = vector.broadcast %11 : vector<1x32xf32> to vector<8x32xf32>
    %1070 = arith.mulf %1061, %1069 : vector<8x32xf32>
    %cst_239 = arith.constant dense<0.000000e+00> : vector<8xf32>
    %1071 = vector.multi_reduction <add>, %1070, %cst_239 [1] : vector<8x32xf32> to vector<8xf32>
    %1072 = vector.shape_cast %1071 : vector<8xf32> to vector<8x1xf32>
    %1073 = arith.addf %999, %1072 : vector<8x1xf32>
    %1074 = vector.broadcast %15 : vector<1x1xf32> to vector<8x1xf32>
    %1075 = arith.addf %1073, %1074 : vector<8x1xf32>
    %1076 = vector.broadcast %12 : vector<1x32xf32> to vector<8x32xf32>
    %1077 = arith.mulf %1061, %1076 : vector<8x32xf32>
    %cst_240 = arith.constant dense<0.000000e+00> : vector<8xf32>
    %1078 = vector.multi_reduction <add>, %1077, %cst_240 [1] : vector<8x32xf32> to vector<8xf32>
    %1079 = vector.shape_cast %1078 : vector<8xf32> to vector<8x1xf32>
    %1080 = arith.addf %1006, %1079 : vector<8x1xf32>
    %1081 = vector.broadcast %16 : vector<1x1xf32> to vector<8x1xf32>
    %1082 = arith.addf %1080, %1081 : vector<8x1xf32>
    %1083 = vector.broadcast %13 : vector<1x32xf32> to vector<8x32xf32>
    %1084 = arith.mulf %1061, %1083 : vector<8x32xf32>
    %cst_241 = arith.constant dense<0.000000e+00> : vector<8xf32>
    %1085 = vector.multi_reduction <add>, %1084, %cst_241 [1] : vector<8x32xf32> to vector<8xf32>
    %1086 = vector.shape_cast %1085 : vector<8xf32> to vector<8x1xf32>
    %1087 = arith.addf %1013, %1086 : vector<8x1xf32>
    %1088 = vector.broadcast %17 : vector<1x1xf32> to vector<8x1xf32>
    %1089 = arith.addf %1087, %1088 : vector<8x1xf32>
    %1090 = vector.broadcast %1068 : vector<8x1xf32> to vector<8x4xf32>
    %1091 = vector.broadcast %18 : vector<1x4xf32> to vector<8x4xf32>
    %1092 = arith.mulf %1090, %1091 : vector<8x4xf32>
    %1093 = vector.broadcast %1075 : vector<8x1xf32> to vector<8x4xf32>
    %1094 = vector.broadcast %19 : vector<1x4xf32> to vector<8x4xf32>
    %1095 = arith.mulf %1093, %1094 : vector<8x4xf32>
    %1096 = arith.addf %1092, %1095 : vector<8x4xf32>
    %1097 = vector.broadcast %1082 : vector<8x1xf32> to vector<8x4xf32>
    %1098 = vector.broadcast %20 : vector<1x4xf32> to vector<8x4xf32>
    %1099 = arith.mulf %1097, %1098 : vector<8x4xf32>
    %1100 = arith.addf %1096, %1099 : vector<8x4xf32>
    %1101 = vector.broadcast %1089 : vector<8x1xf32> to vector<8x4xf32>
    %1102 = vector.broadcast %21 : vector<1x4xf32> to vector<8x4xf32>
    %1103 = arith.mulf %1101, %1102 : vector<8x4xf32>
    %1104 = arith.addf %1100, %1103 : vector<8x4xf32>
    %c0_242 = arith.constant 0 : index
    %c56 = arith.constant 56 : index
    %1105 = vector.load %arg10[%c0_242, %c56] : memref<8x128xf32, #tpu.memory_space<vmem>>, vector<8x4xf32>
    tpu.vector_store %arg10[%c0_242, %c56], %1104 {strides = array<i32>} : memref<8x128xf32, #tpu.memory_space<vmem>>, vector<8x4xf32>,
    %c0_243 = arith.constant 0 : index
    %c56_244 = arith.constant 56 : index
    %1106 = vector.load %arg9[%c0_243, %c56_244] : memref<8x128xf32, #tpu.memory_space<vmem>>, vector<8x1xf32>
    tpu.vector_store %arg9[%c0_243, %c56_244], %1068 {strides = array<i32>} : memref<8x128xf32, #tpu.memory_space<vmem>>, vector<8x1xf32>,
    %c0_245 = arith.constant 0 : index
    %c57 = arith.constant 57 : index
    %1107 = vector.load %arg9[%c0_245, %c57] : memref<8x128xf32, #tpu.memory_space<vmem>>, vector<8x1xf32>
    tpu.vector_store %arg9[%c0_245, %c57], %1075 {strides = array<i32>} : memref<8x128xf32, #tpu.memory_space<vmem>>, vector<8x1xf32>,
    %c0_246 = arith.constant 0 : index
    %c58 = arith.constant 58 : index
    %1108 = vector.load %arg9[%c0_246, %c58] : memref<8x128xf32, #tpu.memory_space<vmem>>, vector<8x1xf32>
    tpu.vector_store %arg9[%c0_246, %c58], %1082 {strides = array<i32>} : memref<8x128xf32, #tpu.memory_space<vmem>>, vector<8x1xf32>,
    %c0_247 = arith.constant 0 : index
    %c59 = arith.constant 59 : index
    %1109 = vector.load %arg9[%c0_247, %c59] : memref<8x128xf32, #tpu.memory_space<vmem>>, vector<8x1xf32>
    tpu.vector_store %arg9[%c0_247, %c59], %1089 {strides = array<i32>} : memref<8x128xf32, #tpu.memory_space<vmem>>, vector<8x1xf32>,
    %1110 = vector.broadcast %1068 : vector<8x1xf32> to vector<8x32xf32>
    %1111 = vector.broadcast %4 : vector<1x32xf32> to vector<8x32xf32>
    %1112 = arith.mulf %1110, %1111 : vector<8x32xf32>
    %1113 = vector.broadcast %3 : vector<1x32xf32> to vector<8x32xf32>
    %1114 = arith.addf %1113, %1112 : vector<8x32xf32>
    %1115 = vector.broadcast %1075 : vector<8x1xf32> to vector<8x32xf32>
    %1116 = vector.broadcast %5 : vector<1x32xf32> to vector<8x32xf32>
    %1117 = arith.mulf %1115, %1116 : vector<8x32xf32>
    %1118 = arith.addf %1114, %1117 : vector<8x32xf32>
    %1119 = vector.broadcast %1082 : vector<8x1xf32> to vector<8x32xf32>
    %1120 = vector.broadcast %6 : vector<1x32xf32> to vector<8x32xf32>
    %1121 = arith.mulf %1119, %1120 : vector<8x32xf32>
    %1122 = arith.addf %1118, %1121 : vector<8x32xf32>
    %1123 = vector.broadcast %1089 : vector<8x1xf32> to vector<8x32xf32>
    %1124 = vector.broadcast %7 : vector<1x32xf32> to vector<8x32xf32>
    %1125 = arith.mulf %1123, %1124 : vector<8x32xf32>
    %1126 = arith.addf %1122, %1125 : vector<8x32xf32>
    %c0_248 = arith.constant 0 : index
    %c56_249 = arith.constant 56 : index
    %1127 = vector.load %arg1[%c0_248, %c56_249] : memref<8x128xf32, #tpu.memory_space<vmem>>, vector<8x1xf32>
    %1128 = vector.broadcast %1127 : vector<8x1xf32> to vector<8x32xf32>
    %1129 = vector.broadcast %8 : vector<1x32xf32> to vector<8x32xf32>
    %1130 = arith.mulf %1128, %1129 : vector<8x32xf32>
    %1131 = arith.addf %1126, %1130 : vector<8x32xf32>
    %c0_250 = arith.constant 0 : index
    %c57_251 = arith.constant 57 : index
    %1132 = vector.load %arg1[%c0_250, %c57_251] : memref<8x128xf32, #tpu.memory_space<vmem>>, vector<8x1xf32>
    %1133 = vector.broadcast %1132 : vector<8x1xf32> to vector<8x32xf32>
    %1134 = vector.broadcast %9 : vector<1x32xf32> to vector<8x32xf32>
    %1135 = arith.mulf %1133, %1134 : vector<8x32xf32>
    %1136 = arith.addf %1131, %1135 : vector<8x32xf32>
    %1137 = math.tanh %1136 : vector<8x32xf32>
    %1138 = vector.broadcast %10 : vector<1x32xf32> to vector<8x32xf32>
    %1139 = arith.mulf %1137, %1138 : vector<8x32xf32>
    %cst_252 = arith.constant dense<0.000000e+00> : vector<8xf32>
    %1140 = vector.multi_reduction <add>, %1139, %cst_252 [1] : vector<8x32xf32> to vector<8xf32>
    %1141 = vector.shape_cast %1140 : vector<8xf32> to vector<8x1xf32>
    %1142 = arith.addf %1068, %1141 : vector<8x1xf32>
    %1143 = vector.broadcast %14 : vector<1x1xf32> to vector<8x1xf32>
    %1144 = arith.addf %1142, %1143 : vector<8x1xf32>
    %1145 = vector.broadcast %11 : vector<1x32xf32> to vector<8x32xf32>
    %1146 = arith.mulf %1137, %1145 : vector<8x32xf32>
    %cst_253 = arith.constant dense<0.000000e+00> : vector<8xf32>
    %1147 = vector.multi_reduction <add>, %1146, %cst_253 [1] : vector<8x32xf32> to vector<8xf32>
    %1148 = vector.shape_cast %1147 : vector<8xf32> to vector<8x1xf32>
    %1149 = arith.addf %1075, %1148 : vector<8x1xf32>
    %1150 = vector.broadcast %15 : vector<1x1xf32> to vector<8x1xf32>
    %1151 = arith.addf %1149, %1150 : vector<8x1xf32>
    %1152 = vector.broadcast %12 : vector<1x32xf32> to vector<8x32xf32>
    %1153 = arith.mulf %1137, %1152 : vector<8x32xf32>
    %cst_254 = arith.constant dense<0.000000e+00> : vector<8xf32>
    %1154 = vector.multi_reduction <add>, %1153, %cst_254 [1] : vector<8x32xf32> to vector<8xf32>
    %1155 = vector.shape_cast %1154 : vector<8xf32> to vector<8x1xf32>
    %1156 = arith.addf %1082, %1155 : vector<8x1xf32>
    %1157 = vector.broadcast %16 : vector<1x1xf32> to vector<8x1xf32>
    %1158 = arith.addf %1156, %1157 : vector<8x1xf32>
    %1159 = vector.broadcast %13 : vector<1x32xf32> to vector<8x32xf32>
    %1160 = arith.mulf %1137, %1159 : vector<8x32xf32>
    %cst_255 = arith.constant dense<0.000000e+00> : vector<8xf32>
    %1161 = vector.multi_reduction <add>, %1160, %cst_255 [1] : vector<8x32xf32> to vector<8xf32>
    %1162 = vector.shape_cast %1161 : vector<8xf32> to vector<8x1xf32>
    %1163 = arith.addf %1089, %1162 : vector<8x1xf32>
    %1164 = vector.broadcast %17 : vector<1x1xf32> to vector<8x1xf32>
    %1165 = arith.addf %1163, %1164 : vector<8x1xf32>
    %1166 = vector.broadcast %1144 : vector<8x1xf32> to vector<8x4xf32>
    %1167 = vector.broadcast %18 : vector<1x4xf32> to vector<8x4xf32>
    %1168 = arith.mulf %1166, %1167 : vector<8x4xf32>
    %1169 = vector.broadcast %1151 : vector<8x1xf32> to vector<8x4xf32>
    %1170 = vector.broadcast %19 : vector<1x4xf32> to vector<8x4xf32>
    %1171 = arith.mulf %1169, %1170 : vector<8x4xf32>
    %1172 = arith.addf %1168, %1171 : vector<8x4xf32>
    %1173 = vector.broadcast %1158 : vector<8x1xf32> to vector<8x4xf32>
    %1174 = vector.broadcast %20 : vector<1x4xf32> to vector<8x4xf32>
    %1175 = arith.mulf %1173, %1174 : vector<8x4xf32>
    %1176 = arith.addf %1172, %1175 : vector<8x4xf32>
    %1177 = vector.broadcast %1165 : vector<8x1xf32> to vector<8x4xf32>
    %1178 = vector.broadcast %21 : vector<1x4xf32> to vector<8x4xf32>
    %1179 = arith.mulf %1177, %1178 : vector<8x4xf32>
    %1180 = arith.addf %1176, %1179 : vector<8x4xf32>
    %c0_256 = arith.constant 0 : index
    %c60 = arith.constant 60 : index
    %1181 = vector.load %arg10[%c0_256, %c60] : memref<8x128xf32, #tpu.memory_space<vmem>>, vector<8x4xf32>
    tpu.vector_store %arg10[%c0_256, %c60], %1180 {strides = array<i32>} : memref<8x128xf32, #tpu.memory_space<vmem>>, vector<8x4xf32>,
    %c0_257 = arith.constant 0 : index
    %c60_258 = arith.constant 60 : index
    %1182 = vector.load %arg9[%c0_257, %c60_258] : memref<8x128xf32, #tpu.memory_space<vmem>>, vector<8x1xf32>
    tpu.vector_store %arg9[%c0_257, %c60_258], %1144 {strides = array<i32>} : memref<8x128xf32, #tpu.memory_space<vmem>>, vector<8x1xf32>,
    %c0_259 = arith.constant 0 : index
    %c61 = arith.constant 61 : index
    %1183 = vector.load %arg9[%c0_259, %c61] : memref<8x128xf32, #tpu.memory_space<vmem>>, vector<8x1xf32>
    tpu.vector_store %arg9[%c0_259, %c61], %1151 {strides = array<i32>} : memref<8x128xf32, #tpu.memory_space<vmem>>, vector<8x1xf32>,
    %c0_260 = arith.constant 0 : index
    %c62 = arith.constant 62 : index
    %1184 = vector.load %arg9[%c0_260, %c62] : memref<8x128xf32, #tpu.memory_space<vmem>>, vector<8x1xf32>
    tpu.vector_store %arg9[%c0_260, %c62], %1158 {strides = array<i32>} : memref<8x128xf32, #tpu.memory_space<vmem>>, vector<8x1xf32>,
    %c0_261 = arith.constant 0 : index
    %c63 = arith.constant 63 : index
    %1185 = vector.load %arg9[%c0_261, %c63] : memref<8x128xf32, #tpu.memory_space<vmem>>, vector<8x1xf32>
    tpu.vector_store %arg9[%c0_261, %c63], %1165 {strides = array<i32>} : memref<8x128xf32, #tpu.memory_space<vmem>>, vector<8x1xf32>,
    %1186 = vector.broadcast %1144 : vector<8x1xf32> to vector<8x32xf32>
    %1187 = vector.broadcast %4 : vector<1x32xf32> to vector<8x32xf32>
    %1188 = arith.mulf %1186, %1187 : vector<8x32xf32>
    %1189 = vector.broadcast %3 : vector<1x32xf32> to vector<8x32xf32>
    %1190 = arith.addf %1189, %1188 : vector<8x32xf32>
    %1191 = vector.broadcast %1151 : vector<8x1xf32> to vector<8x32xf32>
    %1192 = vector.broadcast %5 : vector<1x32xf32> to vector<8x32xf32>
    %1193 = arith.mulf %1191, %1192 : vector<8x32xf32>
    %1194 = arith.addf %1190, %1193 : vector<8x32xf32>
    %1195 = vector.broadcast %1158 : vector<8x1xf32> to vector<8x32xf32>
    %1196 = vector.broadcast %6 : vector<1x32xf32> to vector<8x32xf32>
    %1197 = arith.mulf %1195, %1196 : vector<8x32xf32>
    %1198 = arith.addf %1194, %1197 : vector<8x32xf32>
    %1199 = vector.broadcast %1165 : vector<8x1xf32> to vector<8x32xf32>
    %1200 = vector.broadcast %7 : vector<1x32xf32> to vector<8x32xf32>
    %1201 = arith.mulf %1199, %1200 : vector<8x32xf32>
    %1202 = arith.addf %1198, %1201 : vector<8x32xf32>
    %c0_262 = arith.constant 0 : index
    %c60_263 = arith.constant 60 : index
    %1203 = vector.load %arg1[%c0_262, %c60_263] : memref<8x128xf32, #tpu.memory_space<vmem>>, vector<8x1xf32>
    %1204 = vector.broadcast %1203 : vector<8x1xf32> to vector<8x32xf32>
    %1205 = vector.broadcast %8 : vector<1x32xf32> to vector<8x32xf32>
    %1206 = arith.mulf %1204, %1205 : vector<8x32xf32>
    %1207 = arith.addf %1202, %1206 : vector<8x32xf32>
    %c0_264 = arith.constant 0 : index
    %c61_265 = arith.constant 61 : index
    %1208 = vector.load %arg1[%c0_264, %c61_265] : memref<8x128xf32, #tpu.memory_space<vmem>>, vector<8x1xf32>
    %1209 = vector.broadcast %1208 : vector<8x1xf32> to vector<8x32xf32>
    %1210 = vector.broadcast %9 : vector<1x32xf32> to vector<8x32xf32>
    %1211 = arith.mulf %1209, %1210 : vector<8x32xf32>
    %1212 = arith.addf %1207, %1211 : vector<8x32xf32>
    %1213 = math.tanh %1212 : vector<8x32xf32>
    %1214 = vector.broadcast %10 : vector<1x32xf32> to vector<8x32xf32>
    %1215 = arith.mulf %1213, %1214 : vector<8x32xf32>
    %cst_266 = arith.constant dense<0.000000e+00> : vector<8xf32>
    %1216 = vector.multi_reduction <add>, %1215, %cst_266 [1] : vector<8x32xf32> to vector<8xf32>
    %1217 = vector.shape_cast %1216 : vector<8xf32> to vector<8x1xf32>
    %1218 = arith.addf %1144, %1217 : vector<8x1xf32>
    %1219 = vector.broadcast %14 : vector<1x1xf32> to vector<8x1xf32>
    %1220 = arith.addf %1218, %1219 : vector<8x1xf32>
    %1221 = vector.broadcast %11 : vector<1x32xf32> to vector<8x32xf32>
    %1222 = arith.mulf %1213, %1221 : vector<8x32xf32>
    %cst_267 = arith.constant dense<0.000000e+00> : vector<8xf32>
    %1223 = vector.multi_reduction <add>, %1222, %cst_267 [1] : vector<8x32xf32> to vector<8xf32>
    %1224 = vector.shape_cast %1223 : vector<8xf32> to vector<8x1xf32>
    %1225 = arith.addf %1151, %1224 : vector<8x1xf32>
    %1226 = vector.broadcast %15 : vector<1x1xf32> to vector<8x1xf32>
    %1227 = arith.addf %1225, %1226 : vector<8x1xf32>
    %1228 = vector.broadcast %12 : vector<1x32xf32> to vector<8x32xf32>
    %1229 = arith.mulf %1213, %1228 : vector<8x32xf32>
    %cst_268 = arith.constant dense<0.000000e+00> : vector<8xf32>
    %1230 = vector.multi_reduction <add>, %1229, %cst_268 [1] : vector<8x32xf32> to vector<8xf32>
    %1231 = vector.shape_cast %1230 : vector<8xf32> to vector<8x1xf32>
    %1232 = arith.addf %1158, %1231 : vector<8x1xf32>
    %1233 = vector.broadcast %16 : vector<1x1xf32> to vector<8x1xf32>
    %1234 = arith.addf %1232, %1233 : vector<8x1xf32>
    %1235 = vector.broadcast %13 : vector<1x32xf32> to vector<8x32xf32>
    %1236 = arith.mulf %1213, %1235 : vector<8x32xf32>
    %cst_269 = arith.constant dense<0.000000e+00> : vector<8xf32>
    %1237 = vector.multi_reduction <add>, %1236, %cst_269 [1] : vector<8x32xf32> to vector<8xf32>
    %1238 = vector.shape_cast %1237 : vector<8xf32> to vector<8x1xf32>
    %1239 = arith.addf %1165, %1238 : vector<8x1xf32>
    %1240 = vector.broadcast %17 : vector<1x1xf32> to vector<8x1xf32>
    %1241 = arith.addf %1239, %1240 : vector<8x1xf32>
    %1242 = vector.broadcast %1220 : vector<8x1xf32> to vector<8x4xf32>
    %1243 = vector.broadcast %18 : vector<1x4xf32> to vector<8x4xf32>
    %1244 = arith.mulf %1242, %1243 : vector<8x4xf32>
    %1245 = vector.broadcast %1227 : vector<8x1xf32> to vector<8x4xf32>
    %1246 = vector.broadcast %19 : vector<1x4xf32> to vector<8x4xf32>
    %1247 = arith.mulf %1245, %1246 : vector<8x4xf32>
    %1248 = arith.addf %1244, %1247 : vector<8x4xf32>
    %1249 = vector.broadcast %1234 : vector<8x1xf32> to vector<8x4xf32>
    %1250 = vector.broadcast %20 : vector<1x4xf32> to vector<8x4xf32>
    %1251 = arith.mulf %1249, %1250 : vector<8x4xf32>
    %1252 = arith.addf %1248, %1251 : vector<8x4xf32>
    %1253 = vector.broadcast %1241 : vector<8x1xf32> to vector<8x4xf32>
    %1254 = vector.broadcast %21 : vector<1x4xf32> to vector<8x4xf32>
    %1255 = arith.mulf %1253, %1254 : vector<8x4xf32>
    %1256 = arith.addf %1252, %1255 : vector<8x4xf32>
    %c0_270 = arith.constant 0 : index
    %c64 = arith.constant 64 : index
    %1257 = vector.load %arg10[%c0_270, %c64] : memref<8x128xf32, #tpu.memory_space<vmem>>, vector<8x4xf32>
    tpu.vector_store %arg10[%c0_270, %c64], %1256 {strides = array<i32>} : memref<8x128xf32, #tpu.memory_space<vmem>>, vector<8x4xf32>,
    %c0_271 = arith.constant 0 : index
    %c64_272 = arith.constant 64 : index
    %1258 = vector.load %arg9[%c0_271, %c64_272] : memref<8x128xf32, #tpu.memory_space<vmem>>, vector<8x1xf32>
    tpu.vector_store %arg9[%c0_271, %c64_272], %1220 {strides = array<i32>} : memref<8x128xf32, #tpu.memory_space<vmem>>, vector<8x1xf32>,
    %c0_273 = arith.constant 0 : index
    %c65 = arith.constant 65 : index
    %1259 = vector.load %arg9[%c0_273, %c65] : memref<8x128xf32, #tpu.memory_space<vmem>>, vector<8x1xf32>
    tpu.vector_store %arg9[%c0_273, %c65], %1227 {strides = array<i32>} : memref<8x128xf32, #tpu.memory_space<vmem>>, vector<8x1xf32>,
    %c0_274 = arith.constant 0 : index
    %c66 = arith.constant 66 : index
    %1260 = vector.load %arg9[%c0_274, %c66] : memref<8x128xf32, #tpu.memory_space<vmem>>, vector<8x1xf32>
    tpu.vector_store %arg9[%c0_274, %c66], %1234 {strides = array<i32>} : memref<8x128xf32, #tpu.memory_space<vmem>>, vector<8x1xf32>,
    %c0_275 = arith.constant 0 : index
    %c67 = arith.constant 67 : index
    %1261 = vector.load %arg9[%c0_275, %c67] : memref<8x128xf32, #tpu.memory_space<vmem>>, vector<8x1xf32>
    tpu.vector_store %arg9[%c0_275, %c67], %1241 {strides = array<i32>} : memref<8x128xf32, #tpu.memory_space<vmem>>, vector<8x1xf32>,
    %1262 = vector.broadcast %1220 : vector<8x1xf32> to vector<8x32xf32>
    %1263 = vector.broadcast %4 : vector<1x32xf32> to vector<8x32xf32>
    %1264 = arith.mulf %1262, %1263 : vector<8x32xf32>
    %1265 = vector.broadcast %3 : vector<1x32xf32> to vector<8x32xf32>
    %1266 = arith.addf %1265, %1264 : vector<8x32xf32>
    %1267 = vector.broadcast %1227 : vector<8x1xf32> to vector<8x32xf32>
    %1268 = vector.broadcast %5 : vector<1x32xf32> to vector<8x32xf32>
    %1269 = arith.mulf %1267, %1268 : vector<8x32xf32>
    %1270 = arith.addf %1266, %1269 : vector<8x32xf32>
    %1271 = vector.broadcast %1234 : vector<8x1xf32> to vector<8x32xf32>
    %1272 = vector.broadcast %6 : vector<1x32xf32> to vector<8x32xf32>
    %1273 = arith.mulf %1271, %1272 : vector<8x32xf32>
    %1274 = arith.addf %1270, %1273 : vector<8x32xf32>
    %1275 = vector.broadcast %1241 : vector<8x1xf32> to vector<8x32xf32>
    %1276 = vector.broadcast %7 : vector<1x32xf32> to vector<8x32xf32>
    %1277 = arith.mulf %1275, %1276 : vector<8x32xf32>
    %1278 = arith.addf %1274, %1277 : vector<8x32xf32>
    %c0_276 = arith.constant 0 : index
    %c64_277 = arith.constant 64 : index
    %1279 = vector.load %arg1[%c0_276, %c64_277] : memref<8x128xf32, #tpu.memory_space<vmem>>, vector<8x1xf32>
    %1280 = vector.broadcast %1279 : vector<8x1xf32> to vector<8x32xf32>
    %1281 = vector.broadcast %8 : vector<1x32xf32> to vector<8x32xf32>
    %1282 = arith.mulf %1280, %1281 : vector<8x32xf32>
    %1283 = arith.addf %1278, %1282 : vector<8x32xf32>
    %c0_278 = arith.constant 0 : index
    %c65_279 = arith.constant 65 : index
    %1284 = vector.load %arg1[%c0_278, %c65_279] : memref<8x128xf32, #tpu.memory_space<vmem>>, vector<8x1xf32>
    %1285 = vector.broadcast %1284 : vector<8x1xf32> to vector<8x32xf32>
    %1286 = vector.broadcast %9 : vector<1x32xf32> to vector<8x32xf32>
    %1287 = arith.mulf %1285, %1286 : vector<8x32xf32>
    %1288 = arith.addf %1283, %1287 : vector<8x32xf32>
    %1289 = math.tanh %1288 : vector<8x32xf32>
    %1290 = vector.broadcast %10 : vector<1x32xf32> to vector<8x32xf32>
    %1291 = arith.mulf %1289, %1290 : vector<8x32xf32>
    %cst_280 = arith.constant dense<0.000000e+00> : vector<8xf32>
    %1292 = vector.multi_reduction <add>, %1291, %cst_280 [1] : vector<8x32xf32> to vector<8xf32>
    %1293 = vector.shape_cast %1292 : vector<8xf32> to vector<8x1xf32>
    %1294 = arith.addf %1220, %1293 : vector<8x1xf32>
    %1295 = vector.broadcast %14 : vector<1x1xf32> to vector<8x1xf32>
    %1296 = arith.addf %1294, %1295 : vector<8x1xf32>
    %1297 = vector.broadcast %11 : vector<1x32xf32> to vector<8x32xf32>
    %1298 = arith.mulf %1289, %1297 : vector<8x32xf32>
    %cst_281 = arith.constant dense<0.000000e+00> : vector<8xf32>
    %1299 = vector.multi_reduction <add>, %1298, %cst_281 [1] : vector<8x32xf32> to vector<8xf32>
    %1300 = vector.shape_cast %1299 : vector<8xf32> to vector<8x1xf32>
    %1301 = arith.addf %1227, %1300 : vector<8x1xf32>
    %1302 = vector.broadcast %15 : vector<1x1xf32> to vector<8x1xf32>
    %1303 = arith.addf %1301, %1302 : vector<8x1xf32>
    %1304 = vector.broadcast %12 : vector<1x32xf32> to vector<8x32xf32>
    %1305 = arith.mulf %1289, %1304 : vector<8x32xf32>
    %cst_282 = arith.constant dense<0.000000e+00> : vector<8xf32>
    %1306 = vector.multi_reduction <add>, %1305, %cst_282 [1] : vector<8x32xf32> to vector<8xf32>
    %1307 = vector.shape_cast %1306 : vector<8xf32> to vector<8x1xf32>
    %1308 = arith.addf %1234, %1307 : vector<8x1xf32>
    %1309 = vector.broadcast %16 : vector<1x1xf32> to vector<8x1xf32>
    %1310 = arith.addf %1308, %1309 : vector<8x1xf32>
    %1311 = vector.broadcast %13 : vector<1x32xf32> to vector<8x32xf32>
    %1312 = arith.mulf %1289, %1311 : vector<8x32xf32>
    %cst_283 = arith.constant dense<0.000000e+00> : vector<8xf32>
    %1313 = vector.multi_reduction <add>, %1312, %cst_283 [1] : vector<8x32xf32> to vector<8xf32>
    %1314 = vector.shape_cast %1313 : vector<8xf32> to vector<8x1xf32>
    %1315 = arith.addf %1241, %1314 : vector<8x1xf32>
    %1316 = vector.broadcast %17 : vector<1x1xf32> to vector<8x1xf32>
    %1317 = arith.addf %1315, %1316 : vector<8x1xf32>
    %1318 = vector.broadcast %1296 : vector<8x1xf32> to vector<8x4xf32>
    %1319 = vector.broadcast %18 : vector<1x4xf32> to vector<8x4xf32>
    %1320 = arith.mulf %1318, %1319 : vector<8x4xf32>
    %1321 = vector.broadcast %1303 : vector<8x1xf32> to vector<8x4xf32>
    %1322 = vector.broadcast %19 : vector<1x4xf32> to vector<8x4xf32>
    %1323 = arith.mulf %1321, %1322 : vector<8x4xf32>
    %1324 = arith.addf %1320, %1323 : vector<8x4xf32>
    %1325 = vector.broadcast %1310 : vector<8x1xf32> to vector<8x4xf32>
    %1326 = vector.broadcast %20 : vector<1x4xf32> to vector<8x4xf32>
    %1327 = arith.mulf %1325, %1326 : vector<8x4xf32>
    %1328 = arith.addf %1324, %1327 : vector<8x4xf32>
    %1329 = vector.broadcast %1317 : vector<8x1xf32> to vector<8x4xf32>
    %1330 = vector.broadcast %21 : vector<1x4xf32> to vector<8x4xf32>
    %1331 = arith.mulf %1329, %1330 : vector<8x4xf32>
    %1332 = arith.addf %1328, %1331 : vector<8x4xf32>
    %c0_284 = arith.constant 0 : index
    %c68 = arith.constant 68 : index
    %1333 = vector.load %arg10[%c0_284, %c68] : memref<8x128xf32, #tpu.memory_space<vmem>>, vector<8x4xf32>
    tpu.vector_store %arg10[%c0_284, %c68], %1332 {strides = array<i32>} : memref<8x128xf32, #tpu.memory_space<vmem>>, vector<8x4xf32>,
    %c0_285 = arith.constant 0 : index
    %c68_286 = arith.constant 68 : index
    %1334 = vector.load %arg9[%c0_285, %c68_286] : memref<8x128xf32, #tpu.memory_space<vmem>>, vector<8x1xf32>
    tpu.vector_store %arg9[%c0_285, %c68_286], %1296 {strides = array<i32>} : memref<8x128xf32, #tpu.memory_space<vmem>>, vector<8x1xf32>,
    %c0_287 = arith.constant 0 : index
    %c69 = arith.constant 69 : index
    %1335 = vector.load %arg9[%c0_287, %c69] : memref<8x128xf32, #tpu.memory_space<vmem>>, vector<8x1xf32>
    tpu.vector_store %arg9[%c0_287, %c69], %1303 {strides = array<i32>} : memref<8x128xf32, #tpu.memory_space<vmem>>, vector<8x1xf32>,
    %c0_288 = arith.constant 0 : index
    %c70 = arith.constant 70 : index
    %1336 = vector.load %arg9[%c0_288, %c70] : memref<8x128xf32, #tpu.memory_space<vmem>>, vector<8x1xf32>
    tpu.vector_store %arg9[%c0_288, %c70], %1310 {strides = array<i32>} : memref<8x128xf32, #tpu.memory_space<vmem>>, vector<8x1xf32>,
    %c0_289 = arith.constant 0 : index
    %c71 = arith.constant 71 : index
    %1337 = vector.load %arg9[%c0_289, %c71] : memref<8x128xf32, #tpu.memory_space<vmem>>, vector<8x1xf32>
    tpu.vector_store %arg9[%c0_289, %c71], %1317 {strides = array<i32>} : memref<8x128xf32, #tpu.memory_space<vmem>>, vector<8x1xf32>,
    %1338 = vector.broadcast %1296 : vector<8x1xf32> to vector<8x32xf32>
    %1339 = vector.broadcast %4 : vector<1x32xf32> to vector<8x32xf32>
    %1340 = arith.mulf %1338, %1339 : vector<8x32xf32>
    %1341 = vector.broadcast %3 : vector<1x32xf32> to vector<8x32xf32>
    %1342 = arith.addf %1341, %1340 : vector<8x32xf32>
    %1343 = vector.broadcast %1303 : vector<8x1xf32> to vector<8x32xf32>
    %1344 = vector.broadcast %5 : vector<1x32xf32> to vector<8x32xf32>
    %1345 = arith.mulf %1343, %1344 : vector<8x32xf32>
    %1346 = arith.addf %1342, %1345 : vector<8x32xf32>
    %1347 = vector.broadcast %1310 : vector<8x1xf32> to vector<8x32xf32>
    %1348 = vector.broadcast %6 : vector<1x32xf32> to vector<8x32xf32>
    %1349 = arith.mulf %1347, %1348 : vector<8x32xf32>
    %1350 = arith.addf %1346, %1349 : vector<8x32xf32>
    %1351 = vector.broadcast %1317 : vector<8x1xf32> to vector<8x32xf32>
    %1352 = vector.broadcast %7 : vector<1x32xf32> to vector<8x32xf32>
    %1353 = arith.mulf %1351, %1352 : vector<8x32xf32>
    %1354 = arith.addf %1350, %1353 : vector<8x32xf32>
    %c0_290 = arith.constant 0 : index
    %c68_291 = arith.constant 68 : index
    %1355 = vector.load %arg1[%c0_290, %c68_291] : memref<8x128xf32, #tpu.memory_space<vmem>>, vector<8x1xf32>
    %1356 = vector.broadcast %1355 : vector<8x1xf32> to vector<8x32xf32>
    %1357 = vector.broadcast %8 : vector<1x32xf32> to vector<8x32xf32>
    %1358 = arith.mulf %1356, %1357 : vector<8x32xf32>
    %1359 = arith.addf %1354, %1358 : vector<8x32xf32>
    %c0_292 = arith.constant 0 : index
    %c69_293 = arith.constant 69 : index
    %1360 = vector.load %arg1[%c0_292, %c69_293] : memref<8x128xf32, #tpu.memory_space<vmem>>, vector<8x1xf32>
    %1361 = vector.broadcast %1360 : vector<8x1xf32> to vector<8x32xf32>
    %1362 = vector.broadcast %9 : vector<1x32xf32> to vector<8x32xf32>
    %1363 = arith.mulf %1361, %1362 : vector<8x32xf32>
    %1364 = arith.addf %1359, %1363 : vector<8x32xf32>
    %1365 = math.tanh %1364 : vector<8x32xf32>
    %1366 = vector.broadcast %10 : vector<1x32xf32> to vector<8x32xf32>
    %1367 = arith.mulf %1365, %1366 : vector<8x32xf32>
    %cst_294 = arith.constant dense<0.000000e+00> : vector<8xf32>
    %1368 = vector.multi_reduction <add>, %1367, %cst_294 [1] : vector<8x32xf32> to vector<8xf32>
    %1369 = vector.shape_cast %1368 : vector<8xf32> to vector<8x1xf32>
    %1370 = arith.addf %1296, %1369 : vector<8x1xf32>
    %1371 = vector.broadcast %14 : vector<1x1xf32> to vector<8x1xf32>
    %1372 = arith.addf %1370, %1371 : vector<8x1xf32>
    %1373 = vector.broadcast %11 : vector<1x32xf32> to vector<8x32xf32>
    %1374 = arith.mulf %1365, %1373 : vector<8x32xf32>
    %cst_295 = arith.constant dense<0.000000e+00> : vector<8xf32>
    %1375 = vector.multi_reduction <add>, %1374, %cst_295 [1] : vector<8x32xf32> to vector<8xf32>
    %1376 = vector.shape_cast %1375 : vector<8xf32> to vector<8x1xf32>
    %1377 = arith.addf %1303, %1376 : vector<8x1xf32>
    %1378 = vector.broadcast %15 : vector<1x1xf32> to vector<8x1xf32>
    %1379 = arith.addf %1377, %1378 : vector<8x1xf32>
    %1380 = vector.broadcast %12 : vector<1x32xf32> to vector<8x32xf32>
    %1381 = arith.mulf %1365, %1380 : vector<8x32xf32>
    %cst_296 = arith.constant dense<0.000000e+00> : vector<8xf32>
    %1382 = vector.multi_reduction <add>, %1381, %cst_296 [1] : vector<8x32xf32> to vector<8xf32>
    %1383 = vector.shape_cast %1382 : vector<8xf32> to vector<8x1xf32>
    %1384 = arith.addf %1310, %1383 : vector<8x1xf32>
    %1385 = vector.broadcast %16 : vector<1x1xf32> to vector<8x1xf32>
    %1386 = arith.addf %1384, %1385 : vector<8x1xf32>
    %1387 = vector.broadcast %13 : vector<1x32xf32> to vector<8x32xf32>
    %1388 = arith.mulf %1365, %1387 : vector<8x32xf32>
    %cst_297 = arith.constant dense<0.000000e+00> : vector<8xf32>
    %1389 = vector.multi_reduction <add>, %1388, %cst_297 [1] : vector<8x32xf32> to vector<8xf32>
    %1390 = vector.shape_cast %1389 : vector<8xf32> to vector<8x1xf32>
    %1391 = arith.addf %1317, %1390 : vector<8x1xf32>
    %1392 = vector.broadcast %17 : vector<1x1xf32> to vector<8x1xf32>
    %1393 = arith.addf %1391, %1392 : vector<8x1xf32>
    %1394 = vector.broadcast %1372 : vector<8x1xf32> to vector<8x4xf32>
    %1395 = vector.broadcast %18 : vector<1x4xf32> to vector<8x4xf32>
    %1396 = arith.mulf %1394, %1395 : vector<8x4xf32>
    %1397 = vector.broadcast %1379 : vector<8x1xf32> to vector<8x4xf32>
    %1398 = vector.broadcast %19 : vector<1x4xf32> to vector<8x4xf32>
    %1399 = arith.mulf %1397, %1398 : vector<8x4xf32>
    %1400 = arith.addf %1396, %1399 : vector<8x4xf32>
    %1401 = vector.broadcast %1386 : vector<8x1xf32> to vector<8x4xf32>
    %1402 = vector.broadcast %20 : vector<1x4xf32> to vector<8x4xf32>
    %1403 = arith.mulf %1401, %1402 : vector<8x4xf32>
    %1404 = arith.addf %1400, %1403 : vector<8x4xf32>
    %1405 = vector.broadcast %1393 : vector<8x1xf32> to vector<8x4xf32>
    %1406 = vector.broadcast %21 : vector<1x4xf32> to vector<8x4xf32>
    %1407 = arith.mulf %1405, %1406 : vector<8x4xf32>
    %1408 = arith.addf %1404, %1407 : vector<8x4xf32>
    %c0_298 = arith.constant 0 : index
    %c72 = arith.constant 72 : index
    %1409 = vector.load %arg10[%c0_298, %c72] : memref<8x128xf32, #tpu.memory_space<vmem>>, vector<8x4xf32>
    tpu.vector_store %arg10[%c0_298, %c72], %1408 {strides = array<i32>} : memref<8x128xf32, #tpu.memory_space<vmem>>, vector<8x4xf32>,
    %c0_299 = arith.constant 0 : index
    %c72_300 = arith.constant 72 : index
    %1410 = vector.load %arg9[%c0_299, %c72_300] : memref<8x128xf32, #tpu.memory_space<vmem>>, vector<8x1xf32>
    tpu.vector_store %arg9[%c0_299, %c72_300], %1372 {strides = array<i32>} : memref<8x128xf32, #tpu.memory_space<vmem>>, vector<8x1xf32>,
    %c0_301 = arith.constant 0 : index
    %c73 = arith.constant 73 : index
    %1411 = vector.load %arg9[%c0_301, %c73] : memref<8x128xf32, #tpu.memory_space<vmem>>, vector<8x1xf32>
    tpu.vector_store %arg9[%c0_301, %c73], %1379 {strides = array<i32>} : memref<8x128xf32, #tpu.memory_space<vmem>>, vector<8x1xf32>,
    %c0_302 = arith.constant 0 : index
    %c74 = arith.constant 74 : index
    %1412 = vector.load %arg9[%c0_302, %c74] : memref<8x128xf32, #tpu.memory_space<vmem>>, vector<8x1xf32>
    tpu.vector_store %arg9[%c0_302, %c74], %1386 {strides = array<i32>} : memref<8x128xf32, #tpu.memory_space<vmem>>, vector<8x1xf32>,
    %c0_303 = arith.constant 0 : index
    %c75 = arith.constant 75 : index
    %1413 = vector.load %arg9[%c0_303, %c75] : memref<8x128xf32, #tpu.memory_space<vmem>>, vector<8x1xf32>
    tpu.vector_store %arg9[%c0_303, %c75], %1393 {strides = array<i32>} : memref<8x128xf32, #tpu.memory_space<vmem>>, vector<8x1xf32>,
    %1414 = vector.broadcast %1372 : vector<8x1xf32> to vector<8x32xf32>
    %1415 = vector.broadcast %4 : vector<1x32xf32> to vector<8x32xf32>
    %1416 = arith.mulf %1414, %1415 : vector<8x32xf32>
    %1417 = vector.broadcast %3 : vector<1x32xf32> to vector<8x32xf32>
    %1418 = arith.addf %1417, %1416 : vector<8x32xf32>
    %1419 = vector.broadcast %1379 : vector<8x1xf32> to vector<8x32xf32>
    %1420 = vector.broadcast %5 : vector<1x32xf32> to vector<8x32xf32>
    %1421 = arith.mulf %1419, %1420 : vector<8x32xf32>
    %1422 = arith.addf %1418, %1421 : vector<8x32xf32>
    %1423 = vector.broadcast %1386 : vector<8x1xf32> to vector<8x32xf32>
    %1424 = vector.broadcast %6 : vector<1x32xf32> to vector<8x32xf32>
    %1425 = arith.mulf %1423, %1424 : vector<8x32xf32>
    %1426 = arith.addf %1422, %1425 : vector<8x32xf32>
    %1427 = vector.broadcast %1393 : vector<8x1xf32> to vector<8x32xf32>
    %1428 = vector.broadcast %7 : vector<1x32xf32> to vector<8x32xf32>
    %1429 = arith.mulf %1427, %1428 : vector<8x32xf32>
    %1430 = arith.addf %1426, %1429 : vector<8x32xf32>
    %c0_304 = arith.constant 0 : index
    %c72_305 = arith.constant 72 : index
    %1431 = vector.load %arg1[%c0_304, %c72_305] : memref<8x128xf32, #tpu.memory_space<vmem>>, vector<8x1xf32>
    %1432 = vector.broadcast %1431 : vector<8x1xf32> to vector<8x32xf32>
    %1433 = vector.broadcast %8 : vector<1x32xf32> to vector<8x32xf32>
    %1434 = arith.mulf %1432, %1433 : vector<8x32xf32>
    %1435 = arith.addf %1430, %1434 : vector<8x32xf32>
    %c0_306 = arith.constant 0 : index
    %c73_307 = arith.constant 73 : index
    %1436 = vector.load %arg1[%c0_306, %c73_307] : memref<8x128xf32, #tpu.memory_space<vmem>>, vector<8x1xf32>
    %1437 = vector.broadcast %1436 : vector<8x1xf32> to vector<8x32xf32>
    %1438 = vector.broadcast %9 : vector<1x32xf32> to vector<8x32xf32>
    %1439 = arith.mulf %1437, %1438 : vector<8x32xf32>
    %1440 = arith.addf %1435, %1439 : vector<8x32xf32>
    %1441 = math.tanh %1440 : vector<8x32xf32>
    %1442 = vector.broadcast %10 : vector<1x32xf32> to vector<8x32xf32>
    %1443 = arith.mulf %1441, %1442 : vector<8x32xf32>
    %cst_308 = arith.constant dense<0.000000e+00> : vector<8xf32>
    %1444 = vector.multi_reduction <add>, %1443, %cst_308 [1] : vector<8x32xf32> to vector<8xf32>
    %1445 = vector.shape_cast %1444 : vector<8xf32> to vector<8x1xf32>
    %1446 = arith.addf %1372, %1445 : vector<8x1xf32>
    %1447 = vector.broadcast %14 : vector<1x1xf32> to vector<8x1xf32>
    %1448 = arith.addf %1446, %1447 : vector<8x1xf32>
    %1449 = vector.broadcast %11 : vector<1x32xf32> to vector<8x32xf32>
    %1450 = arith.mulf %1441, %1449 : vector<8x32xf32>
    %cst_309 = arith.constant dense<0.000000e+00> : vector<8xf32>
    %1451 = vector.multi_reduction <add>, %1450, %cst_309 [1] : vector<8x32xf32> to vector<8xf32>
    %1452 = vector.shape_cast %1451 : vector<8xf32> to vector<8x1xf32>
    %1453 = arith.addf %1379, %1452 : vector<8x1xf32>
    %1454 = vector.broadcast %15 : vector<1x1xf32> to vector<8x1xf32>
    %1455 = arith.addf %1453, %1454 : vector<8x1xf32>
    %1456 = vector.broadcast %12 : vector<1x32xf32> to vector<8x32xf32>
    %1457 = arith.mulf %1441, %1456 : vector<8x32xf32>
    %cst_310 = arith.constant dense<0.000000e+00> : vector<8xf32>
    %1458 = vector.multi_reduction <add>, %1457, %cst_310 [1] : vector<8x32xf32> to vector<8xf32>
    %1459 = vector.shape_cast %1458 : vector<8xf32> to vector<8x1xf32>
    %1460 = arith.addf %1386, %1459 : vector<8x1xf32>
    %1461 = vector.broadcast %16 : vector<1x1xf32> to vector<8x1xf32>
    %1462 = arith.addf %1460, %1461 : vector<8x1xf32>
    %1463 = vector.broadcast %13 : vector<1x32xf32> to vector<8x32xf32>
    %1464 = arith.mulf %1441, %1463 : vector<8x32xf32>
    %cst_311 = arith.constant dense<0.000000e+00> : vector<8xf32>
    %1465 = vector.multi_reduction <add>, %1464, %cst_311 [1] : vector<8x32xf32> to vector<8xf32>
    %1466 = vector.shape_cast %1465 : vector<8xf32> to vector<8x1xf32>
    %1467 = arith.addf %1393, %1466 : vector<8x1xf32>
    %1468 = vector.broadcast %17 : vector<1x1xf32> to vector<8x1xf32>
    %1469 = arith.addf %1467, %1468 : vector<8x1xf32>
    %1470 = vector.broadcast %1448 : vector<8x1xf32> to vector<8x4xf32>
    %1471 = vector.broadcast %18 : vector<1x4xf32> to vector<8x4xf32>
    %1472 = arith.mulf %1470, %1471 : vector<8x4xf32>
    %1473 = vector.broadcast %1455 : vector<8x1xf32> to vector<8x4xf32>
    %1474 = vector.broadcast %19 : vector<1x4xf32> to vector<8x4xf32>
    %1475 = arith.mulf %1473, %1474 : vector<8x4xf32>
    %1476 = arith.addf %1472, %1475 : vector<8x4xf32>
    %1477 = vector.broadcast %1462 : vector<8x1xf32> to vector<8x4xf32>
    %1478 = vector.broadcast %20 : vector<1x4xf32> to vector<8x4xf32>
    %1479 = arith.mulf %1477, %1478 : vector<8x4xf32>
    %1480 = arith.addf %1476, %1479 : vector<8x4xf32>
    %1481 = vector.broadcast %1469 : vector<8x1xf32> to vector<8x4xf32>
    %1482 = vector.broadcast %21 : vector<1x4xf32> to vector<8x4xf32>
    %1483 = arith.mulf %1481, %1482 : vector<8x4xf32>
    %1484 = arith.addf %1480, %1483 : vector<8x4xf32>
    %c0_312 = arith.constant 0 : index
    %c76 = arith.constant 76 : index
    %1485 = vector.load %arg10[%c0_312, %c76] : memref<8x128xf32, #tpu.memory_space<vmem>>, vector<8x4xf32>
    tpu.vector_store %arg10[%c0_312, %c76], %1484 {strides = array<i32>} : memref<8x128xf32, #tpu.memory_space<vmem>>, vector<8x4xf32>,
    %c0_313 = arith.constant 0 : index
    %c76_314 = arith.constant 76 : index
    %1486 = vector.load %arg9[%c0_313, %c76_314] : memref<8x128xf32, #tpu.memory_space<vmem>>, vector<8x1xf32>
    tpu.vector_store %arg9[%c0_313, %c76_314], %1448 {strides = array<i32>} : memref<8x128xf32, #tpu.memory_space<vmem>>, vector<8x1xf32>,
    %c0_315 = arith.constant 0 : index
    %c77 = arith.constant 77 : index
    %1487 = vector.load %arg9[%c0_315, %c77] : memref<8x128xf32, #tpu.memory_space<vmem>>, vector<8x1xf32>
    tpu.vector_store %arg9[%c0_315, %c77], %1455 {strides = array<i32>} : memref<8x128xf32, #tpu.memory_space<vmem>>, vector<8x1xf32>,
    %c0_316 = arith.constant 0 : index
    %c78 = arith.constant 78 : index
    %1488 = vector.load %arg9[%c0_316, %c78] : memref<8x128xf32, #tpu.memory_space<vmem>>, vector<8x1xf32>
    tpu.vector_store %arg9[%c0_316, %c78], %1462 {strides = array<i32>} : memref<8x128xf32, #tpu.memory_space<vmem>>, vector<8x1xf32>,
    %c0_317 = arith.constant 0 : index
    %c79 = arith.constant 79 : index
    %1489 = vector.load %arg9[%c0_317, %c79] : memref<8x128xf32, #tpu.memory_space<vmem>>, vector<8x1xf32>
    tpu.vector_store %arg9[%c0_317, %c79], %1469 {strides = array<i32>} : memref<8x128xf32, #tpu.memory_space<vmem>>, vector<8x1xf32>,
    %1490 = vector.broadcast %1448 : vector<8x1xf32> to vector<8x32xf32>
    %1491 = vector.broadcast %4 : vector<1x32xf32> to vector<8x32xf32>
    %1492 = arith.mulf %1490, %1491 : vector<8x32xf32>
    %1493 = vector.broadcast %3 : vector<1x32xf32> to vector<8x32xf32>
    %1494 = arith.addf %1493, %1492 : vector<8x32xf32>
    %1495 = vector.broadcast %1455 : vector<8x1xf32> to vector<8x32xf32>
    %1496 = vector.broadcast %5 : vector<1x32xf32> to vector<8x32xf32>
    %1497 = arith.mulf %1495, %1496 : vector<8x32xf32>
    %1498 = arith.addf %1494, %1497 : vector<8x32xf32>
    %1499 = vector.broadcast %1462 : vector<8x1xf32> to vector<8x32xf32>
    %1500 = vector.broadcast %6 : vector<1x32xf32> to vector<8x32xf32>
    %1501 = arith.mulf %1499, %1500 : vector<8x32xf32>
    %1502 = arith.addf %1498, %1501 : vector<8x32xf32>
    %1503 = vector.broadcast %1469 : vector<8x1xf32> to vector<8x32xf32>
    %1504 = vector.broadcast %7 : vector<1x32xf32> to vector<8x32xf32>
    %1505 = arith.mulf %1503, %1504 : vector<8x32xf32>
    %1506 = arith.addf %1502, %1505 : vector<8x32xf32>
    %c0_318 = arith.constant 0 : index
    %c76_319 = arith.constant 76 : index
    %1507 = vector.load %arg1[%c0_318, %c76_319] : memref<8x128xf32, #tpu.memory_space<vmem>>, vector<8x1xf32>
    %1508 = vector.broadcast %1507 : vector<8x1xf32> to vector<8x32xf32>
    %1509 = vector.broadcast %8 : vector<1x32xf32> to vector<8x32xf32>
    %1510 = arith.mulf %1508, %1509 : vector<8x32xf32>
    %1511 = arith.addf %1506, %1510 : vector<8x32xf32>
    %c0_320 = arith.constant 0 : index
    %c77_321 = arith.constant 77 : index
    %1512 = vector.load %arg1[%c0_320, %c77_321] : memref<8x128xf32, #tpu.memory_space<vmem>>, vector<8x1xf32>
    %1513 = vector.broadcast %1512 : vector<8x1xf32> to vector<8x32xf32>
    %1514 = vector.broadcast %9 : vector<1x32xf32> to vector<8x32xf32>
    %1515 = arith.mulf %1513, %1514 : vector<8x32xf32>
    %1516 = arith.addf %1511, %1515 : vector<8x32xf32>
    %1517 = math.tanh %1516 : vector<8x32xf32>
    %1518 = vector.broadcast %10 : vector<1x32xf32> to vector<8x32xf32>
    %1519 = arith.mulf %1517, %1518 : vector<8x32xf32>
    %cst_322 = arith.constant dense<0.000000e+00> : vector<8xf32>
    %1520 = vector.multi_reduction <add>, %1519, %cst_322 [1] : vector<8x32xf32> to vector<8xf32>
    %1521 = vector.shape_cast %1520 : vector<8xf32> to vector<8x1xf32>
    %1522 = arith.addf %1448, %1521 : vector<8x1xf32>
    %1523 = vector.broadcast %14 : vector<1x1xf32> to vector<8x1xf32>
    %1524 = arith.addf %1522, %1523 : vector<8x1xf32>
    %1525 = vector.broadcast %11 : vector<1x32xf32> to vector<8x32xf32>
    %1526 = arith.mulf %1517, %1525 : vector<8x32xf32>
    %cst_323 = arith.constant dense<0.000000e+00> : vector<8xf32>
    %1527 = vector.multi_reduction <add>, %1526, %cst_323 [1] : vector<8x32xf32> to vector<8xf32>
    %1528 = vector.shape_cast %1527 : vector<8xf32> to vector<8x1xf32>
    %1529 = arith.addf %1455, %1528 : vector<8x1xf32>
    %1530 = vector.broadcast %15 : vector<1x1xf32> to vector<8x1xf32>
    %1531 = arith.addf %1529, %1530 : vector<8x1xf32>
    %1532 = vector.broadcast %12 : vector<1x32xf32> to vector<8x32xf32>
    %1533 = arith.mulf %1517, %1532 : vector<8x32xf32>
    %cst_324 = arith.constant dense<0.000000e+00> : vector<8xf32>
    %1534 = vector.multi_reduction <add>, %1533, %cst_324 [1] : vector<8x32xf32> to vector<8xf32>
    %1535 = vector.shape_cast %1534 : vector<8xf32> to vector<8x1xf32>
    %1536 = arith.addf %1462, %1535 : vector<8x1xf32>
    %1537 = vector.broadcast %16 : vector<1x1xf32> to vector<8x1xf32>
    %1538 = arith.addf %1536, %1537 : vector<8x1xf32>
    %1539 = vector.broadcast %13 : vector<1x32xf32> to vector<8x32xf32>
    %1540 = arith.mulf %1517, %1539 : vector<8x32xf32>
    %cst_325 = arith.constant dense<0.000000e+00> : vector<8xf32>
    %1541 = vector.multi_reduction <add>, %1540, %cst_325 [1] : vector<8x32xf32> to vector<8xf32>
    %1542 = vector.shape_cast %1541 : vector<8xf32> to vector<8x1xf32>
    %1543 = arith.addf %1469, %1542 : vector<8x1xf32>
    %1544 = vector.broadcast %17 : vector<1x1xf32> to vector<8x1xf32>
    %1545 = arith.addf %1543, %1544 : vector<8x1xf32>
    %1546 = vector.broadcast %1524 : vector<8x1xf32> to vector<8x4xf32>
    %1547 = vector.broadcast %18 : vector<1x4xf32> to vector<8x4xf32>
    %1548 = arith.mulf %1546, %1547 : vector<8x4xf32>
    %1549 = vector.broadcast %1531 : vector<8x1xf32> to vector<8x4xf32>
    %1550 = vector.broadcast %19 : vector<1x4xf32> to vector<8x4xf32>
    %1551 = arith.mulf %1549, %1550 : vector<8x4xf32>
    %1552 = arith.addf %1548, %1551 : vector<8x4xf32>
    %1553 = vector.broadcast %1538 : vector<8x1xf32> to vector<8x4xf32>
    %1554 = vector.broadcast %20 : vector<1x4xf32> to vector<8x4xf32>
    %1555 = arith.mulf %1553, %1554 : vector<8x4xf32>
    %1556 = arith.addf %1552, %1555 : vector<8x4xf32>
    %1557 = vector.broadcast %1545 : vector<8x1xf32> to vector<8x4xf32>
    %1558 = vector.broadcast %21 : vector<1x4xf32> to vector<8x4xf32>
    %1559 = arith.mulf %1557, %1558 : vector<8x4xf32>
    %1560 = arith.addf %1556, %1559 : vector<8x4xf32>
    %c0_326 = arith.constant 0 : index
    %c80 = arith.constant 80 : index
    %1561 = vector.load %arg10[%c0_326, %c80] : memref<8x128xf32, #tpu.memory_space<vmem>>, vector<8x4xf32>
    tpu.vector_store %arg10[%c0_326, %c80], %1560 {strides = array<i32>} : memref<8x128xf32, #tpu.memory_space<vmem>>, vector<8x4xf32>,
    %c0_327 = arith.constant 0 : index
    %c80_328 = arith.constant 80 : index
    %1562 = vector.load %arg9[%c0_327, %c80_328] : memref<8x128xf32, #tpu.memory_space<vmem>>, vector<8x1xf32>
    tpu.vector_store %arg9[%c0_327, %c80_328], %1524 {strides = array<i32>} : memref<8x128xf32, #tpu.memory_space<vmem>>, vector<8x1xf32>,
    %c0_329 = arith.constant 0 : index
    %c81 = arith.constant 81 : index
    %1563 = vector.load %arg9[%c0_329, %c81] : memref<8x128xf32, #tpu.memory_space<vmem>>, vector<8x1xf32>
    tpu.vector_store %arg9[%c0_329, %c81], %1531 {strides = array<i32>} : memref<8x128xf32, #tpu.memory_space<vmem>>, vector<8x1xf32>,
    %c0_330 = arith.constant 0 : index
    %c82 = arith.constant 82 : index
    %1564 = vector.load %arg9[%c0_330, %c82] : memref<8x128xf32, #tpu.memory_space<vmem>>, vector<8x1xf32>
    tpu.vector_store %arg9[%c0_330, %c82], %1538 {strides = array<i32>} : memref<8x128xf32, #tpu.memory_space<vmem>>, vector<8x1xf32>,
    %c0_331 = arith.constant 0 : index
    %c83 = arith.constant 83 : index
    %1565 = vector.load %arg9[%c0_331, %c83] : memref<8x128xf32, #tpu.memory_space<vmem>>, vector<8x1xf32>
    tpu.vector_store %arg9[%c0_331, %c83], %1545 {strides = array<i32>} : memref<8x128xf32, #tpu.memory_space<vmem>>, vector<8x1xf32>,
    %1566 = vector.broadcast %1524 : vector<8x1xf32> to vector<8x32xf32>
    %1567 = vector.broadcast %4 : vector<1x32xf32> to vector<8x32xf32>
    %1568 = arith.mulf %1566, %1567 : vector<8x32xf32>
    %1569 = vector.broadcast %3 : vector<1x32xf32> to vector<8x32xf32>
    %1570 = arith.addf %1569, %1568 : vector<8x32xf32>
    %1571 = vector.broadcast %1531 : vector<8x1xf32> to vector<8x32xf32>
    %1572 = vector.broadcast %5 : vector<1x32xf32> to vector<8x32xf32>
    %1573 = arith.mulf %1571, %1572 : vector<8x32xf32>
    %1574 = arith.addf %1570, %1573 : vector<8x32xf32>
    %1575 = vector.broadcast %1538 : vector<8x1xf32> to vector<8x32xf32>
    %1576 = vector.broadcast %6 : vector<1x32xf32> to vector<8x32xf32>
    %1577 = arith.mulf %1575, %1576 : vector<8x32xf32>
    %1578 = arith.addf %1574, %1577 : vector<8x32xf32>
    %1579 = vector.broadcast %1545 : vector<8x1xf32> to vector<8x32xf32>
    %1580 = vector.broadcast %7 : vector<1x32xf32> to vector<8x32xf32>
    %1581 = arith.mulf %1579, %1580 : vector<8x32xf32>
    %1582 = arith.addf %1578, %1581 : vector<8x32xf32>
    %c0_332 = arith.constant 0 : index
    %c80_333 = arith.constant 80 : index
    %1583 = vector.load %arg1[%c0_332, %c80_333] : memref<8x128xf32, #tpu.memory_space<vmem>>, vector<8x1xf32>
    %1584 = vector.broadcast %1583 : vector<8x1xf32> to vector<8x32xf32>
    %1585 = vector.broadcast %8 : vector<1x32xf32> to vector<8x32xf32>
    %1586 = arith.mulf %1584, %1585 : vector<8x32xf32>
    %1587 = arith.addf %1582, %1586 : vector<8x32xf32>
    %c0_334 = arith.constant 0 : index
    %c81_335 = arith.constant 81 : index
    %1588 = vector.load %arg1[%c0_334, %c81_335] : memref<8x128xf32, #tpu.memory_space<vmem>>, vector<8x1xf32>
    %1589 = vector.broadcast %1588 : vector<8x1xf32> to vector<8x32xf32>
    %1590 = vector.broadcast %9 : vector<1x32xf32> to vector<8x32xf32>
    %1591 = arith.mulf %1589, %1590 : vector<8x32xf32>
    %1592 = arith.addf %1587, %1591 : vector<8x32xf32>
    %1593 = math.tanh %1592 : vector<8x32xf32>
    %1594 = vector.broadcast %10 : vector<1x32xf32> to vector<8x32xf32>
    %1595 = arith.mulf %1593, %1594 : vector<8x32xf32>
    %cst_336 = arith.constant dense<0.000000e+00> : vector<8xf32>
    %1596 = vector.multi_reduction <add>, %1595, %cst_336 [1] : vector<8x32xf32> to vector<8xf32>
    %1597 = vector.shape_cast %1596 : vector<8xf32> to vector<8x1xf32>
    %1598 = arith.addf %1524, %1597 : vector<8x1xf32>
    %1599 = vector.broadcast %14 : vector<1x1xf32> to vector<8x1xf32>
    %1600 = arith.addf %1598, %1599 : vector<8x1xf32>
    %1601 = vector.broadcast %11 : vector<1x32xf32> to vector<8x32xf32>
    %1602 = arith.mulf %1593, %1601 : vector<8x32xf32>
    %cst_337 = arith.constant dense<0.000000e+00> : vector<8xf32>
    %1603 = vector.multi_reduction <add>, %1602, %cst_337 [1] : vector<8x32xf32> to vector<8xf32>
    %1604 = vector.shape_cast %1603 : vector<8xf32> to vector<8x1xf32>
    %1605 = arith.addf %1531, %1604 : vector<8x1xf32>
    %1606 = vector.broadcast %15 : vector<1x1xf32> to vector<8x1xf32>
    %1607 = arith.addf %1605, %1606 : vector<8x1xf32>
    %1608 = vector.broadcast %12 : vector<1x32xf32> to vector<8x32xf32>
    %1609 = arith.mulf %1593, %1608 : vector<8x32xf32>
    %cst_338 = arith.constant dense<0.000000e+00> : vector<8xf32>
    %1610 = vector.multi_reduction <add>, %1609, %cst_338 [1] : vector<8x32xf32> to vector<8xf32>
    %1611 = vector.shape_cast %1610 : vector<8xf32> to vector<8x1xf32>
    %1612 = arith.addf %1538, %1611 : vector<8x1xf32>
    %1613 = vector.broadcast %16 : vector<1x1xf32> to vector<8x1xf32>
    %1614 = arith.addf %1612, %1613 : vector<8x1xf32>
    %1615 = vector.broadcast %13 : vector<1x32xf32> to vector<8x32xf32>
    %1616 = arith.mulf %1593, %1615 : vector<8x32xf32>
    %cst_339 = arith.constant dense<0.000000e+00> : vector<8xf32>
    %1617 = vector.multi_reduction <add>, %1616, %cst_339 [1] : vector<8x32xf32> to vector<8xf32>
    %1618 = vector.shape_cast %1617 : vector<8xf32> to vector<8x1xf32>
    %1619 = arith.addf %1545, %1618 : vector<8x1xf32>
    %1620 = vector.broadcast %17 : vector<1x1xf32> to vector<8x1xf32>
    %1621 = arith.addf %1619, %1620 : vector<8x1xf32>
    %1622 = vector.broadcast %1600 : vector<8x1xf32> to vector<8x4xf32>
    %1623 = vector.broadcast %18 : vector<1x4xf32> to vector<8x4xf32>
    %1624 = arith.mulf %1622, %1623 : vector<8x4xf32>
    %1625 = vector.broadcast %1607 : vector<8x1xf32> to vector<8x4xf32>
    %1626 = vector.broadcast %19 : vector<1x4xf32> to vector<8x4xf32>
    %1627 = arith.mulf %1625, %1626 : vector<8x4xf32>
    %1628 = arith.addf %1624, %1627 : vector<8x4xf32>
    %1629 = vector.broadcast %1614 : vector<8x1xf32> to vector<8x4xf32>
    %1630 = vector.broadcast %20 : vector<1x4xf32> to vector<8x4xf32>
    %1631 = arith.mulf %1629, %1630 : vector<8x4xf32>
    %1632 = arith.addf %1628, %1631 : vector<8x4xf32>
    %1633 = vector.broadcast %1621 : vector<8x1xf32> to vector<8x4xf32>
    %1634 = vector.broadcast %21 : vector<1x4xf32> to vector<8x4xf32>
    %1635 = arith.mulf %1633, %1634 : vector<8x4xf32>
    %1636 = arith.addf %1632, %1635 : vector<8x4xf32>
    %c0_340 = arith.constant 0 : index
    %c84 = arith.constant 84 : index
    %1637 = vector.load %arg10[%c0_340, %c84] : memref<8x128xf32, #tpu.memory_space<vmem>>, vector<8x4xf32>
    tpu.vector_store %arg10[%c0_340, %c84], %1636 {strides = array<i32>} : memref<8x128xf32, #tpu.memory_space<vmem>>, vector<8x4xf32>,
    %c0_341 = arith.constant 0 : index
    %c84_342 = arith.constant 84 : index
    %1638 = vector.load %arg9[%c0_341, %c84_342] : memref<8x128xf32, #tpu.memory_space<vmem>>, vector<8x1xf32>
    tpu.vector_store %arg9[%c0_341, %c84_342], %1600 {strides = array<i32>} : memref<8x128xf32, #tpu.memory_space<vmem>>, vector<8x1xf32>,
    %c0_343 = arith.constant 0 : index
    %c85 = arith.constant 85 : index
    %1639 = vector.load %arg9[%c0_343, %c85] : memref<8x128xf32, #tpu.memory_space<vmem>>, vector<8x1xf32>
    tpu.vector_store %arg9[%c0_343, %c85], %1607 {strides = array<i32>} : memref<8x128xf32, #tpu.memory_space<vmem>>, vector<8x1xf32>,
    %c0_344 = arith.constant 0 : index
    %c86 = arith.constant 86 : index
    %1640 = vector.load %arg9[%c0_344, %c86] : memref<8x128xf32, #tpu.memory_space<vmem>>, vector<8x1xf32>
    tpu.vector_store %arg9[%c0_344, %c86], %1614 {strides = array<i32>} : memref<8x128xf32, #tpu.memory_space<vmem>>, vector<8x1xf32>,
    %c0_345 = arith.constant 0 : index
    %c87 = arith.constant 87 : index
    %1641 = vector.load %arg9[%c0_345, %c87] : memref<8x128xf32, #tpu.memory_space<vmem>>, vector<8x1xf32>
    tpu.vector_store %arg9[%c0_345, %c87], %1621 {strides = array<i32>} : memref<8x128xf32, #tpu.memory_space<vmem>>, vector<8x1xf32>,
    %1642 = vector.broadcast %1600 : vector<8x1xf32> to vector<8x32xf32>
    %1643 = vector.broadcast %4 : vector<1x32xf32> to vector<8x32xf32>
    %1644 = arith.mulf %1642, %1643 : vector<8x32xf32>
    %1645 = vector.broadcast %3 : vector<1x32xf32> to vector<8x32xf32>
    %1646 = arith.addf %1645, %1644 : vector<8x32xf32>
    %1647 = vector.broadcast %1607 : vector<8x1xf32> to vector<8x32xf32>
    %1648 = vector.broadcast %5 : vector<1x32xf32> to vector<8x32xf32>
    %1649 = arith.mulf %1647, %1648 : vector<8x32xf32>
    %1650 = arith.addf %1646, %1649 : vector<8x32xf32>
    %1651 = vector.broadcast %1614 : vector<8x1xf32> to vector<8x32xf32>
    %1652 = vector.broadcast %6 : vector<1x32xf32> to vector<8x32xf32>
    %1653 = arith.mulf %1651, %1652 : vector<8x32xf32>
    %1654 = arith.addf %1650, %1653 : vector<8x32xf32>
    %1655 = vector.broadcast %1621 : vector<8x1xf32> to vector<8x32xf32>
    %1656 = vector.broadcast %7 : vector<1x32xf32> to vector<8x32xf32>
    %1657 = arith.mulf %1655, %1656 : vector<8x32xf32>
    %1658 = arith.addf %1654, %1657 : vector<8x32xf32>
    %c0_346 = arith.constant 0 : index
    %c84_347 = arith.constant 84 : index
    %1659 = vector.load %arg1[%c0_346, %c84_347] : memref<8x128xf32, #tpu.memory_space<vmem>>, vector<8x1xf32>
    %1660 = vector.broadcast %1659 : vector<8x1xf32> to vector<8x32xf32>
    %1661 = vector.broadcast %8 : vector<1x32xf32> to vector<8x32xf32>
    %1662 = arith.mulf %1660, %1661 : vector<8x32xf32>
    %1663 = arith.addf %1658, %1662 : vector<8x32xf32>
    %c0_348 = arith.constant 0 : index
    %c85_349 = arith.constant 85 : index
    %1664 = vector.load %arg1[%c0_348, %c85_349] : memref<8x128xf32, #tpu.memory_space<vmem>>, vector<8x1xf32>
    %1665 = vector.broadcast %1664 : vector<8x1xf32> to vector<8x32xf32>
    %1666 = vector.broadcast %9 : vector<1x32xf32> to vector<8x32xf32>
    %1667 = arith.mulf %1665, %1666 : vector<8x32xf32>
    %1668 = arith.addf %1663, %1667 : vector<8x32xf32>
    %1669 = math.tanh %1668 : vector<8x32xf32>
    %1670 = vector.broadcast %10 : vector<1x32xf32> to vector<8x32xf32>
    %1671 = arith.mulf %1669, %1670 : vector<8x32xf32>
    %cst_350 = arith.constant dense<0.000000e+00> : vector<8xf32>
    %1672 = vector.multi_reduction <add>, %1671, %cst_350 [1] : vector<8x32xf32> to vector<8xf32>
    %1673 = vector.shape_cast %1672 : vector<8xf32> to vector<8x1xf32>
    %1674 = arith.addf %1600, %1673 : vector<8x1xf32>
    %1675 = vector.broadcast %14 : vector<1x1xf32> to vector<8x1xf32>
    %1676 = arith.addf %1674, %1675 : vector<8x1xf32>
    %1677 = vector.broadcast %11 : vector<1x32xf32> to vector<8x32xf32>
    %1678 = arith.mulf %1669, %1677 : vector<8x32xf32>
    %cst_351 = arith.constant dense<0.000000e+00> : vector<8xf32>
    %1679 = vector.multi_reduction <add>, %1678, %cst_351 [1] : vector<8x32xf32> to vector<8xf32>
    %1680 = vector.shape_cast %1679 : vector<8xf32> to vector<8x1xf32>
    %1681 = arith.addf %1607, %1680 : vector<8x1xf32>
    %1682 = vector.broadcast %15 : vector<1x1xf32> to vector<8x1xf32>
    %1683 = arith.addf %1681, %1682 : vector<8x1xf32>
    %1684 = vector.broadcast %12 : vector<1x32xf32> to vector<8x32xf32>
    %1685 = arith.mulf %1669, %1684 : vector<8x32xf32>
    %cst_352 = arith.constant dense<0.000000e+00> : vector<8xf32>
    %1686 = vector.multi_reduction <add>, %1685, %cst_352 [1] : vector<8x32xf32> to vector<8xf32>
    %1687 = vector.shape_cast %1686 : vector<8xf32> to vector<8x1xf32>
    %1688 = arith.addf %1614, %1687 : vector<8x1xf32>
    %1689 = vector.broadcast %16 : vector<1x1xf32> to vector<8x1xf32>
    %1690 = arith.addf %1688, %1689 : vector<8x1xf32>
    %1691 = vector.broadcast %13 : vector<1x32xf32> to vector<8x32xf32>
    %1692 = arith.mulf %1669, %1691 : vector<8x32xf32>
    %cst_353 = arith.constant dense<0.000000e+00> : vector<8xf32>
    %1693 = vector.multi_reduction <add>, %1692, %cst_353 [1] : vector<8x32xf32> to vector<8xf32>
    %1694 = vector.shape_cast %1693 : vector<8xf32> to vector<8x1xf32>
    %1695 = arith.addf %1621, %1694 : vector<8x1xf32>
    %1696 = vector.broadcast %17 : vector<1x1xf32> to vector<8x1xf32>
    %1697 = arith.addf %1695, %1696 : vector<8x1xf32>
    %1698 = vector.broadcast %1676 : vector<8x1xf32> to vector<8x4xf32>
    %1699 = vector.broadcast %18 : vector<1x4xf32> to vector<8x4xf32>
    %1700 = arith.mulf %1698, %1699 : vector<8x4xf32>
    %1701 = vector.broadcast %1683 : vector<8x1xf32> to vector<8x4xf32>
    %1702 = vector.broadcast %19 : vector<1x4xf32> to vector<8x4xf32>
    %1703 = arith.mulf %1701, %1702 : vector<8x4xf32>
    %1704 = arith.addf %1700, %1703 : vector<8x4xf32>
    %1705 = vector.broadcast %1690 : vector<8x1xf32> to vector<8x4xf32>
    %1706 = vector.broadcast %20 : vector<1x4xf32> to vector<8x4xf32>
    %1707 = arith.mulf %1705, %1706 : vector<8x4xf32>
    %1708 = arith.addf %1704, %1707 : vector<8x4xf32>
    %1709 = vector.broadcast %1697 : vector<8x1xf32> to vector<8x4xf32>
    %1710 = vector.broadcast %21 : vector<1x4xf32> to vector<8x4xf32>
    %1711 = arith.mulf %1709, %1710 : vector<8x4xf32>
    %1712 = arith.addf %1708, %1711 : vector<8x4xf32>
    %c0_354 = arith.constant 0 : index
    %c88 = arith.constant 88 : index
    %1713 = vector.load %arg10[%c0_354, %c88] : memref<8x128xf32, #tpu.memory_space<vmem>>, vector<8x4xf32>
    tpu.vector_store %arg10[%c0_354, %c88], %1712 {strides = array<i32>} : memref<8x128xf32, #tpu.memory_space<vmem>>, vector<8x4xf32>,
    %c0_355 = arith.constant 0 : index
    %c88_356 = arith.constant 88 : index
    %1714 = vector.load %arg9[%c0_355, %c88_356] : memref<8x128xf32, #tpu.memory_space<vmem>>, vector<8x1xf32>
    tpu.vector_store %arg9[%c0_355, %c88_356], %1676 {strides = array<i32>} : memref<8x128xf32, #tpu.memory_space<vmem>>, vector<8x1xf32>,
    %c0_357 = arith.constant 0 : index
    %c89 = arith.constant 89 : index
    %1715 = vector.load %arg9[%c0_357, %c89] : memref<8x128xf32, #tpu.memory_space<vmem>>, vector<8x1xf32>
    tpu.vector_store %arg9[%c0_357, %c89], %1683 {strides = array<i32>} : memref<8x128xf32, #tpu.memory_space<vmem>>, vector<8x1xf32>,
    %c0_358 = arith.constant 0 : index
    %c90 = arith.constant 90 : index
    %1716 = vector.load %arg9[%c0_358, %c90] : memref<8x128xf32, #tpu.memory_space<vmem>>, vector<8x1xf32>
    tpu.vector_store %arg9[%c0_358, %c90], %1690 {strides = array<i32>} : memref<8x128xf32, #tpu.memory_space<vmem>>, vector<8x1xf32>,
    %c0_359 = arith.constant 0 : index
    %c91 = arith.constant 91 : index
    %1717 = vector.load %arg9[%c0_359, %c91] : memref<8x128xf32, #tpu.memory_space<vmem>>, vector<8x1xf32>
    tpu.vector_store %arg9[%c0_359, %c91], %1697 {strides = array<i32>} : memref<8x128xf32, #tpu.memory_space<vmem>>, vector<8x1xf32>,
    %1718 = vector.broadcast %1676 : vector<8x1xf32> to vector<8x32xf32>
    %1719 = vector.broadcast %4 : vector<1x32xf32> to vector<8x32xf32>
    %1720 = arith.mulf %1718, %1719 : vector<8x32xf32>
    %1721 = vector.broadcast %3 : vector<1x32xf32> to vector<8x32xf32>
    %1722 = arith.addf %1721, %1720 : vector<8x32xf32>
    %1723 = vector.broadcast %1683 : vector<8x1xf32> to vector<8x32xf32>
    %1724 = vector.broadcast %5 : vector<1x32xf32> to vector<8x32xf32>
    %1725 = arith.mulf %1723, %1724 : vector<8x32xf32>
    %1726 = arith.addf %1722, %1725 : vector<8x32xf32>
    %1727 = vector.broadcast %1690 : vector<8x1xf32> to vector<8x32xf32>
    %1728 = vector.broadcast %6 : vector<1x32xf32> to vector<8x32xf32>
    %1729 = arith.mulf %1727, %1728 : vector<8x32xf32>
    %1730 = arith.addf %1726, %1729 : vector<8x32xf32>
    %1731 = vector.broadcast %1697 : vector<8x1xf32> to vector<8x32xf32>
    %1732 = vector.broadcast %7 : vector<1x32xf32> to vector<8x32xf32>
    %1733 = arith.mulf %1731, %1732 : vector<8x32xf32>
    %1734 = arith.addf %1730, %1733 : vector<8x32xf32>
    %c0_360 = arith.constant 0 : index
    %c88_361 = arith.constant 88 : index
    %1735 = vector.load %arg1[%c0_360, %c88_361] : memref<8x128xf32, #tpu.memory_space<vmem>>, vector<8x1xf32>
    %1736 = vector.broadcast %1735 : vector<8x1xf32> to vector<8x32xf32>
    %1737 = vector.broadcast %8 : vector<1x32xf32> to vector<8x32xf32>
    %1738 = arith.mulf %1736, %1737 : vector<8x32xf32>
    %1739 = arith.addf %1734, %1738 : vector<8x32xf32>
    %c0_362 = arith.constant 0 : index
    %c89_363 = arith.constant 89 : index
    %1740 = vector.load %arg1[%c0_362, %c89_363] : memref<8x128xf32, #tpu.memory_space<vmem>>, vector<8x1xf32>
    %1741 = vector.broadcast %1740 : vector<8x1xf32> to vector<8x32xf32>
    %1742 = vector.broadcast %9 : vector<1x32xf32> to vector<8x32xf32>
    %1743 = arith.mulf %1741, %1742 : vector<8x32xf32>
    %1744 = arith.addf %1739, %1743 : vector<8x32xf32>
    %1745 = math.tanh %1744 : vector<8x32xf32>
    %1746 = vector.broadcast %10 : vector<1x32xf32> to vector<8x32xf32>
    %1747 = arith.mulf %1745, %1746 : vector<8x32xf32>
    %cst_364 = arith.constant dense<0.000000e+00> : vector<8xf32>
    %1748 = vector.multi_reduction <add>, %1747, %cst_364 [1] : vector<8x32xf32> to vector<8xf32>
    %1749 = vector.shape_cast %1748 : vector<8xf32> to vector<8x1xf32>
    %1750 = arith.addf %1676, %1749 : vector<8x1xf32>
    %1751 = vector.broadcast %14 : vector<1x1xf32> to vector<8x1xf32>
    %1752 = arith.addf %1750, %1751 : vector<8x1xf32>
    %1753 = vector.broadcast %11 : vector<1x32xf32> to vector<8x32xf32>
    %1754 = arith.mulf %1745, %1753 : vector<8x32xf32>
    %cst_365 = arith.constant dense<0.000000e+00> : vector<8xf32>
    %1755 = vector.multi_reduction <add>, %1754, %cst_365 [1] : vector<8x32xf32> to vector<8xf32>
    %1756 = vector.shape_cast %1755 : vector<8xf32> to vector<8x1xf32>
    %1757 = arith.addf %1683, %1756 : vector<8x1xf32>
    %1758 = vector.broadcast %15 : vector<1x1xf32> to vector<8x1xf32>
    %1759 = arith.addf %1757, %1758 : vector<8x1xf32>
    %1760 = vector.broadcast %12 : vector<1x32xf32> to vector<8x32xf32>
    %1761 = arith.mulf %1745, %1760 : vector<8x32xf32>
    %cst_366 = arith.constant dense<0.000000e+00> : vector<8xf32>
    %1762 = vector.multi_reduction <add>, %1761, %cst_366 [1] : vector<8x32xf32> to vector<8xf32>
    %1763 = vector.shape_cast %1762 : vector<8xf32> to vector<8x1xf32>
    %1764 = arith.addf %1690, %1763 : vector<8x1xf32>
    %1765 = vector.broadcast %16 : vector<1x1xf32> to vector<8x1xf32>
    %1766 = arith.addf %1764, %1765 : vector<8x1xf32>
    %1767 = vector.broadcast %13 : vector<1x32xf32> to vector<8x32xf32>
    %1768 = arith.mulf %1745, %1767 : vector<8x32xf32>
    %cst_367 = arith.constant dense<0.000000e+00> : vector<8xf32>
    %1769 = vector.multi_reduction <add>, %1768, %cst_367 [1] : vector<8x32xf32> to vector<8xf32>
    %1770 = vector.shape_cast %1769 : vector<8xf32> to vector<8x1xf32>
    %1771 = arith.addf %1697, %1770 : vector<8x1xf32>
    %1772 = vector.broadcast %17 : vector<1x1xf32> to vector<8x1xf32>
    %1773 = arith.addf %1771, %1772 : vector<8x1xf32>
    %1774 = vector.broadcast %1752 : vector<8x1xf32> to vector<8x4xf32>
    %1775 = vector.broadcast %18 : vector<1x4xf32> to vector<8x4xf32>
    %1776 = arith.mulf %1774, %1775 : vector<8x4xf32>
    %1777 = vector.broadcast %1759 : vector<8x1xf32> to vector<8x4xf32>
    %1778 = vector.broadcast %19 : vector<1x4xf32> to vector<8x4xf32>
    %1779 = arith.mulf %1777, %1778 : vector<8x4xf32>
    %1780 = arith.addf %1776, %1779 : vector<8x4xf32>
    %1781 = vector.broadcast %1766 : vector<8x1xf32> to vector<8x4xf32>
    %1782 = vector.broadcast %20 : vector<1x4xf32> to vector<8x4xf32>
    %1783 = arith.mulf %1781, %1782 : vector<8x4xf32>
    %1784 = arith.addf %1780, %1783 : vector<8x4xf32>
    %1785 = vector.broadcast %1773 : vector<8x1xf32> to vector<8x4xf32>
    %1786 = vector.broadcast %21 : vector<1x4xf32> to vector<8x4xf32>
    %1787 = arith.mulf %1785, %1786 : vector<8x4xf32>
    %1788 = arith.addf %1784, %1787 : vector<8x4xf32>
    %c0_368 = arith.constant 0 : index
    %c92 = arith.constant 92 : index
    %1789 = vector.load %arg10[%c0_368, %c92] : memref<8x128xf32, #tpu.memory_space<vmem>>, vector<8x4xf32>
    tpu.vector_store %arg10[%c0_368, %c92], %1788 {strides = array<i32>} : memref<8x128xf32, #tpu.memory_space<vmem>>, vector<8x4xf32>,
    %c0_369 = arith.constant 0 : index
    %c92_370 = arith.constant 92 : index
    %1790 = vector.load %arg9[%c0_369, %c92_370] : memref<8x128xf32, #tpu.memory_space<vmem>>, vector<8x1xf32>
    tpu.vector_store %arg9[%c0_369, %c92_370], %1752 {strides = array<i32>} : memref<8x128xf32, #tpu.memory_space<vmem>>, vector<8x1xf32>,
    %c0_371 = arith.constant 0 : index
    %c93 = arith.constant 93 : index
    %1791 = vector.load %arg9[%c0_371, %c93] : memref<8x128xf32, #tpu.memory_space<vmem>>, vector<8x1xf32>
    tpu.vector_store %arg9[%c0_371, %c93], %1759 {strides = array<i32>} : memref<8x128xf32, #tpu.memory_space<vmem>>, vector<8x1xf32>,
    %c0_372 = arith.constant 0 : index
    %c94 = arith.constant 94 : index
    %1792 = vector.load %arg9[%c0_372, %c94] : memref<8x128xf32, #tpu.memory_space<vmem>>, vector<8x1xf32>
    tpu.vector_store %arg9[%c0_372, %c94], %1766 {strides = array<i32>} : memref<8x128xf32, #tpu.memory_space<vmem>>, vector<8x1xf32>,
    %c0_373 = arith.constant 0 : index
    %c95 = arith.constant 95 : index
    %1793 = vector.load %arg9[%c0_373, %c95] : memref<8x128xf32, #tpu.memory_space<vmem>>, vector<8x1xf32>
    tpu.vector_store %arg9[%c0_373, %c95], %1773 {strides = array<i32>} : memref<8x128xf32, #tpu.memory_space<vmem>>, vector<8x1xf32>,
    %1794 = vector.broadcast %1752 : vector<8x1xf32> to vector<8x32xf32>
    %1795 = vector.broadcast %4 : vector<1x32xf32> to vector<8x32xf32>
    %1796 = arith.mulf %1794, %1795 : vector<8x32xf32>
    %1797 = vector.broadcast %3 : vector<1x32xf32> to vector<8x32xf32>
    %1798 = arith.addf %1797, %1796 : vector<8x32xf32>
    %1799 = vector.broadcast %1759 : vector<8x1xf32> to vector<8x32xf32>
    %1800 = vector.broadcast %5 : vector<1x32xf32> to vector<8x32xf32>
    %1801 = arith.mulf %1799, %1800 : vector<8x32xf32>
    %1802 = arith.addf %1798, %1801 : vector<8x32xf32>
    %1803 = vector.broadcast %1766 : vector<8x1xf32> to vector<8x32xf32>
    %1804 = vector.broadcast %6 : vector<1x32xf32> to vector<8x32xf32>
    %1805 = arith.mulf %1803, %1804 : vector<8x32xf32>
    %1806 = arith.addf %1802, %1805 : vector<8x32xf32>
    %1807 = vector.broadcast %1773 : vector<8x1xf32> to vector<8x32xf32>
    %1808 = vector.broadcast %7 : vector<1x32xf32> to vector<8x32xf32>
    %1809 = arith.mulf %1807, %1808 : vector<8x32xf32>
    %1810 = arith.addf %1806, %1809 : vector<8x32xf32>
    %c0_374 = arith.constant 0 : index
    %c92_375 = arith.constant 92 : index
    %1811 = vector.load %arg1[%c0_374, %c92_375] : memref<8x128xf32, #tpu.memory_space<vmem>>, vector<8x1xf32>
    %1812 = vector.broadcast %1811 : vector<8x1xf32> to vector<8x32xf32>
    %1813 = vector.broadcast %8 : vector<1x32xf32> to vector<8x32xf32>
    %1814 = arith.mulf %1812, %1813 : vector<8x32xf32>
    %1815 = arith.addf %1810, %1814 : vector<8x32xf32>
    %c0_376 = arith.constant 0 : index
    %c93_377 = arith.constant 93 : index
    %1816 = vector.load %arg1[%c0_376, %c93_377] : memref<8x128xf32, #tpu.memory_space<vmem>>, vector<8x1xf32>
    %1817 = vector.broadcast %1816 : vector<8x1xf32> to vector<8x32xf32>
    %1818 = vector.broadcast %9 : vector<1x32xf32> to vector<8x32xf32>
    %1819 = arith.mulf %1817, %1818 : vector<8x32xf32>
    %1820 = arith.addf %1815, %1819 : vector<8x32xf32>
    %1821 = math.tanh %1820 : vector<8x32xf32>
    %1822 = vector.broadcast %10 : vector<1x32xf32> to vector<8x32xf32>
    %1823 = arith.mulf %1821, %1822 : vector<8x32xf32>
    %cst_378 = arith.constant dense<0.000000e+00> : vector<8xf32>
    %1824 = vector.multi_reduction <add>, %1823, %cst_378 [1] : vector<8x32xf32> to vector<8xf32>
    %1825 = vector.shape_cast %1824 : vector<8xf32> to vector<8x1xf32>
    %1826 = arith.addf %1752, %1825 : vector<8x1xf32>
    %1827 = vector.broadcast %14 : vector<1x1xf32> to vector<8x1xf32>
    %1828 = arith.addf %1826, %1827 : vector<8x1xf32>
    %1829 = vector.broadcast %11 : vector<1x32xf32> to vector<8x32xf32>
    %1830 = arith.mulf %1821, %1829 : vector<8x32xf32>
    %cst_379 = arith.constant dense<0.000000e+00> : vector<8xf32>
    %1831 = vector.multi_reduction <add>, %1830, %cst_379 [1] : vector<8x32xf32> to vector<8xf32>
    %1832 = vector.shape_cast %1831 : vector<8xf32> to vector<8x1xf32>
    %1833 = arith.addf %1759, %1832 : vector<8x1xf32>
    %1834 = vector.broadcast %15 : vector<1x1xf32> to vector<8x1xf32>
    %1835 = arith.addf %1833, %1834 : vector<8x1xf32>
    %1836 = vector.broadcast %12 : vector<1x32xf32> to vector<8x32xf32>
    %1837 = arith.mulf %1821, %1836 : vector<8x32xf32>
    %cst_380 = arith.constant dense<0.000000e+00> : vector<8xf32>
    %1838 = vector.multi_reduction <add>, %1837, %cst_380 [1] : vector<8x32xf32> to vector<8xf32>
    %1839 = vector.shape_cast %1838 : vector<8xf32> to vector<8x1xf32>
    %1840 = arith.addf %1766, %1839 : vector<8x1xf32>
    %1841 = vector.broadcast %16 : vector<1x1xf32> to vector<8x1xf32>
    %1842 = arith.addf %1840, %1841 : vector<8x1xf32>
    %1843 = vector.broadcast %13 : vector<1x32xf32> to vector<8x32xf32>
    %1844 = arith.mulf %1821, %1843 : vector<8x32xf32>
    %cst_381 = arith.constant dense<0.000000e+00> : vector<8xf32>
    %1845 = vector.multi_reduction <add>, %1844, %cst_381 [1] : vector<8x32xf32> to vector<8xf32>
    %1846 = vector.shape_cast %1845 : vector<8xf32> to vector<8x1xf32>
    %1847 = arith.addf %1773, %1846 : vector<8x1xf32>
    %1848 = vector.broadcast %17 : vector<1x1xf32> to vector<8x1xf32>
    %1849 = arith.addf %1847, %1848 : vector<8x1xf32>
    %1850 = vector.broadcast %1828 : vector<8x1xf32> to vector<8x4xf32>
    %1851 = vector.broadcast %18 : vector<1x4xf32> to vector<8x4xf32>
    %1852 = arith.mulf %1850, %1851 : vector<8x4xf32>
    %1853 = vector.broadcast %1835 : vector<8x1xf32> to vector<8x4xf32>
    %1854 = vector.broadcast %19 : vector<1x4xf32> to vector<8x4xf32>
    %1855 = arith.mulf %1853, %1854 : vector<8x4xf32>
    %1856 = arith.addf %1852, %1855 : vector<8x4xf32>
    %1857 = vector.broadcast %1842 : vector<8x1xf32> to vector<8x4xf32>
    %1858 = vector.broadcast %20 : vector<1x4xf32> to vector<8x4xf32>
    %1859 = arith.mulf %1857, %1858 : vector<8x4xf32>
    %1860 = arith.addf %1856, %1859 : vector<8x4xf32>
    %1861 = vector.broadcast %1849 : vector<8x1xf32> to vector<8x4xf32>
    %1862 = vector.broadcast %21 : vector<1x4xf32> to vector<8x4xf32>
    %1863 = arith.mulf %1861, %1862 : vector<8x4xf32>
    %1864 = arith.addf %1860, %1863 : vector<8x4xf32>
    %c0_382 = arith.constant 0 : index
    %c96 = arith.constant 96 : index
    %1865 = vector.load %arg10[%c0_382, %c96] : memref<8x128xf32, #tpu.memory_space<vmem>>, vector<8x4xf32>
    tpu.vector_store %arg10[%c0_382, %c96], %1864 {strides = array<i32>} : memref<8x128xf32, #tpu.memory_space<vmem>>, vector<8x4xf32>,
    %c0_383 = arith.constant 0 : index
    %c96_384 = arith.constant 96 : index
    %1866 = vector.load %arg9[%c0_383, %c96_384] : memref<8x128xf32, #tpu.memory_space<vmem>>, vector<8x1xf32>
    tpu.vector_store %arg9[%c0_383, %c96_384], %1828 {strides = array<i32>} : memref<8x128xf32, #tpu.memory_space<vmem>>, vector<8x1xf32>,
    %c0_385 = arith.constant 0 : index
    %c97 = arith.constant 97 : index
    %1867 = vector.load %arg9[%c0_385, %c97] : memref<8x128xf32, #tpu.memory_space<vmem>>, vector<8x1xf32>
    tpu.vector_store %arg9[%c0_385, %c97], %1835 {strides = array<i32>} : memref<8x128xf32, #tpu.memory_space<vmem>>, vector<8x1xf32>,
    %c0_386 = arith.constant 0 : index
    %c98 = arith.constant 98 : index
    %1868 = vector.load %arg9[%c0_386, %c98] : memref<8x128xf32, #tpu.memory_space<vmem>>, vector<8x1xf32>
    tpu.vector_store %arg9[%c0_386, %c98], %1842 {strides = array<i32>} : memref<8x128xf32, #tpu.memory_space<vmem>>, vector<8x1xf32>,
    %c0_387 = arith.constant 0 : index
    %c99 = arith.constant 99 : index
    %1869 = vector.load %arg9[%c0_387, %c99] : memref<8x128xf32, #tpu.memory_space<vmem>>, vector<8x1xf32>
    tpu.vector_store %arg9[%c0_387, %c99], %1849 {strides = array<i32>} : memref<8x128xf32, #tpu.memory_space<vmem>>, vector<8x1xf32>,
    %1870 = vector.broadcast %1828 : vector<8x1xf32> to vector<8x32xf32>
    %1871 = vector.broadcast %4 : vector<1x32xf32> to vector<8x32xf32>
    %1872 = arith.mulf %1870, %1871 : vector<8x32xf32>
    %1873 = vector.broadcast %3 : vector<1x32xf32> to vector<8x32xf32>
    %1874 = arith.addf %1873, %1872 : vector<8x32xf32>
    %1875 = vector.broadcast %1835 : vector<8x1xf32> to vector<8x32xf32>
    %1876 = vector.broadcast %5 : vector<1x32xf32> to vector<8x32xf32>
    %1877 = arith.mulf %1875, %1876 : vector<8x32xf32>
    %1878 = arith.addf %1874, %1877 : vector<8x32xf32>
    %1879 = vector.broadcast %1842 : vector<8x1xf32> to vector<8x32xf32>
    %1880 = vector.broadcast %6 : vector<1x32xf32> to vector<8x32xf32>
    %1881 = arith.mulf %1879, %1880 : vector<8x32xf32>
    %1882 = arith.addf %1878, %1881 : vector<8x32xf32>
    %1883 = vector.broadcast %1849 : vector<8x1xf32> to vector<8x32xf32>
    %1884 = vector.broadcast %7 : vector<1x32xf32> to vector<8x32xf32>
    %1885 = arith.mulf %1883, %1884 : vector<8x32xf32>
    %1886 = arith.addf %1882, %1885 : vector<8x32xf32>
    %c0_388 = arith.constant 0 : index
    %c96_389 = arith.constant 96 : index
    %1887 = vector.load %arg1[%c0_388, %c96_389] : memref<8x128xf32, #tpu.memory_space<vmem>>, vector<8x1xf32>
    %1888 = vector.broadcast %1887 : vector<8x1xf32> to vector<8x32xf32>
    %1889 = vector.broadcast %8 : vector<1x32xf32> to vector<8x32xf32>
    %1890 = arith.mulf %1888, %1889 : vector<8x32xf32>
    %1891 = arith.addf %1886, %1890 : vector<8x32xf32>
    %c0_390 = arith.constant 0 : index
    %c97_391 = arith.constant 97 : index
    %1892 = vector.load %arg1[%c0_390, %c97_391] : memref<8x128xf32, #tpu.memory_space<vmem>>, vector<8x1xf32>
    %1893 = vector.broadcast %1892 : vector<8x1xf32> to vector<8x32xf32>
    %1894 = vector.broadcast %9 : vector<1x32xf32> to vector<8x32xf32>
    %1895 = arith.mulf %1893, %1894 : vector<8x32xf32>
    %1896 = arith.addf %1891, %1895 : vector<8x32xf32>
    %1897 = math.tanh %1896 : vector<8x32xf32>
    %1898 = vector.broadcast %10 : vector<1x32xf32> to vector<8x32xf32>
    %1899 = arith.mulf %1897, %1898 : vector<8x32xf32>
    %cst_392 = arith.constant dense<0.000000e+00> : vector<8xf32>
    %1900 = vector.multi_reduction <add>, %1899, %cst_392 [1] : vector<8x32xf32> to vector<8xf32>
    %1901 = vector.shape_cast %1900 : vector<8xf32> to vector<8x1xf32>
    %1902 = arith.addf %1828, %1901 : vector<8x1xf32>
    %1903 = vector.broadcast %14 : vector<1x1xf32> to vector<8x1xf32>
    %1904 = arith.addf %1902, %1903 : vector<8x1xf32>
    %1905 = vector.broadcast %11 : vector<1x32xf32> to vector<8x32xf32>
    %1906 = arith.mulf %1897, %1905 : vector<8x32xf32>
    %cst_393 = arith.constant dense<0.000000e+00> : vector<8xf32>
    %1907 = vector.multi_reduction <add>, %1906, %cst_393 [1] : vector<8x32xf32> to vector<8xf32>
    %1908 = vector.shape_cast %1907 : vector<8xf32> to vector<8x1xf32>
    %1909 = arith.addf %1835, %1908 : vector<8x1xf32>
    %1910 = vector.broadcast %15 : vector<1x1xf32> to vector<8x1xf32>
    %1911 = arith.addf %1909, %1910 : vector<8x1xf32>
    %1912 = vector.broadcast %12 : vector<1x32xf32> to vector<8x32xf32>
    %1913 = arith.mulf %1897, %1912 : vector<8x32xf32>
    %cst_394 = arith.constant dense<0.000000e+00> : vector<8xf32>
    %1914 = vector.multi_reduction <add>, %1913, %cst_394 [1] : vector<8x32xf32> to vector<8xf32>
    %1915 = vector.shape_cast %1914 : vector<8xf32> to vector<8x1xf32>
    %1916 = arith.addf %1842, %1915 : vector<8x1xf32>
    %1917 = vector.broadcast %16 : vector<1x1xf32> to vector<8x1xf32>
    %1918 = arith.addf %1916, %1917 : vector<8x1xf32>
    %1919 = vector.broadcast %13 : vector<1x32xf32> to vector<8x32xf32>
    %1920 = arith.mulf %1897, %1919 : vector<8x32xf32>
    %cst_395 = arith.constant dense<0.000000e+00> : vector<8xf32>
    %1921 = vector.multi_reduction <add>, %1920, %cst_395 [1] : vector<8x32xf32> to vector<8xf32>
    %1922 = vector.shape_cast %1921 : vector<8xf32> to vector<8x1xf32>
    %1923 = arith.addf %1849, %1922 : vector<8x1xf32>
    %1924 = vector.broadcast %17 : vector<1x1xf32> to vector<8x1xf32>
    %1925 = arith.addf %1923, %1924 : vector<8x1xf32>
    %1926 = vector.broadcast %1904 : vector<8x1xf32> to vector<8x4xf32>
    %1927 = vector.broadcast %18 : vector<1x4xf32> to vector<8x4xf32>
    %1928 = arith.mulf %1926, %1927 : vector<8x4xf32>
    %1929 = vector.broadcast %1911 : vector<8x1xf32> to vector<8x4xf32>
    %1930 = vector.broadcast %19 : vector<1x4xf32> to vector<8x4xf32>
    %1931 = arith.mulf %1929, %1930 : vector<8x4xf32>
    %1932 = arith.addf %1928, %1931 : vector<8x4xf32>
    %1933 = vector.broadcast %1918 : vector<8x1xf32> to vector<8x4xf32>
    %1934 = vector.broadcast %20 : vector<1x4xf32> to vector<8x4xf32>
    %1935 = arith.mulf %1933, %1934 : vector<8x4xf32>
    %1936 = arith.addf %1932, %1935 : vector<8x4xf32>
    %1937 = vector.broadcast %1925 : vector<8x1xf32> to vector<8x4xf32>
    %1938 = vector.broadcast %21 : vector<1x4xf32> to vector<8x4xf32>
    %1939 = arith.mulf %1937, %1938 : vector<8x4xf32>
    %1940 = arith.addf %1936, %1939 : vector<8x4xf32>
    %c0_396 = arith.constant 0 : index
    %c100 = arith.constant 100 : index
    %1941 = vector.load %arg10[%c0_396, %c100] : memref<8x128xf32, #tpu.memory_space<vmem>>, vector<8x4xf32>
    tpu.vector_store %arg10[%c0_396, %c100], %1940 {strides = array<i32>} : memref<8x128xf32, #tpu.memory_space<vmem>>, vector<8x4xf32>,
    %c0_397 = arith.constant 0 : index
    %c100_398 = arith.constant 100 : index
    %1942 = vector.load %arg9[%c0_397, %c100_398] : memref<8x128xf32, #tpu.memory_space<vmem>>, vector<8x1xf32>
    tpu.vector_store %arg9[%c0_397, %c100_398], %1904 {strides = array<i32>} : memref<8x128xf32, #tpu.memory_space<vmem>>, vector<8x1xf32>,
    %c0_399 = arith.constant 0 : index
    %c101 = arith.constant 101 : index
    %1943 = vector.load %arg9[%c0_399, %c101] : memref<8x128xf32, #tpu.memory_space<vmem>>, vector<8x1xf32>
    tpu.vector_store %arg9[%c0_399, %c101], %1911 {strides = array<i32>} : memref<8x128xf32, #tpu.memory_space<vmem>>, vector<8x1xf32>,
    %c0_400 = arith.constant 0 : index
    %c102 = arith.constant 102 : index
    %1944 = vector.load %arg9[%c0_400, %c102] : memref<8x128xf32, #tpu.memory_space<vmem>>, vector<8x1xf32>
    tpu.vector_store %arg9[%c0_400, %c102], %1918 {strides = array<i32>} : memref<8x128xf32, #tpu.memory_space<vmem>>, vector<8x1xf32>,
    %c0_401 = arith.constant 0 : index
    %c103 = arith.constant 103 : index
    %1945 = vector.load %arg9[%c0_401, %c103] : memref<8x128xf32, #tpu.memory_space<vmem>>, vector<8x1xf32>
    tpu.vector_store %arg9[%c0_401, %c103], %1925 {strides = array<i32>} : memref<8x128xf32, #tpu.memory_space<vmem>>, vector<8x1xf32>,
    %1946 = vector.broadcast %1904 : vector<8x1xf32> to vector<8x32xf32>
    %1947 = vector.broadcast %4 : vector<1x32xf32> to vector<8x32xf32>
    %1948 = arith.mulf %1946, %1947 : vector<8x32xf32>
    %1949 = vector.broadcast %3 : vector<1x32xf32> to vector<8x32xf32>
    %1950 = arith.addf %1949, %1948 : vector<8x32xf32>
    %1951 = vector.broadcast %1911 : vector<8x1xf32> to vector<8x32xf32>
    %1952 = vector.broadcast %5 : vector<1x32xf32> to vector<8x32xf32>
    %1953 = arith.mulf %1951, %1952 : vector<8x32xf32>
    %1954 = arith.addf %1950, %1953 : vector<8x32xf32>
    %1955 = vector.broadcast %1918 : vector<8x1xf32> to vector<8x32xf32>
    %1956 = vector.broadcast %6 : vector<1x32xf32> to vector<8x32xf32>
    %1957 = arith.mulf %1955, %1956 : vector<8x32xf32>
    %1958 = arith.addf %1954, %1957 : vector<8x32xf32>
    %1959 = vector.broadcast %1925 : vector<8x1xf32> to vector<8x32xf32>
    %1960 = vector.broadcast %7 : vector<1x32xf32> to vector<8x32xf32>
    %1961 = arith.mulf %1959, %1960 : vector<8x32xf32>
    %1962 = arith.addf %1958, %1961 : vector<8x32xf32>
    %c0_402 = arith.constant 0 : index
    %c100_403 = arith.constant 100 : index
    %1963 = vector.load %arg1[%c0_402, %c100_403] : memref<8x128xf32, #tpu.memory_space<vmem>>, vector<8x1xf32>
    %1964 = vector.broadcast %1963 : vector<8x1xf32> to vector<8x32xf32>
    %1965 = vector.broadcast %8 : vector<1x32xf32> to vector<8x32xf32>
    %1966 = arith.mulf %1964, %1965 : vector<8x32xf32>
    %1967 = arith.addf %1962, %1966 : vector<8x32xf32>
    %c0_404 = arith.constant 0 : index
    %c101_405 = arith.constant 101 : index
    %1968 = vector.load %arg1[%c0_404, %c101_405] : memref<8x128xf32, #tpu.memory_space<vmem>>, vector<8x1xf32>
    %1969 = vector.broadcast %1968 : vector<8x1xf32> to vector<8x32xf32>
    %1970 = vector.broadcast %9 : vector<1x32xf32> to vector<8x32xf32>
    %1971 = arith.mulf %1969, %1970 : vector<8x32xf32>
    %1972 = arith.addf %1967, %1971 : vector<8x32xf32>
    %1973 = math.tanh %1972 : vector<8x32xf32>
    %1974 = vector.broadcast %10 : vector<1x32xf32> to vector<8x32xf32>
    %1975 = arith.mulf %1973, %1974 : vector<8x32xf32>
    %cst_406 = arith.constant dense<0.000000e+00> : vector<8xf32>
    %1976 = vector.multi_reduction <add>, %1975, %cst_406 [1] : vector<8x32xf32> to vector<8xf32>
    %1977 = vector.shape_cast %1976 : vector<8xf32> to vector<8x1xf32>
    %1978 = arith.addf %1904, %1977 : vector<8x1xf32>
    %1979 = vector.broadcast %14 : vector<1x1xf32> to vector<8x1xf32>
    %1980 = arith.addf %1978, %1979 : vector<8x1xf32>
    %1981 = vector.broadcast %11 : vector<1x32xf32> to vector<8x32xf32>
    %1982 = arith.mulf %1973, %1981 : vector<8x32xf32>
    %cst_407 = arith.constant dense<0.000000e+00> : vector<8xf32>
    %1983 = vector.multi_reduction <add>, %1982, %cst_407 [1] : vector<8x32xf32> to vector<8xf32>
    %1984 = vector.shape_cast %1983 : vector<8xf32> to vector<8x1xf32>
    %1985 = arith.addf %1911, %1984 : vector<8x1xf32>
    %1986 = vector.broadcast %15 : vector<1x1xf32> to vector<8x1xf32>
    %1987 = arith.addf %1985, %1986 : vector<8x1xf32>
    %1988 = vector.broadcast %12 : vector<1x32xf32> to vector<8x32xf32>
    %1989 = arith.mulf %1973, %1988 : vector<8x32xf32>
    %cst_408 = arith.constant dense<0.000000e+00> : vector<8xf32>
    %1990 = vector.multi_reduction <add>, %1989, %cst_408 [1] : vector<8x32xf32> to vector<8xf32>
    %1991 = vector.shape_cast %1990 : vector<8xf32> to vector<8x1xf32>
    %1992 = arith.addf %1918, %1991 : vector<8x1xf32>
    %1993 = vector.broadcast %16 : vector<1x1xf32> to vector<8x1xf32>
    %1994 = arith.addf %1992, %1993 : vector<8x1xf32>
    %1995 = vector.broadcast %13 : vector<1x32xf32> to vector<8x32xf32>
    %1996 = arith.mulf %1973, %1995 : vector<8x32xf32>
    %cst_409 = arith.constant dense<0.000000e+00> : vector<8xf32>
    %1997 = vector.multi_reduction <add>, %1996, %cst_409 [1] : vector<8x32xf32> to vector<8xf32>
    %1998 = vector.shape_cast %1997 : vector<8xf32> to vector<8x1xf32>
    %1999 = arith.addf %1925, %1998 : vector<8x1xf32>
    %2000 = vector.broadcast %17 : vector<1x1xf32> to vector<8x1xf32>
    %2001 = arith.addf %1999, %2000 : vector<8x1xf32>
    %2002 = vector.broadcast %1980 : vector<8x1xf32> to vector<8x4xf32>
    %2003 = vector.broadcast %18 : vector<1x4xf32> to vector<8x4xf32>
    %2004 = arith.mulf %2002, %2003 : vector<8x4xf32>
    %2005 = vector.broadcast %1987 : vector<8x1xf32> to vector<8x4xf32>
    %2006 = vector.broadcast %19 : vector<1x4xf32> to vector<8x4xf32>
    %2007 = arith.mulf %2005, %2006 : vector<8x4xf32>
    %2008 = arith.addf %2004, %2007 : vector<8x4xf32>
    %2009 = vector.broadcast %1994 : vector<8x1xf32> to vector<8x4xf32>
    %2010 = vector.broadcast %20 : vector<1x4xf32> to vector<8x4xf32>
    %2011 = arith.mulf %2009, %2010 : vector<8x4xf32>
    %2012 = arith.addf %2008, %2011 : vector<8x4xf32>
    %2013 = vector.broadcast %2001 : vector<8x1xf32> to vector<8x4xf32>
    %2014 = vector.broadcast %21 : vector<1x4xf32> to vector<8x4xf32>
    %2015 = arith.mulf %2013, %2014 : vector<8x4xf32>
    %2016 = arith.addf %2012, %2015 : vector<8x4xf32>
    %c0_410 = arith.constant 0 : index
    %c104 = arith.constant 104 : index
    %2017 = vector.load %arg10[%c0_410, %c104] : memref<8x128xf32, #tpu.memory_space<vmem>>, vector<8x4xf32>
    tpu.vector_store %arg10[%c0_410, %c104], %2016 {strides = array<i32>} : memref<8x128xf32, #tpu.memory_space<vmem>>, vector<8x4xf32>,
    %c0_411 = arith.constant 0 : index
    %c104_412 = arith.constant 104 : index
    %2018 = vector.load %arg9[%c0_411, %c104_412] : memref<8x128xf32, #tpu.memory_space<vmem>>, vector<8x1xf32>
    tpu.vector_store %arg9[%c0_411, %c104_412], %1980 {strides = array<i32>} : memref<8x128xf32, #tpu.memory_space<vmem>>, vector<8x1xf32>,
    %c0_413 = arith.constant 0 : index
    %c105 = arith.constant 105 : index
    %2019 = vector.load %arg9[%c0_413, %c105] : memref<8x128xf32, #tpu.memory_space<vmem>>, vector<8x1xf32>
    tpu.vector_store %arg9[%c0_413, %c105], %1987 {strides = array<i32>} : memref<8x128xf32, #tpu.memory_space<vmem>>, vector<8x1xf32>,
    %c0_414 = arith.constant 0 : index
    %c106 = arith.constant 106 : index
    %2020 = vector.load %arg9[%c0_414, %c106] : memref<8x128xf32, #tpu.memory_space<vmem>>, vector<8x1xf32>
    tpu.vector_store %arg9[%c0_414, %c106], %1994 {strides = array<i32>} : memref<8x128xf32, #tpu.memory_space<vmem>>, vector<8x1xf32>,
    %c0_415 = arith.constant 0 : index
    %c107 = arith.constant 107 : index
    %2021 = vector.load %arg9[%c0_415, %c107] : memref<8x128xf32, #tpu.memory_space<vmem>>, vector<8x1xf32>
    tpu.vector_store %arg9[%c0_415, %c107], %2001 {strides = array<i32>} : memref<8x128xf32, #tpu.memory_space<vmem>>, vector<8x1xf32>,
    %2022 = vector.broadcast %1980 : vector<8x1xf32> to vector<8x32xf32>
    %2023 = vector.broadcast %4 : vector<1x32xf32> to vector<8x32xf32>
    %2024 = arith.mulf %2022, %2023 : vector<8x32xf32>
    %2025 = vector.broadcast %3 : vector<1x32xf32> to vector<8x32xf32>
    %2026 = arith.addf %2025, %2024 : vector<8x32xf32>
    %2027 = vector.broadcast %1987 : vector<8x1xf32> to vector<8x32xf32>
    %2028 = vector.broadcast %5 : vector<1x32xf32> to vector<8x32xf32>
    %2029 = arith.mulf %2027, %2028 : vector<8x32xf32>
    %2030 = arith.addf %2026, %2029 : vector<8x32xf32>
    %2031 = vector.broadcast %1994 : vector<8x1xf32> to vector<8x32xf32>
    %2032 = vector.broadcast %6 : vector<1x32xf32> to vector<8x32xf32>
    %2033 = arith.mulf %2031, %2032 : vector<8x32xf32>
    %2034 = arith.addf %2030, %2033 : vector<8x32xf32>
    %2035 = vector.broadcast %2001 : vector<8x1xf32> to vector<8x32xf32>
    %2036 = vector.broadcast %7 : vector<1x32xf32> to vector<8x32xf32>
    %2037 = arith.mulf %2035, %2036 : vector<8x32xf32>
    %2038 = arith.addf %2034, %2037 : vector<8x32xf32>
    %c0_416 = arith.constant 0 : index
    %c104_417 = arith.constant 104 : index
    %2039 = vector.load %arg1[%c0_416, %c104_417] : memref<8x128xf32, #tpu.memory_space<vmem>>, vector<8x1xf32>
    %2040 = vector.broadcast %2039 : vector<8x1xf32> to vector<8x32xf32>
    %2041 = vector.broadcast %8 : vector<1x32xf32> to vector<8x32xf32>
    %2042 = arith.mulf %2040, %2041 : vector<8x32xf32>
    %2043 = arith.addf %2038, %2042 : vector<8x32xf32>
    %c0_418 = arith.constant 0 : index
    %c105_419 = arith.constant 105 : index
    %2044 = vector.load %arg1[%c0_418, %c105_419] : memref<8x128xf32, #tpu.memory_space<vmem>>, vector<8x1xf32>
    %2045 = vector.broadcast %2044 : vector<8x1xf32> to vector<8x32xf32>
    %2046 = vector.broadcast %9 : vector<1x32xf32> to vector<8x32xf32>
    %2047 = arith.mulf %2045, %2046 : vector<8x32xf32>
    %2048 = arith.addf %2043, %2047 : vector<8x32xf32>
    %2049 = math.tanh %2048 : vector<8x32xf32>
    %2050 = vector.broadcast %10 : vector<1x32xf32> to vector<8x32xf32>
    %2051 = arith.mulf %2049, %2050 : vector<8x32xf32>
    %cst_420 = arith.constant dense<0.000000e+00> : vector<8xf32>
    %2052 = vector.multi_reduction <add>, %2051, %cst_420 [1] : vector<8x32xf32> to vector<8xf32>
    %2053 = vector.shape_cast %2052 : vector<8xf32> to vector<8x1xf32>
    %2054 = arith.addf %1980, %2053 : vector<8x1xf32>
    %2055 = vector.broadcast %14 : vector<1x1xf32> to vector<8x1xf32>
    %2056 = arith.addf %2054, %2055 : vector<8x1xf32>
    %2057 = vector.broadcast %11 : vector<1x32xf32> to vector<8x32xf32>
    %2058 = arith.mulf %2049, %2057 : vector<8x32xf32>
    %cst_421 = arith.constant dense<0.000000e+00> : vector<8xf32>
    %2059 = vector.multi_reduction <add>, %2058, %cst_421 [1] : vector<8x32xf32> to vector<8xf32>
    %2060 = vector.shape_cast %2059 : vector<8xf32> to vector<8x1xf32>
    %2061 = arith.addf %1987, %2060 : vector<8x1xf32>
    %2062 = vector.broadcast %15 : vector<1x1xf32> to vector<8x1xf32>
    %2063 = arith.addf %2061, %2062 : vector<8x1xf32>
    %2064 = vector.broadcast %12 : vector<1x32xf32> to vector<8x32xf32>
    %2065 = arith.mulf %2049, %2064 : vector<8x32xf32>
    %cst_422 = arith.constant dense<0.000000e+00> : vector<8xf32>
    %2066 = vector.multi_reduction <add>, %2065, %cst_422 [1] : vector<8x32xf32> to vector<8xf32>
    %2067 = vector.shape_cast %2066 : vector<8xf32> to vector<8x1xf32>
    %2068 = arith.addf %1994, %2067 : vector<8x1xf32>
    %2069 = vector.broadcast %16 : vector<1x1xf32> to vector<8x1xf32>
    %2070 = arith.addf %2068, %2069 : vector<8x1xf32>
    %2071 = vector.broadcast %13 : vector<1x32xf32> to vector<8x32xf32>
    %2072 = arith.mulf %2049, %2071 : vector<8x32xf32>
    %cst_423 = arith.constant dense<0.000000e+00> : vector<8xf32>
    %2073 = vector.multi_reduction <add>, %2072, %cst_423 [1] : vector<8x32xf32> to vector<8xf32>
    %2074 = vector.shape_cast %2073 : vector<8xf32> to vector<8x1xf32>
    %2075 = arith.addf %2001, %2074 : vector<8x1xf32>
    %2076 = vector.broadcast %17 : vector<1x1xf32> to vector<8x1xf32>
    %2077 = arith.addf %2075, %2076 : vector<8x1xf32>
    %2078 = vector.broadcast %2056 : vector<8x1xf32> to vector<8x4xf32>
    %2079 = vector.broadcast %18 : vector<1x4xf32> to vector<8x4xf32>
    %2080 = arith.mulf %2078, %2079 : vector<8x4xf32>
    %2081 = vector.broadcast %2063 : vector<8x1xf32> to vector<8x4xf32>
    %2082 = vector.broadcast %19 : vector<1x4xf32> to vector<8x4xf32>
    %2083 = arith.mulf %2081, %2082 : vector<8x4xf32>
    %2084 = arith.addf %2080, %2083 : vector<8x4xf32>
    %2085 = vector.broadcast %2070 : vector<8x1xf32> to vector<8x4xf32>
    %2086 = vector.broadcast %20 : vector<1x4xf32> to vector<8x4xf32>
    %2087 = arith.mulf %2085, %2086 : vector<8x4xf32>
    %2088 = arith.addf %2084, %2087 : vector<8x4xf32>
    %2089 = vector.broadcast %2077 : vector<8x1xf32> to vector<8x4xf32>
    %2090 = vector.broadcast %21 : vector<1x4xf32> to vector<8x4xf32>
    %2091 = arith.mulf %2089, %2090 : vector<8x4xf32>
    %2092 = arith.addf %2088, %2091 : vector<8x4xf32>
    %c0_424 = arith.constant 0 : index
    %c108 = arith.constant 108 : index
    %2093 = vector.load %arg10[%c0_424, %c108] : memref<8x128xf32, #tpu.memory_space<vmem>>, vector<8x4xf32>
    tpu.vector_store %arg10[%c0_424, %c108], %2092 {strides = array<i32>} : memref<8x128xf32, #tpu.memory_space<vmem>>, vector<8x4xf32>,
    %c0_425 = arith.constant 0 : index
    %c108_426 = arith.constant 108 : index
    %2094 = vector.load %arg9[%c0_425, %c108_426] : memref<8x128xf32, #tpu.memory_space<vmem>>, vector<8x1xf32>
    tpu.vector_store %arg9[%c0_425, %c108_426], %2056 {strides = array<i32>} : memref<8x128xf32, #tpu.memory_space<vmem>>, vector<8x1xf32>,
    %c0_427 = arith.constant 0 : index
    %c109 = arith.constant 109 : index
    %2095 = vector.load %arg9[%c0_427, %c109] : memref<8x128xf32, #tpu.memory_space<vmem>>, vector<8x1xf32>
    tpu.vector_store %arg9[%c0_427, %c109], %2063 {strides = array<i32>} : memref<8x128xf32, #tpu.memory_space<vmem>>, vector<8x1xf32>,
    %c0_428 = arith.constant 0 : index
    %c110 = arith.constant 110 : index
    %2096 = vector.load %arg9[%c0_428, %c110] : memref<8x128xf32, #tpu.memory_space<vmem>>, vector<8x1xf32>
    tpu.vector_store %arg9[%c0_428, %c110], %2070 {strides = array<i32>} : memref<8x128xf32, #tpu.memory_space<vmem>>, vector<8x1xf32>,
    %c0_429 = arith.constant 0 : index
    %c111 = arith.constant 111 : index
    %2097 = vector.load %arg9[%c0_429, %c111] : memref<8x128xf32, #tpu.memory_space<vmem>>, vector<8x1xf32>
    tpu.vector_store %arg9[%c0_429, %c111], %2077 {strides = array<i32>} : memref<8x128xf32, #tpu.memory_space<vmem>>, vector<8x1xf32>,
    %2098 = vector.broadcast %2056 : vector<8x1xf32> to vector<8x32xf32>
    %2099 = vector.broadcast %4 : vector<1x32xf32> to vector<8x32xf32>
    %2100 = arith.mulf %2098, %2099 : vector<8x32xf32>
    %2101 = vector.broadcast %3 : vector<1x32xf32> to vector<8x32xf32>
    %2102 = arith.addf %2101, %2100 : vector<8x32xf32>
    %2103 = vector.broadcast %2063 : vector<8x1xf32> to vector<8x32xf32>
    %2104 = vector.broadcast %5 : vector<1x32xf32> to vector<8x32xf32>
    %2105 = arith.mulf %2103, %2104 : vector<8x32xf32>
    %2106 = arith.addf %2102, %2105 : vector<8x32xf32>
    %2107 = vector.broadcast %2070 : vector<8x1xf32> to vector<8x32xf32>
    %2108 = vector.broadcast %6 : vector<1x32xf32> to vector<8x32xf32>
    %2109 = arith.mulf %2107, %2108 : vector<8x32xf32>
    %2110 = arith.addf %2106, %2109 : vector<8x32xf32>
    %2111 = vector.broadcast %2077 : vector<8x1xf32> to vector<8x32xf32>
    %2112 = vector.broadcast %7 : vector<1x32xf32> to vector<8x32xf32>
    %2113 = arith.mulf %2111, %2112 : vector<8x32xf32>
    %2114 = arith.addf %2110, %2113 : vector<8x32xf32>
    %c0_430 = arith.constant 0 : index
    %c108_431 = arith.constant 108 : index
    %2115 = vector.load %arg1[%c0_430, %c108_431] : memref<8x128xf32, #tpu.memory_space<vmem>>, vector<8x1xf32>
    %2116 = vector.broadcast %2115 : vector<8x1xf32> to vector<8x32xf32>
    %2117 = vector.broadcast %8 : vector<1x32xf32> to vector<8x32xf32>
    %2118 = arith.mulf %2116, %2117 : vector<8x32xf32>
    %2119 = arith.addf %2114, %2118 : vector<8x32xf32>
    %c0_432 = arith.constant 0 : index
    %c109_433 = arith.constant 109 : index
    %2120 = vector.load %arg1[%c0_432, %c109_433] : memref<8x128xf32, #tpu.memory_space<vmem>>, vector<8x1xf32>
    %2121 = vector.broadcast %2120 : vector<8x1xf32> to vector<8x32xf32>
    %2122 = vector.broadcast %9 : vector<1x32xf32> to vector<8x32xf32>
    %2123 = arith.mulf %2121, %2122 : vector<8x32xf32>
    %2124 = arith.addf %2119, %2123 : vector<8x32xf32>
    %2125 = math.tanh %2124 : vector<8x32xf32>
    %2126 = vector.broadcast %10 : vector<1x32xf32> to vector<8x32xf32>
    %2127 = arith.mulf %2125, %2126 : vector<8x32xf32>
    %cst_434 = arith.constant dense<0.000000e+00> : vector<8xf32>
    %2128 = vector.multi_reduction <add>, %2127, %cst_434 [1] : vector<8x32xf32> to vector<8xf32>
    %2129 = vector.shape_cast %2128 : vector<8xf32> to vector<8x1xf32>
    %2130 = arith.addf %2056, %2129 : vector<8x1xf32>
    %2131 = vector.broadcast %14 : vector<1x1xf32> to vector<8x1xf32>
    %2132 = arith.addf %2130, %2131 : vector<8x1xf32>
    %2133 = vector.broadcast %11 : vector<1x32xf32> to vector<8x32xf32>
    %2134 = arith.mulf %2125, %2133 : vector<8x32xf32>
    %cst_435 = arith.constant dense<0.000000e+00> : vector<8xf32>
    %2135 = vector.multi_reduction <add>, %2134, %cst_435 [1] : vector<8x32xf32> to vector<8xf32>
    %2136 = vector.shape_cast %2135 : vector<8xf32> to vector<8x1xf32>
    %2137 = arith.addf %2063, %2136 : vector<8x1xf32>
    %2138 = vector.broadcast %15 : vector<1x1xf32> to vector<8x1xf32>
    %2139 = arith.addf %2137, %2138 : vector<8x1xf32>
    %2140 = vector.broadcast %12 : vector<1x32xf32> to vector<8x32xf32>
    %2141 = arith.mulf %2125, %2140 : vector<8x32xf32>
    %cst_436 = arith.constant dense<0.000000e+00> : vector<8xf32>
    %2142 = vector.multi_reduction <add>, %2141, %cst_436 [1] : vector<8x32xf32> to vector<8xf32>
    %2143 = vector.shape_cast %2142 : vector<8xf32> to vector<8x1xf32>
    %2144 = arith.addf %2070, %2143 : vector<8x1xf32>
    %2145 = vector.broadcast %16 : vector<1x1xf32> to vector<8x1xf32>
    %2146 = arith.addf %2144, %2145 : vector<8x1xf32>
    %2147 = vector.broadcast %13 : vector<1x32xf32> to vector<8x32xf32>
    %2148 = arith.mulf %2125, %2147 : vector<8x32xf32>
    %cst_437 = arith.constant dense<0.000000e+00> : vector<8xf32>
    %2149 = vector.multi_reduction <add>, %2148, %cst_437 [1] : vector<8x32xf32> to vector<8xf32>
    %2150 = vector.shape_cast %2149 : vector<8xf32> to vector<8x1xf32>
    %2151 = arith.addf %2077, %2150 : vector<8x1xf32>
    %2152 = vector.broadcast %17 : vector<1x1xf32> to vector<8x1xf32>
    %2153 = arith.addf %2151, %2152 : vector<8x1xf32>
    %2154 = vector.broadcast %2132 : vector<8x1xf32> to vector<8x4xf32>
    %2155 = vector.broadcast %18 : vector<1x4xf32> to vector<8x4xf32>
    %2156 = arith.mulf %2154, %2155 : vector<8x4xf32>
    %2157 = vector.broadcast %2139 : vector<8x1xf32> to vector<8x4xf32>
    %2158 = vector.broadcast %19 : vector<1x4xf32> to vector<8x4xf32>
    %2159 = arith.mulf %2157, %2158 : vector<8x4xf32>
    %2160 = arith.addf %2156, %2159 : vector<8x4xf32>
    %2161 = vector.broadcast %2146 : vector<8x1xf32> to vector<8x4xf32>
    %2162 = vector.broadcast %20 : vector<1x4xf32> to vector<8x4xf32>
    %2163 = arith.mulf %2161, %2162 : vector<8x4xf32>
    %2164 = arith.addf %2160, %2163 : vector<8x4xf32>
    %2165 = vector.broadcast %2153 : vector<8x1xf32> to vector<8x4xf32>
    %2166 = vector.broadcast %21 : vector<1x4xf32> to vector<8x4xf32>
    %2167 = arith.mulf %2165, %2166 : vector<8x4xf32>
    %2168 = arith.addf %2164, %2167 : vector<8x4xf32>
    %c0_438 = arith.constant 0 : index
    %c112 = arith.constant 112 : index
    %2169 = vector.load %arg10[%c0_438, %c112] : memref<8x128xf32, #tpu.memory_space<vmem>>, vector<8x4xf32>
    tpu.vector_store %arg10[%c0_438, %c112], %2168 {strides = array<i32>} : memref<8x128xf32, #tpu.memory_space<vmem>>, vector<8x4xf32>,
    %c0_439 = arith.constant 0 : index
    %c112_440 = arith.constant 112 : index
    %2170 = vector.load %arg9[%c0_439, %c112_440] : memref<8x128xf32, #tpu.memory_space<vmem>>, vector<8x1xf32>
    tpu.vector_store %arg9[%c0_439, %c112_440], %2132 {strides = array<i32>} : memref<8x128xf32, #tpu.memory_space<vmem>>, vector<8x1xf32>,
    %c0_441 = arith.constant 0 : index
    %c113 = arith.constant 113 : index
    %2171 = vector.load %arg9[%c0_441, %c113] : memref<8x128xf32, #tpu.memory_space<vmem>>, vector<8x1xf32>
    tpu.vector_store %arg9[%c0_441, %c113], %2139 {strides = array<i32>} : memref<8x128xf32, #tpu.memory_space<vmem>>, vector<8x1xf32>,
    %c0_442 = arith.constant 0 : index
    %c114 = arith.constant 114 : index
    %2172 = vector.load %arg9[%c0_442, %c114] : memref<8x128xf32, #tpu.memory_space<vmem>>, vector<8x1xf32>
    tpu.vector_store %arg9[%c0_442, %c114], %2146 {strides = array<i32>} : memref<8x128xf32, #tpu.memory_space<vmem>>, vector<8x1xf32>,
    %c0_443 = arith.constant 0 : index
    %c115 = arith.constant 115 : index
    %2173 = vector.load %arg9[%c0_443, %c115] : memref<8x128xf32, #tpu.memory_space<vmem>>, vector<8x1xf32>
    tpu.vector_store %arg9[%c0_443, %c115], %2153 {strides = array<i32>} : memref<8x128xf32, #tpu.memory_space<vmem>>, vector<8x1xf32>,
    %2174 = vector.broadcast %2132 : vector<8x1xf32> to vector<8x32xf32>
    %2175 = vector.broadcast %4 : vector<1x32xf32> to vector<8x32xf32>
    %2176 = arith.mulf %2174, %2175 : vector<8x32xf32>
    %2177 = vector.broadcast %3 : vector<1x32xf32> to vector<8x32xf32>
    %2178 = arith.addf %2177, %2176 : vector<8x32xf32>
    %2179 = vector.broadcast %2139 : vector<8x1xf32> to vector<8x32xf32>
    %2180 = vector.broadcast %5 : vector<1x32xf32> to vector<8x32xf32>
    %2181 = arith.mulf %2179, %2180 : vector<8x32xf32>
    %2182 = arith.addf %2178, %2181 : vector<8x32xf32>
    %2183 = vector.broadcast %2146 : vector<8x1xf32> to vector<8x32xf32>
    %2184 = vector.broadcast %6 : vector<1x32xf32> to vector<8x32xf32>
    %2185 = arith.mulf %2183, %2184 : vector<8x32xf32>
    %2186 = arith.addf %2182, %2185 : vector<8x32xf32>
    %2187 = vector.broadcast %2153 : vector<8x1xf32> to vector<8x32xf32>
    %2188 = vector.broadcast %7 : vector<1x32xf32> to vector<8x32xf32>
    %2189 = arith.mulf %2187, %2188 : vector<8x32xf32>
    %2190 = arith.addf %2186, %2189 : vector<8x32xf32>
    %c0_444 = arith.constant 0 : index
    %c112_445 = arith.constant 112 : index
    %2191 = vector.load %arg1[%c0_444, %c112_445] : memref<8x128xf32, #tpu.memory_space<vmem>>, vector<8x1xf32>
    %2192 = vector.broadcast %2191 : vector<8x1xf32> to vector<8x32xf32>
    %2193 = vector.broadcast %8 : vector<1x32xf32> to vector<8x32xf32>
    %2194 = arith.mulf %2192, %2193 : vector<8x32xf32>
    %2195 = arith.addf %2190, %2194 : vector<8x32xf32>
    %c0_446 = arith.constant 0 : index
    %c113_447 = arith.constant 113 : index
    %2196 = vector.load %arg1[%c0_446, %c113_447] : memref<8x128xf32, #tpu.memory_space<vmem>>, vector<8x1xf32>
    %2197 = vector.broadcast %2196 : vector<8x1xf32> to vector<8x32xf32>
    %2198 = vector.broadcast %9 : vector<1x32xf32> to vector<8x32xf32>
    %2199 = arith.mulf %2197, %2198 : vector<8x32xf32>
    %2200 = arith.addf %2195, %2199 : vector<8x32xf32>
    %2201 = math.tanh %2200 : vector<8x32xf32>
    %2202 = vector.broadcast %10 : vector<1x32xf32> to vector<8x32xf32>
    %2203 = arith.mulf %2201, %2202 : vector<8x32xf32>
    %cst_448 = arith.constant dense<0.000000e+00> : vector<8xf32>
    %2204 = vector.multi_reduction <add>, %2203, %cst_448 [1] : vector<8x32xf32> to vector<8xf32>
    %2205 = vector.shape_cast %2204 : vector<8xf32> to vector<8x1xf32>
    %2206 = arith.addf %2132, %2205 : vector<8x1xf32>
    %2207 = vector.broadcast %14 : vector<1x1xf32> to vector<8x1xf32>
    %2208 = arith.addf %2206, %2207 : vector<8x1xf32>
    %2209 = vector.broadcast %11 : vector<1x32xf32> to vector<8x32xf32>
    %2210 = arith.mulf %2201, %2209 : vector<8x32xf32>
    %cst_449 = arith.constant dense<0.000000e+00> : vector<8xf32>
    %2211 = vector.multi_reduction <add>, %2210, %cst_449 [1] : vector<8x32xf32> to vector<8xf32>
    %2212 = vector.shape_cast %2211 : vector<8xf32> to vector<8x1xf32>
    %2213 = arith.addf %2139, %2212 : vector<8x1xf32>
    %2214 = vector.broadcast %15 : vector<1x1xf32> to vector<8x1xf32>
    %2215 = arith.addf %2213, %2214 : vector<8x1xf32>
    %2216 = vector.broadcast %12 : vector<1x32xf32> to vector<8x32xf32>
    %2217 = arith.mulf %2201, %2216 : vector<8x32xf32>
    %cst_450 = arith.constant dense<0.000000e+00> : vector<8xf32>
    %2218 = vector.multi_reduction <add>, %2217, %cst_450 [1] : vector<8x32xf32> to vector<8xf32>
    %2219 = vector.shape_cast %2218 : vector<8xf32> to vector<8x1xf32>
    %2220 = arith.addf %2146, %2219 : vector<8x1xf32>
    %2221 = vector.broadcast %16 : vector<1x1xf32> to vector<8x1xf32>
    %2222 = arith.addf %2220, %2221 : vector<8x1xf32>
    %2223 = vector.broadcast %13 : vector<1x32xf32> to vector<8x32xf32>
    %2224 = arith.mulf %2201, %2223 : vector<8x32xf32>
    %cst_451 = arith.constant dense<0.000000e+00> : vector<8xf32>
    %2225 = vector.multi_reduction <add>, %2224, %cst_451 [1] : vector<8x32xf32> to vector<8xf32>
    %2226 = vector.shape_cast %2225 : vector<8xf32> to vector<8x1xf32>
    %2227 = arith.addf %2153, %2226 : vector<8x1xf32>
    %2228 = vector.broadcast %17 : vector<1x1xf32> to vector<8x1xf32>
    %2229 = arith.addf %2227, %2228 : vector<8x1xf32>
    %2230 = vector.broadcast %2208 : vector<8x1xf32> to vector<8x4xf32>
    %2231 = vector.broadcast %18 : vector<1x4xf32> to vector<8x4xf32>
    %2232 = arith.mulf %2230, %2231 : vector<8x4xf32>
    %2233 = vector.broadcast %2215 : vector<8x1xf32> to vector<8x4xf32>
    %2234 = vector.broadcast %19 : vector<1x4xf32> to vector<8x4xf32>
    %2235 = arith.mulf %2233, %2234 : vector<8x4xf32>
    %2236 = arith.addf %2232, %2235 : vector<8x4xf32>
    %2237 = vector.broadcast %2222 : vector<8x1xf32> to vector<8x4xf32>
    %2238 = vector.broadcast %20 : vector<1x4xf32> to vector<8x4xf32>
    %2239 = arith.mulf %2237, %2238 : vector<8x4xf32>
    %2240 = arith.addf %2236, %2239 : vector<8x4xf32>
    %2241 = vector.broadcast %2229 : vector<8x1xf32> to vector<8x4xf32>
    %2242 = vector.broadcast %21 : vector<1x4xf32> to vector<8x4xf32>
    %2243 = arith.mulf %2241, %2242 : vector<8x4xf32>
    %2244 = arith.addf %2240, %2243 : vector<8x4xf32>
    %c0_452 = arith.constant 0 : index
    %c116 = arith.constant 116 : index
    %2245 = vector.load %arg10[%c0_452, %c116] : memref<8x128xf32, #tpu.memory_space<vmem>>, vector<8x4xf32>
    tpu.vector_store %arg10[%c0_452, %c116], %2244 {strides = array<i32>} : memref<8x128xf32, #tpu.memory_space<vmem>>, vector<8x4xf32>,
    %c0_453 = arith.constant 0 : index
    %c116_454 = arith.constant 116 : index
    %2246 = vector.load %arg9[%c0_453, %c116_454] : memref<8x128xf32, #tpu.memory_space<vmem>>, vector<8x1xf32>
    tpu.vector_store %arg9[%c0_453, %c116_454], %2208 {strides = array<i32>} : memref<8x128xf32, #tpu.memory_space<vmem>>, vector<8x1xf32>,
    %c0_455 = arith.constant 0 : index
    %c117 = arith.constant 117 : index
    %2247 = vector.load %arg9[%c0_455, %c117] : memref<8x128xf32, #tpu.memory_space<vmem>>, vector<8x1xf32>
    tpu.vector_store %arg9[%c0_455, %c117], %2215 {strides = array<i32>} : memref<8x128xf32, #tpu.memory_space<vmem>>, vector<8x1xf32>,
    %c0_456 = arith.constant 0 : index
    %c118 = arith.constant 118 : index
    %2248 = vector.load %arg9[%c0_456, %c118] : memref<8x128xf32, #tpu.memory_space<vmem>>, vector<8x1xf32>
    tpu.vector_store %arg9[%c0_456, %c118], %2222 {strides = array<i32>} : memref<8x128xf32, #tpu.memory_space<vmem>>, vector<8x1xf32>,
    %c0_457 = arith.constant 0 : index
    %c119 = arith.constant 119 : index
    %2249 = vector.load %arg9[%c0_457, %c119] : memref<8x128xf32, #tpu.memory_space<vmem>>, vector<8x1xf32>
    tpu.vector_store %arg9[%c0_457, %c119], %2229 {strides = array<i32>} : memref<8x128xf32, #tpu.memory_space<vmem>>, vector<8x1xf32>,
    %2250 = vector.broadcast %2208 : vector<8x1xf32> to vector<8x32xf32>
    %2251 = vector.broadcast %4 : vector<1x32xf32> to vector<8x32xf32>
    %2252 = arith.mulf %2250, %2251 : vector<8x32xf32>
    %2253 = vector.broadcast %3 : vector<1x32xf32> to vector<8x32xf32>
    %2254 = arith.addf %2253, %2252 : vector<8x32xf32>
    %2255 = vector.broadcast %2215 : vector<8x1xf32> to vector<8x32xf32>
    %2256 = vector.broadcast %5 : vector<1x32xf32> to vector<8x32xf32>
    %2257 = arith.mulf %2255, %2256 : vector<8x32xf32>
    %2258 = arith.addf %2254, %2257 : vector<8x32xf32>
    %2259 = vector.broadcast %2222 : vector<8x1xf32> to vector<8x32xf32>
    %2260 = vector.broadcast %6 : vector<1x32xf32> to vector<8x32xf32>
    %2261 = arith.mulf %2259, %2260 : vector<8x32xf32>
    %2262 = arith.addf %2258, %2261 : vector<8x32xf32>
    %2263 = vector.broadcast %2229 : vector<8x1xf32> to vector<8x32xf32>
    %2264 = vector.broadcast %7 : vector<1x32xf32> to vector<8x32xf32>
    %2265 = arith.mulf %2263, %2264 : vector<8x32xf32>
    %2266 = arith.addf %2262, %2265 : vector<8x32xf32>
    %c0_458 = arith.constant 0 : index
    %c116_459 = arith.constant 116 : index
    %2267 = vector.load %arg1[%c0_458, %c116_459] : memref<8x128xf32, #tpu.memory_space<vmem>>, vector<8x1xf32>
    %2268 = vector.broadcast %2267 : vector<8x1xf32> to vector<8x32xf32>
    %2269 = vector.broadcast %8 : vector<1x32xf32> to vector<8x32xf32>
    %2270 = arith.mulf %2268, %2269 : vector<8x32xf32>
    %2271 = arith.addf %2266, %2270 : vector<8x32xf32>
    %c0_460 = arith.constant 0 : index
    %c117_461 = arith.constant 117 : index
    %2272 = vector.load %arg1[%c0_460, %c117_461] : memref<8x128xf32, #tpu.memory_space<vmem>>, vector<8x1xf32>
    %2273 = vector.broadcast %2272 : vector<8x1xf32> to vector<8x32xf32>
    %2274 = vector.broadcast %9 : vector<1x32xf32> to vector<8x32xf32>
    %2275 = arith.mulf %2273, %2274 : vector<8x32xf32>
    %2276 = arith.addf %2271, %2275 : vector<8x32xf32>
    %2277 = math.tanh %2276 : vector<8x32xf32>
    %2278 = vector.broadcast %10 : vector<1x32xf32> to vector<8x32xf32>
    %2279 = arith.mulf %2277, %2278 : vector<8x32xf32>
    %cst_462 = arith.constant dense<0.000000e+00> : vector<8xf32>
    %2280 = vector.multi_reduction <add>, %2279, %cst_462 [1] : vector<8x32xf32> to vector<8xf32>
    %2281 = vector.shape_cast %2280 : vector<8xf32> to vector<8x1xf32>
    %2282 = arith.addf %2208, %2281 : vector<8x1xf32>
    %2283 = vector.broadcast %14 : vector<1x1xf32> to vector<8x1xf32>
    %2284 = arith.addf %2282, %2283 : vector<8x1xf32>
    %2285 = vector.broadcast %11 : vector<1x32xf32> to vector<8x32xf32>
    %2286 = arith.mulf %2277, %2285 : vector<8x32xf32>
    %cst_463 = arith.constant dense<0.000000e+00> : vector<8xf32>
    %2287 = vector.multi_reduction <add>, %2286, %cst_463 [1] : vector<8x32xf32> to vector<8xf32>
    %2288 = vector.shape_cast %2287 : vector<8xf32> to vector<8x1xf32>
    %2289 = arith.addf %2215, %2288 : vector<8x1xf32>
    %2290 = vector.broadcast %15 : vector<1x1xf32> to vector<8x1xf32>
    %2291 = arith.addf %2289, %2290 : vector<8x1xf32>
    %2292 = vector.broadcast %12 : vector<1x32xf32> to vector<8x32xf32>
    %2293 = arith.mulf %2277, %2292 : vector<8x32xf32>
    %cst_464 = arith.constant dense<0.000000e+00> : vector<8xf32>
    %2294 = vector.multi_reduction <add>, %2293, %cst_464 [1] : vector<8x32xf32> to vector<8xf32>
    %2295 = vector.shape_cast %2294 : vector<8xf32> to vector<8x1xf32>
    %2296 = arith.addf %2222, %2295 : vector<8x1xf32>
    %2297 = vector.broadcast %16 : vector<1x1xf32> to vector<8x1xf32>
    %2298 = arith.addf %2296, %2297 : vector<8x1xf32>
    %2299 = vector.broadcast %13 : vector<1x32xf32> to vector<8x32xf32>
    %2300 = arith.mulf %2277, %2299 : vector<8x32xf32>
    %cst_465 = arith.constant dense<0.000000e+00> : vector<8xf32>
    %2301 = vector.multi_reduction <add>, %2300, %cst_465 [1] : vector<8x32xf32> to vector<8xf32>
    %2302 = vector.shape_cast %2301 : vector<8xf32> to vector<8x1xf32>
    %2303 = arith.addf %2229, %2302 : vector<8x1xf32>
    %2304 = vector.broadcast %17 : vector<1x1xf32> to vector<8x1xf32>
    %2305 = arith.addf %2303, %2304 : vector<8x1xf32>
    %2306 = vector.broadcast %2284 : vector<8x1xf32> to vector<8x4xf32>
    %2307 = vector.broadcast %18 : vector<1x4xf32> to vector<8x4xf32>
    %2308 = arith.mulf %2306, %2307 : vector<8x4xf32>
    %2309 = vector.broadcast %2291 : vector<8x1xf32> to vector<8x4xf32>
    %2310 = vector.broadcast %19 : vector<1x4xf32> to vector<8x4xf32>
    %2311 = arith.mulf %2309, %2310 : vector<8x4xf32>
    %2312 = arith.addf %2308, %2311 : vector<8x4xf32>
    %2313 = vector.broadcast %2298 : vector<8x1xf32> to vector<8x4xf32>
    %2314 = vector.broadcast %20 : vector<1x4xf32> to vector<8x4xf32>
    %2315 = arith.mulf %2313, %2314 : vector<8x4xf32>
    %2316 = arith.addf %2312, %2315 : vector<8x4xf32>
    %2317 = vector.broadcast %2305 : vector<8x1xf32> to vector<8x4xf32>
    %2318 = vector.broadcast %21 : vector<1x4xf32> to vector<8x4xf32>
    %2319 = arith.mulf %2317, %2318 : vector<8x4xf32>
    %2320 = arith.addf %2316, %2319 : vector<8x4xf32>
    %c0_466 = arith.constant 0 : index
    %c120 = arith.constant 120 : index
    %2321 = vector.load %arg10[%c0_466, %c120] : memref<8x128xf32, #tpu.memory_space<vmem>>, vector<8x4xf32>
    tpu.vector_store %arg10[%c0_466, %c120], %2320 {strides = array<i32>} : memref<8x128xf32, #tpu.memory_space<vmem>>, vector<8x4xf32>,
    %c0_467 = arith.constant 0 : index
    %c120_468 = arith.constant 120 : index
    %2322 = vector.load %arg9[%c0_467, %c120_468] : memref<8x128xf32, #tpu.memory_space<vmem>>, vector<8x1xf32>
    tpu.vector_store %arg9[%c0_467, %c120_468], %2284 {strides = array<i32>} : memref<8x128xf32, #tpu.memory_space<vmem>>, vector<8x1xf32>,
    %c0_469 = arith.constant 0 : index
    %c121 = arith.constant 121 : index
    %2323 = vector.load %arg9[%c0_469, %c121] : memref<8x128xf32, #tpu.memory_space<vmem>>, vector<8x1xf32>
    tpu.vector_store %arg9[%c0_469, %c121], %2291 {strides = array<i32>} : memref<8x128xf32, #tpu.memory_space<vmem>>, vector<8x1xf32>,
    %c0_470 = arith.constant 0 : index
    %c122 = arith.constant 122 : index
    %2324 = vector.load %arg9[%c0_470, %c122] : memref<8x128xf32, #tpu.memory_space<vmem>>, vector<8x1xf32>
    tpu.vector_store %arg9[%c0_470, %c122], %2298 {strides = array<i32>} : memref<8x128xf32, #tpu.memory_space<vmem>>, vector<8x1xf32>,
    %c0_471 = arith.constant 0 : index
    %c123 = arith.constant 123 : index
    %2325 = vector.load %arg9[%c0_471, %c123] : memref<8x128xf32, #tpu.memory_space<vmem>>, vector<8x1xf32>
    tpu.vector_store %arg9[%c0_471, %c123], %2305 {strides = array<i32>} : memref<8x128xf32, #tpu.memory_space<vmem>>, vector<8x1xf32>,
    %2326 = vector.broadcast %2284 : vector<8x1xf32> to vector<8x32xf32>
    %2327 = vector.broadcast %4 : vector<1x32xf32> to vector<8x32xf32>
    %2328 = arith.mulf %2326, %2327 : vector<8x32xf32>
    %2329 = vector.broadcast %3 : vector<1x32xf32> to vector<8x32xf32>
    %2330 = arith.addf %2329, %2328 : vector<8x32xf32>
    %2331 = vector.broadcast %2291 : vector<8x1xf32> to vector<8x32xf32>
    %2332 = vector.broadcast %5 : vector<1x32xf32> to vector<8x32xf32>
    %2333 = arith.mulf %2331, %2332 : vector<8x32xf32>
    %2334 = arith.addf %2330, %2333 : vector<8x32xf32>
    %2335 = vector.broadcast %2298 : vector<8x1xf32> to vector<8x32xf32>
    %2336 = vector.broadcast %6 : vector<1x32xf32> to vector<8x32xf32>
    %2337 = arith.mulf %2335, %2336 : vector<8x32xf32>
    %2338 = arith.addf %2334, %2337 : vector<8x32xf32>
    %2339 = vector.broadcast %2305 : vector<8x1xf32> to vector<8x32xf32>
    %2340 = vector.broadcast %7 : vector<1x32xf32> to vector<8x32xf32>
    %2341 = arith.mulf %2339, %2340 : vector<8x32xf32>
    %2342 = arith.addf %2338, %2341 : vector<8x32xf32>
    %c0_472 = arith.constant 0 : index
    %c120_473 = arith.constant 120 : index
    %2343 = vector.load %arg1[%c0_472, %c120_473] : memref<8x128xf32, #tpu.memory_space<vmem>>, vector<8x1xf32>
    %2344 = vector.broadcast %2343 : vector<8x1xf32> to vector<8x32xf32>
    %2345 = vector.broadcast %8 : vector<1x32xf32> to vector<8x32xf32>
    %2346 = arith.mulf %2344, %2345 : vector<8x32xf32>
    %2347 = arith.addf %2342, %2346 : vector<8x32xf32>
    %c0_474 = arith.constant 0 : index
    %c121_475 = arith.constant 121 : index
    %2348 = vector.load %arg1[%c0_474, %c121_475] : memref<8x128xf32, #tpu.memory_space<vmem>>, vector<8x1xf32>
    %2349 = vector.broadcast %2348 : vector<8x1xf32> to vector<8x32xf32>
    %2350 = vector.broadcast %9 : vector<1x32xf32> to vector<8x32xf32>
    %2351 = arith.mulf %2349, %2350 : vector<8x32xf32>
    %2352 = arith.addf %2347, %2351 : vector<8x32xf32>
    %2353 = math.tanh %2352 : vector<8x32xf32>
    %2354 = vector.broadcast %10 : vector<1x32xf32> to vector<8x32xf32>
    %2355 = arith.mulf %2353, %2354 : vector<8x32xf32>
    %cst_476 = arith.constant dense<0.000000e+00> : vector<8xf32>
    %2356 = vector.multi_reduction <add>, %2355, %cst_476 [1] : vector<8x32xf32> to vector<8xf32>
    %2357 = vector.shape_cast %2356 : vector<8xf32> to vector<8x1xf32>
    %2358 = arith.addf %2284, %2357 : vector<8x1xf32>
    %2359 = vector.broadcast %14 : vector<1x1xf32> to vector<8x1xf32>
    %2360 = arith.addf %2358, %2359 : vector<8x1xf32>
    %2361 = vector.broadcast %11 : vector<1x32xf32> to vector<8x32xf32>
    %2362 = arith.mulf %2353, %2361 : vector<8x32xf32>
    %cst_477 = arith.constant dense<0.000000e+00> : vector<8xf32>
    %2363 = vector.multi_reduction <add>, %2362, %cst_477 [1] : vector<8x32xf32> to vector<8xf32>
    %2364 = vector.shape_cast %2363 : vector<8xf32> to vector<8x1xf32>
    %2365 = arith.addf %2291, %2364 : vector<8x1xf32>
    %2366 = vector.broadcast %15 : vector<1x1xf32> to vector<8x1xf32>
    %2367 = arith.addf %2365, %2366 : vector<8x1xf32>
    %2368 = vector.broadcast %12 : vector<1x32xf32> to vector<8x32xf32>
    %2369 = arith.mulf %2353, %2368 : vector<8x32xf32>
    %cst_478 = arith.constant dense<0.000000e+00> : vector<8xf32>
    %2370 = vector.multi_reduction <add>, %2369, %cst_478 [1] : vector<8x32xf32> to vector<8xf32>
    %2371 = vector.shape_cast %2370 : vector<8xf32> to vector<8x1xf32>
    %2372 = arith.addf %2298, %2371 : vector<8x1xf32>
    %2373 = vector.broadcast %16 : vector<1x1xf32> to vector<8x1xf32>
    %2374 = arith.addf %2372, %2373 : vector<8x1xf32>
    %2375 = vector.broadcast %13 : vector<1x32xf32> to vector<8x32xf32>
    %2376 = arith.mulf %2353, %2375 : vector<8x32xf32>
    %cst_479 = arith.constant dense<0.000000e+00> : vector<8xf32>
    %2377 = vector.multi_reduction <add>, %2376, %cst_479 [1] : vector<8x32xf32> to vector<8xf32>
    %2378 = vector.shape_cast %2377 : vector<8xf32> to vector<8x1xf32>
    %2379 = arith.addf %2305, %2378 : vector<8x1xf32>
    %2380 = vector.broadcast %17 : vector<1x1xf32> to vector<8x1xf32>
    %2381 = arith.addf %2379, %2380 : vector<8x1xf32>
    %2382 = vector.broadcast %2360 : vector<8x1xf32> to vector<8x4xf32>
    %2383 = vector.broadcast %18 : vector<1x4xf32> to vector<8x4xf32>
    %2384 = arith.mulf %2382, %2383 : vector<8x4xf32>
    %2385 = vector.broadcast %2367 : vector<8x1xf32> to vector<8x4xf32>
    %2386 = vector.broadcast %19 : vector<1x4xf32> to vector<8x4xf32>
    %2387 = arith.mulf %2385, %2386 : vector<8x4xf32>
    %2388 = arith.addf %2384, %2387 : vector<8x4xf32>
    %2389 = vector.broadcast %2374 : vector<8x1xf32> to vector<8x4xf32>
    %2390 = vector.broadcast %20 : vector<1x4xf32> to vector<8x4xf32>
    %2391 = arith.mulf %2389, %2390 : vector<8x4xf32>
    %2392 = arith.addf %2388, %2391 : vector<8x4xf32>
    %2393 = vector.broadcast %2381 : vector<8x1xf32> to vector<8x4xf32>
    %2394 = vector.broadcast %21 : vector<1x4xf32> to vector<8x4xf32>
    %2395 = arith.mulf %2393, %2394 : vector<8x4xf32>
    %2396 = arith.addf %2392, %2395 : vector<8x4xf32>
    %c0_480 = arith.constant 0 : index
    %c124 = arith.constant 124 : index
    %2397 = vector.load %arg10[%c0_480, %c124] : memref<8x128xf32, #tpu.memory_space<vmem>>, vector<8x4xf32>
    tpu.vector_store %arg10[%c0_480, %c124], %2396 {strides = array<i32>} : memref<8x128xf32, #tpu.memory_space<vmem>>, vector<8x4xf32>,
    %c0_481 = arith.constant 0 : index
    %c124_482 = arith.constant 124 : index
    %2398 = vector.load %arg9[%c0_481, %c124_482] : memref<8x128xf32, #tpu.memory_space<vmem>>, vector<8x1xf32>
    tpu.vector_store %arg9[%c0_481, %c124_482], %2360 {strides = array<i32>} : memref<8x128xf32, #tpu.memory_space<vmem>>, vector<8x1xf32>,
    %c0_483 = arith.constant 0 : index
    %c125 = arith.constant 125 : index
    %2399 = vector.load %arg9[%c0_483, %c125] : memref<8x128xf32, #tpu.memory_space<vmem>>, vector<8x1xf32>
    tpu.vector_store %arg9[%c0_483, %c125], %2367 {strides = array<i32>} : memref<8x128xf32, #tpu.memory_space<vmem>>, vector<8x1xf32>,
    %c0_484 = arith.constant 0 : index
    %c126 = arith.constant 126 : index
    %2400 = vector.load %arg9[%c0_484, %c126] : memref<8x128xf32, #tpu.memory_space<vmem>>, vector<8x1xf32>
    tpu.vector_store %arg9[%c0_484, %c126], %2374 {strides = array<i32>} : memref<8x128xf32, #tpu.memory_space<vmem>>, vector<8x1xf32>,
    %c0_485 = arith.constant 0 : index
    %c127 = arith.constant 127 : index
    %2401 = vector.load %arg9[%c0_485, %c127] : memref<8x128xf32, #tpu.memory_space<vmem>>, vector<8x1xf32>
    tpu.vector_store %arg9[%c0_485, %c127], %2381 {strides = array<i32>} : memref<8x128xf32, #tpu.memory_space<vmem>>, vector<8x1xf32>,
    %2402 = vector.broadcast %2360 : vector<8x1xf32> to vector<8x32xf32>
    %2403 = vector.broadcast %4 : vector<1x32xf32> to vector<8x32xf32>
    %2404 = arith.mulf %2402, %2403 : vector<8x32xf32>
    %2405 = vector.broadcast %3 : vector<1x32xf32> to vector<8x32xf32>
    %2406 = arith.addf %2405, %2404 : vector<8x32xf32>
    %2407 = vector.broadcast %2367 : vector<8x1xf32> to vector<8x32xf32>
    %2408 = vector.broadcast %5 : vector<1x32xf32> to vector<8x32xf32>
    %2409 = arith.mulf %2407, %2408 : vector<8x32xf32>
    %2410 = arith.addf %2406, %2409 : vector<8x32xf32>
    %2411 = vector.broadcast %2374 : vector<8x1xf32> to vector<8x32xf32>
    %2412 = vector.broadcast %6 : vector<1x32xf32> to vector<8x32xf32>
    %2413 = arith.mulf %2411, %2412 : vector<8x32xf32>
    %2414 = arith.addf %2410, %2413 : vector<8x32xf32>
    %2415 = vector.broadcast %2381 : vector<8x1xf32> to vector<8x32xf32>
    %2416 = vector.broadcast %7 : vector<1x32xf32> to vector<8x32xf32>
    %2417 = arith.mulf %2415, %2416 : vector<8x32xf32>
    %2418 = arith.addf %2414, %2417 : vector<8x32xf32>
    %c0_486 = arith.constant 0 : index
    %c124_487 = arith.constant 124 : index
    %2419 = vector.load %arg1[%c0_486, %c124_487] : memref<8x128xf32, #tpu.memory_space<vmem>>, vector<8x1xf32>
    %2420 = vector.broadcast %2419 : vector<8x1xf32> to vector<8x32xf32>
    %2421 = vector.broadcast %8 : vector<1x32xf32> to vector<8x32xf32>
    %2422 = arith.mulf %2420, %2421 : vector<8x32xf32>
    %2423 = arith.addf %2418, %2422 : vector<8x32xf32>
    %c0_488 = arith.constant 0 : index
    %c125_489 = arith.constant 125 : index
    %2424 = vector.load %arg1[%c0_488, %c125_489] : memref<8x128xf32, #tpu.memory_space<vmem>>, vector<8x1xf32>
    %2425 = vector.broadcast %2424 : vector<8x1xf32> to vector<8x32xf32>
    %2426 = vector.broadcast %9 : vector<1x32xf32> to vector<8x32xf32>
    %2427 = arith.mulf %2425, %2426 : vector<8x32xf32>
    %2428 = arith.addf %2423, %2427 : vector<8x32xf32>
    %2429 = math.tanh %2428 : vector<8x32xf32>
    %2430 = vector.broadcast %10 : vector<1x32xf32> to vector<8x32xf32>
    %2431 = arith.mulf %2429, %2430 : vector<8x32xf32>
    %cst_490 = arith.constant dense<0.000000e+00> : vector<8xf32>
    %2432 = vector.multi_reduction <add>, %2431, %cst_490 [1] : vector<8x32xf32> to vector<8xf32>
    %2433 = vector.shape_cast %2432 : vector<8xf32> to vector<8x1xf32>
    %2434 = arith.addf %2360, %2433 : vector<8x1xf32>
    %2435 = vector.broadcast %14 : vector<1x1xf32> to vector<8x1xf32>
    %2436 = arith.addf %2434, %2435 : vector<8x1xf32>
    %2437 = vector.broadcast %11 : vector<1x32xf32> to vector<8x32xf32>
    %2438 = arith.mulf %2429, %2437 : vector<8x32xf32>
    %cst_491 = arith.constant dense<0.000000e+00> : vector<8xf32>
    %2439 = vector.multi_reduction <add>, %2438, %cst_491 [1] : vector<8x32xf32> to vector<8xf32>
    %2440 = vector.shape_cast %2439 : vector<8xf32> to vector<8x1xf32>
    %2441 = arith.addf %2367, %2440 : vector<8x1xf32>
    %2442 = vector.broadcast %15 : vector<1x1xf32> to vector<8x1xf32>
    %2443 = arith.addf %2441, %2442 : vector<8x1xf32>
    %2444 = vector.broadcast %12 : vector<1x32xf32> to vector<8x32xf32>
    %2445 = arith.mulf %2429, %2444 : vector<8x32xf32>
    %cst_492 = arith.constant dense<0.000000e+00> : vector<8xf32>
    %2446 = vector.multi_reduction <add>, %2445, %cst_492 [1] : vector<8x32xf32> to vector<8xf32>
    %2447 = vector.shape_cast %2446 : vector<8xf32> to vector<8x1xf32>
    %2448 = arith.addf %2374, %2447 : vector<8x1xf32>
    %2449 = vector.broadcast %16 : vector<1x1xf32> to vector<8x1xf32>
    %2450 = arith.addf %2448, %2449 : vector<8x1xf32>
    %2451 = vector.broadcast %13 : vector<1x32xf32> to vector<8x32xf32>
    %2452 = arith.mulf %2429, %2451 : vector<8x32xf32>
    %cst_493 = arith.constant dense<0.000000e+00> : vector<8xf32>
    %2453 = vector.multi_reduction <add>, %2452, %cst_493 [1] : vector<8x32xf32> to vector<8xf32>
    %2454 = vector.shape_cast %2453 : vector<8xf32> to vector<8x1xf32>
    %2455 = arith.addf %2381, %2454 : vector<8x1xf32>
    %2456 = vector.broadcast %17 : vector<1x1xf32> to vector<8x1xf32>
    %2457 = arith.addf %2455, %2456 : vector<8x1xf32>
    %c0_494 = arith.constant 0 : index
    %c0_495 = arith.constant 0 : index
    %2458 = vector.load %arg11[%c0_494, %c0_495] : memref<8x4xf32, #tpu.memory_space<vmem>>, vector<8x1xf32>
    tpu.vector_store %arg11[%c0_494, %c0_495], %2436 {strides = array<i32>} : memref<8x4xf32, #tpu.memory_space<vmem>>, vector<8x1xf32>,
    %c0_496 = arith.constant 0 : index
    %c1_497 = arith.constant 1 : index
    %2459 = vector.load %arg11[%c0_496, %c1_497] : memref<8x4xf32, #tpu.memory_space<vmem>>, vector<8x1xf32>
    tpu.vector_store %arg11[%c0_496, %c1_497], %2443 {strides = array<i32>} : memref<8x4xf32, #tpu.memory_space<vmem>>, vector<8x1xf32>,
    %c0_498 = arith.constant 0 : index
    %c2_499 = arith.constant 2 : index
    %2460 = vector.load %arg11[%c0_498, %c2_499] : memref<8x4xf32, #tpu.memory_space<vmem>>, vector<8x1xf32>
    tpu.vector_store %arg11[%c0_498, %c2_499], %2450 {strides = array<i32>} : memref<8x4xf32, #tpu.memory_space<vmem>>, vector<8x1xf32>,
    %c0_500 = arith.constant 0 : index
    %c3_501 = arith.constant 3 : index
    %2461 = vector.load %arg11[%c0_500, %c3_501] : memref<8x4xf32, #tpu.memory_space<vmem>>, vector<8x1xf32>
    tpu.vector_store %arg11[%c0_500, %c3_501], %2457 {strides = array<i32>} : memref<8x4xf32, #tpu.memory_space<vmem>>, vector<8x1xf32>,
    return
  }
  func.func @transform_0(%arg0: i32) -> (i32, i32) {
    %c0_i32 = arith.constant 0 : i32
    %c0_i32_0 = arith.constant 0 : i32
    return %c0_i32, %arg0 : i32, i32
  }
  func.func @transform_1(%arg0: i32) -> (i32, i32) {
    %c0_i32 = arith.constant 0 : i32
    %c0_i32_0 = arith.constant 0 : i32
    %c0_i32_1 = arith.constant 0 : i32
    return %c0_i32, %c0_i32_0 : i32, i32
  }
  func.func @transform_2(%arg0: i32) -> (i32, i32) {
    %c0_i32 = arith.constant 0 : i32
    %c0_i32_0 = arith.constant 0 : i32
    %c0_i32_1 = arith.constant 0 : i32
    return %c0_i32, %c0_i32_0 : i32, i32
  }
  func.func @transform_3(%arg0: i32) -> (i32, i32) {
    %c0_i32 = arith.constant 0 : i32
    %c0_i32_0 = arith.constant 0 : i32
    %c0_i32_1 = arith.constant 0 : i32
    return %c0_i32, %c0_i32_0 : i32, i32
  }
  func.func @transform_4(%arg0: i32) -> (i32, i32) {
    %c0_i32 = arith.constant 0 : i32
    %c0_i32_0 = arith.constant 0 : i32
    %c0_i32_1 = arith.constant 0 : i32
    return %c0_i32, %c0_i32_0 : i32, i32
  }
  func.func @transform_5(%arg0: i32) -> (i32, i32) {
    %c0_i32 = arith.constant 0 : i32
    %c0_i32_0 = arith.constant 0 : i32
    %c0_i32_1 = arith.constant 0 : i32
    return %c0_i32, %c0_i32_0 : i32, i32
  }
  func.func @transform_6(%arg0: i32) -> (i32, i32) {
    %c0_i32 = arith.constant 0 : i32
    %c0_i32_0 = arith.constant 0 : i32
    %c0_i32_1 = arith.constant 0 : i32
    return %c0_i32, %c0_i32_0 : i32, i32
  }
  func.func @transform_7(%arg0: i32) -> (i32, i32) {
    %c0_i32 = arith.constant 0 : i32
    %c0_i32_0 = arith.constant 0 : i32
    %c0_i32_1 = arith.constant 0 : i32
    return %c0_i32, %c0_i32_0 : i32, i32
  }
  func.func @transform_8(%arg0: i32) -> (i32, i32) {
    %c0_i32 = arith.constant 0 : i32
    %c0_i32_0 = arith.constant 0 : i32
    return %c0_i32, %arg0 : i32, i32
  }
  func.func @transform_9(%arg0: i32) -> (i32, i32) {
    %c0_i32 = arith.constant 0 : i32
    %c0_i32_0 = arith.constant 0 : i32
    return %c0_i32, %arg0 : i32, i32
  }
}

</mosaic_0001>

<bundles_post_ra>
// kernel: tpu_custom_call.1
= control target key start
LH: loop header
LB: loop body
LE: loop exit
PB: predicated region body
PF: predicated region fallthrough
CT: control target
= control target key end

     0   :  { %15 = vsyncpa [#allocation4], 0  ;;  %vm38_vm0 = vcmask 31744   ;;  %v6529_v1 = vmov 0   ;;  %v6535_v2 = vmov 2   ;;  %s6519_s0 = inlined_call_operand.vmem [shape: f32[8,128], index: 0, kind: input, shape index: {}]   ;;  %s6520_s1 = inlined_call_operand.vmem [shape: f32[8,4], index: 1, kind: input, shape index: {}]   ;;  %s6521_s2 = inlined_call_operand.vmem [shape: f32[4,32], index: 2, kind: input, shape index: {}]   ;;  %s6522_s3 = inlined_call_operand.vmem [shape: f32[2,32], index: 3, kind: input, shape index: {}]   ;;  %s6523_s4 = inlined_call_operand.vmem [shape: f32[1,32], index: 4, kind: input, shape index: {}]   ;;  %s6524_s5 = inlined_call_operand.vmem [shape: f32[4,32], index: 5, kind: input, shape index: {}]   ;;  %s6525_s6 = inlined_call_operand.vmem [shape: f32[1,4], index: 6, kind: input, shape index: {}]   ;;  %s6526_s7 = inlined_call_operand.vmem [shape: f32[4,4], index: 7, kind: input, shape index: {}]   ;;  %s6527_s8 = inlined_call_operand.hbm [shape: f32[8,128], index: 8, kind: output, shape index: {0}]   ;;  %s6528_s9 = inlined_call_operand.hbm [shape: f32[8,128], index: 9, kind: output, shape index: {1}]  }
   0x1   :  { %v37_v0 = vld [vmem:[%s6520_s1] sm:$0xff]  ;;  %3454 = vset.pattern.permute.xlu0 %v6529_v1  ;;  %3456 = vset.pattern.permute.xlu1 %v6535_v2 }
   0x2   :  { %39 = vst.msk [vmem:[#allocation2] sm:$0xff] %vm38_vm0, %v37_v0 }
   0x3   :  { %16 = vsyncpa [#allocation6], 0  ;;  %v6531_v4 = vmov 1   ;;  %v6533_v5 = vmov 3   ;;  %v3974_v6 = vld [vmem:[%s6519_s0] sm:$0xff]  ;;  %v3812_v7 = vmov 4  }
   0x4   :  { %v3983_v8 = vld [vmem:[%s6521_s2] ss:$0 sm:$0xff]  ;;  %v3997_v14 = vld [vmem:[%s6521_s2 + $0x1] ss:$0 sm:$0xff]  ;;  %v4005_v16 = vld [vmem:[%s6521_s2 + $0x2] ss:$0 sm:$0xff] }
   0x5   :  { %v3988_v11 = vld [vmem:[%s6523_s4] ss:$0 sm:$0xff]  ;;  %v3340_v15 = vld [vmem:[%s6526_s7 + $0x1] ss:$0 sm:$0xff]  ;;  %v3341_v17 = vld [vmem:[%s6526_s7 + $0x2] ss:$0 sm:$0xff] }
   0x6   :  { %v3339_v13 = vld [vmem:[%s6526_s7] ss:$0 sm:$0xff]  ;;  %v4015_v24 = vld [vmem:[%s6521_s2 + $0x3] ss:$0 sm:$0xff]  ;;  %v4030_v36 = vld [vmem:[%s6522_s3 + $0x1] ss:$0 sm:$0xff] }
   0x7   :  { %v3342_v25 = vld [vmem:[%s6526_s7 + $0x3] ss:$0 sm:$0xff]  ;;  %v4024_v30 = vld [vmem:[%s6522_s3] ss:$0 sm:$0xff]  ;;  %v4038_v44 = vld [vmem:[%s6524_s5 + $0x1] ss:$0 sm:$0xff] }
   0x8   :  { %v4043_v45 = vld [vmem:[%s6524_s5] ss:$0 sm:$0xff]  ;;  %vm165_vm1 = vcmask 261120   ;;  %v4048_v47 = vld [vmem:[%s6524_s5 + $0x2] ss:$0 sm:$0xff]  ;;  %vm99_vm2 = vcmask 7168  }
   0x9   :  { %v3963_v3 = vld [vmem:[#allocation2] sm:$0xff]  ;;  %vm101_vm3 = vcmask 15368   ;;  %vm103_vm4 = vcmask 23568   ;;  %vm105_vm5 = vcmask 31768   ;;  %s3870_s16 = smov 4   ;;  %s3871_s19 = smov 8  }
   0xa   :  { %59 = vperm.xlu0 %3454, %v3963_v3   ;;  %78 = vperm.xlu1 %3456, %v3963_v3   ;;  %v4053_v48 = vld [vmem:[%s6524_s5 + $0x3] ss:$0 sm:$0xff]  ;;  %v4068_v57 = vld [vmem:[%s6525_s6] ss:$0 sm:$0xff]  ;;  %100 = vst.msk [vmem:[#allocation3] sm:$0xff] %vm99_vm2, %v3963_v3  ;;  %vm243_vm6 = vcmask 39968  }
   0xb   :  { %102 = vst.msk [vmem:[#allocation3] sm:$0xff] %vm101_vm3, %v3963_v3  ;;  %vm238_vm7 = vcmask 64544   ;;  %vm338_vm8 = vcmask 97344   ;;  %vm248_vm9 = vcmask 48168   ;;  %vm253_vm10 = vcmask 56368   ;;  %s3872_s22 = smov 12  }
   0xc   :  { %104 = vst.msk [vmem:[#allocation3] sm:$0xff] %vm103_vm4, %v3963_v3  ;;  %vm258_vm11 = vcmask 64568   ;;  %vm343_vm12 = vcmask 72768   ;;  %vm348_vm13 = vcmask 80968   ;;  %vm353_vm14 = vcmask 89168   ;;  %s3873_s23 = smov 16  }
   0xd   :  { %106 = vst.msk [vmem:[#allocation3] sm:$0xff] %vm105_vm5, %v3963_v3  ;;  %vm358_vm15 = vcmask 97368   ;;  %s3874_s24 = smov 20   ;;  %s3875_s25 = smov 24  }
   0xe   :  { %3455 = vset.pattern.permute.xlu0 %v6531_v4  ;;  %3457 = vset.pattern.permute.xlu1 %v6533_v5  ;;  %s3876_s26 = smov 28   ;;  %s3878_s27 = smov 32  }
   0xf   :  { %68 = vperm.xlu0 %3455, %v3963_v3   ;;  %88 = vperm.xlu1 %3457, %v3963_v3   ;;  %s3879_s28 = smov 36   ;;  %s3881_s29 = smov 40  }
  0x10   :  { %s3882_s30 = smov 44   ;;  %s3883_s10 = smov 48  }
  0x11   :  { %s3884_s1 = smov 52   ;;  %s3885_s11 = smov 56  }
  0x12   :  { %s3886_s12 = smov 60   ;;  %s3887_s13 = smov 64  }
  0x13   :  { %150 = vperm.xlu0 %3455, %v3974_v6   ;;  %3458 = vset.pattern.permute.xlu1 %v6529_v1 }
  0x14   :  { %140 = vperm.xlu1 %3458, %v3974_v6  }
  0x17   :  { %3459 = vset.pattern.permute.xlu0 %v6529_v1 }
  0x18   :  { %3460 = vset.pattern.permute.xlu1 %v3812_v7 }
  0x89   :  { %v60_v9 = vpop.permute.xlu0 %59  ;;  %v79_v10 = vpop.permute.xlu1 %78 }
  0x8a   :  { %v111_v12 = vmul.f32 %v3983_v8, %v60_v9  ;;  %v66_v20 = vmul.f32 %v3339_v13, %v60_v9  ;;  %v85_v26 = vmul.f32 %v3341_v17, %v79_v10  ;;  %v129_v27 = vmul.f32 %v4005_v16, %v79_v10 }
  0x8c   :  { %v118_v21 = vadd.f32 %v3988_v11, %v111_v12 }
  0x8e   :  { %v69_v18 = vpop.permute.xlu0 %68  ;;  %v89_v19 = vpop.permute.xlu1 %88 }
  0x8f   :  { %v75_v22 = vmul.f32 %v3340_v15, %v69_v18  ;;  %v123_v23 = vmul.f32 %v3997_v14, %v69_v18  ;;  %v95_v32 = vmul.f32 %v3342_v25, %v89_v19  ;;  %v135_v34 = vmul.f32 %v4015_v24, %v89_v19 }
  0x90   :  { %v3813_v15 = vmov 5  }
  0x91   :  { %v76_v28 = vadd.f32 %v75_v22, %v66_v20  ;;  %v124_v29 = vadd.f32 %v123_v23, %v118_v21 }
  0x92   :  { %v151_v37 = vpop.permute.xlu0 %150 }
  0x93   :  { %v86_v31 = vadd.f32 %v85_v26, %v76_v28  ;;  %v130_v33 = vadd.f32 %v129_v27, %v124_v29  ;;  %v141_v35 = vpop.permute.xlu1 %140  ;;  %v157_v41 = vmul.f32 %v4030_v36, %v151_v37 }
  0x94   :  { %v147_v38 = vmul.f32 %v4024_v30, %v141_v35 }
  0x95   :  { %v96_v39 = vadd.f32 %v95_v32, %v86_v31  ;;  %v136_v40 = vadd.f32 %v135_v34, %v130_v33 }
  0x97   :  { %98 = vst.msk [vmem:[#allocation5] sm:$0xff] %vm38_vm0, %v96_v39  ;;  %v148_v42 = vadd.f32 %v147_v38, %v136_v40  ;;  %vm443_vm0 = vcmask 105568  }
  0x99   :  { %v158_v43 = vadd.f32 %v157_v41, %v148_v42 }
  0x9b   :  { %3636 = vtanh.f32 %v158_v43 }
  0xa5   :  { %v3637_v46 = vpop.eup %3636 }
  0xa6   :  { %v181_v49 = vmul.f32 %v3637_v46, %v4038_v44  ;;  %v164_v50 = vmul.f32 %v3637_v46, %v4043_v45  ;;  %v191_v53 = vmul.f32 %v3637_v46, %v4048_v47  ;;  %v201_v54 = vmul.f32 %v3637_v46, %v4053_v48 }
  0xa8   :  { %v182_v51 = vsel %vm165_vm1, %v181_v49, 0.0  ;;  %v166_v52 = vsel %vm165_vm1, %v164_v50, 0.0  ;;  %v192_v55 = vsel %vm165_vm1, %v191_v53, 0.0  ;;  %v202_v56 = vsel %vm165_vm1, %v201_v54, 0.0 }
  0xa9   :  { %183 = vadd.xlane.f32.xlu0 %v182_v51  ;;  %167 = vadd.xlane.f32.xlu1 %v166_v52 }
  0xad   :  { %193 = vadd.xlane.f32.xlu0 %v192_v55  ;;  %203 = vadd.xlane.f32.xlu1 %v202_v56 }
  0xbe   :  { %271 = vperm.xlu1 %3460, %v3974_v6  }
  0xc2   :  { %3461 = vset.pattern.permute.xlu1 %v6531_v4 }
 0x136   :  { %v184_v58 = vpop.xlane.xlu0 %183  ;;  %v168_v59 = vpop.xlane.xlu1 %167 }
 0x137   :  { %v185_v60 = vadd.f32 %v184_v58, %v3963_v3  ;;  %v169_v61 = vadd.f32 %v168_v59, %v3963_v3 }
 0x139   :  { %v4073_v62 = vadd.f32 %v4068_v57, %v185_v60  ;;  %v4076_v63 = vadd.f32 %v4068_v57, %v169_v61 }
 0x13a   :  { %v194_v0 = vpop.xlane.xlu0 %193  ;;  %v204_v9 = vpop.xlane.xlu1 %203 }
 0x13b   :  { %v195_v7 = vadd.f32 %v194_v0, %v3963_v3  ;;  %215 = vperm.xlu1 %3461, %v4073_v62   ;;  %209 = vperm.xlu0 %3459, %v4076_v63   ;;  %v205_v12 = vadd.f32 %v204_v9, %v3963_v3  ;;  %v3814_v9 = vmov 8  }
 0x13d   :  { %v4082_v10 = vadd.f32 %v4068_v57, %v195_v7  ;;  %v4088_v13 = vadd.f32 %v4068_v57, %v205_v12  ;;  %v3815_v12 = vmov 9  }
 0x13e   :  { %v272_v17 = vpop.permute.xlu1 %271 }
 0x13f   :  { %3462 = vset.pattern.permute.xlu1 %v6535_v2  ;;  %v274_v31 = vmul.f32 %v4024_v30, %v272_v17 }
 0x140   :  { %222 = vperm.xlu1 %3462, %v4082_v10  }
 0x144   :  { %3463 = vset.pattern.permute.xlu1 %v6533_v5 }
 0x145   :  { %229 = vperm.xlu1 %3463, %v4088_v13  }
 0x149   :  { %3464 = vset.pattern.permute.xlu1 %v3813_v15 }
 0x14a   :  { %277 = vperm.xlu1 %3464, %v3974_v6  }
 0x14e   :  { %3465 = vset.pattern.permute.xlu1 %v6531_v4 }
 0x1ba   :  { %v4094_v18 = vpop.permute.xlu0 %209  ;;  %v4096_v19 = vpop.permute.xlu1 %215 }
 0x1bb   :  { %v260_v20 = vmul.f32 %v3983_v8, %v4094_v18  ;;  %v262_v22 = vmul.f32 %v3997_v14, %v4096_v19 }
 0x1bd   :  { %v261_v21 = vadd.f32 %v3988_v11, %v260_v20 }
 0x1bf   :  { %v4103_v23 = vpop.permute.xlu1 %222  ;;  %v263_v25 = vadd.f32 %v262_v22, %v261_v21 }
 0x1c0   :  { %v264_v26 = vmul.f32 %v4005_v16, %v4103_v23 }
 0x1c2   :  { %v265_v28 = vadd.f32 %v264_v26, %v263_v25 }
 0x1c4   :  { %v4107_v27 = vpop.permute.xlu1 %229 }
 0x1c5   :  { %v266_v29 = vmul.f32 %v4015_v24, %v4107_v27 }
 0x1c7   :  { %v267_v32 = vadd.f32 %v266_v29, %v265_v28 }
 0x1c9   :  { %v275_v33 = vadd.f32 %v274_v31, %v267_v32  ;;  %v278_v34 = vpop.permute.xlu1 %277 }
 0x1ca   :  { %v280_v35 = vmul.f32 %v4030_v36, %v278_v34 }
 0x1cc   :  { %v281_v37 = vadd.f32 %v280_v35, %v275_v33 }
 0x1ce   :  { %3638 = vtanh.f32 %v281_v37 }
 0x1d8   :  { %v3639_v38 = vpop.eup %3638 }
 0x1d9   :  { %v289_v39 = vmul.f32 %v3639_v38, %v4038_v44  ;;  %v283_v40 = vmul.f32 %v3639_v38, %v4043_v45  ;;  %v295_v43 = vmul.f32 %v3639_v38, %v4048_v47  ;;  %v301_v49 = vmul.f32 %v3639_v38, %v4053_v48 }
 0x1db   :  { %v290_v41 = vsel %vm165_vm1, %v289_v39, 0.0  ;;  %v284_v42 = vsel %vm165_vm1, %v283_v40, 0.0  ;;  %v296_v46 = vsel %vm165_vm1, %v295_v43, 0.0  ;;  %v302_v50 = vsel %vm165_vm1, %v301_v49, 0.0 }
 0x1dc   :  { %291 = vadd.xlane.f32.xlu0 %v290_v41  ;;  %285 = vadd.xlane.f32.xlu1 %v284_v42 }
 0x1e0   :  { %297 = vadd.xlane.f32.xlu1 %v296_v46 }
 0x1e4   :  { %303 = vadd.xlane.f32.xlu1 %v302_v50 }
 0x269   :  { %v292_v51 = vpop.xlane.xlu0 %291  ;;  %v286_v52 = vpop.xlane.xlu1 %285 }
 0x26a   :  { %v293_v53 = vadd.f32 %v292_v51, %v4073_v62  ;;  %v287_v54 = vadd.f32 %v286_v52, %v4076_v63 }
 0x26c   :  { %v4124_v55 = vadd.f32 %v4068_v57, %v293_v53  ;;  %v4127_v56 = vadd.f32 %v4068_v57, %v287_v54 }
 0x26d   :  { %v298_v58 = vpop.xlane.xlu1 %297 }
 0x26e   :  { %v299_v59 = vadd.f32 %v298_v58, %v4082_v10  ;;  %315 = vperm.xlu1 %3465, %v4124_v55   ;;  %309 = vperm.xlu0 %3459, %v4127_v56  }
 0x270   :  { %v4133_v60 = vadd.f32 %v4068_v57, %v299_v59 }
 0x271   :  { %v304_v61 = vpop.xlane.xlu1 %303 }
 0x272   :  { %v305_v0 = vadd.f32 %v304_v61, %v4088_v13  ;;  %3466 = vset.pattern.permute.xlu1 %v6535_v2  ;;  %3467 = vset.pattern.permute.xlu0 %v6533_v5 }
 0x273   :  { %322 = vperm.xlu1 %3466, %v4133_v60  }
 0x274   :  { %v4140_v7 = vadd.f32 %v4068_v57, %v305_v0 }
 0x276   :  { %329 = vperm.xlu0 %3467, %v4140_v7  }
 0x277   :  { %3468 = vset.pattern.permute.xlu1 %v3814_v9 }
 0x278   :  { %371 = vperm.xlu1 %3468, %v3974_v6  }
 0x27a   :  { %3471 = vset.pattern.permute.xlu0 %v6531_v4 }
 0x27c   :  { %3469 = vset.pattern.permute.xlu1 %v3815_v12 }
 0x27d   :  { %377 = vperm.xlu1 %3469, %v3974_v6  }
 0x281   :  { %3470 = vset.pattern.permute.xlu1 %v6529_v1 }
 0x2ed   :  { %v4147_v15 = vpop.permute.xlu0 %309  ;;  %v4149_v17 = vpop.permute.xlu1 %315 }
 0x2ee   :  { %v360_v20 = vmul.f32 %v3983_v8, %v4147_v15  ;;  %v362_v22 = vmul.f32 %v3997_v14, %v4149_v17 }
 0x2f0   :  { %v361_v21 = vadd.f32 %v3988_v11, %v360_v20 }
 0x2f2   :  { %v363_v25 = vadd.f32 %v362_v22, %v361_v21  ;;  %v4156_v26 = vpop.permute.xlu1 %322  ;;  %v3816_v21 = vmov 12  }
 0x2f3   :  { %v364_v28 = vmul.f32 %v4005_v16, %v4156_v26 }
 0x2f5   :  { %v365_v29 = vadd.f32 %v364_v28, %v363_v25  ;;  %v4160_v31 = vpop.permute.xlu0 %329 }
 0x2f6   :  { %v366_v32 = vmul.f32 %v4015_v24, %v4160_v31 }
 0x2f7   :  { %v372_v33 = vpop.permute.xlu1 %371 }
 0x2f8   :  { %v367_v34 = vadd.f32 %v366_v32, %v365_v29  ;;  %v374_v35 = vmul.f32 %v4024_v30, %v372_v33  ;;  %v3817_v32 = vmov 13   ;;  %v3818_v33 = vmov 16  }
 0x2fa   :  { %v375_v38 = vadd.f32 %v374_v35, %v367_v34 }
 0x2fc   :  { %v378_v37 = vpop.permute.xlu1 %377 }
 0x2fd   :  { %v380_v39 = vmul.f32 %v4030_v36, %v378_v37 }
 0x2ff   :  { %v381_v40 = vadd.f32 %v380_v39, %v375_v38 }
 0x301   :  { %3640 = vtanh.f32 %v381_v40 }
 0x30b   :  { %v3641_v41 = vpop.eup %3640 }
 0x30c   :  { %v389_v42 = vmul.f32 %v3641_v41, %v4038_v44  ;;  %v383_v43 = vmul.f32 %v3641_v41, %v4043_v45  ;;  %v395_v50 = vmul.f32 %v3641_v41, %v4048_v47  ;;  %v401_v52 = vmul.f32 %v3641_v41, %v4053_v48 }
 0x30e   :  { %v390_v46 = vsel %vm165_vm1, %v389_v42, 0.0  ;;  %v384_v49 = vsel %vm165_vm1, %v383_v43, 0.0  ;;  %v396_v51 = vsel %vm165_vm1, %v395_v50, 0.0  ;;  %v402_v53 = vsel %vm165_vm1, %v401_v52, 0.0 }
 0x30f   :  { %391 = vadd.xlane.f32.xlu1 %v390_v46  ;;  %385 = vadd.xlane.f32.xlu0 %v384_v49 }
 0x313   :  { %397 = vadd.xlane.f32.xlu0 %v396_v51 }
 0x317   :  { %403 = vadd.xlane.f32.xlu0 %v402_v53 }
 0x39c   :  { %v392_v54 = vpop.xlane.xlu1 %391  ;;  %v386_v58 = vpop.xlane.xlu0 %385 }
 0x39d   :  { %v393_v59 = vadd.f32 %v392_v54, %v4124_v55  ;;  %v387_v61 = vadd.f32 %v386_v58, %v4127_v56 }
 0x39f   :  { %v4177_v0 = vadd.f32 %v4068_v57, %v393_v59  ;;  %v4180_v9 = vadd.f32 %v4068_v57, %v387_v61 }
 0x3a0   :  { %v398_v12 = vpop.xlane.xlu0 %397 }
 0x3a1   :  { %6720 = vst [vmem:[#allocation9_spill] sm:$0xff] %v4177_v0  ;;  %415 = vperm.xlu0 %3471, %v4177_v0   ;;  %409 = vperm.xlu1 %3470, %v4180_v9   ;;  %v399_v20 = vadd.f32 %v398_v12, %v4133_v60 }
 0x3a3   :  { %v4188_v25 = vadd.f32 %v4068_v57, %v399_v20 }
 0x3a4   :  { %v404_v22 = vpop.xlane.xlu0 %403 }
 0x3a5   :  { %3472 = vset.pattern.permute.xlu1 %v3816_v21  ;;  %3476 = vset.pattern.permute.xlu0 %v6529_v1  ;;  %6721 = vst [vmem:[#allocation10_spill] sm:$0xff] %v4188_v25  ;;  %v405_v28 = vadd.f32 %v404_v22, %v4140_v7 }
 0x3a6   :  { %471 = vperm.xlu1 %3472, %v3974_v6  }
 0x3a7   :  { %v4194_v29 = vadd.f32 %v4068_v57, %v405_v28 }
 0x3a9   :  { %6722 = vst [vmem:[#allocation11_spill] sm:$0xff] %v4194_v29 }
 0x3aa   :  { %3473 = vset.pattern.permute.xlu1 %v6535_v2 }
 0x3ab   :  { %422 = vperm.xlu1 %3473, %v4188_v25  }
 0x3af   :  { %3474 = vset.pattern.permute.xlu1 %v6533_v5 }
 0x3b0   :  { %429 = vperm.xlu1 %3474, %v4194_v29  }
 0x3b4   :  { %3475 = vset.pattern.permute.xlu1 %v3817_v32 }
 0x3b5   :  { %477 = vperm.xlu1 %3475, %v3974_v6  }
 0x3b9   :  { %3477 = vset.pattern.permute.xlu1 %v3818_v33 }
 0x420   :  { %v4199_v34 = vpop.permute.xlu1 %409  ;;  %v4203_v38 = vpop.permute.xlu0 %415 }
 0x421   :  { %v460_v37 = vmul.f32 %v3983_v8, %v4199_v34  ;;  %v462_v41 = vmul.f32 %v3997_v14, %v4203_v38 }
 0x423   :  { %v461_v39 = vadd.f32 %v3988_v11, %v460_v37 }
 0x425   :  { %v472_v35 = vpop.permute.xlu1 %471  ;;  %v463_v43 = vadd.f32 %v462_v41, %v461_v39 }
 0x426   :  { %v474_v51 = vmul.f32 %v4024_v30, %v472_v35 }
 0x42a   :  { %v4206_v40 = vpop.permute.xlu1 %422 }
 0x42b   :  { %v464_v42 = vmul.f32 %v4005_v16, %v4206_v40 }
 0x42d   :  { %v465_v49 = vadd.f32 %v464_v42, %v463_v43 }
 0x42f   :  { %v4212_v46 = vpop.permute.xlu1 %429 }
 0x430   :  { %v466_v50 = vmul.f32 %v4015_v24, %v4212_v46 }
 0x432   :  { %v467_v52 = vadd.f32 %v466_v50, %v465_v49 }
 0x434   :  { %v478_v53 = vpop.permute.xlu1 %477  ;;  %v475_v54 = vadd.f32 %v474_v51, %v467_v52 }
 0x435   :  { %v480_v58 = vmul.f32 %v4030_v36, %v478_v53 }
 0x437   :  { %v481_v59 = vadd.f32 %v480_v58, %v475_v54 }
 0x439   :  { %3642 = vtanh.f32 %v481_v59  ;;  %v3819_v59 = vmov 17  }
 0x443   :  { %v3643_v61 = vpop.eup %3642 }
 0x444   :  { %v489_v12 = vmul.f32 %v3643_v61, %v4038_v44  ;;  %v483_v20 = vmul.f32 %v3643_v61, %v4043_v45  ;;  %v495_v28 = vmul.f32 %v3643_v61, %v4048_v47  ;;  %v501_v33 = vmul.f32 %v3643_v61, %v4053_v48 }
 0x446   :  { %v490_v21 = vsel %vm165_vm1, %v489_v12, 0.0  ;;  %v484_v22 = vsel %vm165_vm1, %v483_v20, 0.0  ;;  %v496_v32 = vsel %vm165_vm1, %v495_v28, 0.0  ;;  %v502_v35 = vsel %vm165_vm1, %v501_v33, 0.0 }
 0x447   :  { %491 = vadd.xlane.f32.xlu0 %v490_v21  ;;  %485 = vadd.xlane.f32.xlu1 %v484_v22 }
 0x44b   :  { %497 = vadd.xlane.f32.xlu1 %v496_v32 }
 0x44f   :  { %503 = vadd.xlane.f32.xlu1 %v502_v35 }
 0x460   :  { %571 = vperm.xlu1 %3477, %v3974_v6  }
 0x464   :  { %3478 = vset.pattern.permute.xlu1 %v6531_v4 }
 0x4d4   :  { %v492_v37 = vpop.xlane.xlu0 %491  ;;  %v486_v39 = vpop.xlane.xlu1 %485 }
 0x4d5   :  { %v493_v41 = vadd.f32 %v492_v37, %v4177_v0  ;;  %v487_v42 = vadd.f32 %v486_v39, %v4180_v9 }
 0x4d7   :  { %v4231_v43 = vadd.f32 %v4068_v57, %v493_v41  ;;  %v4234_v49 = vadd.f32 %v4068_v57, %v487_v42 }
 0x4d8   :  { %v498_v50 = vpop.xlane.xlu1 %497 }
 0x4d9   :  { %6723 = vst [vmem:[#allocation12_spill] sm:$0xff] %v4231_v43  ;;  %6724 = vst [vmem:[#allocation13_spill] sm:$0xff] %v4234_v49  ;;  %v499_v51 = vadd.f32 %v498_v50, %v4188_v25  ;;  %515 = vperm.xlu1 %3478, %v4231_v43   ;;  %509 = vperm.xlu0 %3476, %v4234_v49  }
 0x4db   :  { %v4240_v52 = vadd.f32 %v4068_v57, %v499_v51 }
 0x4dc   :  { %v504_v53 = vpop.xlane.xlu1 %503 }
 0x4dd   :  { %6725 = vst [vmem:[#allocation14_spill] sm:$0xff] %v4240_v52  ;;  %v505_v54 = vadd.f32 %v504_v53, %v4194_v29  ;;  %3479 = vset.pattern.permute.xlu1 %v6535_v2 }
 0x4de   :  { %522 = vperm.xlu1 %3479, %v4240_v52  }
 0x4df   :  { %v4246_v58 = vadd.f32 %v4068_v57, %v505_v54 }
 0x4e0   :  { %v572_v61 = vpop.permute.xlu1 %571 }
 0x4e1   :  { %6726 = vst [vmem:[#allocation15_spill] sm:$0xff] %v4246_v58  ;;  %v574_v42 = vmul.f32 %v4024_v30, %v572_v61 }
 0x4e2   :  { %3480 = vset.pattern.permute.xlu1 %v6533_v5 }
 0x4e3   :  { %529 = vperm.xlu1 %3480, %v4246_v58  }
 0x4e7   :  { %3481 = vset.pattern.permute.xlu1 %v3819_v59 }
 0x4e8   :  { %577 = vperm.xlu1 %3481, %v3974_v6  }
 0x4ec   :  { %3482 = vset.pattern.permute.xlu1 %v6531_v4 }
 0x558   :  { %v4252_v12 = vpop.permute.xlu0 %509  ;;  %v4254_v20 = vpop.permute.xlu1 %515 }
 0x559   :  { %v560_v21 = vmul.f32 %v3983_v8, %v4252_v12  ;;  %v562_v28 = vmul.f32 %v3997_v14, %v4254_v20 }
 0x55b   :  { %v561_v22 = vadd.f32 %v3988_v11, %v560_v21 }
 0x55d   :  { %v4261_v32 = vpop.permute.xlu1 %522  ;;  %v563_v33 = vadd.f32 %v562_v28, %v561_v22 }
 0x55e   :  { %v564_v35 = vmul.f32 %v4005_v16, %v4261_v32 }
 0x560   :  { %v565_v39 = vadd.f32 %v564_v35, %v563_v33 }
 0x562   :  { %v4265_v37 = vpop.permute.xlu1 %529 }
 0x563   :  { %v566_v41 = vmul.f32 %v4015_v24, %v4265_v37 }
 0x565   :  { %v567_v50 = vadd.f32 %v566_v41, %v565_v39 }
 0x567   :  { %v575_v51 = vadd.f32 %v574_v42, %v567_v50  ;;  %v578_v53 = vpop.permute.xlu1 %577 }
 0x568   :  { %v580_v54 = vmul.f32 %v4030_v36, %v578_v53 }
 0x56a   :  { %v581_v59 = vadd.f32 %v580_v54, %v575_v51 }
 0x56c   :  { %3644 = vtanh.f32 %v581_v59 }
 0x576   :  { %v3645_v21 = vpop.eup %3644 }
 0x577   :  { %v589_v22 = vmul.f32 %v3645_v21, %v4038_v44  ;;  %v583_v28 = vmul.f32 %v3645_v21, %v4043_v45  ;;  %v595_v35 = vmul.f32 %v3645_v21, %v4048_v47  ;;  %v601_v39 = vmul.f32 %v3645_v21, %v4053_v48 }
 0x579   :  { %v590_v1 = vsel %vm165_vm1, %v589_v22, 0.0  ;;  %v584_v33 = vsel %vm165_vm1, %v583_v28, 0.0  ;;  %v596_v61 = vsel %vm165_vm1, %v595_v35, 0.0  ;;  %v602_v41 = vsel %vm165_vm1, %v601_v39, 0.0 }
 0x57a   :  { %591 = vadd.xlane.f32.xlu0 %v590_v1  ;;  %585 = vadd.xlane.f32.xlu1 %v584_v33  ;;  %v3821_v39 = vmov 21  }
 0x57e   :  { %597 = vadd.xlane.f32.xlu1 %v596_v61  ;;  %v3820_v61 = vmov 20  }
 0x582   :  { %603 = vadd.xlane.f32.xlu1 %v602_v41  ;;  %v6731_v41 = vmov 0  }
 0x607   :  { %v592_v42 = vpop.xlane.xlu0 %591  ;;  %v586_v50 = vpop.xlane.xlu1 %585 }
 0x608   :  { %v593_v51 = vadd.f32 %v592_v42, %v4231_v43  ;;  %v587_v53 = vadd.f32 %v586_v50, %v4234_v49 }
 0x60a   :  { %v4282_v54 = vadd.f32 %v4068_v57, %v593_v51  ;;  %v4285_v1 = vadd.f32 %v4068_v57, %v587_v53 }
 0x60b   :  { %v598_v59 = vpop.xlane.xlu1 %597 }
 0x60c   :  { %6727 = vst [vmem:[#allocation16_spill] sm:$0xff] %v4282_v54  ;;  %6728 = vst [vmem:[#allocation17_spill] sm:$0xff] %v4285_v1  ;;  %v599_v22 = vadd.f32 %v598_v59, %v4240_v52  ;;  %615 = vperm.xlu1 %3482, %v4282_v54   ;;  %609 = vperm.xlu0 %3476, %v4285_v1  }
 0x60e   :  { %v4291_v21 = vadd.f32 %v4068_v57, %v599_v22 }
 0x60f   :  { %v604_v28 = vpop.xlane.xlu1 %603 }
 0x610   :  { %6729 = vst [vmem:[#allocation18_spill] sm:$0xff] %v4291_v21  ;;  %v605_v33 = vadd.f32 %v604_v28, %v4246_v58  ;;  %3483 = vset.pattern.permute.xlu1 %v6535_v2  ;;  %3484 = vset.pattern.permute.xlu0 %v6533_v5 }
 0x611   :  { %622 = vperm.xlu1 %3483, %v4291_v21  }
 0x612   :  { %v4298_v35 = vadd.f32 %v4068_v57, %v605_v33 }
 0x614   :  { %6730 = vst [vmem:[#allocation19_spill] sm:$0xff] %v4298_v35  ;;  %629 = vperm.xlu0 %3484, %v4298_v35  }
 0x615   :  { %3485 = vset.pattern.permute.xlu1 %v3820_v61 }
 0x616   :  { %671 = vperm.xlu1 %3485, %v3974_v6  }
 0x618   :  { %3488 = vset.pattern.permute.xlu0 %v6531_v4 }
 0x61a   :  { %3486 = vset.pattern.permute.xlu1 %v3821_v39 }
 0x61b   :  { %677 = vperm.xlu1 %3486, %v3974_v6  }
 0x61f   :  { %3487 = vset.pattern.permute.xlu1 %v6731_v41 }
 0x68b   :  { %v4305_v42 = vpop.permute.xlu0 %609  ;;  %v4307_v50 = vpop.permute.xlu1 %615 }
 0x68c   :  { %6732 = vst [vmem:[#allocation20_spill] sm:$0xff] %v4305_v42  ;;  %6733 = vst [vmem:[#allocation21_spill] sm:$0xff] %v4307_v50  ;;  %v660_v51 = vmul.f32 %v3983_v8, %v4305_v42  ;;  %v662_v59 = vmul.f32 %v3997_v14, %v4307_v50 }
 0x68e   :  { %v661_v53 = vadd.f32 %v3988_v11, %v660_v51 }
 0x690   :  { %v663_v22 = vadd.f32 %v662_v59, %v661_v53  ;;  %v4314_v28 = vpop.permute.xlu1 %622 }
 0x691   :  { %6734 = vst [vmem:[#allocation22_spill] sm:$0xff] %v4314_v28  ;;  %v664_v33 = vmul.f32 %v4005_v16, %v4314_v28 }
 0x693   :  { %v665_v61 = vadd.f32 %v664_v33, %v663_v22  ;;  %v4318_v39 = vpop.permute.xlu0 %629 }
 0x694   :  { %6735 = vst [vmem:[#allocation23_spill] sm:$0xff] %v4318_v39  ;;  %v666_v4 = vmul.f32 %v4015_v24, %v4318_v39 }
 0x695   :  { %v672_v5 = vpop.permute.xlu1 %671 }
 0x696   :  { %v667_v2 = vadd.f32 %v666_v4, %v665_v61  ;;  %v674_v52 = vmul.f32 %v4024_v30, %v672_v5 }
 0x698   :  { %v675_v49 = vadd.f32 %v674_v52, %v667_v2 }
 0x69a   :  { %v678_v51 = vpop.permute.xlu1 %677 }
 0x69b   :  { %v680_v58 = vmul.f32 %v4030_v36, %v678_v51 }
 0x69d   :  { %v681_v53 = vadd.f32 %v680_v58, %v675_v49 }
 0x69f   :  { %3646 = vtanh.f32 %v681_v53  ;;  %v3822_v53 = vmov 24  }
 0x6a9   :  { %v3647_v59 = vpop.eup %3646 }
 0x6aa   :  { %v689_v29 = vmul.f32 %v3647_v59, %v4038_v44  ;;  %v683_v22 = vmul.f32 %v3647_v59, %v4043_v45  ;;  %v695_v39 = vmul.f32 %v3647_v59, %v4048_v47  ;;  %v701_v2 = vmul.f32 %v3647_v59, %v4053_v48 }
 0x6ac   :  { %v690_v33 = vsel %vm165_vm1, %v689_v29, 0.0  ;;  %v684_v28 = vsel %vm165_vm1, %v683_v22, 0.0  ;;  %v696_v4 = vsel %vm165_vm1, %v695_v39, 0.0  ;;  %v702_v5 = vsel %vm165_vm1, %v701_v2, 0.0 }
 0x6ad   :  { %691 = vadd.xlane.f32.xlu1 %v690_v33  ;;  %685 = vadd.xlane.f32.xlu0 %v684_v28 }
 0x6b1   :  { %697 = vadd.xlane.f32.xlu0 %v696_v4  ;;  %v6739_v4 = vmov 2  }
 0x6b5   :  { %703 = vadd.xlane.f32.xlu0 %v702_v5  ;;  %v6741_v5 = vmov 3  }
 0x73a   :  { %v692_v49 = vpop.xlane.xlu1 %691  ;;  %v686_v52 = vpop.xlane.xlu0 %685 }
 0x73b   :  { %v693_v58 = vadd.f32 %v692_v49, %v4282_v54  ;;  %v687_v29 = vadd.f32 %v686_v52, %v4285_v1  ;;  %v3823_v49 = vmov 25   ;;  %v3824_v52 = vmov 28  }
 0x73d   :  { %v4335_v61 = vadd.f32 %v4068_v57, %v693_v58  ;;  %v4338_v51 = vadd.f32 %v4068_v57, %v687_v29 }
 0x73e   :  { %v698_v28 = vpop.xlane.xlu0 %697 }
 0x73f   :  { %6736 = vst [vmem:[#allocation24_spill] sm:$0xff] %v4335_v61  ;;  %6737 = vst [vmem:[#allocation25_spill] sm:$0xff] %v4338_v51  ;;  %715 = vperm.xlu0 %3488, %v4335_v61   ;;  %709 = vperm.xlu1 %3487, %v4338_v51   ;;  %v699_v39 = vadd.f32 %v698_v28, %v4291_v21 }
 0x741   :  { %v4346_v22 = vadd.f32 %v4068_v57, %v699_v39 }
 0x742   :  { %v704_v59 = vpop.xlane.xlu0 %703 }
 0x743   :  { %3489 = vset.pattern.permute.xlu1 %v3822_v53  ;;  %3493 = vset.pattern.permute.xlu0 %v6731_v41  ;;  %6738 = vst [vmem:[#allocation26_spill] sm:$0xff] %v4346_v22  ;;  %v705_v33 = vadd.f32 %v704_v59, %v4298_v35 }
 0x744   :  { %771 = vperm.xlu1 %3489, %v3974_v6  }
 0x745   :  { %v4352_v2 = vadd.f32 %v4068_v57, %v705_v33 }
 0x747   :  { %6740 = vst [vmem:[#allocation27_spill] sm:$0xff] %v4352_v2 }
 0x748   :  { %3490 = vset.pattern.permute.xlu1 %v6739_v4 }
 0x749   :  { %722 = vperm.xlu1 %3490, %v4346_v22  }
 0x74d   :  { %3491 = vset.pattern.permute.xlu1 %v6741_v5 }
 0x74e   :  { %729 = vperm.xlu1 %3491, %v4352_v2  }
 0x752   :  { %3492 = vset.pattern.permute.xlu1 %v3823_v49 }
 0x753   :  { %777 = vperm.xlu1 %3492, %v3974_v6  }
 0x757   :  { %3494 = vset.pattern.permute.xlu1 %v3824_v52 }
 0x7be   :  { %v4357_v58 = vpop.permute.xlu1 %709  ;;  %v4361_v39 = vpop.permute.xlu0 %715 }
 0x7bf   :  { %6742 = vst [vmem:[#allocation28_spill] sm:$0xff] %v4357_v58  ;;  %v760_v28 = vmul.f32 %v3983_v8, %v4357_v58  ;;  %6743 = vst [vmem:[#allocation29_spill] sm:$0xff] %v4361_v39  ;;  %v762_v33 = vmul.f32 %v3997_v14, %v4361_v39 }
 0x7c1   :  { %v761_v53 = vadd.f32 %v3988_v11, %v760_v28 }
 0x7c3   :  { %v772_v29 = vpop.permute.xlu1 %771  ;;  %v763_v21 = vadd.f32 %v762_v33, %v761_v53 }
 0x7c4   :  { %v774_v58 = vmul.f32 %v4024_v30, %v772_v29 }
 0x7c8   :  { %v4364_v59 = vpop.permute.xlu1 %722 }
 0x7c9   :  { %6744 = vst [vmem:[#allocation30_spill] sm:$0xff] %v4364_v59  ;;  %v764_v49 = vmul.f32 %v4005_v16, %v4364_v59 }
 0x7cb   :  { %v765_v35 = vadd.f32 %v764_v49, %v763_v21 }
 0x7cd   :  { %v4370_v52 = vpop.permute.xlu1 %729 }
 0x7ce   :  { %6745 = vst [vmem:[#allocation31_spill] sm:$0xff] %v4370_v52  ;;  %v766_v54 = vmul.f32 %v4015_v24, %v4370_v52 }
 0x7d0   :  { %v767_v1 = vadd.f32 %v766_v54, %v765_v35  ;;  %v6746_v35 = vmov 1  }
 0x7d2   :  { %v778_v50 = vpop.permute.xlu1 %777  ;;  %v775_v28 = vadd.f32 %v774_v58, %v767_v1 }
 0x7d3   :  { %v780_v42 = vmul.f32 %v4030_v36, %v778_v50 }
 0x7d5   :  { %v781_v43 = vadd.f32 %v780_v42, %v775_v28 }
 0x7d7   :  { %3648 = vtanh.f32 %v781_v43 }
 0x7e1   :  { %v3649_v39 = vpop.eup %3648 }
 0x7e2   :  { %v789_v0 = vmul.f32 %v3649_v39, %v4038_v44  ;;  %v783_v53 = vmul.f32 %v3649_v39, %v4043_v45  ;;  %v795_v49 = vmul.f32 %v3649_v39, %v4048_v47  ;;  %v801_v1 = vmul.f32 %v3649_v39, %v4053_v48 }
 0x7e4   :  { %v790_v33 = vsel %vm165_vm1, %v789_v0, 0.0  ;;  %v784_v21 = vsel %vm165_vm1, %v783_v53, 0.0  ;;  %v796_v54 = vsel %vm165_vm1, %v795_v49, 0.0  ;;  %v802_v43 = vsel %vm165_vm1, %v801_v1, 0.0 }
 0x7e5   :  { %791 = vadd.xlane.f32.xlu0 %v790_v33  ;;  %785 = vadd.xlane.f32.xlu1 %v784_v21  ;;  %v3825_v1 = vmov 29  }
 0x7e9   :  { %797 = vadd.xlane.f32.xlu1 %v796_v54 }
 0x7ed   :  { %803 = vadd.xlane.f32.xlu1 %v802_v43 }
 0x7fe   :  { %871 = vperm.xlu1 %3494, %v3974_v6  }
 0x802   :  { %3495 = vset.pattern.permute.xlu1 %v6746_v35 }
 0x872   :  { %v792_v42 = vpop.xlane.xlu0 %791  ;;  %v786_v0 = vpop.xlane.xlu1 %785 }
 0x873   :  { %v793_v50 = vadd.f32 %v792_v42, %v4335_v61  ;;  %v787_v58 = vadd.f32 %v786_v0, %v4338_v51 }
 0x875   :  { %v4389_v29 = vadd.f32 %v4068_v57, %v793_v50  ;;  %v4392_v28 = vadd.f32 %v4068_v57, %v787_v58 }
 0x876   :  { %v798_v39 = vpop.xlane.xlu1 %797 }
 0x877   :  { %6747 = vst [vmem:[#allocation32_spill] sm:$0xff] %v4389_v29  ;;  %6748 = vst [vmem:[#allocation33_spill] sm:$0xff] %v4392_v28  ;;  %v799_v53 = vadd.f32 %v798_v39, %v4346_v22  ;;  %815 = vperm.xlu1 %3495, %v4389_v29   ;;  %809 = vperm.xlu0 %3493, %v4392_v28  }
 0x879   :  { %v4398_v33 = vadd.f32 %v4068_v57, %v799_v53 }
 0x87a   :  { %v804_v21 = vpop.xlane.xlu1 %803 }
 0x87b   :  { %6749 = vst [vmem:[#allocation34_spill] sm:$0xff] %v4398_v33  ;;  %v805_v49 = vadd.f32 %v804_v21, %v4352_v2  ;;  %3496 = vset.pattern.permute.xlu1 %v6739_v4 }
 0x87c   :  { %822 = vperm.xlu1 %3496, %v4398_v33  }
 0x87d   :  { %v4404_v54 = vadd.f32 %v4068_v57, %v805_v49 }
 0x87e   :  { %v872_v43 = vpop.permute.xlu1 %871 }
 0x87f   :  { %6750 = vst [vmem:[#allocation35_spill] sm:$0xff] %v4404_v54  ;;  %v874_v22 = vmul.f32 %v4024_v30, %v872_v43 }
 0x880   :  { %3497 = vset.pattern.permute.xlu1 %v6741_v5 }
 0x881   :  { %829 = vperm.xlu1 %3497, %v4404_v54  }
 0x885   :  { %3498 = vset.pattern.permute.xlu1 %v3825_v1 }
 0x886   :  { %877 = vperm.xlu1 %3498, %v3974_v6  }
 0x88a   :  { %3499 = vset.pattern.permute.xlu1 %v6746_v35 }
 0x8f6   :  { %v4410_v42 = vpop.permute.xlu0 %809  ;;  %v4412_v0 = vpop.permute.xlu1 %815 }
 0x8f7   :  { %6751 = vst [vmem:[#allocation36_spill] sm:$0xff] %v4410_v42  ;;  %6752 = vst [vmem:[#allocation37_spill] sm:$0xff] %v4412_v0  ;;  %v860_v50 = vmul.f32 %v3983_v8, %v4410_v42  ;;  %v862_v39 = vmul.f32 %v3997_v14, %v4412_v0 }
 0x8f9   :  { %v861_v58 = vadd.f32 %v3988_v11, %v860_v50 }
 0x8fb   :  { %v4419_v53 = vpop.permute.xlu1 %822  ;;  %v863_v21 = vadd.f32 %v862_v39, %v861_v58 }
 0x8fc   :  { %6753 = vst [vmem:[#allocation38_spill] sm:$0xff] %v4419_v53  ;;  %v864_v6 = vmul.f32 %v4005_v16, %v4419_v53 }
 0x8fe   :  { %v865_v1 = vadd.f32 %v864_v6, %v863_v21 }
 0x900   :  { %v4423_v49 = vpop.permute.xlu1 %829 }
 0x901   :  { %6754 = vst [vmem:[#allocation39_spill] sm:$0xff] %v4423_v49  ;;  %v866_v2 = vmul.f32 %v4015_v24, %v4423_v49 }
 0x903   :  { %v867_v61 = vadd.f32 %v866_v2, %v865_v1 }
 0x905   :  { %v875_v51 = vadd.f32 %v874_v22, %v867_v61  ;;  %v878_v50 = vpop.permute.xlu1 %877 }
 0x906   :  { %v880_v42 = vmul.f32 %v4030_v36, %v878_v50 }
 0x908   :  { %v881_v0 = vadd.f32 %v880_v42, %v875_v51 }
 0x90a   :  { %3650 = vtanh.f32 %v881_v0 }
 0x914   :  { %v3651_v52 = vpop.eup %3650 }
 0x915   :  { %v889_v58 = vmul.f32 %v3651_v52, %v4038_v44  ;;  %v883_v39 = vmul.f32 %v3651_v52, %v4043_v45  ;;  %v895_v6 = vmul.f32 %v3651_v52, %v4048_v47  ;;  %v901_v22 = vmul.f32 %v3651_v52, %v4053_v48 }
 0x917   :  { %v890_v53 = vsel %vm165_vm1, %v889_v58, 0.0  ;;  %v884_v21 = vsel %vm165_vm1, %v883_v39, 0.0  ;;  %v896_v61 = vsel %vm165_vm1, %v895_v6, 0.0  ;;  %v902_v51 = vsel %vm165_vm1, %v901_v22, 0.0 }
 0x918   :  { %891 = vadd.xlane.f32.xlu0 %v890_v53  ;;  %885 = vadd.xlane.f32.xlu1 %v884_v21  ;;  %v3826_v22 = vmov 32  }
 0x91c   :  { %897 = vadd.xlane.f32.xlu1 %v896_v61  ;;  %v4461_v61 = vld [vmem:[%s6519_s0] sm:$0xff] }
 0x920   :  { %903 = vadd.xlane.f32.xlu1 %v902_v51  ;;  %v3827_v51 = vmov 33  }
 0x9a5   :  { %v892_v2 = vpop.xlane.xlu0 %891  ;;  %v886_v43 = vpop.xlane.xlu1 %885 }
 0x9a6   :  { %v893_v42 = vadd.f32 %v892_v2, %v4389_v29  ;;  %v887_v0 = vadd.f32 %v886_v43, %v4392_v28 }
 0x9a8   :  { %v4440_v1 = vadd.f32 %v4068_v57, %v893_v42  ;;  %v4443_v53 = vadd.f32 %v4068_v57, %v887_v0 }
 0x9a9   :  { %v898_v50 = vpop.xlane.xlu1 %897 }
 0x9aa   :  { %6755 = vst [vmem:[#allocation40_spill] sm:$0xff] %v4440_v1  ;;  %6756 = vst [vmem:[#allocation41_spill] sm:$0xff] %v4443_v53  ;;  %v899_v58 = vadd.f32 %v898_v50, %v4398_v33  ;;  %915 = vperm.xlu1 %3499, %v4440_v1   ;;  %909 = vperm.xlu0 %3493, %v4443_v53  }
 0x9ac   :  { %v4449_v52 = vadd.f32 %v4068_v57, %v899_v58 }
 0x9ad   :  { %v904_v39 = vpop.xlane.xlu1 %903 }
 0x9ae   :  { %6757 = vst [vmem:[#allocation42_spill] sm:$0xff] %v4449_v52  ;;  %v905_v21 = vadd.f32 %v904_v39, %v4404_v54  ;;  %3500 = vset.pattern.permute.xlu1 %v6739_v4  ;;  %3501 = vset.pattern.permute.xlu0 %v6741_v5 }
 0x9af   :  { %922 = vperm.xlu1 %3500, %v4449_v52  }
 0x9b0   :  { %v4456_v6 = vadd.f32 %v4068_v57, %v905_v21 }
 0x9b2   :  { %6758 = vst [vmem:[#allocation43_spill] sm:$0xff] %v4456_v6  ;;  %929 = vperm.xlu0 %3501, %v4456_v6  }
 0x9b3   :  { %3502 = vset.pattern.permute.xlu1 %v3826_v22 }
 0x9b4   :  { %971 = vperm.xlu1 %3502, %v4461_v61  }
 0x9b6   :  { %3505 = vset.pattern.permute.xlu0 %v6746_v35 }
 0x9b8   :  { %3503 = vset.pattern.permute.xlu1 %v3827_v51 }
 0x9b9   :  { %977 = vperm.xlu1 %3503, %v4461_v61  }
 0x9bd   :  { %3504 = vset.pattern.permute.xlu1 %v6731_v41 }
 0xa29   :  { %v4468_v2 = vpop.permute.xlu0 %909  ;;  %v4470_v43 = vpop.permute.xlu1 %915 }
 0xa2a   :  { %6759 = vst [vmem:[#allocation44_spill] sm:$0xff] %v4468_v2  ;;  %6760 = vst [vmem:[#allocation45_spill] sm:$0xff] %v4470_v43  ;;  %v960_v42 = vmul.f32 %v3983_v8, %v4468_v2  ;;  %v962_v50 = vmul.f32 %v3997_v14, %v4470_v43 }
 0xa2c   :  { %v961_v0 = vadd.f32 %v3988_v11, %v960_v42 }
 0xa2e   :  { %v963_v58 = vadd.f32 %v962_v50, %v961_v0  ;;  %v4477_v39 = vpop.permute.xlu1 %922 }
 0xa2f   :  { %6761 = vst [vmem:[#allocation46_spill] sm:$0xff] %v4477_v39  ;;  %v964_v21 = vmul.f32 %v4005_v16, %v4477_v39 }
 0xa31   :  { %v965_v22 = vadd.f32 %v964_v21, %v963_v58  ;;  %v4481_v51 = vpop.permute.xlu0 %929 }
 0xa32   :  { %6762 = vst [vmem:[#allocation47_spill] sm:$0xff] %v4481_v51  ;;  %v966_v54 = vmul.f32 %v4015_v24, %v4481_v51 }
 0xa33   :  { %v972_v29 = vpop.permute.xlu1 %971 }
 0xa34   :  { %v967_v33 = vadd.f32 %v966_v54, %v965_v22  ;;  %v974_v8 = vmul.f32 %v4024_v30, %v972_v29 }
 0xa36   :  { %v975_v42 = vadd.f32 %v974_v8, %v967_v33  ;;  %v3828_v8 = vmov 36  }
 0xa38   :  { %v978_v11 = vpop.permute.xlu1 %977 }
 0xa39   :  { %v980_v14 = vmul.f32 %v4030_v36, %v978_v11 }
 0xa3b   :  { %v981_v0 = vadd.f32 %v980_v14, %v975_v42 }
 0xa3d   :  { %3652 = vtanh.f32 %v981_v0 }
 0xa47   :  { %v3653_v50 = vpop.eup %3652 }
 0xa48   :  { %v989_v43 = vmul.f32 %v3653_v50, %v4038_v44  ;;  %v983_v16 = vmul.f32 %v3653_v50, %v4043_v45  ;;  %v995_v24 = vmul.f32 %v3653_v50, %v4048_v47  ;;  %v1001_v29 = vmul.f32 %v3653_v50, %v4053_v48 }
 0xa49   :  { %v3829_v50 = vmov 37  }
 0xa4a   :  { %v990_v58 = vsel %vm165_vm1, %v989_v43, 0.0  ;;  %v984_v21 = vsel %vm165_vm1, %v983_v16, 0.0  ;;  %v996_v30 = vsel %vm165_vm1, %v995_v24, 0.0  ;;  %v1002_v36 = vsel %vm165_vm1, %v1001_v29, 0.0  ;;  %v4525_v24 = vld [vmem:[%s6521_s2] ss:$0 sm:$0xff] }
 0xa4b   :  { %991 = vadd.xlane.f32.xlu1 %v990_v58  ;;  %985 = vadd.xlane.f32.xlu0 %v984_v21  ;;  %v3830_v16 = vmov 40   ;;  %v4534_v29 = vld [vmem:[%s6523_s4] ss:$0 sm:$0xff] }
 0xa4f   :  { %997 = vadd.xlane.f32.xlu0 %v996_v30 }
 0xa53   :  { %1003 = vadd.xlane.f32.xlu0 %v1002_v36 }
 0xad8   :  { %v992_v33 = vpop.xlane.xlu1 %991  ;;  %v986_v44 = vpop.xlane.xlu0 %985 }
 0xad9   :  { %v993_v45 = vadd.f32 %v992_v33, %v4440_v1  ;;  %v987_v54 = vadd.f32 %v986_v44, %v4443_v53  ;;  %v4542_v44 = vld [vmem:[%s6521_s2 + $0x1] ss:$0 sm:$0xff] }
 0xadb   :  { %v4498_v43 = vadd.f32 %v4068_v57, %v993_v45  ;;  %v4501_v47 = vadd.f32 %v4068_v57, %v987_v54  ;;  %v4549_v54 = vld [vmem:[%s6521_s2 + $0x2] ss:$0 sm:$0xff] }
 0xadc   :  { %v998_v22 = vpop.xlane.xlu0 %997 }
 0xadd   :  { %6763 = vst [vmem:[#allocation48_spill] sm:$0xff] %v4498_v43  ;;  %6764 = vst [vmem:[#allocation49_spill] sm:$0xff] %v4501_v47  ;;  %1015 = vperm.xlu0 %3505, %v4498_v43   ;;  %1009 = vperm.xlu1 %3504, %v4501_v47   ;;  %v999_v48 = vadd.f32 %v998_v22, %v4449_v52 }
 0xadf   :  { %v4509_v42 = vadd.f32 %v4068_v57, %v999_v48 }
 0xae0   :  { %v1004_v11 = vpop.xlane.xlu0 %1003 }
 0xae1   :  { %3506 = vset.pattern.permute.xlu1 %v3828_v8  ;;  %3510 = vset.pattern.permute.xlu0 %v6731_v41  ;;  %6765 = vst [vmem:[#allocation50_spill] sm:$0xff] %v4509_v42  ;;  %v1005_v14 = vadd.f32 %v1004_v11, %v4456_v6  ;;  %v4577_v6 = vld [vmem:[%s6524_s5 + $0x1] ss:$0 sm:$0xff] }
 0xae2   :  { %1071 = vperm.xlu1 %3506, %v4461_v61  }
 0xae3   :  { %v4515_v0 = vadd.f32 %v4068_v57, %v1005_v14  ;;  %v4558_v14 = vld [vmem:[%s6521_s2 + $0x3] ss:$0 sm:$0xff] }
 0xae5   :  { %6766 = vst [vmem:[#allocation51_spill] sm:$0xff] %v4515_v0 }
 0xae6   :  { %3507 = vset.pattern.permute.xlu1 %v6739_v4 }
 0xae7   :  { %1022 = vperm.xlu1 %3507, %v4509_v42  }
 0xaeb   :  { %3508 = vset.pattern.permute.xlu1 %v6741_v5 }
 0xaec   :  { %1029 = vperm.xlu1 %3508, %v4515_v0  }
 0xaf0   :  { %3509 = vset.pattern.permute.xlu1 %v3829_v50 }
 0xaf1   :  { %1077 = vperm.xlu1 %3509, %v4461_v61  }
 0xaf5   :  { %3511 = vset.pattern.permute.xlu1 %v3830_v16  ;;  %v4565_v16 = vld [vmem:[%s6522_s3] ss:$0 sm:$0xff] }
 0xb5c   :  { %v4520_v58 = vpop.permute.xlu1 %1009  ;;  %v4529_v30 = vpop.permute.xlu0 %1015 }
 0xb5d   :  { %6767 = vst [vmem:[#allocation52_spill] sm:$0xff] %v4520_v58  ;;  %v1060_v57 = vmul.f32 %v4525_v24, %v4520_v58  ;;  %6768 = vst [vmem:[#allocation53_spill] sm:$0xff] %v4529_v30  ;;  %v1062_v45 = vmul.f32 %v4542_v44, %v4529_v30  ;;  %v4609_v30 = vld [vmem:[%s6525_s6] ss:$0 sm:$0xff] }
 0xb5f   :  { %v1061_v36 = vadd.f32 %v4534_v29, %v1060_v57 }
 0xb61   :  { %v1072_v21 = vpop.permute.xlu1 %1071  ;;  %v1063_v48 = vadd.f32 %v1062_v45, %v1061_v36 }
 0xb62   :  { %v1074_v57 = vmul.f32 %v4565_v16, %v1072_v21 }
 0xb66   :  { %v4537_v33 = vpop.permute.xlu1 %1022 }
 0xb67   :  { %6769 = vst [vmem:[#allocation54_spill] sm:$0xff] %v4537_v33  ;;  %v1064_v22 = vmul.f32 %v4549_v54, %v4537_v33 }
 0xb69   :  { %v1065_v11 = vadd.f32 %v1064_v22, %v1063_v48  ;;  %v4571_v22 = vld [vmem:[%s6522_s3 + $0x1] ss:$0 sm:$0xff] }
 0xb6b   :  { %v4553_v8 = vpop.permute.xlu1 %1029 }
 0xb6c   :  { %6770 = vst [vmem:[#allocation55_spill] sm:$0xff] %v4553_v8  ;;  %v1066_v50 = vmul.f32 %v4558_v14, %v4553_v8 }
 0xb6e   :  { %v1067_v52 = vadd.f32 %v1066_v50, %v1065_v11 }
 0xb70   :  { %v1078_v36 = vpop.permute.xlu1 %1077  ;;  %v1075_v45 = vadd.f32 %v1074_v57, %v1067_v52  ;;  %v4583_v52 = vld [vmem:[%s6524_s5] ss:$0 sm:$0xff] }
 0xb71   :  { %v1080_v48 = vmul.f32 %v4571_v22, %v1078_v36 }
 0xb73   :  { %v1081_v53 = vadd.f32 %v1080_v48, %v1075_v45  ;;  %v4598_v48 = vld [vmem:[%s6524_s5 + $0x3] ss:$0 sm:$0xff] }
 0xb75   :  { %3654 = vtanh.f32 %v1081_v53  ;;  %v4591_v53 = vld [vmem:[%s6524_s5 + $0x2] ss:$0 sm:$0xff] }
 0xb7f   :  { %v3655_v8 = vpop.eup %3654 }
 0xb80   :  { %v1089_v21 = vmul.f32 %v4577_v6, %v3655_v8  ;;  %v1083_v11 = vmul.f32 %v4583_v52, %v3655_v8  ;;  %v1095_v36 = vmul.f32 %v4591_v53, %v3655_v8 }
 0xb82   :  { %v1090_v50 = vsel %vm165_vm1, %v1089_v21, 0.0  ;;  %v1084_v57 = vsel %vm165_vm1, %v1083_v11, 0.0  ;;  %v1096_v45 = vsel %vm165_vm1, %v1095_v36, 0.0  ;;  %v1101_v21 = vmul.f32 %v4598_v48, %v3655_v8 }
 0xb83   :  { %1091 = vadd.xlane.f32.xlu0 %v1090_v50  ;;  %1085 = vadd.xlane.f32.xlu1 %v1084_v57 }
 0xb84   :  { %v1102_v11 = vsel %vm165_vm1, %v1101_v21, 0.0 }
 0xb87   :  { %1097 = vadd.xlane.f32.xlu1 %v1096_v45 }
 0xb8b   :  { %1103 = vadd.xlane.f32.xlu1 %v1102_v11 }
 0xb9c   :  { %1171 = vperm.xlu1 %3511, %v4461_v61  }
 0xba0   :  { %3512 = vset.pattern.permute.xlu1 %v6746_v35 }
 0xc10   :  { %v1092_v33 = vpop.xlane.xlu0 %1091  ;;  %v1086_v50 = vpop.xlane.xlu1 %1085 }
 0xc11   :  { %v1093_v57 = vadd.f32 %v1092_v33, %v4498_v43  ;;  %v1087_v36 = vadd.f32 %v1086_v50, %v4501_v47 }
 0xc13   :  { %v4612_v8 = vadd.f32 %v4609_v30, %v1093_v57  ;;  %v4615_v45 = vadd.f32 %v4609_v30, %v1087_v36  ;;  %v3831_v36 = vmov 41  }
 0xc14   :  { %v1098_v21 = vpop.xlane.xlu1 %1097 }
 0xc15   :  { %6771 = vst [vmem:[#allocation56_spill] sm:$0xff] %v4612_v8  ;;  %6772 = vst [vmem:[#allocation57_spill] sm:$0xff] %v4615_v45  ;;  %v1099_v11 = vadd.f32 %v1098_v21, %v4509_v42  ;;  %1115 = vperm.xlu1 %3512, %v4612_v8   ;;  %1109 = vperm.xlu0 %3510, %v4615_v45  }
 0xc17   :  { %v4621_v33 = vadd.f32 %v4609_v30, %v1099_v11 }
 0xc18   :  { %v1104_v50 = vpop.xlane.xlu1 %1103 }
 0xc19   :  { %6773 = vst [vmem:[#allocation58_spill] sm:$0xff] %v4621_v33  ;;  %v1105_v43 = vadd.f32 %v1104_v50, %v4515_v0  ;;  %3513 = vset.pattern.permute.xlu1 %v6739_v4 }
 0xc1a   :  { %1122 = vperm.xlu1 %3513, %v4621_v33  }
 0xc1b   :  { %v4627_v57 = vadd.f32 %v4609_v30, %v1105_v43 }
 0xc1c   :  { %v1172_v21 = vpop.permute.xlu1 %1171 }
 0xc1d   :  { %6774 = vst [vmem:[#allocation59_spill] sm:$0xff] %v4627_v57  ;;  %v1174_v2 = vmul.f32 %v4565_v16, %v1172_v21 }
 0xc1e   :  { %3514 = vset.pattern.permute.xlu1 %v6741_v5 }
 0xc1f   :  { %1129 = vperm.xlu1 %3514, %v4627_v57  }
 0xc23   :  { %3515 = vset.pattern.permute.xlu1 %v3831_v36 }
 0xc24   :  { %1177 = vperm.xlu1 %3515, %v4461_v61  }
 0xc28   :  { %3516 = vset.pattern.permute.xlu1 %v6746_v35 }
 0xc94   :  { %v4633_v11 = vpop.permute.xlu0 %1109  ;;  %v4635_v50 = vpop.permute.xlu1 %1115 }
 0xc95   :  { %6775 = vst [vmem:[#allocation60_spill] sm:$0xff] %v4633_v11  ;;  %6776 = vst [vmem:[#allocation61_spill] sm:$0xff] %v4635_v50  ;;  %v1160_v0 = vmul.f32 %v4525_v24, %v4633_v11  ;;  %v1162_v42 = vmul.f32 %v4542_v44, %v4635_v50 }
 0xc97   :  { %v1161_v43 = vadd.f32 %v4534_v29, %v1160_v0 }
 0xc99   :  { %v4642_v47 = vpop.permute.xlu1 %1122  ;;  %v1163_v36 = vadd.f32 %v1162_v42, %v1161_v43 }
 0xc9a   :  { %6777 = vst [vmem:[#allocation62_spill] sm:$0xff] %v4642_v47  ;;  %v1164_v58 = vmul.f32 %v4549_v54, %v4642_v47 }
 0xc9c   :  { %v1165_v51 = vadd.f32 %v1164_v58, %v1163_v36 }
 0xc9e   :  { %v4646_v1 = vpop.permute.xlu1 %1129 }
 0xc9f   :  { %6778 = vst [vmem:[#allocation63_spill] sm:$0xff] %v4646_v1  ;;  %v1166_v39 = vmul.f32 %v4558_v14, %v4646_v1 }
 0xca1   :  { %v1167_v11 = vadd.f32 %v1166_v39, %v1165_v51 }
 0xca3   :  { %v1175_v28 = vadd.f32 %v1174_v2, %v1167_v11  ;;  %v1178_v0 = vpop.permute.xlu1 %1177 }
 0xca4   :  { %v1180_v49 = vmul.f32 %v4571_v22, %v1178_v0 }
 0xca6   :  { %v1181_v50 = vadd.f32 %v1180_v49, %v1175_v28 }
 0xca8   :  { %3656 = vtanh.f32 %v1181_v50 }
 0xcb2   :  { %v3657_v59 = vpop.eup %3656 }
 0xcb3   :  { %v1189_v42 = vmul.f32 %v4577_v6, %v3657_v59  ;;  %v1183_v43 = vmul.f32 %v4583_v52, %v3657_v59  ;;  %v1195_v36 = vmul.f32 %v4591_v53, %v3657_v59  ;;  %v1201_v39 = vmul.f32 %v4598_v48, %v3657_v59 }
 0xcb5   :  { %v1190_v47 = vsel %vm165_vm1, %v1189_v42, 0.0  ;;  %v1184_v58 = vsel %vm165_vm1, %v1183_v43, 0.0  ;;  %v1196_v2 = vsel %vm165_vm1, %v1195_v36, 0.0  ;;  %v1202_v28 = vsel %vm165_vm1, %v1201_v39, 0.0 }
 0xcb6   :  { %1191 = vadd.xlane.f32.xlu0 %v1190_v47  ;;  %1185 = vadd.xlane.f32.xlu1 %v1184_v58  ;;  %v3833_v39 = vmov 45  }
 0xcba   :  { %1197 = vadd.xlane.f32.xlu1 %v1196_v2  ;;  %v3832_v2 = vmov 44  }
 0xcbe   :  { %1203 = vadd.xlane.f32.xlu1 %v1202_v28 }
 0xd43   :  { %v1192_v49 = vpop.xlane.xlu0 %1191  ;;  %v1186_v51 = vpop.xlane.xlu1 %1185 }
 0xd44   :  { %v1193_v21 = vadd.f32 %v1192_v49, %v4612_v8  ;;  %v1187_v11 = vadd.f32 %v1186_v51, %v4615_v45 }
 0xd46   :  { %v4663_v50 = vadd.f32 %v4609_v30, %v1193_v21  ;;  %v4666_v47 = vadd.f32 %v4609_v30, %v1187_v11 }
 0xd47   :  { %v1198_v0 = vpop.xlane.xlu1 %1197 }
 0xd48   :  { %6779 = vst [vmem:[#allocation64_spill] sm:$0xff] %v4663_v50  ;;  %6780 = vst [vmem:[#allocation65_spill] sm:$0xff] %v4666_v47  ;;  %v1199_v42 = vadd.f32 %v1198_v0, %v4621_v33  ;;  %1215 = vperm.xlu1 %3516, %v4663_v50   ;;  %1209 = vperm.xlu0 %3510, %v4666_v47  }
 0xd4a   :  { %v4672_v59 = vadd.f32 %v4609_v30, %v1199_v42 }
 0xd4b   :  { %v1204_v43 = vpop.xlane.xlu1 %1203 }
 0xd4c   :  { %6781 = vst [vmem:[#allocation66_spill] sm:$0xff] %v4672_v59  ;;  %v1205_v58 = vadd.f32 %v1204_v43, %v4627_v57  ;;  %3517 = vset.pattern.permute.xlu1 %v6739_v4  ;;  %3518 = vset.pattern.permute.xlu0 %v6741_v5 }
 0xd4d   :  { %1222 = vperm.xlu1 %3517, %v4672_v59  }
 0xd4e   :  { %v4679_v36 = vadd.f32 %v4609_v30, %v1205_v58 }
 0xd50   :  { %6782 = vst [vmem:[#allocation67_spill] sm:$0xff] %v4679_v36  ;;  %1229 = vperm.xlu0 %3518, %v4679_v36  }
 0xd51   :  { %3519 = vset.pattern.permute.xlu1 %v3832_v2 }
 0xd52   :  { %1271 = vperm.xlu1 %3519, %v4461_v61  }
 0xd54   :  { %3522 = vset.pattern.permute.xlu0 %v6746_v35 }
 0xd56   :  { %3520 = vset.pattern.permute.xlu1 %v3833_v39 }
 0xd57   :  { %1277 = vperm.xlu1 %3520, %v4461_v61  }
 0xd5b   :  { %3521 = vset.pattern.permute.xlu1 %v6731_v41 }
 0xdc7   :  { %v4686_v28 = vpop.permute.xlu0 %1209  ;;  %v4688_v49 = vpop.permute.xlu1 %1215 }
 0xdc8   :  { %6783 = vst [vmem:[#allocation68_spill] sm:$0xff] %v4686_v28  ;;  %6784 = vst [vmem:[#allocation69_spill] sm:$0xff] %v4688_v49  ;;  %v1260_v51 = vmul.f32 %v4525_v24, %v4686_v28  ;;  %v1262_v11 = vmul.f32 %v4542_v44, %v4688_v49 }
 0xdca   :  { %v1261_v21 = vadd.f32 %v4534_v29, %v1260_v51 }
 0xdcc   :  { %v1263_v0 = vadd.f32 %v1262_v11, %v1261_v21  ;;  %v4695_v42 = vpop.permute.xlu1 %1222 }
 0xdcd   :  { %6785 = vst [vmem:[#allocation70_spill] sm:$0xff] %v4695_v42  ;;  %v1264_v43 = vmul.f32 %v4549_v54, %v4695_v42 }
 0xdcf   :  { %v1265_v58 = vadd.f32 %v1264_v43, %v1263_v0  ;;  %v4699_v2 = vpop.permute.xlu0 %1229 }
 0xdd0   :  { %6786 = vst [vmem:[#allocation71_spill] sm:$0xff] %v4699_v2  ;;  %v1266_v39 = vmul.f32 %v4558_v14, %v4699_v2 }
 0xdd1   :  { %v1272_v57 = vpop.permute.xlu1 %1271 }
 0xdd2   :  { %v1267_v8 = vadd.f32 %v1266_v39, %v1265_v58  ;;  %v1274_v33 = vmul.f32 %v4565_v16, %v1272_v57 }
 0xdd4   :  { %v1275_v45 = vadd.f32 %v1274_v33, %v1267_v8 }
 0xdd6   :  { %v1278_v51 = vpop.permute.xlu1 %1277 }
 0xdd7   :  { %v1280_v49 = vmul.f32 %v4571_v22, %v1278_v51 }
 0xdd9   :  { %v1281_v21 = vadd.f32 %v1280_v49, %v1275_v45 }
 0xddb   :  { %3658 = vtanh.f32 %v1281_v21  ;;  %v3834_v21 = vmov 48  }
 0xde5   :  { %v3659_v11 = vpop.eup %3658 }
 0xde6   :  { %v1289_v28 = vmul.f32 %v4577_v6, %v3659_v11  ;;  %v1283_v0 = vmul.f32 %v4583_v52, %v3659_v11  ;;  %v1295_v2 = vmul.f32 %v4591_v53, %v3659_v11  ;;  %v1301_v8 = vmul.f32 %v4598_v48, %v3659_v11 }
 0xde8   :  { %v1290_v43 = vsel %vm165_vm1, %v1289_v28, 0.0  ;;  %v1284_v42 = vsel %vm165_vm1, %v1283_v0, 0.0  ;;  %v1296_v57 = vsel %vm165_vm1, %v1295_v2, 0.0  ;;  %v1302_v45 = vsel %vm165_vm1, %v1301_v8, 0.0 }
 0xde9   :  { %1291 = vadd.xlane.f32.xlu1 %v1290_v43  ;;  %1285 = vadd.xlane.f32.xlu0 %v1284_v42  ;;  %v3835_v8 = vmov 49  }
 0xded   :  { %1297 = vadd.xlane.f32.xlu0 %v1296_v57 }
 0xdf1   :  { %1303 = vadd.xlane.f32.xlu0 %v1302_v45  ;;  %v3836_v45 = vmov 52  }
 0xe76   :  { %v1292_v33 = vpop.xlane.xlu1 %1291  ;;  %v1286_v49 = vpop.xlane.xlu0 %1285 }
 0xe77   :  { %v1293_v58 = vadd.f32 %v1292_v33, %v4663_v50  ;;  %v1287_v28 = vadd.f32 %v1286_v49, %v4666_v47 }
 0xe79   :  { %v4716_v39 = vadd.f32 %v4609_v30, %v1293_v58  ;;  %v4719_v51 = vadd.f32 %v4609_v30, %v1287_v28 }
 0xe7a   :  { %v1298_v42 = vpop.xlane.xlu0 %1297 }
 0xe7b   :  { %6787 = vst [vmem:[#allocation72_spill] sm:$0xff] %v4716_v39  ;;  %6788 = vst [vmem:[#allocation73_spill] sm:$0xff] %v4719_v51  ;;  %1315 = vperm.xlu0 %3522, %v4716_v39   ;;  %1309 = vperm.xlu1 %3521, %v4719_v51   ;;  %v1299_v2 = vadd.f32 %v1298_v42, %v4672_v59 }
 0xe7d   :  { %v4727_v0 = vadd.f32 %v4609_v30, %v1299_v2 }
 0xe7e   :  { %v1304_v11 = vpop.xlane.xlu0 %1303 }
 0xe7f   :  { %3523 = vset.pattern.permute.xlu1 %v3834_v21  ;;  %3527 = vset.pattern.permute.xlu0 %v6731_v41  ;;  %6789 = vst [vmem:[#allocation74_spill] sm:$0xff] %v4727_v0  ;;  %v1305_v43 = vadd.f32 %v1304_v11, %v4679_v36 }
 0xe80   :  { %1371 = vperm.xlu1 %3523, %v4461_v61  }
 0xe81   :  { %v4733_v57 = vadd.f32 %v4609_v30, %v1305_v43 }
 0xe83   :  { %6790 = vst [vmem:[#allocation75_spill] sm:$0xff] %v4733_v57 }
 0xe84   :  { %3524 = vset.pattern.permute.xlu1 %v6739_v4 }
 0xe85   :  { %1322 = vperm.xlu1 %3524, %v4727_v0  }
 0xe89   :  { %3525 = vset.pattern.permute.xlu1 %v6741_v5 }
 0xe8a   :  { %1329 = vperm.xlu1 %3525, %v4733_v57  }
 0xe8e   :  { %3526 = vset.pattern.permute.xlu1 %v3835_v8 }
 0xe8f   :  { %1377 = vperm.xlu1 %3526, %v4461_v61  }
 0xe93   :  { %3528 = vset.pattern.permute.xlu1 %v3836_v45 }
 0xefa   :  { %v4738_v33 = vpop.permute.xlu1 %1309  ;;  %v4742_v28 = vpop.permute.xlu0 %1315 }
 0xefb   :  { %6791 = vst [vmem:[#allocation76_spill] sm:$0xff] %v4738_v33  ;;  %v1360_v58 = vmul.f32 %v4525_v24, %v4738_v33  ;;  %6792 = vst [vmem:[#allocation77_spill] sm:$0xff] %v4742_v28  ;;  %v1362_v21 = vmul.f32 %v4542_v44, %v4742_v28 }
 0xefd   :  { %v1361_v42 = vadd.f32 %v4534_v29, %v1360_v58 }
 0xeff   :  { %v1372_v49 = vpop.permute.xlu1 %1371  ;;  %v1363_v43 = vadd.f32 %v1362_v21, %v1361_v42 }
 0xf00   :  { %v1374_v36 = vmul.f32 %v4565_v16, %v1372_v49 }
 0xf04   :  { %v4745_v2 = vpop.permute.xlu1 %1322 }
 0xf05   :  { %6793 = vst [vmem:[#allocation78_spill] sm:$0xff] %v4745_v2  ;;  %v1364_v11 = vmul.f32 %v4549_v54, %v4745_v2 }
 0xf07   :  { %v1365_v45 = vadd.f32 %v1364_v11, %v1363_v43 }
 0xf09   :  { %v4751_v8 = vpop.permute.xlu1 %1329 }
 0xf0a   :  { %6794 = vst [vmem:[#allocation79_spill] sm:$0xff] %v4751_v8  ;;  %v1366_v59 = vmul.f32 %v4558_v14, %v4751_v8 }
 0xf0c   :  { %v1367_v47 = vadd.f32 %v1366_v59, %v1365_v45 }
 0xf0e   :  { %v1378_v50 = vpop.permute.xlu1 %1377  ;;  %v1375_v58 = vadd.f32 %v1374_v36, %v1367_v47 }
 0xf0f   :  { %v1380_v33 = vmul.f32 %v4571_v22, %v1378_v50 }
 0xf11   :  { %v1381_v1 = vadd.f32 %v1380_v33, %v1375_v58 }
 0xf13   :  { %3660 = vtanh.f32 %v1381_v1 }
 0xf1d   :  { %v3661_v28 = vpop.eup %3660 }
 0xf1e   :  { %v1389_v25 = vmul.f32 %v4577_v6, %v3661_v28  ;;  %v1383_v42 = vmul.f32 %v4583_v52, %v3661_v28  ;;  %v1395_v43 = vmul.f32 %v4591_v53, %v3661_v28  ;;  %v1401_v47 = vmul.f32 %v4598_v48, %v3661_v28 }
 0xf20   :  { %v1390_v21 = vsel %vm165_vm1, %v1389_v25, 0.0  ;;  %v1384_v11 = vsel %vm165_vm1, %v1383_v42, 0.0  ;;  %v1396_v59 = vsel %vm165_vm1, %v1395_v43, 0.0  ;;  %v1402_v1 = vsel %vm165_vm1, %v1401_v47, 0.0 }
 0xf21   :  { %1391 = vadd.xlane.f32.xlu0 %v1390_v21  ;;  %1385 = vadd.xlane.f32.xlu1 %v1384_v11 }
 0xf25   :  { %1397 = vadd.xlane.f32.xlu1 %v1396_v59  ;;  %v3837_v59 = vmov 53  }
 0xf29   :  { %1403 = vadd.xlane.f32.xlu1 %v1402_v1 }
 0xf3a   :  { %1471 = vperm.xlu1 %3528, %v4461_v61  }
 0xf3e   :  { %3529 = vset.pattern.permute.xlu1 %v6746_v35 }
 0xfae   :  { %v1392_v50 = vpop.xlane.xlu0 %1391  ;;  %v1386_v25 = vpop.xlane.xlu1 %1385 }
 0xfaf   :  { %v1393_v36 = vadd.f32 %v1392_v50, %v4716_v39  ;;  %v1387_v33 = vadd.f32 %v1386_v25, %v4719_v51 }
 0xfb1   :  { %v4770_v49 = vadd.f32 %v4609_v30, %v1393_v36  ;;  %v4773_v45 = vadd.f32 %v4609_v30, %v1387_v33 }
 0xfb2   :  { %v1398_v28 = vpop.xlane.xlu1 %1397 }
 0xfb3   :  { %6795 = vst [vmem:[#allocation80_spill] sm:$0xff] %v4770_v49  ;;  %6796 = vst [vmem:[#allocation81_spill] sm:$0xff] %v4773_v45  ;;  %v1399_v58 = vadd.f32 %v1398_v28, %v4727_v0  ;;  %1415 = vperm.xlu1 %3529, %v4770_v49   ;;  %1409 = vperm.xlu0 %3527, %v4773_v45  }
 0xfb5   :  { %v4779_v42 = vadd.f32 %v4609_v30, %v1399_v58 }
 0xfb6   :  { %v1404_v21 = vpop.xlane.xlu1 %1403 }
 0xfb7   :  { %6797 = vst [vmem:[#allocation82_spill] sm:$0xff] %v4779_v42  ;;  %v1405_v11 = vadd.f32 %v1404_v21, %v4733_v57  ;;  %3530 = vset.pattern.permute.xlu1 %v6739_v4 }
 0xfb8   :  { %1422 = vperm.xlu1 %3530, %v4779_v42  }
 0xfb9   :  { %v4785_v43 = vadd.f32 %v4609_v30, %v1405_v11 }
 0xfba   :  { %v1472_v47 = vpop.permute.xlu1 %1471 }
 0xfbb   :  { %6798 = vst [vmem:[#allocation83_spill] sm:$0xff] %v4785_v43  ;;  %v1474_v39 = vmul.f32 %v4565_v16, %v1472_v47 }
 0xfbc   :  { %3531 = vset.pattern.permute.xlu1 %v6741_v5 }
 0xfbd   :  { %1429 = vperm.xlu1 %3531, %v4785_v43  }
 0xfc1   :  { %3532 = vset.pattern.permute.xlu1 %v3837_v59 }
 0xfc2   :  { %1477 = vperm.xlu1 %3532, %v4461_v61  }
 0xfc6   :  { %3533 = vset.pattern.permute.xlu1 %v6746_v35 }
0x1032   :  { %v4791_v1 = vpop.permute.xlu0 %1409  ;;  %v4793_v50 = vpop.permute.xlu1 %1415 }
0x1033   :  { %6799 = vst [vmem:[#allocation84_spill] sm:$0xff] %v4791_v1  ;;  %6800 = vst [vmem:[#allocation85_spill] sm:$0xff] %v4793_v50  ;;  %v1460_v25 = vmul.f32 %v4525_v24, %v4791_v1  ;;  %v1462_v33 = vmul.f32 %v4542_v44, %v4793_v50 }
0x1035   :  { %v1461_v36 = vadd.f32 %v4534_v29, %v1460_v25 }
0x1037   :  { %v4800_v28 = vpop.permute.xlu1 %1422  ;;  %v1463_v58 = vadd.f32 %v1462_v33, %v1461_v36 }
0x1038   :  { %6801 = vst [vmem:[#allocation86_spill] sm:$0xff] %v4800_v28  ;;  %v1464_v21 = vmul.f32 %v4549_v54, %v4800_v28 }
0x103a   :  { %v1465_v59 = vadd.f32 %v1464_v21, %v1463_v58 }
0x103c   :  { %v4804_v11 = vpop.permute.xlu1 %1429 }
0x103d   :  { %6802 = vst [vmem:[#allocation87_spill] sm:$0xff] %v4804_v11  ;;  %v1466_v57 = vmul.f32 %v4558_v14, %v4804_v11 }
0x103f   :  { %v1467_v0 = vadd.f32 %v1466_v57, %v1465_v59 }
0x1041   :  { %v1475_v51 = vadd.f32 %v1474_v39, %v1467_v0  ;;  %v1478_v25 = vpop.permute.xlu1 %1477 }
0x1042   :  { %v1480_v1 = vmul.f32 %v4571_v22, %v1478_v25 }
0x1044   :  { %v1481_v50 = vadd.f32 %v1480_v1, %v1475_v51 }
0x1046   :  { %3662 = vtanh.f32 %v1481_v50 }
0x1050   :  { %v3663_v8 = vpop.eup %3662 }
0x1051   :  { %v1489_v36 = vmul.f32 %v4577_v6, %v3663_v8  ;;  %v1483_v33 = vmul.f32 %v4583_v52, %v3663_v8  ;;  %v1495_v21 = vmul.f32 %v4591_v53, %v3663_v8  ;;  %v1501_v0 = vmul.f32 %v4598_v48, %v3663_v8 }
0x1053   :  { %v1490_v28 = vsel %vm165_vm1, %v1489_v36, 0.0  ;;  %v1484_v58 = vsel %vm165_vm1, %v1483_v33, 0.0  ;;  %v1496_v39 = vsel %vm165_vm1, %v1495_v21, 0.0  ;;  %v1502_v51 = vsel %vm165_vm1, %v1501_v0, 0.0 }
0x1054   :  { %1491 = vadd.xlane.f32.xlu0 %v1490_v28  ;;  %1485 = vadd.xlane.f32.xlu1 %v1484_v58  ;;  %v3839_v0 = vmov 57  }
0x1058   :  { %1497 = vadd.xlane.f32.xlu1 %v1496_v39  ;;  %v3838_v39 = vmov 56  }
0x105c   :  { %1503 = vadd.xlane.f32.xlu1 %v1502_v51 }
0x10e1   :  { %v1492_v57 = vpop.xlane.xlu0 %1491  ;;  %v1486_v47 = vpop.xlane.xlu1 %1485 }
0x10e2   :  { %v1493_v1 = vadd.f32 %v1492_v57, %v4770_v49  ;;  %v1487_v50 = vadd.f32 %v1486_v47, %v4773_v45 }
0x10e4   :  { %v4821_v59 = vadd.f32 %v4609_v30, %v1493_v1  ;;  %v4824_v28 = vadd.f32 %v4609_v30, %v1487_v50 }
0x10e5   :  { %v1498_v25 = vpop.xlane.xlu1 %1497 }
0x10e6   :  { %6803 = vst [vmem:[#allocation88_spill] sm:$0xff] %v4821_v59  ;;  %6804 = vst [vmem:[#allocation89_spill] sm:$0xff] %v4824_v28  ;;  %v1499_v36 = vadd.f32 %v1498_v25, %v4779_v42  ;;  %1515 = vperm.xlu1 %3533, %v4821_v59   ;;  %1509 = vperm.xlu0 %3527, %v4824_v28  }
0x10e8   :  { %v4830_v8 = vadd.f32 %v4609_v30, %v1499_v36 }
0x10e9   :  { %v1504_v33 = vpop.xlane.xlu1 %1503 }
0x10ea   :  { %6805 = vst [vmem:[#allocation90_spill] sm:$0xff] %v4830_v8  ;;  %v1505_v58 = vadd.f32 %v1504_v33, %v4785_v43  ;;  %3534 = vset.pattern.permute.xlu1 %v6739_v4  ;;  %3535 = vset.pattern.permute.xlu0 %v6741_v5 }
0x10eb   :  { %1522 = vperm.xlu1 %3534, %v4830_v8  }
0x10ec   :  { %v4837_v21 = vadd.f32 %v4609_v30, %v1505_v58 }
0x10ee   :  { %6806 = vst [vmem:[#allocation91_spill] sm:$0xff] %v4837_v21  ;;  %1529 = vperm.xlu0 %3535, %v4837_v21  }
0x10ef   :  { %3536 = vset.pattern.permute.xlu1 %v3838_v39 }
0x10f0   :  { %1571 = vperm.xlu1 %3536, %v4461_v61  }
0x10f2   :  { %3539 = vset.pattern.permute.xlu0 %v6746_v35 }
0x10f4   :  { %3537 = vset.pattern.permute.xlu1 %v3839_v0 }
0x10f5   :  { %1577 = vperm.xlu1 %3537, %v4461_v61  }
0x10f9   :  { %3538 = vset.pattern.permute.xlu1 %v6731_v41 }
0x1165   :  { %v4844_v51 = vpop.permute.xlu0 %1509  ;;  %v4846_v57 = vpop.permute.xlu1 %1515 }
0x1166   :  { %6807 = vst [vmem:[#allocation92_spill] sm:$0xff] %v4844_v51  ;;  %6808 = vst [vmem:[#allocation93_spill] sm:$0xff] %v4846_v57  ;;  %v1560_v47 = vmul.f32 %v4525_v24, %v4844_v51  ;;  %v1562_v50 = vmul.f32 %v4542_v44, %v4846_v57 }
0x1168   :  { %v1561_v1 = vadd.f32 %v4534_v29, %v1560_v47 }
0x116a   :  { %v1563_v25 = vadd.f32 %v1562_v50, %v1561_v1  ;;  %v4853_v36 = vpop.permute.xlu1 %1522 }
0x116b   :  { %6809 = vst [vmem:[#allocation94_spill] sm:$0xff] %v4853_v36  ;;  %v1564_v33 = vmul.f32 %v4549_v54, %v4853_v36 }
0x116d   :  { %v1565_v58 = vadd.f32 %v1564_v33, %v1563_v25  ;;  %v4857_v39 = vpop.permute.xlu0 %1529 }
0x116e   :  { %6810 = vst [vmem:[#allocation95_spill] sm:$0xff] %v4857_v39  ;;  %v1566_v0 = vmul.f32 %v4558_v14, %v4857_v39 }
0x116f   :  { %v1572_v43 = vpop.permute.xlu1 %1571 }
0x1170   :  { %v1567_v49 = vadd.f32 %v1566_v0, %v1565_v58  ;;  %v1574_v42 = vmul.f32 %v4565_v16, %v1572_v43 }
0x1172   :  { %v1575_v51 = vadd.f32 %v1574_v42, %v1567_v49 }
0x1174   :  { %v1578_v47 = vpop.permute.xlu1 %1577 }
0x1175   :  { %v1580_v57 = vmul.f32 %v4571_v22, %v1578_v47 }
0x1177   :  { %v1581_v1 = vadd.f32 %v1580_v57, %v1575_v51 }
0x1179   :  { %3664 = vtanh.f32 %v1581_v1  ;;  %v3840_v1 = vmov 60  }
0x1183   :  { %v3665_v50 = vpop.eup %3664 }
0x1184   :  { %v1589_v45 = vmul.f32 %v4577_v6, %v3665_v50  ;;  %v1583_v25 = vmul.f32 %v4583_v52, %v3665_v50  ;;  %v1595_v39 = vmul.f32 %v4591_v53, %v3665_v50  ;;  %v1601_v49 = vmul.f32 %v4598_v48, %v3665_v50 }
0x1186   :  { %v1590_v33 = vsel %vm165_vm1, %v1589_v45, 0.0  ;;  %v1584_v36 = vsel %vm165_vm1, %v1583_v25, 0.0  ;;  %v1596_v43 = vsel %vm165_vm1, %v1595_v39, 0.0  ;;  %v1602_v42 = vsel %vm165_vm1, %v1601_v49, 0.0 }
0x1187   :  { %1591 = vadd.xlane.f32.xlu1 %v1590_v33  ;;  %1585 = vadd.xlane.f32.xlu0 %v1584_v36  ;;  %v3841_v49 = vmov 61  }
0x118b   :  { %1597 = vadd.xlane.f32.xlu0 %v1596_v43 }
0x118f   :  { %1603 = vadd.xlane.f32.xlu0 %v1602_v42  ;;  %v3842_v42 = vmov 64  }
0x1214   :  { %v1592_v51 = vpop.xlane.xlu1 %1591  ;;  %v1586_v57 = vpop.xlane.xlu0 %1585 }
0x1215   :  { %v1593_v58 = vadd.f32 %v1592_v51, %v4821_v59  ;;  %v1587_v45 = vadd.f32 %v1586_v57, %v4824_v28 }
0x1217   :  { %v4874_v0 = vadd.f32 %v4609_v30, %v1593_v58  ;;  %v4877_v47 = vadd.f32 %v4609_v30, %v1587_v45 }
0x1218   :  { %v1598_v36 = vpop.xlane.xlu0 %1597 }
0x1219   :  { %6811 = vst [vmem:[#allocation96_spill] sm:$0xff] %v4874_v0  ;;  %6812 = vst [vmem:[#allocation97_spill] sm:$0xff] %v4877_v47  ;;  %1615 = vperm.xlu0 %3539, %v4874_v0   ;;  %1609 = vperm.xlu1 %3538, %v4877_v47   ;;  %v1599_v39 = vadd.f32 %v1598_v36, %v4830_v8 }
0x121b   :  { %v4885_v25 = vadd.f32 %v4609_v30, %v1599_v39 }
0x121c   :  { %v1604_v50 = vpop.xlane.xlu0 %1603 }
0x121d   :  { %3540 = vset.pattern.permute.xlu1 %v3840_v1  ;;  %3544 = vset.pattern.permute.xlu0 %v6731_v41  ;;  %6813 = vst [vmem:[#allocation98_spill] sm:$0xff] %v4885_v25  ;;  %v1605_v33 = vadd.f32 %v1604_v50, %v4837_v21 }
0x121e   :  { %1671 = vperm.xlu1 %3540, %v4461_v61  }
0x121f   :  { %v4891_v43 = vadd.f32 %v4609_v30, %v1605_v33 }
0x1221   :  { %6814 = vst [vmem:[#allocation99_spill] sm:$0xff] %v4891_v43 }
0x1222   :  { %3541 = vset.pattern.permute.xlu1 %v6739_v4 }
0x1223   :  { %1622 = vperm.xlu1 %3541, %v4885_v25  }
0x1227   :  { %3542 = vset.pattern.permute.xlu1 %v6741_v5 }
0x1228   :  { %1629 = vperm.xlu1 %3542, %v4891_v43  }
0x122c   :  { %3543 = vset.pattern.permute.xlu1 %v3841_v49 }
0x122d   :  { %1677 = vperm.xlu1 %3543, %v4461_v61  }
0x1231   :  { %3545 = vset.pattern.permute.xlu1 %v3842_v42 }
0x1298   :  { %v4896_v51 = vpop.permute.xlu1 %1609  ;;  %v4900_v45 = vpop.permute.xlu0 %1615 }
0x1299   :  { %6815 = vst [vmem:[#allocation100_spill] sm:$0xff] %v4896_v51  ;;  %v1660_v58 = vmul.f32 %v4525_v24, %v4896_v51  ;;  %6816 = vst [vmem:[#allocation101_spill] sm:$0xff] %v4900_v45  ;;  %v1662_v1 = vmul.f32 %v4542_v44, %v4900_v45 }
0x129b   :  { %v1661_v36 = vadd.f32 %v4534_v29, %v1660_v58 }
0x129d   :  { %v1672_v57 = vpop.permute.xlu1 %1671  ;;  %v1663_v33 = vadd.f32 %v1662_v1, %v1661_v36 }
0x129e   :  { %v1674_v28 = vmul.f32 %v4565_v16, %v1672_v57 }
0x12a2   :  { %v4903_v39 = vpop.permute.xlu1 %1622 }
0x12a3   :  { %6817 = vst [vmem:[#allocation102_spill] sm:$0xff] %v4903_v39  ;;  %v1664_v50 = vmul.f32 %v4549_v54, %v4903_v39 }
0x12a5   :  { %v1665_v42 = vadd.f32 %v1664_v50, %v1663_v33 }
0x12a7   :  { %v4909_v49 = vpop.permute.xlu1 %1629 }
0x12a8   :  { %6818 = vst [vmem:[#allocation103_spill] sm:$0xff] %v4909_v49  ;;  %v1666_v8 = vmul.f32 %v4558_v14, %v4909_v49 }
0x12aa   :  { %v1667_v51 = vadd.f32 %v1666_v8, %v1665_v42 }
0x12ac   :  { %v1678_v21 = vpop.permute.xlu1 %1677  ;;  %v1675_v58 = vadd.f32 %v1674_v28, %v1667_v51 }
0x12ad   :  { %v1680_v59 = vmul.f32 %v4571_v22, %v1678_v21 }
0x12af   :  { %v1681_v11 = vadd.f32 %v1680_v59, %v1675_v58 }
0x12b1   :  { %3666 = vtanh.f32 %v1681_v11 }
0x12bb   :  { %v3667_v45 = vpop.eup %3666 }
0x12bc   :  { %v1689_v2 = vmul.f32 %v4577_v6, %v3667_v45  ;;  %v1683_v36 = vmul.f32 %v4583_v52, %v3667_v45  ;;  %v1695_v33 = vmul.f32 %v4591_v53, %v3667_v45  ;;  %v1701_v28 = vmul.f32 %v4598_v48, %v3667_v45 }
0x12be   :  { %v1690_v1 = vsel %vm165_vm1, %v1689_v2, 0.0  ;;  %v1684_v50 = vsel %vm165_vm1, %v1683_v36, 0.0  ;;  %v1696_v8 = vsel %vm165_vm1, %v1695_v33, 0.0  ;;  %v1702_v11 = vsel %vm165_vm1, %v1701_v28, 0.0 }
0x12bf   :  { %1691 = vadd.xlane.f32.xlu0 %v1690_v1  ;;  %1685 = vadd.xlane.f32.xlu1 %v1684_v50 }
0x12c3   :  { %1697 = vadd.xlane.f32.xlu1 %v1696_v8  ;;  %v3843_v8 = vmov 65  }
0x12c7   :  { %1703 = vadd.xlane.f32.xlu1 %v1702_v11 }
0x12d8   :  { %1771 = vperm.xlu1 %3545, %v4461_v61  }
0x12dc   :  { %3546 = vset.pattern.permute.xlu1 %v6746_v35 }
0x134c   :  { %v1692_v59 = vpop.xlane.xlu0 %1691  ;;  %v1686_v2 = vpop.xlane.xlu1 %1685 }
0x134d   :  { %v1693_v21 = vadd.f32 %v1692_v59, %v4874_v0  ;;  %v1687_v51 = vadd.f32 %v1686_v2, %v4877_v47 }
0x134f   :  { %v4928_v57 = vadd.f32 %v4609_v30, %v1693_v21  ;;  %v4931_v42 = vadd.f32 %v4609_v30, %v1687_v51 }
0x1350   :  { %v1698_v45 = vpop.xlane.xlu1 %1697 }
0x1351   :  { %6819 = vst [vmem:[#allocation104_spill] sm:$0xff] %v4928_v57  ;;  %6820 = vst [vmem:[#allocation105_spill] sm:$0xff] %v4931_v42  ;;  %v1699_v58 = vadd.f32 %v1698_v45, %v4885_v25  ;;  %1715 = vperm.xlu1 %3546, %v4928_v57   ;;  %1709 = vperm.xlu0 %3544, %v4931_v42  }
0x1353   :  { %v4937_v36 = vadd.f32 %v4609_v30, %v1699_v58 }
0x1354   :  { %v1704_v1 = vpop.xlane.xlu1 %1703 }
0x1355   :  { %6821 = vst [vmem:[#allocation106_spill] sm:$0xff] %v4937_v36  ;;  %v1705_v50 = vadd.f32 %v1704_v1, %v4891_v43  ;;  %3547 = vset.pattern.permute.xlu1 %v6739_v4 }
0x1356   :  { %1722 = vperm.xlu1 %3547, %v4937_v36  }
0x1357   :  { %v4943_v33 = vadd.f32 %v4609_v30, %v1705_v50 }
0x1358   :  { %v1772_v28 = vpop.permute.xlu1 %1771 }
0x1359   :  { %6822 = vst [vmem:[#allocation107_spill] sm:$0xff] %v4943_v33  ;;  %v1774_v43 = vmul.f32 %v4565_v16, %v1772_v28 }
0x135a   :  { %3548 = vset.pattern.permute.xlu1 %v6741_v5 }
0x135b   :  { %1729 = vperm.xlu1 %3548, %v4943_v33  }
0x135f   :  { %3549 = vset.pattern.permute.xlu1 %v3843_v8 }
0x1360   :  { %1777 = vperm.xlu1 %3549, %v4461_v61  }
0x1364   :  { %3550 = vset.pattern.permute.xlu1 %v6746_v35 }
0x13d0   :  { %v4949_v11 = vpop.permute.xlu0 %1709  ;;  %v4951_v59 = vpop.permute.xlu1 %1715 }
0x13d1   :  { %6823 = vst [vmem:[#allocation108_spill] sm:$0xff] %v4949_v11  ;;  %6824 = vst [vmem:[#allocation109_spill] sm:$0xff] %v4951_v59  ;;  %v1760_v2 = vmul.f32 %v4525_v24, %v4949_v11  ;;  %v1762_v51 = vmul.f32 %v4542_v44, %v4951_v59 }
0x13d3   :  { %v1761_v21 = vadd.f32 %v4534_v29, %v1760_v2 }
0x13d5   :  { %v4958_v45 = vpop.permute.xlu1 %1722  ;;  %v1763_v58 = vadd.f32 %v1762_v51, %v1761_v21 }
0x13d6   :  { %6825 = vst [vmem:[#allocation110_spill] sm:$0xff] %v4958_v45  ;;  %v1764_v61 = vmul.f32 %v4549_v54, %v4958_v45 }
0x13d8   :  { %v1765_v50 = vadd.f32 %v1764_v61, %v1763_v58 }
0x13da   :  { %v4962_v1 = vpop.permute.xlu1 %1729 }
0x13db   :  { %6826 = vst [vmem:[#allocation111_spill] sm:$0xff] %v4962_v1  ;;  %v1766_v8 = vmul.f32 %v4558_v14, %v4962_v1 }
0x13dd   :  { %v1767_v0 = vadd.f32 %v1766_v8, %v1765_v50 }
0x13df   :  { %v1775_v49 = vadd.f32 %v1774_v43, %v1767_v0  ;;  %v1778_v2 = vpop.permute.xlu1 %1777 }
0x13e0   :  { %v1780_v39 = vmul.f32 %v4571_v22, %v1778_v2 }
0x13e2   :  { %v1781_v25 = vadd.f32 %v1780_v39, %v1775_v49 }
0x13e4   :  { %3668 = vtanh.f32 %v1781_v25 }
0x13ee   :  { %v3669_v47 = vpop.eup %3668 }
0x13ef   :  { %v1789_v21 = vmul.f32 %v4577_v6, %v3669_v47  ;;  %v1783_v51 = vmul.f32 %v4583_v52, %v3669_v47  ;;  %v1795_v61 = vmul.f32 %v4591_v53, %v3669_v47  ;;  %v1801_v43 = vmul.f32 %v4598_v48, %v3669_v47 }
0x13f1   :  { %v1790_v45 = vsel %vm165_vm1, %v1789_v21, 0.0  ;;  %v1784_v58 = vsel %vm165_vm1, %v1783_v51, 0.0  ;;  %v1796_v0 = vsel %vm165_vm1, %v1795_v61, 0.0  ;;  %v1802_v25 = vsel %vm165_vm1, %v1801_v43, 0.0 }
0x13f2   :  { %1791 = vadd.xlane.f32.xlu0 %v1790_v45  ;;  %1785 = vadd.xlane.f32.xlu1 %v1784_v58  ;;  %v3844_v43 = vmov 68  }
0x13f6   :  { %1797 = vadd.xlane.f32.xlu1 %v1796_v0  ;;  %v5000_v0 = vld [vmem:[%s6519_s0] sm:$0xff] }
0x13fa   :  { %1803 = vadd.xlane.f32.xlu1 %v1802_v25  ;;  %v3845_v25 = vmov 69  }
0x147f   :  { %v1792_v39 = vpop.xlane.xlu0 %1791  ;;  %v1786_v49 = vpop.xlane.xlu1 %1785 }
0x1480   :  { %v1793_v28 = vadd.f32 %v1792_v39, %v4928_v57  ;;  %v1787_v50 = vadd.f32 %v1786_v49, %v4931_v42 }
0x1482   :  { %v4979_v8 = vadd.f32 %v4609_v30, %v1793_v28  ;;  %v4982_v45 = vadd.f32 %v4609_v30, %v1787_v50 }
0x1483   :  { %v1798_v2 = vpop.xlane.xlu1 %1797 }
0x1484   :  { %6827 = vst [vmem:[#allocation112_spill] sm:$0xff] %v4979_v8  ;;  %6828 = vst [vmem:[#allocation113_spill] sm:$0xff] %v4982_v45  ;;  %v1799_v21 = vadd.f32 %v1798_v2, %v4937_v36  ;;  %1815 = vperm.xlu1 %3550, %v4979_v8   ;;  %1809 = vperm.xlu0 %3544, %v4982_v45  }
0x1486   :  { %v4988_v47 = vadd.f32 %v4609_v30, %v1799_v21 }
0x1487   :  { %v1804_v51 = vpop.xlane.xlu1 %1803 }
0x1488   :  { %6829 = vst [vmem:[#allocation114_spill] sm:$0xff] %v4988_v47  ;;  %v1805_v58 = vadd.f32 %v1804_v51, %v4943_v33  ;;  %3551 = vset.pattern.permute.xlu1 %v6739_v4  ;;  %3552 = vset.pattern.permute.xlu0 %v6741_v5 }
0x1489   :  { %1822 = vperm.xlu1 %3551, %v4988_v47  }
0x148a   :  { %v4995_v61 = vadd.f32 %v4609_v30, %v1805_v58 }
0x148c   :  { %6830 = vst [vmem:[#allocation115_spill] sm:$0xff] %v4995_v61  ;;  %1829 = vperm.xlu0 %3552, %v4995_v61  }
0x148d   :  { %3553 = vset.pattern.permute.xlu1 %v3844_v43 }
0x148e   :  { %1871 = vperm.xlu1 %3553, %v5000_v0  }
0x1490   :  { %3556 = vset.pattern.permute.xlu0 %v6746_v35 }
0x1492   :  { %3554 = vset.pattern.permute.xlu1 %v3845_v25 }
0x1493   :  { %1877 = vperm.xlu1 %3554, %v5000_v0  }
0x1497   :  { %3555 = vset.pattern.permute.xlu1 %v6731_v41 }
0x1503   :  { %v5007_v39 = vpop.permute.xlu0 %1809  ;;  %v5009_v49 = vpop.permute.xlu1 %1815 }
0x1504   :  { %6831 = vst [vmem:[#allocation116_spill] sm:$0xff] %v5007_v39  ;;  %6832 = vst [vmem:[#allocation117_spill] sm:$0xff] %v5009_v49  ;;  %v1860_v28 = vmul.f32 %v4525_v24, %v5007_v39  ;;  %v1862_v2 = vmul.f32 %v4542_v44, %v5009_v49 }
0x1506   :  { %v1861_v50 = vadd.f32 %v4534_v29, %v1860_v28 }
0x1508   :  { %v1863_v21 = vadd.f32 %v1862_v2, %v1861_v50  ;;  %v5016_v51 = vpop.permute.xlu1 %1822 }
0x1509   :  { %6833 = vst [vmem:[#allocation118_spill] sm:$0xff] %v5016_v51  ;;  %v1864_v58 = vmul.f32 %v4549_v54, %v5016_v51 }
0x150b   :  { %v1865_v43 = vadd.f32 %v1864_v58, %v1863_v21  ;;  %v5020_v25 = vpop.permute.xlu0 %1829 }
0x150c   :  { %6834 = vst [vmem:[#allocation119_spill] sm:$0xff] %v5020_v25  ;;  %v1866_v33 = vmul.f32 %v4558_v14, %v5020_v25 }
0x150d   :  { %v1872_v36 = vpop.permute.xlu1 %1871 }
0x150e   :  { %v1867_v42 = vadd.f32 %v1866_v33, %v1865_v43  ;;  %v1874_v24 = vmul.f32 %v4565_v16, %v1872_v36 }
0x1510   :  { %v1875_v28 = vadd.f32 %v1874_v24, %v1867_v42  ;;  %v3846_v24 = vmov 72  }
0x1512   :  { %v1878_v29 = vpop.permute.xlu1 %1877 }
0x1513   :  { %v1880_v44 = vmul.f32 %v4571_v22, %v1878_v29 }
0x1515   :  { %v1881_v50 = vadd.f32 %v1880_v44, %v1875_v28 }
0x1517   :  { %3670 = vtanh.f32 %v1881_v50 }
0x1521   :  { %v3671_v2 = vpop.eup %3670 }
0x1522   :  { %v1889_v49 = vmul.f32 %v4577_v6, %v3671_v2  ;;  %v1883_v54 = vmul.f32 %v4583_v52, %v3671_v2  ;;  %v1895_v14 = vmul.f32 %v4591_v53, %v3671_v2  ;;  %v1901_v42 = vmul.f32 %v4598_v48, %v3671_v2 }
0x1523   :  { %v3847_v2 = vmov 73  }
0x1524   :  { %v1890_v21 = vsel %vm165_vm1, %v1889_v49, 0.0  ;;  %v1884_v58 = vsel %vm165_vm1, %v1883_v54, 0.0  ;;  %v1896_v16 = vsel %vm165_vm1, %v1895_v14, 0.0  ;;  %v1902_v22 = vsel %vm165_vm1, %v1901_v42, 0.0  ;;  %v5064_v14 = vld [vmem:[%s6521_s2] ss:$0 sm:$0xff] }
0x1525   :  { %1891 = vadd.xlane.f32.xlu1 %v1890_v21  ;;  %1885 = vadd.xlane.f32.xlu0 %v1884_v58  ;;  %v3848_v54 = vmov 76   ;;  %v5073_v42 = vld [vmem:[%s6523_s4] ss:$0 sm:$0xff] }
0x1529   :  { %1897 = vadd.xlane.f32.xlu0 %v1896_v16 }
0x152d   :  { %1903 = vadd.xlane.f32.xlu0 %v1902_v22 }
0x15b2   :  { %v1892_v36 = vpop.xlane.xlu1 %1891  ;;  %v1886_v6 = vpop.xlane.xlu0 %1885 }
0x15b3   :  { %v1893_v52 = vadd.f32 %v1892_v36, %v4979_v8  ;;  %v1887_v33 = vadd.f32 %v1886_v6, %v4982_v45  ;;  %v5081_v6 = vld [vmem:[%s6521_s2 + $0x1] ss:$0 sm:$0xff] }
0x15b5   :  { %v5037_v49 = vadd.f32 %v4609_v30, %v1893_v52  ;;  %v5040_v53 = vadd.f32 %v4609_v30, %v1887_v33  ;;  %v5088_v33 = vld [vmem:[%s6521_s2 + $0x2] ss:$0 sm:$0xff] }
0x15b6   :  { %v1898_v43 = vpop.xlane.xlu0 %1897 }
0x15b7   :  { %6835 = vst [vmem:[#allocation120_spill] sm:$0xff] %v5037_v49  ;;  %6836 = vst [vmem:[#allocation121_spill] sm:$0xff] %v5040_v53  ;;  %1915 = vperm.xlu0 %3556, %v5037_v49   ;;  %1909 = vperm.xlu1 %3555, %v5040_v53   ;;  %v1899_v48 = vadd.f32 %v1898_v43, %v4988_v47 }
0x15b9   :  { %v5048_v28 = vadd.f32 %v4609_v30, %v1899_v48 }
0x15ba   :  { %v1904_v29 = vpop.xlane.xlu0 %1903 }
0x15bb   :  { %3557 = vset.pattern.permute.xlu1 %v3846_v24  ;;  %3561 = vset.pattern.permute.xlu0 %v6731_v41  ;;  %6837 = vst [vmem:[#allocation122_spill] sm:$0xff] %v5048_v28  ;;  %v1905_v44 = vadd.f32 %v1904_v29, %v4995_v61 }
0x15bc   :  { %1971 = vperm.xlu1 %3557, %v5000_v0  }
0x15bd   :  { %v5054_v50 = vadd.f32 %v4609_v30, %v1905_v44  ;;  %v5097_v44 = vld [vmem:[%s6521_s2 + $0x3] ss:$0 sm:$0xff] }
0x15bf   :  { %6838 = vst [vmem:[#allocation123_spill] sm:$0xff] %v5054_v50 }
0x15c0   :  { %3558 = vset.pattern.permute.xlu1 %v6739_v4 }
0x15c1   :  { %1922 = vperm.xlu1 %3558, %v5048_v28  }
0x15c5   :  { %3559 = vset.pattern.permute.xlu1 %v6741_v5 }
0x15c6   :  { %1929 = vperm.xlu1 %3559, %v5054_v50  }
0x15ca   :  { %3560 = vset.pattern.permute.xlu1 %v3847_v2 }
0x15cb   :  { %1977 = vperm.xlu1 %3560, %v5000_v0  }
0x15cf   :  { %3562 = vset.pattern.permute.xlu1 %v3848_v54  ;;  %v5104_v54 = vld [vmem:[%s6522_s3] ss:$0 sm:$0xff] }
0x1636   :  { %v5059_v21 = vpop.permute.xlu1 %1909  ;;  %v5068_v16 = vpop.permute.xlu0 %1915 }
0x1637   :  { %6839 = vst [vmem:[#allocation124_spill] sm:$0xff] %v5059_v21  ;;  %v1960_v30 = vmul.f32 %v5064_v14, %v5059_v21  ;;  %6840 = vst [vmem:[#allocation125_spill] sm:$0xff] %v5068_v16  ;;  %v1962_v52 = vmul.f32 %v5081_v6, %v5068_v16 }
0x1639   :  { %v1961_v22 = vadd.f32 %v5073_v42, %v1960_v30 }
0x163b   :  { %v1972_v58 = vpop.permute.xlu1 %1971  ;;  %v1963_v48 = vadd.f32 %v1962_v52, %v1961_v22 }
0x163c   :  { %v1974_v30 = vmul.f32 %v5104_v54, %v1972_v58 }
0x1640   :  { %v5076_v36 = vpop.permute.xlu1 %1922 }
0x1641   :  { %6841 = vst [vmem:[#allocation126_spill] sm:$0xff] %v5076_v36  ;;  %v1964_v43 = vmul.f32 %v5088_v33, %v5076_v36  ;;  %v5148_v36 = vld [vmem:[%s6525_s6] ss:$0 sm:$0xff] }
0x1643   :  { %v1965_v29 = vadd.f32 %v1964_v43, %v1963_v48  ;;  %v5110_v43 = vld [vmem:[%s6522_s3 + $0x1] ss:$0 sm:$0xff] }
0x1645   :  { %v5092_v24 = vpop.permute.xlu1 %1929 }
0x1646   :  { %6842 = vst [vmem:[#allocation127_spill] sm:$0xff] %v5092_v24  ;;  %v1966_v2 = vmul.f32 %v5097_v44, %v5092_v24  ;;  %v5116_v24 = vld [vmem:[%s6524_s5 + $0x1] ss:$0 sm:$0xff] }
0x1648   :  { %v1967_v61 = vadd.f32 %v1966_v2, %v1965_v29 }
0x164a   :  { %v1978_v22 = vpop.permute.xlu1 %1977  ;;  %v1975_v52 = vadd.f32 %v1974_v30, %v1967_v61  ;;  %v5122_v61 = vld [vmem:[%s6524_s5] ss:$0 sm:$0xff] }
0x164b   :  { %v1980_v48 = vmul.f32 %v5110_v43, %v1978_v22 }
0x164d   :  { %v1981_v47 = vadd.f32 %v1980_v48, %v1975_v52  ;;  %v5137_v48 = vld [vmem:[%s6524_s5 + $0x3] ss:$0 sm:$0xff] }
0x164f   :  { %3672 = vtanh.f32 %v1981_v47  ;;  %v5130_v47 = vld [vmem:[%s6524_s5 + $0x2] ss:$0 sm:$0xff] }
0x1659   :  { %v3673_v8 = vpop.eup %3672 }
0x165a   :  { %v1989_v58 = vmul.f32 %v5116_v24, %v3673_v8  ;;  %v1983_v29 = vmul.f32 %v5122_v61, %v3673_v8  ;;  %v1995_v22 = vmul.f32 %v5130_v47, %v3673_v8 }
0x165c   :  { %v1990_v2 = vsel %vm165_vm1, %v1989_v58, 0.0  ;;  %v1984_v30 = vsel %vm165_vm1, %v1983_v29, 0.0  ;;  %v1996_v52 = vsel %vm165_vm1, %v1995_v22, 0.0  ;;  %v2001_v58 = vmul.f32 %v5137_v48, %v3673_v8 }
0x165d   :  { %1991 = vadd.xlane.f32.xlu0 %v1990_v2  ;;  %1985 = vadd.xlane.f32.xlu1 %v1984_v30 }
0x165e   :  { %v2002_v29 = vsel %vm165_vm1, %v2001_v58, 0.0 }
0x1661   :  { %1997 = vadd.xlane.f32.xlu1 %v1996_v52 }
0x1665   :  { %2003 = vadd.xlane.f32.xlu1 %v2002_v29 }
0x1676   :  { %2071 = vperm.xlu1 %3562, %v5000_v0  }
0x167a   :  { %3563 = vset.pattern.permute.xlu1 %v6746_v35 }
0x16ea   :  { %v1992_v45 = vpop.xlane.xlu0 %1991  ;;  %v1986_v2 = vpop.xlane.xlu1 %1985 }
0x16eb   :  { %v1993_v30 = vadd.f32 %v1992_v45, %v5037_v49  ;;  %v1987_v22 = vadd.f32 %v1986_v2, %v5040_v53 }
0x16ed   :  { %v5151_v8 = vadd.f32 %v5148_v36, %v1993_v30  ;;  %v5154_v52 = vadd.f32 %v5148_v36, %v1987_v22  ;;  %v3849_v22 = vmov 77  }
0x16ee   :  { %v1998_v58 = vpop.xlane.xlu1 %1997 }
0x16ef   :  { %6843 = vst [vmem:[#allocation128_spill] sm:$0xff] %v5151_v8  ;;  %6844 = vst [vmem:[#allocation129_spill] sm:$0xff] %v5154_v52  ;;  %v1999_v29 = vadd.f32 %v1998_v58, %v5048_v28  ;;  %2015 = vperm.xlu1 %3563, %v5151_v8   ;;  %2009 = vperm.xlu0 %3561, %v5154_v52  }
0x16f1   :  { %v5160_v45 = vadd.f32 %v5148_v36, %v1999_v29 }
0x16f2   :  { %v2004_v2 = vpop.xlane.xlu1 %2003 }
0x16f3   :  { %6845 = vst [vmem:[#allocation130_spill] sm:$0xff] %v5160_v45  ;;  %v2005_v49 = vadd.f32 %v2004_v2, %v5054_v50  ;;  %3564 = vset.pattern.permute.xlu1 %v6739_v4 }
0x16f4   :  { %2022 = vperm.xlu1 %3564, %v5160_v45  }
0x16f5   :  { %v5166_v30 = vadd.f32 %v5148_v36, %v2005_v49 }
0x16f6   :  { %v2072_v58 = vpop.permute.xlu1 %2071 }
0x16f7   :  { %6846 = vst [vmem:[#allocation131_spill] sm:$0xff] %v5166_v30  ;;  %v2074_v39 = vmul.f32 %v5104_v54, %v2072_v58 }
0x16f8   :  { %3565 = vset.pattern.permute.xlu1 %v6741_v5 }
0x16f9   :  { %2029 = vperm.xlu1 %3565, %v5166_v30  }
0x16fd   :  { %3566 = vset.pattern.permute.xlu1 %v3849_v22 }
0x16fe   :  { %2077 = vperm.xlu1 %3566, %v5000_v0  }
0x1702   :  { %3567 = vset.pattern.permute.xlu1 %v6746_v35 }
0x176e   :  { %v5172_v29 = vpop.permute.xlu0 %2009  ;;  %v5174_v2 = vpop.permute.xlu1 %2015 }
0x176f   :  { %6847 = vst [vmem:[#allocation132_spill] sm:$0xff] %v5172_v29  ;;  %6848 = vst [vmem:[#allocation133_spill] sm:$0xff] %v5174_v2  ;;  %v2060_v50 = vmul.f32 %v5064_v14, %v5172_v29  ;;  %v2062_v28 = vmul.f32 %v5081_v6, %v5174_v2 }
0x1771   :  { %v2061_v49 = vadd.f32 %v5073_v42, %v2060_v50 }
0x1773   :  { %v5181_v53 = vpop.permute.xlu1 %2022  ;;  %v2063_v22 = vadd.f32 %v2062_v28, %v2061_v49 }
0x1774   :  { %6849 = vst [vmem:[#allocation134_spill] sm:$0xff] %v5181_v53  ;;  %v2064_v16 = vmul.f32 %v5088_v33, %v5181_v53 }
0x1776   :  { %v2065_v25 = vadd.f32 %v2064_v16, %v2063_v22 }
0x1778   :  { %v5185_v21 = vpop.permute.xlu1 %2029 }
0x1779   :  { %6850 = vst [vmem:[#allocation135_spill] sm:$0xff] %v5185_v21  ;;  %v2066_v51 = vmul.f32 %v5097_v44, %v5185_v21 }
0x177b   :  { %v2067_v29 = vadd.f32 %v2066_v51, %v2065_v25 }
0x177d   :  { %v2075_v57 = vadd.f32 %v2074_v39, %v2067_v29  ;;  %v2078_v50 = vpop.permute.xlu1 %2077 }
0x177e   :  { %v2080_v1 = vmul.f32 %v5110_v43, %v2078_v50 }
0x1780   :  { %v2081_v2 = vadd.f32 %v2080_v1, %v2075_v57 }
0x1782   :  { %3674 = vtanh.f32 %v2081_v2 }
0x178c   :  { %v3675_v59 = vpop.eup %3674 }
0x178d   :  { %v2089_v28 = vmul.f32 %v5116_v24, %v3675_v59  ;;  %v2083_v49 = vmul.f32 %v5122_v61, %v3675_v59  ;;  %v2095_v22 = vmul.f32 %v5130_v47, %v3675_v59  ;;  %v2101_v51 = vmul.f32 %v5137_v48, %v3675_v59 }
0x178f   :  { %v2090_v53 = vsel %vm165_vm1, %v2089_v28, 0.0  ;;  %v2084_v16 = vsel %vm165_vm1, %v2083_v49, 0.0  ;;  %v2096_v39 = vsel %vm165_vm1, %v2095_v22, 0.0  ;;  %v2102_v57 = vsel %vm165_vm1, %v2101_v51, 0.0 }
0x1790   :  { %2091 = vadd.xlane.f32.xlu0 %v2090_v53  ;;  %2085 = vadd.xlane.f32.xlu1 %v2084_v16  ;;  %v3851_v51 = vmov 81  }
0x1794   :  { %2097 = vadd.xlane.f32.xlu1 %v2096_v39  ;;  %v3850_v39 = vmov 80  }
0x1798   :  { %2103 = vadd.xlane.f32.xlu1 %v2102_v57 }
0x181d   :  { %v2092_v1 = vpop.xlane.xlu0 %2091  ;;  %v2086_v25 = vpop.xlane.xlu1 %2085 }
0x181e   :  { %v2093_v58 = vadd.f32 %v2092_v1, %v5151_v8  ;;  %v2087_v29 = vadd.f32 %v2086_v25, %v5154_v52 }
0x1820   :  { %v5202_v2 = vadd.f32 %v5148_v36, %v2093_v58  ;;  %v5205_v53 = vadd.f32 %v5148_v36, %v2087_v29 }
0x1821   :  { %v2098_v50 = vpop.xlane.xlu1 %2097 }
0x1822   :  { %6851 = vst [vmem:[#allocation136_spill] sm:$0xff] %v5202_v2  ;;  %6852 = vst [vmem:[#allocation137_spill] sm:$0xff] %v5205_v53  ;;  %v2099_v28 = vadd.f32 %v2098_v50, %v5160_v45  ;;  %2115 = vperm.xlu1 %3567, %v5202_v2   ;;  %2109 = vperm.xlu0 %3561, %v5205_v53  }
0x1824   :  { %v5211_v59 = vadd.f32 %v5148_v36, %v2099_v28 }
0x1825   :  { %v2104_v49 = vpop.xlane.xlu1 %2103 }
0x1826   :  { %6853 = vst [vmem:[#allocation138_spill] sm:$0xff] %v5211_v59  ;;  %v2105_v16 = vadd.f32 %v2104_v49, %v5166_v30  ;;  %3568 = vset.pattern.permute.xlu1 %v6739_v4  ;;  %3569 = vset.pattern.permute.xlu0 %v6741_v5 }
0x1827   :  { %2122 = vperm.xlu1 %3568, %v5211_v59  }
0x1828   :  { %v5218_v22 = vadd.f32 %v5148_v36, %v2105_v16 }
0x182a   :  { %6854 = vst [vmem:[#allocation139_spill] sm:$0xff] %v5218_v22  ;;  %2129 = vperm.xlu0 %3569, %v5218_v22  }
0x182b   :  { %3570 = vset.pattern.permute.xlu1 %v3850_v39 }
0x182c   :  { %2171 = vperm.xlu1 %3570, %v5000_v0  }
0x182e   :  { %3573 = vset.pattern.permute.xlu0 %v6746_v35 }
0x1830   :  { %3571 = vset.pattern.permute.xlu1 %v3851_v51 }
0x1831   :  { %2177 = vperm.xlu1 %3571, %v5000_v0  }
0x1835   :  { %3572 = vset.pattern.permute.xlu1 %v6731_v41 }
0x18a1   :  { %v5225_v57 = vpop.permute.xlu0 %2109  ;;  %v5227_v1 = vpop.permute.xlu1 %2115 }
0x18a2   :  { %6855 = vst [vmem:[#allocation140_spill] sm:$0xff] %v5225_v57  ;;  %6856 = vst [vmem:[#allocation141_spill] sm:$0xff] %v5227_v1  ;;  %v2160_v25 = vmul.f32 %v5064_v14, %v5225_v57  ;;  %v2162_v29 = vmul.f32 %v5081_v6, %v5227_v1 }
0x18a4   :  { %v2161_v58 = vadd.f32 %v5073_v42, %v2160_v25 }
0x18a6   :  { %v2163_v50 = vadd.f32 %v2162_v29, %v2161_v58  ;;  %v5234_v28 = vpop.permute.xlu1 %2122 }
0x18a7   :  { %6857 = vst [vmem:[#allocation142_spill] sm:$0xff] %v5234_v28  ;;  %v2164_v49 = vmul.f32 %v5088_v33, %v5234_v28 }
0x18a9   :  { %v2165_v16 = vadd.f32 %v2164_v49, %v2163_v50  ;;  %v5238_v39 = vpop.permute.xlu0 %2129 }
0x18aa   :  { %6858 = vst [vmem:[#allocation143_spill] sm:$0xff] %v5238_v39  ;;  %v2166_v51 = vmul.f32 %v5097_v44, %v5238_v39 }
0x18ab   :  { %v2172_v30 = vpop.permute.xlu1 %2171 }
0x18ac   :  { %v2167_v45 = vadd.f32 %v2166_v51, %v2165_v16  ;;  %v2174_v8 = vmul.f32 %v5104_v54, %v2172_v30 }
0x18ae   :  { %v2175_v52 = vadd.f32 %v2174_v8, %v2167_v45 }
0x18b0   :  { %v2178_v25 = vpop.permute.xlu1 %2177 }
0x18b1   :  { %v2180_v1 = vmul.f32 %v5110_v43, %v2178_v25 }
0x18b3   :  { %v2181_v58 = vadd.f32 %v2180_v1, %v2175_v52 }
0x18b5   :  { %3676 = vtanh.f32 %v2181_v58  ;;  %v3852_v58 = vmov 84  }
0x18bf   :  { %v3677_v29 = vpop.eup %3676 }
0x18c0   :  { %v2189_v57 = vmul.f32 %v5116_v24, %v3677_v29  ;;  %v2183_v50 = vmul.f32 %v5122_v61, %v3677_v29  ;;  %v2195_v39 = vmul.f32 %v5130_v47, %v3677_v29  ;;  %v2201_v8 = vmul.f32 %v5137_v48, %v3677_v29 }
0x18c2   :  { %v2190_v49 = vsel %vm165_vm1, %v2189_v57, 0.0  ;;  %v2184_v28 = vsel %vm165_vm1, %v2183_v50, 0.0  ;;  %v2196_v30 = vsel %vm165_vm1, %v2195_v39, 0.0  ;;  %v2202_v52 = vsel %vm165_vm1, %v2201_v8, 0.0 }
0x18c3   :  { %2191 = vadd.xlane.f32.xlu1 %v2190_v49  ;;  %2185 = vadd.xlane.f32.xlu0 %v2184_v28  ;;  %v3853_v8 = vmov 85  }
0x18c7   :  { %2197 = vadd.xlane.f32.xlu0 %v2196_v30 }
0x18cb   :  { %2203 = vadd.xlane.f32.xlu0 %v2202_v52  ;;  %v3854_v52 = vmov 88  }
0x1950   :  { %v2192_v45 = vpop.xlane.xlu1 %2191  ;;  %v2186_v1 = vpop.xlane.xlu0 %2185 }
0x1951   :  { %v2193_v16 = vadd.f32 %v2192_v45, %v5202_v2  ;;  %v2187_v57 = vadd.f32 %v2186_v1, %v5205_v53 }
0x1953   :  { %v5255_v51 = vadd.f32 %v5148_v36, %v2193_v16  ;;  %v5258_v25 = vadd.f32 %v5148_v36, %v2187_v57 }
0x1954   :  { %v2198_v28 = vpop.xlane.xlu0 %2197 }
0x1955   :  { %6859 = vst [vmem:[#allocation144_spill] sm:$0xff] %v5255_v51  ;;  %6860 = vst [vmem:[#allocation145_spill] sm:$0xff] %v5258_v25  ;;  %2215 = vperm.xlu0 %3573, %v5255_v51   ;;  %2209 = vperm.xlu1 %3572, %v5258_v25   ;;  %v2199_v39 = vadd.f32 %v2198_v28, %v5211_v59 }
0x1957   :  { %v5266_v50 = vadd.f32 %v5148_v36, %v2199_v39 }
0x1958   :  { %v2204_v29 = vpop.xlane.xlu0 %2203 }
0x1959   :  { %3574 = vset.pattern.permute.xlu1 %v3852_v58  ;;  %3578 = vset.pattern.permute.xlu0 %v6731_v41  ;;  %6861 = vst [vmem:[#allocation146_spill] sm:$0xff] %v5266_v50  ;;  %v2205_v49 = vadd.f32 %v2204_v29, %v5218_v22 }
0x195a   :  { %2271 = vperm.xlu1 %3574, %v5000_v0  }
0x195b   :  { %v5272_v30 = vadd.f32 %v5148_v36, %v2205_v49 }
0x195d   :  { %6862 = vst [vmem:[#allocation147_spill] sm:$0xff] %v5272_v30 }
0x195e   :  { %3575 = vset.pattern.permute.xlu1 %v6739_v4 }
0x195f   :  { %2222 = vperm.xlu1 %3575, %v5266_v50  }
0x1963   :  { %3576 = vset.pattern.permute.xlu1 %v6741_v5 }
0x1964   :  { %2229 = vperm.xlu1 %3576, %v5272_v30  }
0x1968   :  { %3577 = vset.pattern.permute.xlu1 %v3853_v8 }
0x1969   :  { %2277 = vperm.xlu1 %3577, %v5000_v0  }
0x196d   :  { %3579 = vset.pattern.permute.xlu1 %v3854_v52 }
0x19d4   :  { %v5277_v45 = vpop.permute.xlu1 %2209  ;;  %v5281_v57 = vpop.permute.xlu0 %2215 }
0x19d5   :  { %6863 = vst [vmem:[#allocation148_spill] sm:$0xff] %v5277_v45  ;;  %v2260_v16 = vmul.f32 %v5064_v14, %v5277_v45  ;;  %6864 = vst [vmem:[#allocation149_spill] sm:$0xff] %v5281_v57  ;;  %v2262_v58 = vmul.f32 %v5081_v6, %v5281_v57 }
0x19d7   :  { %v2261_v28 = vadd.f32 %v5073_v42, %v2260_v16 }
0x19d9   :  { %v2272_v1 = vpop.permute.xlu1 %2271  ;;  %v2263_v49 = vadd.f32 %v2262_v58, %v2261_v28 }
0x19da   :  { %v2274_v59 = vmul.f32 %v5104_v54, %v2272_v1 }
0x19de   :  { %v5284_v39 = vpop.permute.xlu1 %2222 }
0x19df   :  { %6865 = vst [vmem:[#allocation150_spill] sm:$0xff] %v5284_v39  ;;  %v2264_v29 = vmul.f32 %v5088_v33, %v5284_v39 }
0x19e1   :  { %v2265_v52 = vadd.f32 %v2264_v29, %v2263_v49 }
0x19e3   :  { %v5290_v8 = vpop.permute.xlu1 %2229 }
0x19e4   :  { %6866 = vst [vmem:[#allocation151_spill] sm:$0xff] %v5290_v8  ;;  %v2266_v22 = vmul.f32 %v5097_v44, %v5290_v8 }
0x19e6   :  { %v2267_v2 = vadd.f32 %v2266_v22, %v2265_v52 }
0x19e8   :  { %v2278_v53 = vpop.permute.xlu1 %2277  ;;  %v2275_v16 = vadd.f32 %v2274_v59, %v2267_v2 }
0x19e9   :  { %v2280_v45 = vmul.f32 %v5110_v43, %v2278_v53 }
0x19eb   :  { %v2281_v21 = vadd.f32 %v2280_v45, %v2275_v16 }
0x19ed   :  { %3678 = vtanh.f32 %v2281_v21 }
0x19f7   :  { %v3679_v57 = vpop.eup %3678 }
0x19f8   :  { %v2289_v11 = vmul.f32 %v5116_v24, %v3679_v57  ;;  %v2283_v28 = vmul.f32 %v5122_v61, %v3679_v57  ;;  %v2295_v49 = vmul.f32 %v5130_v47, %v3679_v57  ;;  %v2301_v2 = vmul.f32 %v5137_v48, %v3679_v57 }
0x19fa   :  { %v2290_v58 = vsel %vm165_vm1, %v2289_v11, 0.0  ;;  %v2284_v29 = vsel %vm165_vm1, %v2283_v28, 0.0  ;;  %v2296_v22 = vsel %vm165_vm1, %v2295_v49, 0.0  ;;  %v2302_v21 = vsel %vm165_vm1, %v2301_v2, 0.0 }
0x19fb   :  { %2291 = vadd.xlane.f32.xlu0 %v2290_v58  ;;  %2285 = vadd.xlane.f32.xlu1 %v2284_v29 }
0x19ff   :  { %2297 = vadd.xlane.f32.xlu1 %v2296_v22  ;;  %v3855_v22 = vmov 89  }
0x1a03   :  { %2303 = vadd.xlane.f32.xlu1 %v2302_v21 }
0x1a14   :  { %2371 = vperm.xlu1 %3579, %v5000_v0  }
0x1a18   :  { %3580 = vset.pattern.permute.xlu1 %v6746_v35 }
0x1a88   :  { %v2292_v53 = vpop.xlane.xlu0 %2291  ;;  %v2286_v11 = vpop.xlane.xlu1 %2285 }
0x1a89   :  { %v2293_v59 = vadd.f32 %v2292_v53, %v5255_v51  ;;  %v2287_v45 = vadd.f32 %v2286_v11, %v5258_v25 }
0x1a8b   :  { %v5309_v1 = vadd.f32 %v5148_v36, %v2293_v59  ;;  %v5312_v52 = vadd.f32 %v5148_v36, %v2287_v45 }
0x1a8c   :  { %v2298_v57 = vpop.xlane.xlu1 %2297 }
0x1a8d   :  { %6867 = vst [vmem:[#allocation152_spill] sm:$0xff] %v5309_v1  ;;  %6868 = vst [vmem:[#allocation153_spill] sm:$0xff] %v5312_v52  ;;  %v2299_v16 = vadd.f32 %v2298_v57, %v5266_v50  ;;  %2315 = vperm.xlu1 %3580, %v5309_v1   ;;  %2309 = vperm.xlu0 %3578, %v5312_v52  }
0x1a8f   :  { %v5318_v28 = vadd.f32 %v5148_v36, %v2299_v16 }
0x1a90   :  { %v2304_v58 = vpop.xlane.xlu1 %2303 }
0x1a91   :  { %6869 = vst [vmem:[#allocation154_spill] sm:$0xff] %v5318_v28  ;;  %v2305_v29 = vadd.f32 %v2304_v58, %v5272_v30  ;;  %3581 = vset.pattern.permute.xlu1 %v6739_v4 }
0x1a92   :  { %2322 = vperm.xlu1 %3581, %v5318_v28  }
0x1a93   :  { %v5324_v49 = vadd.f32 %v5148_v36, %v2305_v29 }
0x1a94   :  { %v2372_v2 = vpop.permute.xlu1 %2371 }
0x1a95   :  { %6870 = vst [vmem:[#allocation155_spill] sm:$0xff] %v5324_v49  ;;  %v2374_v50 = vmul.f32 %v5104_v54, %v2372_v2 }
0x1a96   :  { %3582 = vset.pattern.permute.xlu1 %v6741_v5 }
0x1a97   :  { %2329 = vperm.xlu1 %3582, %v5324_v49  }
0x1a9b   :  { %3583 = vset.pattern.permute.xlu1 %v3855_v22 }
0x1a9c   :  { %2377 = vperm.xlu1 %3583, %v5000_v0  }
0x1aa0   :  { %3584 = vset.pattern.permute.xlu1 %v6746_v35 }
0x1b0c   :  { %v5330_v21 = vpop.permute.xlu0 %2309  ;;  %v5332_v53 = vpop.permute.xlu1 %2315 }
0x1b0d   :  { %6871 = vst [vmem:[#allocation156_spill] sm:$0xff] %v5330_v21  ;;  %6872 = vst [vmem:[#allocation157_spill] sm:$0xff] %v5332_v53  ;;  %v2360_v11 = vmul.f32 %v5064_v14, %v5330_v21  ;;  %v2362_v45 = vmul.f32 %v5081_v6, %v5332_v53 }
0x1b0f   :  { %v2361_v59 = vadd.f32 %v5073_v42, %v2360_v11 }
0x1b11   :  { %v5339_v57 = vpop.permute.xlu1 %2322  ;;  %v2363_v16 = vadd.f32 %v2362_v45, %v2361_v59 }
0x1b12   :  { %6873 = vst [vmem:[#allocation158_spill] sm:$0xff] %v5339_v57  ;;  %v2364_v58 = vmul.f32 %v5088_v33, %v5339_v57 }
0x1b14   :  { %v2365_v22 = vadd.f32 %v2364_v58, %v2363_v16 }
0x1b16   :  { %v5343_v29 = vpop.permute.xlu1 %2329 }
0x1b17   :  { %6874 = vst [vmem:[#allocation159_spill] sm:$0xff] %v5343_v29  ;;  %v2366_v30 = vmul.f32 %v5097_v44, %v5343_v29 }
0x1b19   :  { %v2367_v51 = vadd.f32 %v2366_v30, %v2365_v22 }
0x1b1b   :  { %v2375_v25 = vadd.f32 %v2374_v50, %v2367_v51  ;;  %v2378_v11 = vpop.permute.xlu1 %2377 }
0x1b1c   :  { %v2380_v21 = vmul.f32 %v5110_v43, %v2378_v11 }
0x1b1e   :  { %v2381_v53 = vadd.f32 %v2380_v21, %v2375_v25 }
0x1b20   :  { %3680 = vtanh.f32 %v2381_v53 }
0x1b2a   :  { %v3681_v8 = vpop.eup %3680 }
0x1b2b   :  { %v2389_v59 = vmul.f32 %v5116_v24, %v3681_v8  ;;  %v2383_v45 = vmul.f32 %v5122_v61, %v3681_v8  ;;  %v2395_v58 = vmul.f32 %v5130_v47, %v3681_v8  ;;  %v2401_v50 = vmul.f32 %v5137_v48, %v3681_v8 }
0x1b2d   :  { %v2390_v57 = vsel %vm165_vm1, %v2389_v59, 0.0  ;;  %v2384_v16 = vsel %vm165_vm1, %v2383_v45, 0.0  ;;  %v2396_v51 = vsel %vm165_vm1, %v2395_v58, 0.0  ;;  %v2402_v25 = vsel %vm165_vm1, %v2401_v50, 0.0 }
0x1b2e   :  { %2391 = vadd.xlane.f32.xlu0 %v2390_v57  ;;  %2385 = vadd.xlane.f32.xlu1 %v2384_v16  ;;  %v3857_v50 = vmov 93  }
0x1b32   :  { %2397 = vadd.xlane.f32.xlu1 %v2396_v51  ;;  %v3856_v51 = vmov 92  }
0x1b36   :  { %2403 = vadd.xlane.f32.xlu1 %v2402_v25 }
0x1bbb   :  { %v2392_v30 = vpop.xlane.xlu0 %2391  ;;  %v2386_v2 = vpop.xlane.xlu1 %2385 }
0x1bbc   :  { %v2393_v21 = vadd.f32 %v2392_v30, %v5309_v1  ;;  %v2387_v53 = vadd.f32 %v2386_v2, %v5312_v52 }
0x1bbe   :  { %v5360_v22 = vadd.f32 %v5148_v36, %v2393_v21  ;;  %v5363_v57 = vadd.f32 %v5148_v36, %v2387_v53 }
0x1bbf   :  { %v2398_v11 = vpop.xlane.xlu1 %2397 }
0x1bc0   :  { %6875 = vst [vmem:[#allocation160_spill] sm:$0xff] %v5360_v22  ;;  %6876 = vst [vmem:[#allocation161_spill] sm:$0xff] %v5363_v57  ;;  %v2399_v59 = vadd.f32 %v2398_v11, %v5318_v28  ;;  %2415 = vperm.xlu1 %3584, %v5360_v22   ;;  %2409 = vperm.xlu0 %3578, %v5363_v57  }
0x1bc2   :  { %v5369_v8 = vadd.f32 %v5148_v36, %v2399_v59 }
0x1bc3   :  { %v2404_v45 = vpop.xlane.xlu1 %2403 }
0x1bc4   :  { %6877 = vst [vmem:[#allocation162_spill] sm:$0xff] %v5369_v8  ;;  %v2405_v16 = vadd.f32 %v2404_v45, %v5324_v49  ;;  %3585 = vset.pattern.permute.xlu1 %v6739_v4  ;;  %3586 = vset.pattern.permute.xlu0 %v6741_v5 }
0x1bc5   :  { %2422 = vperm.xlu1 %3585, %v5369_v8  }
0x1bc6   :  { %v5376_v58 = vadd.f32 %v5148_v36, %v2405_v16 }
0x1bc8   :  { %6878 = vst [vmem:[#allocation163_spill] sm:$0xff] %v5376_v58  ;;  %2429 = vperm.xlu0 %3586, %v5376_v58  }
0x1bc9   :  { %3587 = vset.pattern.permute.xlu1 %v3856_v51 }
0x1bca   :  { %2471 = vperm.xlu1 %3587, %v5000_v0  }
0x1bcc   :  { %3590 = vset.pattern.permute.xlu0 %v6746_v35 }
0x1bce   :  { %3588 = vset.pattern.permute.xlu1 %v3857_v50 }
0x1bcf   :  { %2477 = vperm.xlu1 %3588, %v5000_v0  }
0x1bd3   :  { %3589 = vset.pattern.permute.xlu1 %v6731_v41 }
0x1c3f   :  { %v5383_v25 = vpop.permute.xlu0 %2409  ;;  %v5385_v30 = vpop.permute.xlu1 %2415 }
0x1c40   :  { %6879 = vst [vmem:[#allocation164_spill] sm:$0xff] %v5383_v25  ;;  %6880 = vst [vmem:[#allocation165_spill] sm:$0xff] %v5385_v30  ;;  %v2460_v2 = vmul.f32 %v5064_v14, %v5383_v25  ;;  %v2462_v53 = vmul.f32 %v5081_v6, %v5385_v30 }
0x1c42   :  { %v2461_v21 = vadd.f32 %v5073_v42, %v2460_v2 }
0x1c44   :  { %v2463_v11 = vadd.f32 %v2462_v53, %v2461_v21  ;;  %v5392_v59 = vpop.permute.xlu1 %2422 }
0x1c45   :  { %6881 = vst [vmem:[#allocation166_spill] sm:$0xff] %v5392_v59  ;;  %v2464_v45 = vmul.f32 %v5088_v33, %v5392_v59 }
0x1c47   :  { %v2465_v16 = vadd.f32 %v2464_v45, %v2463_v11  ;;  %v5396_v51 = vpop.permute.xlu0 %2429 }
0x1c48   :  { %6882 = vst [vmem:[#allocation167_spill] sm:$0xff] %v5396_v51  ;;  %v2466_v50 = vmul.f32 %v5097_v44, %v5396_v51 }
0x1c49   :  { %v2472_v28 = vpop.permute.xlu1 %2471 }
0x1c4a   :  { %v2467_v52 = vadd.f32 %v2466_v50, %v2465_v16  ;;  %v2474_v25 = vmul.f32 %v5104_v54, %v2472_v28 }
0x1c4c   :  { %v2475_v49 = vadd.f32 %v2474_v25, %v2467_v52 }
0x1c4e   :  { %v2478_v2 = vpop.permute.xlu1 %2477 }
0x1c4f   :  { %v2480_v30 = vmul.f32 %v5110_v43, %v2478_v2 }
0x1c51   :  { %v2481_v21 = vadd.f32 %v2480_v30, %v2475_v49 }
0x1c53   :  { %3682 = vtanh.f32 %v2481_v21  ;;  %v3858_v21 = vmov 96  }
0x1c5d   :  { %v3683_v53 = vpop.eup %3682 }
0x1c5e   :  { %v2489_v1 = vmul.f32 %v5116_v24, %v3683_v53  ;;  %v2483_v11 = vmul.f32 %v5122_v61, %v3683_v53  ;;  %v2495_v51 = vmul.f32 %v5130_v47, %v3683_v53  ;;  %v2501_v52 = vmul.f32 %v5137_v48, %v3683_v53 }
0x1c60   :  { %v2490_v45 = vsel %vm165_vm1, %v2489_v1, 0.0  ;;  %v2484_v59 = vsel %vm165_vm1, %v2483_v11, 0.0  ;;  %v2496_v28 = vsel %vm165_vm1, %v2495_v51, 0.0  ;;  %v2502_v49 = vsel %vm165_vm1, %v2501_v52, 0.0 }
0x1c61   :  { %2491 = vadd.xlane.f32.xlu1 %v2490_v45  ;;  %2485 = vadd.xlane.f32.xlu0 %v2484_v59  ;;  %v3859_v52 = vmov 97  }
0x1c65   :  { %2497 = vadd.xlane.f32.xlu0 %v2496_v28 }
0x1c69   :  { %2503 = vadd.xlane.f32.xlu0 %v2502_v49  ;;  %v3860_v49 = vmov 100  }
0x1cee   :  { %v2492_v25 = vpop.xlane.xlu1 %2491  ;;  %v2486_v30 = vpop.xlane.xlu0 %2485 }
0x1cef   :  { %v2493_v16 = vadd.f32 %v2492_v25, %v5360_v22  ;;  %v2487_v1 = vadd.f32 %v2486_v30, %v5363_v57 }
0x1cf1   :  { %v5413_v50 = vadd.f32 %v5148_v36, %v2493_v16  ;;  %v5416_v2 = vadd.f32 %v5148_v36, %v2487_v1 }
0x1cf2   :  { %v2498_v59 = vpop.xlane.xlu0 %2497 }
0x1cf3   :  { %6883 = vst [vmem:[#allocation168_spill] sm:$0xff] %v5413_v50  ;;  %6884 = vst [vmem:[#allocation169_spill] sm:$0xff] %v5416_v2  ;;  %2515 = vperm.xlu0 %3590, %v5413_v50   ;;  %2509 = vperm.xlu1 %3589, %v5416_v2   ;;  %v2499_v51 = vadd.f32 %v2498_v59, %v5369_v8 }
0x1cf5   :  { %v5424_v11 = vadd.f32 %v5148_v36, %v2499_v51 }
0x1cf6   :  { %v2504_v53 = vpop.xlane.xlu0 %2503 }
0x1cf7   :  { %3591 = vset.pattern.permute.xlu1 %v3858_v21  ;;  %3595 = vset.pattern.permute.xlu0 %v6731_v41  ;;  %6885 = vst [vmem:[#allocation170_spill] sm:$0xff] %v5424_v11  ;;  %v2505_v45 = vadd.f32 %v2504_v53, %v5376_v58 }
0x1cf8   :  { %2571 = vperm.xlu1 %3591, %v5000_v0  }
0x1cf9   :  { %v5430_v28 = vadd.f32 %v5148_v36, %v2505_v45 }
0x1cfb   :  { %6886 = vst [vmem:[#allocation171_spill] sm:$0xff] %v5430_v28 }
0x1cfc   :  { %3592 = vset.pattern.permute.xlu1 %v6739_v4 }
0x1cfd   :  { %2522 = vperm.xlu1 %3592, %v5424_v11  }
0x1d01   :  { %3593 = vset.pattern.permute.xlu1 %v6741_v5 }
0x1d02   :  { %2529 = vperm.xlu1 %3593, %v5430_v28  }
0x1d06   :  { %3594 = vset.pattern.permute.xlu1 %v3859_v52 }
0x1d07   :  { %2577 = vperm.xlu1 %3594, %v5000_v0  }
0x1d0b   :  { %3596 = vset.pattern.permute.xlu1 %v3860_v49 }
0x1d72   :  { %v5435_v25 = vpop.permute.xlu1 %2509  ;;  %v5439_v1 = vpop.permute.xlu0 %2515 }
0x1d73   :  { %6887 = vst [vmem:[#allocation172_spill] sm:$0xff] %v5435_v25  ;;  %v2560_v16 = vmul.f32 %v5064_v14, %v5435_v25  ;;  %6888 = vst [vmem:[#allocation173_spill] sm:$0xff] %v5439_v1  ;;  %v2562_v21 = vmul.f32 %v5081_v6, %v5439_v1 }
0x1d75   :  { %v2561_v59 = vadd.f32 %v5073_v42, %v2560_v16 }
0x1d77   :  { %v2572_v30 = vpop.permute.xlu1 %2571  ;;  %v2563_v45 = vadd.f32 %v2562_v21, %v2561_v59 }
0x1d78   :  { %v2574_v57 = vmul.f32 %v5104_v54, %v2572_v30 }
0x1d7c   :  { %v5442_v51 = vpop.permute.xlu1 %2522 }
0x1d7d   :  { %6889 = vst [vmem:[#allocation174_spill] sm:$0xff] %v5442_v51  ;;  %v2564_v53 = vmul.f32 %v5088_v33, %v5442_v51 }
0x1d7f   :  { %v2565_v49 = vadd.f32 %v2564_v53, %v2563_v45 }
0x1d81   :  { %v5448_v52 = vpop.permute.xlu1 %2529 }
0x1d82   :  { %6890 = vst [vmem:[#allocation175_spill] sm:$0xff] %v5448_v52  ;;  %v2566_v8 = vmul.f32 %v5097_v44, %v5448_v52 }
0x1d84   :  { %v2567_v25 = vadd.f32 %v2566_v8, %v2565_v49 }
0x1d86   :  { %v2578_v58 = vpop.permute.xlu1 %2577  ;;  %v2575_v16 = vadd.f32 %v2574_v57, %v2567_v25 }
0x1d87   :  { %v2580_v22 = vmul.f32 %v5110_v43, %v2578_v58 }
0x1d89   :  { %v2581_v29 = vadd.f32 %v2580_v22, %v2575_v16 }
0x1d8b   :  { %3684 = vtanh.f32 %v2581_v29 }
0x1d95   :  { %v3685_v1 = vpop.eup %3684 }
0x1d96   :  { %v2589_v39 = vmul.f32 %v5116_v24, %v3685_v1  ;;  %v2583_v59 = vmul.f32 %v5122_v61, %v3685_v1  ;;  %v2595_v45 = vmul.f32 %v5130_v47, %v3685_v1  ;;  %v2601_v57 = vmul.f32 %v5137_v48, %v3685_v1 }
0x1d98   :  { %v2590_v21 = vsel %vm165_vm1, %v2589_v39, 0.0  ;;  %v2584_v53 = vsel %vm165_vm1, %v2583_v59, 0.0  ;;  %v2596_v8 = vsel %vm165_vm1, %v2595_v45, 0.0  ;;  %v2602_v29 = vsel %vm165_vm1, %v2601_v57, 0.0 }
0x1d99   :  { %2591 = vadd.xlane.f32.xlu0 %v2590_v21  ;;  %2585 = vadd.xlane.f32.xlu1 %v2584_v53 }
0x1d9d   :  { %2597 = vadd.xlane.f32.xlu1 %v2596_v8  ;;  %v3861_v8 = vmov 101  }
0x1da1   :  { %2603 = vadd.xlane.f32.xlu1 %v2602_v29 }
0x1db2   :  { %2671 = vperm.xlu1 %3596, %v5000_v0  }
0x1db6   :  { %3597 = vset.pattern.permute.xlu1 %v6746_v35 }
0x1e26   :  { %v2592_v22 = vpop.xlane.xlu0 %2591  ;;  %v2586_v39 = vpop.xlane.xlu1 %2585 }
0x1e27   :  { %v2593_v58 = vadd.f32 %v2592_v22, %v5413_v50  ;;  %v2587_v25 = vadd.f32 %v2586_v39, %v5416_v2 }
0x1e29   :  { %v5467_v30 = vadd.f32 %v5148_v36, %v2593_v58  ;;  %v5470_v49 = vadd.f32 %v5148_v36, %v2587_v25 }
0x1e2a   :  { %v2598_v1 = vpop.xlane.xlu1 %2597 }
0x1e2b   :  { %6891 = vst [vmem:[#allocation176_spill] sm:$0xff] %v5470_v49  ;;  %v2599_v16 = vadd.f32 %v2598_v1, %v5424_v11  ;;  %2615 = vperm.xlu1 %3597, %v5467_v30   ;;  %2609 = vperm.xlu0 %3595, %v5470_v49  }
0x1e2d   :  { %v5476_v59 = vadd.f32 %v5148_v36, %v2599_v16 }
0x1e2e   :  { %v2604_v21 = vpop.xlane.xlu1 %2603 }
0x1e2f   :  { %6892 = vst [vmem:[#allocation177_spill] sm:$0xff] %v5476_v59  ;;  %v2605_v53 = vadd.f32 %v2604_v21, %v5430_v28  ;;  %3598 = vset.pattern.permute.xlu1 %v6739_v4 }
0x1e30   :  { %2622 = vperm.xlu1 %3598, %v5476_v59  }
0x1e31   :  { %v5482_v45 = vadd.f32 %v5148_v36, %v2605_v53 }
0x1e32   :  { %v2672_v57 = vpop.permute.xlu1 %2671 }
0x1e33   :  { %6893 = vst [vmem:[#allocation178_spill] sm:$0xff] %v5482_v45  ;;  %v2674_v28 = vmul.f32 %v5104_v54, %v2672_v57 }
0x1e34   :  { %3599 = vset.pattern.permute.xlu1 %v6741_v5 }
0x1e35   :  { %2629 = vperm.xlu1 %3599, %v5482_v45  }
0x1e39   :  { %3600 = vset.pattern.permute.xlu1 %v3861_v8 }
0x1e3a   :  { %2677 = vperm.xlu1 %3600, %v5000_v0  }
0x1e3e   :  { %3601 = vset.pattern.permute.xlu1 %v6746_v35 }
0x1eaa   :  { %v5488_v29 = vpop.permute.xlu0 %2609  ;;  %v5490_v22 = vpop.permute.xlu1 %2615 }
0x1eab   :  { %v2660_v39 = vmul.f32 %v5064_v14, %v5488_v29  ;;  %v2662_v25 = vmul.f32 %v5081_v6, %v5490_v22 }
0x1ead   :  { %v2661_v58 = vadd.f32 %v5073_v42, %v2660_v39 }
0x1eaf   :  { %v5497_v1 = vpop.permute.xlu1 %2622  ;;  %v2663_v16 = vadd.f32 %v2662_v25, %v2661_v58 }
0x1eb0   :  { %6894 = vst [vmem:[#allocation179_spill] sm:$0xff] %v5497_v1  ;;  %v2664_v0 = vmul.f32 %v5088_v33, %v5497_v1 }
0x1eb2   :  { %v2665_v53 = vadd.f32 %v2664_v0, %v2663_v16 }
0x1eb4   :  { %v5501_v21 = vpop.permute.xlu1 %2629 }
0x1eb5   :  { %v2666_v8 = vmul.f32 %v5097_v44, %v5501_v21 }
0x1eb7   :  { %v2667_v50 = vadd.f32 %v2666_v8, %v2665_v53 }
0x1eb9   :  { %v2675_v52 = vadd.f32 %v2674_v28, %v2667_v50  ;;  %v2678_v39 = vpop.permute.xlu1 %2677 }
0x1eba   :  { %v2680_v51 = vmul.f32 %v5110_v43, %v2678_v39 }
0x1ebc   :  { %v2681_v11 = vadd.f32 %v2680_v51, %v2675_v52 }
0x1ebe   :  { %3686 = vtanh.f32 %v2681_v11 }
0x1ec8   :  { %v3687_v2 = vpop.eup %3686 }
0x1ec9   :  { %v2689_v58 = vmul.f32 %v5116_v24, %v3687_v2  ;;  %v2683_v25 = vmul.f32 %v5122_v61, %v3687_v2  ;;  %v2695_v0 = vmul.f32 %v5130_v47, %v3687_v2  ;;  %v2701_v28 = vmul.f32 %v5137_v48, %v3687_v2 }
0x1ecb   :  { %v2690_v1 = vsel %vm165_vm1, %v2689_v58, 0.0  ;;  %v2684_v16 = vsel %vm165_vm1, %v2683_v25, 0.0  ;;  %v2696_v50 = vsel %vm165_vm1, %v2695_v0, 0.0  ;;  %v2702_v11 = vsel %vm165_vm1, %v2701_v28, 0.0 }
0x1ecc   :  { %2691 = vadd.xlane.f32.xlu0 %v2690_v1  ;;  %2685 = vadd.xlane.f32.xlu1 %v2684_v16  ;;  %v3862_v28 = vmov 104  }
0x1ed0   :  { %2697 = vadd.xlane.f32.xlu1 %v2696_v50  ;;  %v5539_v50 = vld [vmem:[%s6519_s0] sm:$0xff] }
0x1ed4   :  { %2703 = vadd.xlane.f32.xlu1 %v2702_v11  ;;  %v3863_v11 = vmov 105  }
0x1f59   :  { %v2692_v51 = vpop.xlane.xlu0 %2691  ;;  %v2686_v52 = vpop.xlane.xlu1 %2685 }
0x1f5a   :  { %v2693_v57 = vadd.f32 %v2692_v51, %v5467_v30  ;;  %v2687_v53 = vadd.f32 %v2686_v52, %v5470_v49 }
0x1f5c   :  { %v5518_v8 = vadd.f32 %v5148_v36, %v2693_v57  ;;  %v5521_v1 = vadd.f32 %v5148_v36, %v2687_v53 }
0x1f5d   :  { %v2698_v39 = vpop.xlane.xlu1 %2697 }
0x1f5e   :  { %6895 = vst [vmem:[#allocation180_spill] sm:$0xff] %v5518_v8  ;;  %v2699_v58 = vadd.f32 %v2698_v39, %v5476_v59  ;;  %2715 = vperm.xlu1 %3601, %v5518_v8   ;;  %2709 = vperm.xlu0 %3595, %v5521_v1  }
0x1f60   :  { %v5527_v2 = vadd.f32 %v5148_v36, %v2699_v58 }
0x1f61   :  { %v2704_v25 = vpop.xlane.xlu1 %2703 }
0x1f62   :  { %6896 = vst [vmem:[#allocation181_spill] sm:$0xff] %v5527_v2  ;;  %v2705_v16 = vadd.f32 %v2704_v25, %v5482_v45  ;;  %3602 = vset.pattern.permute.xlu1 %v6739_v4  ;;  %3603 = vset.pattern.permute.xlu0 %v6741_v5 }
0x1f63   :  { %2722 = vperm.xlu1 %3602, %v5527_v2  }
0x1f64   :  { %v5534_v0 = vadd.f32 %v5148_v36, %v2705_v16 }
0x1f66   :  { %6897 = vst [vmem:[#allocation182_spill] sm:$0xff] %v5534_v0  ;;  %2729 = vperm.xlu0 %3603, %v5534_v0  }
0x1f67   :  { %3604 = vset.pattern.permute.xlu1 %v3862_v28 }
0x1f68   :  { %2771 = vperm.xlu1 %3604, %v5539_v50  }
0x1f6a   :  { %3607 = vset.pattern.permute.xlu0 %v6746_v35 }
0x1f6c   :  { %3605 = vset.pattern.permute.xlu1 %v3863_v11 }
0x1f6d   :  { %2777 = vperm.xlu1 %3605, %v5539_v50  }
0x1f71   :  { %3606 = vset.pattern.permute.xlu1 %v6731_v41 }
0x1fdd   :  { %v5546_v51 = vpop.permute.xlu0 %2709  ;;  %v5548_v52 = vpop.permute.xlu1 %2715 }
0x1fde   :  { %6898 = vst [vmem:[#allocation183_spill] sm:$0xff] %v5548_v52  ;;  %v2760_v57 = vmul.f32 %v5064_v14, %v5546_v51  ;;  %v2762_v39 = vmul.f32 %v5081_v6, %v5548_v52 }
0x1fe0   :  { %v2761_v53 = vadd.f32 %v5073_v42, %v2760_v57 }
0x1fe2   :  { %v2763_v58 = vadd.f32 %v2762_v39, %v2761_v53  ;;  %v5555_v25 = vpop.permute.xlu1 %2722 }
0x1fe3   :  { %v2764_v16 = vmul.f32 %v5088_v33, %v5555_v25 }
0x1fe5   :  { %v2765_v28 = vadd.f32 %v2764_v16, %v2763_v58  ;;  %v5559_v11 = vpop.permute.xlu0 %2729 }
0x1fe6   :  { %v2766_v59 = vmul.f32 %v5097_v44, %v5559_v11 }
0x1fe7   :  { %v2772_v49 = vpop.permute.xlu1 %2771 }
0x1fe8   :  { %v2767_v45 = vadd.f32 %v2766_v59, %v2765_v28  ;;  %v2774_v14 = vmul.f32 %v5104_v54, %v2772_v49 }
0x1fea   :  { %v2775_v57 = vadd.f32 %v2774_v14, %v2767_v45  ;;  %v3864_v14 = vmov 108  }
0x1fec   :  { %v2778_v42 = vpop.permute.xlu1 %2777 }
0x1fed   :  { %v2780_v6 = vmul.f32 %v5110_v43, %v2778_v42 }
0x1fef   :  { %v2781_v53 = vadd.f32 %v2780_v6, %v2775_v57 }
0x1ff1   :  { %3688 = vtanh.f32 %v2781_v53 }
0x1ffb   :  { %v3689_v39 = vpop.eup %3688 }
0x1ffc   :  { %v2789_v52 = vmul.f32 %v5116_v24, %v3689_v39  ;;  %v2783_v33 = vmul.f32 %v5122_v61, %v3689_v39  ;;  %v2795_v44 = vmul.f32 %v5130_v47, %v3689_v39  ;;  %v2801_v49 = vmul.f32 %v5137_v48, %v3689_v39 }
0x1ffd   :  { %v3865_v39 = vmov 109  }
0x1ffe   :  { %v2790_v58 = vsel %vm165_vm1, %v2789_v52, 0.0  ;;  %v2784_v16 = vsel %vm165_vm1, %v2783_v33, 0.0  ;;  %v2796_v54 = vsel %vm165_vm1, %v2795_v44, 0.0  ;;  %v2802_v43 = vsel %vm165_vm1, %v2801_v49, 0.0  ;;  %v5603_v44 = vld [vmem:[%s6521_s2] ss:$0 sm:$0xff] }
0x1fff   :  { %2791 = vadd.xlane.f32.xlu1 %v2790_v58  ;;  %2785 = vadd.xlane.f32.xlu0 %v2784_v16  ;;  %v3866_v33 = vmov 112   ;;  %v5612_v49 = vld [vmem:[%s6523_s4] ss:$0 sm:$0xff] }
0x2003   :  { %2797 = vadd.xlane.f32.xlu0 %v2796_v54 }
0x2007   :  { %2803 = vadd.xlane.f32.xlu0 %v2802_v43 }
0x208c   :  { %v2792_v59 = vpop.xlane.xlu1 %2791  ;;  %v2786_v24 = vpop.xlane.xlu0 %2785 }
0x208d   :  { %v2793_v61 = vadd.f32 %v2792_v59, %v5518_v8  ;;  %v2787_v45 = vadd.f32 %v2786_v24, %v5521_v1  ;;  %v5620_v24 = vld [vmem:[%s6521_s2 + $0x1] ss:$0 sm:$0xff] }
0x208f   :  { %v5576_v52 = vadd.f32 %v5148_v36, %v2793_v61  ;;  %v5579_v47 = vadd.f32 %v5148_v36, %v2787_v45  ;;  %v5627_v45 = vld [vmem:[%s6521_s2 + $0x2] ss:$0 sm:$0xff] }
0x2090   :  { %v2798_v28 = vpop.xlane.xlu0 %2797 }
0x2091   :  { %6899 = vst [vmem:[#allocation184_spill] sm:$0xff] %v5576_v52  ;;  %6900 = vst [vmem:[#allocation185_spill] sm:$0xff] %v5579_v47  ;;  %2815 = vperm.xlu0 %3607, %v5576_v52   ;;  %2809 = vperm.xlu1 %3606, %v5579_v47   ;;  %v2799_v48 = vadd.f32 %v2798_v28, %v5527_v2 }
0x2093   :  { %v5587_v57 = vadd.f32 %v5148_v36, %v2799_v48 }
0x2094   :  { %v2804_v42 = vpop.xlane.xlu0 %2803 }
0x2095   :  { %3608 = vset.pattern.permute.xlu1 %v3864_v14  ;;  %3612 = vset.pattern.permute.xlu0 %v6731_v41  ;;  %6901 = vst [vmem:[#allocation186_spill] sm:$0xff] %v5587_v57  ;;  %v2805_v6 = vadd.f32 %v2804_v42, %v5534_v0 }
0x2096   :  { %2871 = vperm.xlu1 %3608, %v5539_v50  }
0x2097   :  { %v5593_v53 = vadd.f32 %v5148_v36, %v2805_v6  ;;  %v5636_v6 = vld [vmem:[%s6521_s2 + $0x3] ss:$0 sm:$0xff] }
0x2099   :  { %6902 = vst [vmem:[#allocation187_spill] sm:$0xff] %v5593_v53 }
0x209a   :  { %3609 = vset.pattern.permute.xlu1 %v6739_v4 }
0x209b   :  { %2822 = vperm.xlu1 %3609, %v5587_v57  }
0x209f   :  { %3610 = vset.pattern.permute.xlu1 %v6741_v5 }
0x20a0   :  { %2829 = vperm.xlu1 %3610, %v5593_v53  }
0x20a4   :  { %3611 = vset.pattern.permute.xlu1 %v3865_v39 }
0x20a5   :  { %2877 = vperm.xlu1 %3611, %v5539_v50  }
0x20a9   :  { %3613 = vset.pattern.permute.xlu1 %v3866_v33  ;;  %v5643_v33 = vld [vmem:[%s6522_s3] ss:$0 sm:$0xff] }
0x2110   :  { %v5598_v58 = vpop.permute.xlu1 %2809  ;;  %v5607_v54 = vpop.permute.xlu0 %2815 }
0x2111   :  { %v2860_v36 = vmul.f32 %v5603_v44, %v5598_v58  ;;  %v2862_v61 = vmul.f32 %v5620_v24, %v5607_v54 }
0x2113   :  { %v2861_v43 = vadd.f32 %v5612_v49, %v2860_v36 }
0x2115   :  { %v2872_v16 = vpop.permute.xlu1 %2871  ;;  %v2863_v48 = vadd.f32 %v2862_v61, %v2861_v43 }
0x2116   :  { %v2874_v36 = vmul.f32 %v5643_v33, %v2872_v16 }
0x211a   :  { %v5615_v59 = vpop.permute.xlu1 %2822 }
0x211b   :  { %6903 = vst [vmem:[#allocation188_spill] sm:$0xff] %v5615_v59  ;;  %v2864_v28 = vmul.f32 %v5627_v45, %v5615_v59  ;;  %v3867_v59 = vmov 113  }
0x211d   :  { %v2865_v42 = vadd.f32 %v2864_v28, %v2863_v48  ;;  %v5649_v28 = vld [vmem:[%s6522_s3 + $0x1] ss:$0 sm:$0xff] }
0x211f   :  { %v5631_v14 = vpop.permute.xlu1 %2829 }
0x2120   :  { %6904 = vst [vmem:[#allocation189_spill] sm:$0xff] %v5631_v14  ;;  %v2866_v39 = vmul.f32 %v5636_v6, %v5631_v14  ;;  %v5655_v14 = vld [vmem:[%s6524_s5 + $0x1] ss:$0 sm:$0xff] }
0x2122   :  { %v2867_v0 = vadd.f32 %v2866_v39, %v2865_v42 }
0x2124   :  { %v2878_v43 = vpop.permute.xlu1 %2877  ;;  %v2875_v61 = vadd.f32 %v2874_v36, %v2867_v0  ;;  %v5661_v0 = vld [vmem:[%s6524_s5] ss:$0 sm:$0xff] }
0x2125   :  { %v2880_v48 = vmul.f32 %v5649_v28, %v2878_v43 }
0x2127   :  { %v2881_v8 = vadd.f32 %v2880_v48, %v2875_v61  ;;  %v5676_v48 = vld [vmem:[%s6524_s5 + $0x3] ss:$0 sm:$0xff] }
0x2129   :  { %3690 = vtanh.f32 %v2881_v8  ;;  %v5669_v8 = vld [vmem:[%s6524_s5 + $0x2] ss:$0 sm:$0xff] }
0x2133   :  { %v3691_v2 = vpop.eup %3690 }
0x2134   :  { %v2889_v16 = vmul.f32 %v5655_v14, %v3691_v2  ;;  %v2883_v42 = vmul.f32 %v5661_v0, %v3691_v2  ;;  %v2895_v43 = vmul.f32 %v5669_v8, %v3691_v2 }
0x2136   :  { %v2890_v39 = vsel %vm165_vm1, %v2889_v16, 0.0  ;;  %v2884_v36 = vsel %vm165_vm1, %v2883_v42, 0.0  ;;  %v2896_v61 = vsel %vm165_vm1, %v2895_v43, 0.0  ;;  %v2901_v16 = vmul.f32 %v5676_v48, %v3691_v2 }
0x2137   :  { %2891 = vadd.xlane.f32.xlu0 %v2890_v39  ;;  %2885 = vadd.xlane.f32.xlu1 %v2884_v36  ;;  %v3868_v39 = vmov 116   ;;  %v5686_v36 = vld [vmem:[%s6526_s7] ss:$0 sm:$0xff]  ;;  %v3869_v43 = vmov 117  }
0x2138   :  { %v2902_v42 = vsel %vm165_vm1, %v2901_v16, 0.0  ;;  %v312_v2 = vmul.f32 %v5686_v36, %v4147_v15  ;;  %v5705_v15 = vld [vmem:[%s6526_s7 + $0x2] ss:$0 sm:$0xff] }
0x2139   :  { %v325_v16 = vmul.f32 %v5705_v15, %v4156_v26 }
0x213b   :  { %2897 = vadd.xlane.f32.xlu1 %v2896_v61 }
0x213f   :  { %2903 = vadd.xlane.f32.xlu1 %v2902_v42 }
0x2150   :  { %2971 = vperm.xlu1 %3613, %v5539_v50  }
0x2154   :  { %3614 = vset.pattern.permute.xlu1 %v3867_v59  ;;  %v5693_v59 = vld [vmem:[%s6526_s7 + $0x1] ss:$0 sm:$0xff] }
0x2155   :  { %2977 = vperm.xlu1 %3614, %v5539_v50   ;;  %v318_v61 = vmul.f32 %v5693_v59, %v4149_v17 }
0x2157   :  { %v319_v17 = vadd.f32 %v318_v61, %v312_v2  ;;  %v218_v2 = vmul.f32 %v5693_v59, %v4096_v19 }
0x2159   :  { %3615 = vset.pattern.permute.xlu1 %v3868_v39  ;;  %v326_v42 = vadd.f32 %v325_v16, %v319_v17  ;;  %v5719_v39 = vld [vmem:[%s6526_s7 + $0x3] ss:$0 sm:$0xff] }
0x215a   :  { %3071 = vperm.xlu1 %3615, %v5539_v50   ;;  %v332_v26 = vmul.f32 %v5719_v39, %v4160_v31 }
0x215c   :  { %v333_v3 = vadd.f32 %v332_v26, %v326_v42 }
0x215e   :  { %3616 = vset.pattern.permute.xlu1 %v3869_v43 }
0x215f   :  { %3077 = vperm.xlu1 %3616, %v5539_v50  }
0x2163   :  { %240 = vrot.lane.b32.xlu1 %v4076_v63, %s3870_s16  ;;  %v212_v63 = vmul.f32 %v5686_v36, %v4094_v18  ;;  %v5743_v18 = vld [vmem:[%s6525_s6] ss:$0 sm:$0xff] }
0x2164   :  { %3617 = vset.pattern.permute.xlu1 %v6746_v35 }
0x2165   :  { %v219_v17 = vadd.f32 %v218_v2, %v212_v63 }
0x2167   :  { %250 = vrot.lane.b32.xlu1 %v4082_v10, %s3870_s16  ;;  %v225_v10 = vmul.f32 %v5705_v15, %v4103_v23 }
0x2169   :  { %v226_v42 = vadd.f32 %v225_v10, %v219_v17 }
0x216b   :  { %335 = vrot.lane.b32.xlu1 %v333_v3, %s3871_s19 }
0x216f   :  { %345 = vrot.lane.b32.xlu1 %v4124_v55, %s3871_s19  ;;  %v232_v55 = vmul.f32 %v5719_v39, %v4107_v27 }
0x2171   :  { %v233_v27 = vadd.f32 %v232_v55, %v226_v42 }
0x2173   :  { %355 = vrot.lane.b32.xlu1 %v4140_v7, %s3871_s19 }
0x21c4   :  { %v2892_v31 = vpop.xlane.xlu0 %2891  ;;  %v2886_v43 = vpop.xlane.xlu1 %2885 }
0x21c5   :  { %v2893_v61 = vadd.f32 %v2892_v31, %v5576_v52  ;;  %v2887_v16 = vadd.f32 %v2886_v43, %v5579_v47 }
0x21c7   :  { %v5746_v19 = vadd.f32 %v5743_v18, %v2893_v61  ;;  %v5749_v7 = vadd.f32 %v5743_v18, %v2887_v16 }
0x21c8   :  { %v2898_v23 = vpop.xlane.xlu1 %2897 }
0x21c9   :  { %v2899_v26 = vadd.f32 %v2898_v23, %v5587_v57  ;;  %2915 = vperm.xlu1 %3617, %v5746_v19   ;;  %2909 = vperm.xlu0 %3612, %v5749_v7  }
0x21cb   :  { %v5755_v3 = vadd.f32 %v5743_v18, %v2899_v26 }
0x21cc   :  { %v2904_v63 = vpop.xlane.xlu1 %2903 }
0x21cd   :  { %v2905_v2 = vadd.f32 %v2904_v63, %v5593_v53  ;;  %3618 = vset.pattern.permute.xlu1 %v6739_v4  ;;  %235 = vrot.lane.b32.xlu0 %v233_v27, %s3870_s16 }
0x21ce   :  { %2922 = vperm.xlu1 %3618, %v5755_v3  }
0x21cf   :  { %v5762_v43 = vadd.f32 %v5743_v18, %v2905_v2 }
0x21d0   :  { %v2972_v31 = vpop.permute.xlu1 %2971 }
0x21d1   :  { %245 = vrot.lane.b32.xlu0 %v4073_v62, %s3870_s16  ;;  %v2974_v53 = vmul.f32 %v5643_v33, %v2972_v31 }
0x21d2   :  { %3619 = vset.pattern.permute.xlu1 %v6741_v5 }
0x21d3   :  { %2929 = vperm.xlu1 %3619, %v5762_v43  }
0x21d4   :  { %v2978_v10 = vpop.permute.xlu1 %2977 }
0x21d5   :  { %255 = vrot.lane.b32.xlu0 %v4088_v13, %s3870_s16 }
0x21d7   :  { %3620 = vset.pattern.permute.xlu1 %v6746_v35 }
0x21d9   :  { %340 = vrot.lane.b32.xlu0 %v4127_v56, %s3871_s19  ;;  %v5773_v61 = vpop.permute.xlu1 %3071 }
0x21dd   :  { %350 = vrot.lane.b32.xlu0 %v4133_v60, %s3871_s19 }
0x21de   :  { %v5777_v16 = vpop.permute.xlu1 %3077 }
0x21e2   :  { %v241_v62 = vpop.permute.xlu1 %240 }
0x21e3   :  { %244 = vst.msk [vmem:[#allocation3] sm:$0xff] %vm243_vm6, %v241_v62  ;;  %vm438_vm6 = vcmask 130144  }
0x21e6   :  { %v251_v17 = vpop.permute.xlu1 %250 }
0x21ea   :  { %v336_v55 = vpop.permute.xlu1 %335 }
0x21ee   :  { %v346_v23 = vpop.permute.xlu1 %345 }
0x21f2   :  { %v356_v42 = vpop.permute.xlu1 %355 }
0x2248   :  { %v5779_v13 = vpop.permute.xlu0 %2909  ;;  %v5781_v26 = vpop.permute.xlu1 %2915 }
0x2249   :  { %6905 = vst [vmem:[#allocation190_spill] sm:$0xff] %v5779_v13  ;;  %6906 = vst [vmem:[#allocation191_spill] sm:$0xff] %v5781_v26  ;;  %v2960_v56 = vmul.f32 %v5603_v44, %v5779_v13  ;;  %v2962_v63 = vmul.f32 %v5620_v24, %v5781_v26 }
0x224b   :  { %v2961_v27 = vadd.f32 %v5612_v49, %v2960_v56 }
0x224c   :  { %v236_v60 = vpop.permute.xlu0 %235 }
0x224d   :  { %239 = vst.msk [vmem:[#allocation5] sm:$0xff] %vm238_vm7, %v236_v60  ;;  %v5788_v2 = vpop.permute.xlu1 %2922  ;;  %v2963_v62 = vadd.f32 %v2962_v63, %v2961_v27  ;;  %vm448_vm7 = vcmask 113768  }
0x224e   :  { %339 = vst.msk [vmem:[#allocation5] sm:$0xff] %vm338_vm8, %v336_v55  ;;  %v2964_v57 = vmul.f32 %v5627_v45, %v5788_v2  ;;  %v2980_v55 = vmul.f32 %v5649_v28, %v2978_v10  ;;  %vm453_vm8 = vcmask 121968  }
0x2250   :  { %v246_v47 = vpop.permute.xlu0 %245  ;;  %v2965_v56 = vadd.f32 %v2964_v57, %v2963_v62  ;;  %v512_v62 = vmul.f32 %v5686_v36, %v4252_v12 }
0x2251   :  { %249 = vst.msk [vmem:[#allocation3] sm:$0xff] %vm248_vm9, %v246_v47  ;;  %vm538_vm9 = vcmask 162944  }
0x2252   :  { %254 = vst.msk [vmem:[#allocation3] sm:$0xff] %vm253_vm10, %v251_v17  ;;  %v5792_v13 = vpop.permute.xlu1 %2929  ;;  %vm458_vm10 = vcmask 130168  }
0x2253   :  { %v2966_v26 = vmul.f32 %v5636_v6, %v5792_v13 }
0x2254   :  { %v256_v60 = vpop.permute.xlu0 %255 }
0x2255   :  { %v2967_v52 = vadd.f32 %v2966_v26, %v2965_v56  ;;  %259 = vst.msk [vmem:[#allocation3] sm:$0xff] %vm258_vm11, %v256_v60  ;;  %v425_v26 = vmul.f32 %v5705_v15, %v4206_v40  ;;  %v518_v56 = vmul.f32 %v5693_v59, %v4254_v20  ;;  %v532_v40 = vmul.f32 %v5719_v39, %v4265_v37  ;;  %v6913_v37 = vld [vmem:[#allocation22_spill] sm:$0xff] }
0x2256   :  { %vm543_vm11 = vcmask 138368  }
0x2257   :  { %v2975_v27 = vadd.f32 %v2974_v53, %v2967_v52 }
0x2258   :  { %v341_v63 = vpop.permute.xlu0 %340 }
0x2259   :  { %v2981_v47 = vadd.f32 %v2980_v55, %v2975_v27  ;;  %344 = vst.msk [vmem:[#allocation3] sm:$0xff] %vm343_vm12, %v341_v63  ;;  %v432_v55 = vmul.f32 %v5719_v39, %v4212_v46  ;;  %v525_v27 = vmul.f32 %v5705_v15, %v4261_v32  ;;  %v6908_v46 = vld [vmem:[#allocation9_spill] sm:$0xff]  ;;  %v6910_v32 = vld [vmem:[#allocation20_spill] sm:$0xff]  ;;  %vm548_vm12 = vcmask 146568  }
0x225a   :  { %349 = vst.msk [vmem:[#allocation3] sm:$0xff] %vm348_vm13, %v346_v23  ;;  %v412_v23 = vmul.f32 %v5686_v36, %v4199_v34  ;;  %vm553_vm13 = vcmask 154768  }
0x225b   :  { %3692 = vtanh.f32 %v2981_v47  ;;  %v6907_v47 = vld [vmem:[#allocation10_spill] sm:$0xff] }
0x225c   :  { %v351_v57 = vpop.permute.xlu0 %350 }
0x225d   :  { %354 = vst.msk [vmem:[#allocation3] sm:$0xff] %vm353_vm14, %v351_v57  ;;  %v6909_v57 = vld [vmem:[#allocation12_spill] sm:$0xff]  ;;  %vm558_vm14 = vcmask 162968  }
0x225e   :  { %359 = vst.msk [vmem:[#allocation3] sm:$0xff] %vm358_vm15, %v356_v42  ;;  %v418_v42 = vmul.f32 %v5693_v59, %v4203_v38  ;;  %v519_v38 = vadd.f32 %v518_v56, %v512_v62  ;;  %v6916_v56 = vld [vmem:[#allocation23_spill] sm:$0xff]  ;;  %vm643_vm15 = vcmask 171168  }
0x2260   :  { %v419_v60 = vadd.f32 %v418_v42, %v412_v23  ;;  %v526_v12 = vadd.f32 %v525_v27, %v519_v38  ;;  %v6914_v23 = vld [vmem:[#allocation15_spill] sm:$0xff]  ;;  %v6918_v27 = vld [vmem:[#allocation14_spill] sm:$0xff] }
0x2262   :  { %v426_v34 = vadd.f32 %v425_v26, %v419_v60  ;;  %v533_v20 = vadd.f32 %v532_v40, %v526_v12  ;;  %v6915_v26 = vld [vmem:[#allocation13_spill] sm:$0xff]  ;;  %v632_v60 = vmul.f32 %v5719_v39, %v6916_v56 }
0x2263   :  { %v6920_v40 = vld [vmem:[#allocation29_spill] sm:$0xff] }
0x2264   :  { %v433_v63 = vadd.f32 %v432_v55, %v426_v34  ;;  %v6917_v55 = vld [vmem:[#allocation17_spill] sm:$0xff]  ;;  %v6919_v34 = vld [vmem:[#allocation28_spill] sm:$0xff] }
0x2265   :  { %v5798_v17 = vpop.eup %3692  ;;  %v712_v38 = vmul.f32 %v5686_v36, %v6919_v34 }
0x2266   :  { %v2989_v31 = vmul.f32 %v5655_v14, %v5798_v17  ;;  %v2983_v10 = vmul.f32 %v5661_v0, %v5798_v17 }
0x2268   :  { %v2990_v52 = vsel %vm165_vm1, %v2989_v31, 0.0  ;;  %v2984_v53 = vsel %vm165_vm1, %v2983_v10, 0.0  ;;  %v6911_v31 = vld [vmem:[#allocation21_spill] sm:$0xff] }
0x2269   :  { %2991 = vadd.xlane.f32.xlu0 %v2990_v52  ;;  %2985 = vadd.xlane.f32.xlu1 %v2984_v53  ;;  %v618_v10 = vmul.f32 %v5693_v59, %v6911_v31  ;;  %v6912_v52 = vld [vmem:[#allocation11_spill] sm:$0xff]  ;;  %v625_v53 = vmul.f32 %v5705_v15, %v6913_v37 }
0x227a   :  { %440 = vrot.lane.b32.xlu1 %v4180_v9, %s3872_s22  ;;  %v612_v9 = vmul.f32 %v5686_v36, %v6910_v32  ;;  %v6923_v32 = vld [vmem:[#allocation31_spill] sm:$0xff] }
0x227c   :  { %v619_v42 = vadd.f32 %v618_v10, %v612_v9  ;;  %v732_v9 = vmul.f32 %v5719_v39, %v6923_v32  ;;  %v6924_v10 = vld [vmem:[#allocation19_spill] sm:$0xff] }
0x227d   :  { %v6933_v32 = vld [vmem:[#allocation27_spill] sm:$0xff] }
0x227e   :  { %450 = vrot.lane.b32.xlu1 %v6907_v47, %s3872_s22  ;;  %v626_v62 = vadd.f32 %v625_v53, %v619_v42  ;;  %v6921_v47 = vld [vmem:[#allocation30_spill] sm:$0xff]  ;;  %v6926_v53 = vld [vmem:[#allocation36_spill] sm:$0xff]  ;;  %v6927_v42 = vld [vmem:[#allocation37_spill] sm:$0xff] }
0x227f   :  { %435 = vrot.lane.b32.xlu0 %v433_v63, %s3872_s22  ;;  %v718_v63 = vmul.f32 %v5693_v59, %v6920_v40 }
0x2280   :  { %v633_v12 = vadd.f32 %v632_v60, %v626_v62  ;;  %v6928_v62 = vld [vmem:[#allocation38_spill] sm:$0xff]  ;;  %v6929_v60 = vld [vmem:[#allocation25_spill] sm:$0xff] }
0x2281   :  { %v825_v56 = vmul.f32 %v5705_v15, %v6928_v62 }
0x2282   :  { %535 = vrot.lane.b32.xlu1 %v533_v20, %s3873_s23  ;;  %v725_v20 = vmul.f32 %v5705_v15, %v6921_v47  ;;  %v2995_v47 = vmul.f32 %v5669_v8, %v5798_v17 }
0x2283   :  { %445 = vrot.lane.b32.xlu0 %v6908_v46, %s3872_s22  ;;  %v6922_v46 = vld [vmem:[#allocation16_spill] sm:$0xff] }
0x2286   :  { %545 = vrot.lane.b32.xlu1 %v6909_v57, %s3873_s23  ;;  %v719_v57 = vadd.f32 %v718_v63, %v712_v38  ;;  %v6931_v38 = vld [vmem:[#allocation24_spill] sm:$0xff]  ;;  %v6932_v63 = vld [vmem:[#allocation26_spill] sm:$0xff] }
0x2287   :  { %455 = vrot.lane.b32.xlu0 %v6912_v52, %s3872_s22  ;;  %v6925_v52 = vld [vmem:[#allocation18_spill] sm:$0xff]  ;;  %s3888_s22 = smov 68  }
0x2288   :  { %v726_v31 = vadd.f32 %v725_v20, %v719_v57  ;;  %v2996_v20 = vsel %vm165_vm1, %v2995_v47, 0.0 }
0x228a   :  { %555 = vrot.lane.b32.xlu1 %v6914_v23, %s3873_s23  ;;  %v733_v37 = vadd.f32 %v732_v9, %v726_v31  ;;  %v812_v23 = vmul.f32 %v5686_v36, %v6926_v53  ;;  %v6934_v9 = vld [vmem:[#allocation33_spill] sm:$0xff] }
0x228b   :  { %540 = vrot.lane.b32.xlu0 %v6915_v26, %s3873_s23  ;;  %v818_v26 = vmul.f32 %v5693_v59, %v6927_v42 }
0x228e   :  { %640 = vrot.lane.b32.xlu1 %v6917_v55, %s3874_s24  ;;  %v819_v55 = vadd.f32 %v818_v26, %v812_v23 }
0x228f   :  { %550 = vrot.lane.b32.xlu0 %v6918_v27, %s3873_s23  ;;  %v6930_v27 = vld [vmem:[#allocation39_spill] sm:$0xff]  ;;  %s3891_s23 = smov 72  }
0x2290   :  { %v832_v34 = vmul.f32 %v5719_v39, %v6930_v27  ;;  %v826_v40 = vadd.f32 %v825_v56, %v819_v55 }
0x2292   :  { %645 = vrot.lane.b32.xlu1 %v6922_v46, %s3874_s24  ;;  %v3001_v46 = vmul.f32 %v5676_v48, %v5798_v17 }
0x2293   :  { %635 = vrot.lane.b32.xlu0 %v633_v12, %s3874_s24  ;;  %v833_v12 = vadd.f32 %v832_v34, %v826_v40 }
0x2294   :  { %v3002_v57 = vsel %vm165_vm1, %v3001_v46, 0.0 }
0x2296   :  { %655 = vrot.lane.b32.xlu1 %v6924_v10, %s3874_s24 }
0x2297   :  { %650 = vrot.lane.b32.xlu0 %v6925_v52, %s3874_s24  ;;  %s3892_s24 = smov 76  }
0x229a   :  { %735 = vrot.lane.b32.xlu1 %v733_v37, %s3875_s25 }
0x229b   :  { %740 = vrot.lane.b32.xlu0 %v6929_v60, %s3875_s25 }
0x229e   :  { %745 = vrot.lane.b32.xlu1 %v6931_v38, %s3875_s25 }
0x229f   :  { %750 = vrot.lane.b32.xlu0 %v6932_v63, %s3875_s25 }
0x22a3   :  { %835 = vrot.lane.b32.xlu0 %v833_v12, %s3876_s26 }
0x22c2   :  { %2997 = vadd.xlane.f32.xlu1 %v2996_v20 }
0x22c6   :  { %3003 = vadd.xlane.f32.xlu1 %v3002_v57 }
0x22d7   :  { %755 = vrot.lane.b32.xlu1 %v6933_v32, %s3875_s25  ;;  %s3893_s25 = smov 80  }
0x22db   :  { %840 = vrot.lane.b32.xlu1 %v6934_v9, %s3876_s26 }
0x22f6   :  { %v2992_v31 = vpop.xlane.xlu0 %2991  ;;  %v2986_v10 = vpop.xlane.xlu1 %2985 }
0x22f7   :  { %v2993_v52 = vadd.f32 %v2992_v31, %v5746_v19  ;;  %v2987_v37 = vadd.f32 %v2986_v10, %v5749_v7 }
0x22f9   :  { %v5874_v53 = vadd.f32 %v5743_v18, %v2993_v52  ;;  %v5877_v17 = vadd.f32 %v5743_v18, %v2987_v37  ;;  %v6935_v52 = vld [vmem:[#allocation44_spill] sm:$0xff] }
0x22fa   :  { %v441_v23 = vpop.permute.xlu1 %440  ;;  %v436_v42 = vpop.permute.xlu0 %435  ;;  %v912_v37 = vmul.f32 %v5686_v36, %v6935_v52  ;;  %v6943_v52 = vld [vmem:[#allocation52_spill] sm:$0xff] }
0x22fb   :  { %444 = vst.msk [vmem:[#allocation3] sm:$0xff] %vm443_vm0, %v441_v23  ;;  %3015 = vperm.xlu1 %3620, %v5874_v53   ;;  %3009 = vperm.xlu0 %3612, %v5877_v17   ;;  %vm638_vm0 = vcmask 195744   ;;  %v6936_v23 = vld [vmem:[#allocation45_spill] sm:$0xff] }
0x22fc   :  { %439 = vst.msk [vmem:[#allocation5] sm:$0xff] %vm438_vm6, %v436_v42  ;;  %vm648_vm6 = vcmask 179368   ;;  %v918_v42 = vmul.f32 %v5693_v59, %v6936_v23  ;;  %v6944_v23 = vld [vmem:[#allocation53_spill] sm:$0xff] }
0x22fe   :  { %v451_v26 = vpop.permute.xlu1 %450  ;;  %v446_v62 = vpop.permute.xlu0 %445 }
0x22ff   :  { %449 = vst.msk [vmem:[#allocation3] sm:$0xff] %vm448_vm7, %v446_v62  ;;  %3621 = vset.pattern.permute.xlu1 %v6739_v4  ;;  %3622 = vset.pattern.permute.xlu0 %v6741_v5  ;;  %vm653_vm7 = vcmask 187568   ;;  %v6937_v62 = vld [vmem:[#allocation46_spill] sm:$0xff] }
0x2300   :  { %454 = vst.msk [vmem:[#allocation3] sm:$0xff] %vm453_vm8, %v451_v26  ;;  %vm658_vm8 = vcmask 195768  }
0x2302   :  { %v536_v56 = vpop.permute.xlu1 %535  ;;  %v456_v60 = vpop.permute.xlu0 %455 }
0x2303   :  { %539 = vst.msk [vmem:[#allocation5] sm:$0xff] %vm538_vm9, %v536_v56  ;;  %vm743_vm9 = vcmask 203968   ;;  %v925_v56 = vmul.f32 %v5705_v15, %v6937_v62 }
0x2304   :  { %459 = vst.msk [vmem:[#allocation3] sm:$0xff] %vm458_vm10, %v456_v60  ;;  %vm738_vm10 = vcmask 228544  }
0x2306   :  { %v546_v55 = vpop.permute.xlu1 %545  ;;  %v541_v27 = vpop.permute.xlu0 %540 }
0x2307   :  { %544 = vst.msk [vmem:[#allocation3] sm:$0xff] %vm543_vm11, %v541_v27  ;;  %vm748_vm11 = vcmask 212168   ;;  %v919_v27 = vadd.f32 %v918_v42, %v912_v37  ;;  %v1012_v37 = vmul.f32 %v5686_v36, %v6943_v52  ;;  %v1018_v42 = vmul.f32 %v5693_v59, %v6944_v23  ;;  %v6955_v52 = vld [vmem:[#allocation62_spill] sm:$0xff] }
0x2308   :  { %549 = vst.msk [vmem:[#allocation3] sm:$0xff] %vm548_vm12, %v546_v55  ;;  %vm838_vm12 = vcmask 261344  }
0x230a   :  { %v556_v34 = vpop.permute.xlu1 %555  ;;  %v551_v38 = vpop.permute.xlu0 %550 }
0x230b   :  { %554 = vst.msk [vmem:[#allocation3] sm:$0xff] %vm553_vm13, %v551_v38  ;;  %vm753_vm13 = vcmask 220368   ;;  %v926_v38 = vadd.f32 %v925_v56, %v919_v27  ;;  %v6946_v56 = vld [vmem:[#allocation43_spill] sm:$0xff]  ;;  %v1019_v27 = vadd.f32 %v1018_v42, %v1012_v37  ;;  %v1125_v37 = vmul.f32 %v5705_v15, %v6955_v52  ;;  %v6964_v52 = vld [vmem:[#allocation56_spill] sm:$0xff] }
0x230c   :  { %559 = vst.msk [vmem:[#allocation3] sm:$0xff] %vm558_vm14, %v556_v34  ;;  %vm758_vm14 = vcmask 228568   ;;  %v6956_v42 = vld [vmem:[#allocation63_spill] sm:$0xff] }
0x230e   :  { %v641_v40 = vpop.permute.xlu1 %640  ;;  %v636_v63 = vpop.permute.xlu0 %635 }
0x230f   :  { %644 = vst.msk [vmem:[#allocation3] sm:$0xff] %vm643_vm15, %v641_v40  ;;  %v6938_v40 = vld [vmem:[#allocation47_spill] sm:$0xff]  ;;  %vm843_vm15 = vcmask 236768  }
0x2310   :  { %639 = vst.msk [vmem:[#allocation5] sm:$0xff] %vm638_vm0, %v636_v63  ;;  %v932_v63 = vmul.f32 %v5719_v39, %v6938_v40  ;;  %vm938_vm0 = vcmask 294144  }
0x2312   :  { %v646_v12 = vpop.permute.xlu1 %645  ;;  %v651_v47 = vpop.permute.xlu0 %650 }
0x2313   :  { %649 = vst.msk [vmem:[#allocation3] sm:$0xff] %vm648_vm6, %v646_v12  ;;  %vm848_vm6 = vcmask 244968  }
0x2314   :  { %654 = vst.msk [vmem:[#allocation3] sm:$0xff] %vm653_vm7, %v651_v47  ;;  %vm853_vm7 = vcmask 253168  }
0x2316   :  { %v656_v20 = vpop.permute.xlu1 %655  ;;  %v741_v46 = vpop.permute.xlu0 %740 }
0x2317   :  { %659 = vst.msk [vmem:[#allocation3] sm:$0xff] %vm658_vm8, %v656_v20  ;;  %v6939_v20 = vld [vmem:[#allocation34_spill] sm:$0xff]  ;;  %vm858_vm8 = vcmask 261368  }
0x2318   :  { %744 = vst.msk [vmem:[#allocation3] sm:$0xff] %vm743_vm9, %v741_v46  ;;  %v3877_v46 = vmov 120   ;;  %vm943_vm9 = vcmask 269568  }
0x231a   :  { %v736_v57 = vpop.permute.xlu1 %735  ;;  %v751_v32 = vpop.permute.xlu0 %750 }
0x231b   :  { %739 = vst.msk [vmem:[#allocation5] sm:$0xff] %vm738_vm10, %v736_v57  ;;  %v933_v57 = vadd.f32 %v932_v63, %v926_v38  ;;  %v6949_v63 = vld [vmem:[#allocation49_spill] sm:$0xff]  ;;  %vm948_vm10 = vcmask 277768  }
0x231e   :  { %v746_v9 = vpop.permute.xlu1 %745  ;;  %v836_v31 = vpop.permute.xlu0 %835 }
0x231f   :  { %749 = vst.msk [vmem:[#allocation3] sm:$0xff] %vm748_vm11, %v746_v9  ;;  %v6940_v9 = vld [vmem:[#allocation32_spill] sm:$0xff]  ;;  %vm953_vm11 = vcmask 285968  }
0x2320   :  { %839 = vst.msk [vmem:[#allocation5] sm:$0xff] %vm838_vm12, %v836_v31  ;;  %v6941_v31 = vld [vmem:[#allocation40_spill] sm:$0xff]  ;;  %vm958_vm12 = vcmask 294168  }
0x2321   :  { %754 = vst.msk [vmem:[#allocation3] sm:$0xff] %vm753_vm13, %v751_v32  ;;  %vm1043_vm13 = vcmask 302368  }
0x234f   :  { %v2998_v10 = vpop.xlane.xlu1 %2997 }
0x2350   :  { %v2999_v26 = vadd.f32 %v2998_v10, %v5755_v3  ;;  %v6942_v10 = vld [vmem:[#allocation35_spill] sm:$0xff] }
0x2352   :  { %v5891_v60 = vadd.f32 %v5743_v18, %v2999_v26  ;;  %v6945_v26 = vld [vmem:[#allocation54_spill] sm:$0xff] }
0x2353   :  { %v3004_v55 = vpop.xlane.xlu1 %3003  ;;  %v1025_v62 = vmul.f32 %v5705_v15, %v6945_v26  ;;  %v1132_v26 = vmul.f32 %v5719_v39, %v6956_v42 }
0x2354   :  { %v3005_v34 = vadd.f32 %v3004_v55, %v5762_v43  ;;  %3022 = vperm.xlu1 %3621, %v5891_v60   ;;  %v6947_v55 = vld [vmem:[#allocation41_spill] sm:$0xff] }
0x2355   :  { %v1026_v40 = vadd.f32 %v1025_v62, %v1019_v27  ;;  %v6957_v62 = vld [vmem:[#allocation68_spill] sm:$0xff] }
0x2356   :  { %v5898_v12 = vadd.f32 %v5743_v18, %v3005_v34  ;;  %v6948_v34 = vld [vmem:[#allocation55_spill] sm:$0xff] }
0x2357   :  { %v756_v47 = vpop.permute.xlu1 %755  ;;  %v1032_v38 = vmul.f32 %v5719_v39, %v6948_v34  ;;  %v3880_v34 = vmov 121  }
0x2358   :  { %759 = vst.msk [vmem:[#allocation3] sm:$0xff] %vm758_vm14, %v756_v47  ;;  %850 = vrot.lane.b32.xlu1 %v6939_v20, %s3876_s26  ;;  %3029 = vperm.xlu0 %3622, %v5898_v12   ;;  %v6950_v47 = vld [vmem:[#allocation42_spill] sm:$0xff]  ;;  %vm1038_vm14 = vcmask 326944  }
0x2359   :  { %3623 = vset.pattern.permute.xlu1 %v3877_v46  ;;  %v1033_v20 = vadd.f32 %v1032_v38, %v1026_v40  ;;  %v6951_v46 = vld [vmem:[#allocation50_spill] sm:$0xff]  ;;  %v6959_v38 = vld [vmem:[#allocation51_spill] sm:$0xff] }
0x235b   :  { %v841_v32 = vpop.permute.xlu1 %840 }
0x235c   :  { %844 = vst.msk [vmem:[#allocation3] sm:$0xff] %vm843_vm15, %v841_v32  ;;  %935 = vrot.lane.b32.xlu1 %v933_v57, %s3878_s27  ;;  %845 = vrot.lane.b32.xlu0 %v6940_v9, %s3876_s26  ;;  %v6952_v57 = vld [vmem:[#allocation60_spill] sm:$0xff]  ;;  %v6953_v9 = vld [vmem:[#allocation61_spill] sm:$0xff]  ;;  %vm1048_vm15 = vcmask 310568  }
0x235d   :  { %3625 = vset.pattern.permute.xlu0 %v6731_v41  ;;  %v1112_v32 = vmul.f32 %v5686_v36, %v6952_v57  ;;  %v6961_v57 = vld [vmem:[#allocation57_spill] sm:$0xff] }
0x2360   :  { %945 = vrot.lane.b32.xlu1 %v6941_v31, %s3878_s27  ;;  %855 = vrot.lane.b32.xlu0 %v6942_v10, %s3876_s26  ;;  %v1118_v31 = vmul.f32 %v5693_v59, %v6953_v9  ;;  %v6954_v10 = vld [vmem:[#allocation48_spill] sm:$0xff]  ;;  %v6962_v9 = vld [vmem:[#allocation71_spill] sm:$0xff] }
0x2362   :  { %v1119_v23 = vadd.f32 %v1118_v31, %v1112_v32  ;;  %v1232_v31 = vmul.f32 %v5719_v39, %v6962_v9  ;;  %v6975_v9 = vld [vmem:[#allocation85_spill] sm:$0xff] }
0x2364   :  { %955 = vrot.lane.b32.xlu1 %v6946_v56, %s3878_s27  ;;  %940 = vrot.lane.b32.xlu0 %v6947_v55, %s3878_s27  ;;  %v1212_v56 = vmul.f32 %v5686_v36, %v6957_v62  ;;  %v6958_v55 = vld [vmem:[#allocation69_spill] sm:$0xff]  ;;  %v1126_v40 = vadd.f32 %v1125_v37, %v1119_v23  ;;  %v6965_v37 = vld [vmem:[#allocation59_spill] sm:$0xff]  ;;  %v6966_v23 = vld [vmem:[#allocation76_spill] sm:$0xff] }
0x2365   :  { %v1218_v27 = vmul.f32 %v5693_v59, %v6958_v55  ;;  %v1312_v42 = vmul.f32 %v5686_v36, %v6966_v23  ;;  %v6969_v55 = vld [vmem:[#allocation78_spill] sm:$0xff] }
0x2368   :  { %1040 = vrot.lane.b32.xlu1 %v6949_v63, %s3879_s28  ;;  %950 = vrot.lane.b32.xlu0 %v6950_v47, %s3878_s27  ;;  %v6960_v63 = vld [vmem:[#allocation70_spill] sm:$0xff] }
0x2369   :  { %v1225_v47 = vmul.f32 %v5705_v15, %v6960_v63 }
0x236c   :  { %1050 = vrot.lane.b32.xlu1 %v6951_v46, %s3879_s28  ;;  %1035 = vrot.lane.b32.xlu0 %v1033_v20, %s3879_s28  ;;  %v1133_v20 = vadd.f32 %v1132_v26, %v1126_v40  ;;  %v1219_v46 = vadd.f32 %v1218_v27, %v1212_v56  ;;  %v6967_v26 = vld [vmem:[#allocation77_spill] sm:$0xff]  ;;  %v6968_v56 = vld [vmem:[#allocation64_spill] sm:$0xff]  ;;  %v1325_v27 = vmul.f32 %v5705_v15, %v6969_v55  ;;  %v6971_v40 = vld [vmem:[#allocation79_spill] sm:$0xff] }
0x236d   :  { %v1318_v62 = vmul.f32 %v5693_v59, %v6967_v26  ;;  %v1332_v63 = vmul.f32 %v5719_v39, %v6971_v40  ;;  %v6980_v55 = vld [vmem:[#allocation72_spill] sm:$0xff] }
0x236e   :  { %v1226_v32 = vadd.f32 %v1225_v47, %v1219_v46  ;;  %v6972_v47 = vld [vmem:[#allocation67_spill] sm:$0xff]  ;;  %v6973_v46 = vld [vmem:[#allocation66_spill] sm:$0xff] }
0x2370   :  { %3171 = vperm.xlu1 %3623, %v5539_v50   ;;  %1045 = vrot.lane.b32.xlu0 %v6954_v10, %s3879_s28  ;;  %v6963_v10 = vld [vmem:[#allocation58_spill] sm:$0xff] }
0x2374   :  { %3624 = vset.pattern.permute.xlu1 %v3880_v34  ;;  %1055 = vrot.lane.b32.xlu0 %v6959_v38, %s3879_s28  ;;  %v6970_v34 = vld [vmem:[#allocation65_spill] sm:$0xff]  ;;  %v1319_v38 = vadd.f32 %v1318_v62, %v1312_v42  ;;  %v6978_v42 = vld [vmem:[#allocation87_spill] sm:$0xff]  ;;  %s3894_s28 = smov 84  }
0x2375   :  { %3177 = vperm.xlu1 %3624, %v5539_v50   ;;  %v1233_v50 = vadd.f32 %v1232_v31, %v1226_v32  ;;  %v1418_v31 = vmul.f32 %v5693_v59, %v6975_v9  ;;  %v1432_v26 = vmul.f32 %v5719_v39, %v6978_v42 }
0x2378   :  { %1140 = vrot.lane.b32.xlu0 %v6961_v57, %s3881_s29  ;;  %v6974_v57 = vld [vmem:[#allocation84_spill] sm:$0xff] }
0x2379   :  { %1135 = vrot.lane.b32.xlu1 %v1133_v20, %s3881_s29  ;;  %v1326_v20 = vadd.f32 %v1325_v27, %v1319_v38  ;;  %v1412_v32 = vmul.f32 %v5686_v36, %v6974_v57  ;;  %v6982_v38 = vld [vmem:[#allocation81_spill] sm:$0xff] }
0x237a   :  { %3626 = vset.pattern.permute.xlu1 %v6746_v35  ;;  %v5974_v40 = vpop.permute.xlu0 %3009 }
0x237b   :  { %v1419_v23 = vadd.f32 %v1418_v31, %v1412_v32 }
0x237c   :  { %1150 = vrot.lane.b32.xlu0 %v6963_v10, %s3881_s29  ;;  %v1333_v10 = vadd.f32 %v1332_v63, %v1326_v20  ;;  %v3060_v63 = vmul.f32 %v5603_v44, %v5974_v40 }
0x237d   :  { %1145 = vrot.lane.b32.xlu1 %v6964_v52, %s3881_s29  ;;  %v6976_v52 = vld [vmem:[#allocation86_spill] sm:$0xff] }
0x237e   :  { %v3061_v20 = vadd.f32 %v5612_v49, %v3060_v63  ;;  %v3074_v49 = vmul.f32 %v5643_v33, %v5773_v61 }
0x2380   :  { %1235 = vrot.lane.b32.xlu0 %v1233_v50, %s3882_s30  ;;  %v1425_v50 = vmul.f32 %v5705_v15, %v6976_v52 }
0x2381   :  { %1155 = vrot.lane.b32.xlu1 %v6965_v37, %s3881_s29  ;;  %v6977_v37 = vld [vmem:[#allocation73_spill] sm:$0xff] }
0x2382   :  { %v1426_v62 = vadd.f32 %v1425_v50, %v1419_v23 }
0x2384   :  { %1245 = vrot.lane.b32.xlu0 %v6968_v56, %s3882_s30  ;;  %v6979_v56 = vld [vmem:[#allocation74_spill] sm:$0xff]  ;;  %v1433_v27 = vadd.f32 %v1432_v26, %v1426_v62 }
0x2385   :  { %1240 = vrot.lane.b32.xlu1 %v6970_v34, %s3882_s30  ;;  %v6981_v34 = vld [vmem:[#allocation75_spill] sm:$0xff] }
0x2388   :  { %1255 = vrot.lane.b32.xlu0 %v6972_v47, %s3882_s30  ;;  %v5978_v47 = vpop.permute.xlu1 %3015 }
0x2389   :  { %1250 = vrot.lane.b32.xlu1 %v6973_v46, %s3882_s30  ;;  %v3062_v57 = vmul.f32 %v5620_v24, %v5978_v47  ;;  %s3901_s30 = smov 112  }
0x238b   :  { %v3063_v9 = vadd.f32 %v3062_v57, %v3061_v20 }
0x238c   :  { %1340 = vrot.lane.b32.xlu0 %v6977_v37, %s3883_s10 }
0x238d   :  { %1335 = vrot.lane.b32.xlu1 %v1333_v10, %s3883_s10 }
0x2390   :  { %1350 = vrot.lane.b32.xlu0 %v6979_v56, %s3883_s10 }
0x2391   :  { %1345 = vrot.lane.b32.xlu1 %v6980_v55, %s3883_s10 }
0x2394   :  { %1435 = vrot.lane.b32.xlu0 %v1433_v27, %s3884_s1 }
0x2395   :  { %1355 = vrot.lane.b32.xlu1 %v6981_v34, %s3883_s10  ;;  %s3902_s10 = smov 116  }
0x2399   :  { %1440 = vrot.lane.b32.xlu1 %v6982_v38, %s3884_s1 }
0x23d3   :  { %v5981_v46 = vpop.permute.xlu1 %3022 }
0x23d4   :  { %v3064_v32 = vmul.f32 %v5627_v45, %v5981_v46  ;;  %v3080_v45 = vmul.f32 %v5649_v28, %v5777_v16 }
0x23d6   :  { %v3065_v52 = vadd.f32 %v3064_v32, %v3063_v9 }
0x23d7   :  { %v851_v31 = vpop.permute.xlu1 %850  ;;  %v5987_v10 = vpop.permute.xlu0 %3029 }
0x23d8   :  { %v3066_v44 = vmul.f32 %v5636_v6, %v5987_v10 }
0x23da   :  { %v3067_v50 = vadd.f32 %v3066_v44, %v3065_v52  ;;  %v6983_v52 = vld [vmem:[#allocation92_spill] sm:$0xff] }
0x23db   :  { %v936_v37 = vpop.permute.xlu1 %935  ;;  %v846_v24 = vpop.permute.xlu0 %845  ;;  %v1512_v44 = vmul.f32 %v5686_v36, %v6983_v52  ;;  %v6992_v52 = vld [vmem:[#allocation109_spill] sm:$0xff] }
0x23dc   :  { %v3075_v23 = vadd.f32 %v3074_v49, %v3067_v50  ;;  %939 = vst.msk [vmem:[#allocation5] sm:$0xff] %vm938_vm0, %v936_v37  ;;  %vm1053_vm0 = vcmask 318768   ;;  %v6984_v49 = vld [vmem:[#allocation93_spill] sm:$0xff] }
0x23dd   :  { %849 = vst.msk [vmem:[#allocation3] sm:$0xff] %vm848_vm6, %v846_v24  ;;  %vm1058_vm6 = vcmask 326968   ;;  %v1518_v50 = vmul.f32 %v5693_v59, %v6984_v49  ;;  %v6993_v49 = vld [vmem:[#allocation110_spill] sm:$0xff] }
0x23de   :  { %854 = vst.msk [vmem:[#allocation3] sm:$0xff] %vm853_vm7, %v851_v31  ;;  %v3081_v42 = vadd.f32 %v3080_v45, %v3075_v23  ;;  %vm1143_vm7 = vcmask 335168  }
0x23df   :  { %v946_v26 = vpop.permute.xlu1 %945  ;;  %v856_v6 = vpop.permute.xlu0 %855  ;;  %v1519_v23 = vadd.f32 %v1518_v50, %v1512_v44  ;;  %v1718_v44 = vmul.f32 %v5693_v59, %v6992_v52  ;;  %v1725_v50 = vmul.f32 %v5705_v15, %v6993_v49  ;;  %v7007_v52 = vld [vmem:[#allocation105_spill] sm:$0xff] }
0x23e0   :  { %3694 = vtanh.f32 %v3081_v42  ;;  %859 = vst.msk [vmem:[#allocation3] sm:$0xff] %vm858_vm8, %v856_v6  ;;  %vm1138_vm8 = vcmask 359744  }
0x23e3   :  { %v956_v33 = vpop.permute.xlu1 %955  ;;  %v941_v61 = vpop.permute.xlu0 %940 }
0x23e4   :  { %944 = vst.msk [vmem:[#allocation3] sm:$0xff] %vm943_vm9, %v941_v61  ;;  %vm1148_vm9 = vcmask 343368  }
0x23e5   :  { %949 = vst.msk [vmem:[#allocation3] sm:$0xff] %vm948_vm10, %v946_v26  ;;  %vm1153_vm10 = vcmask 351568  }
0x23e7   :  { %v1041_v62 = vpop.permute.xlu1 %1040  ;;  %v951_v28 = vpop.permute.xlu0 %950 }
0x23e8   :  { %954 = vst.msk [vmem:[#allocation3] sm:$0xff] %vm953_vm11, %v951_v28  ;;  %vm1238_vm11 = vcmask 392544  }
0x23e9   :  { %959 = vst.msk [vmem:[#allocation3] sm:$0xff] %vm958_vm12, %v956_v33  ;;  %v6986_v33 = vld [vmem:[#allocation95_spill] sm:$0xff]  ;;  %vm1158_vm12 = vcmask 359768  }
0x23ea   :  { %v3695_v16 = vpop.eup %3694  ;;  %1044 = vst.msk [vmem:[#allocation3] sm:$0xff] %vm1043_vm13, %v1041_v62  ;;  %v1532_v61 = vmul.f32 %v5719_v39, %v6986_v33  ;;  %v6987_v62 = vld [vmem:[#allocation82_spill] sm:$0xff]  ;;  %vm1243_vm13 = vcmask 367968  }
0x23eb   :  { %v1051_v56 = vpop.permute.xlu1 %1050  ;;  %v1036_v55 = vpop.permute.xlu0 %1035  ;;  %v3089_v27 = vmul.f32 %v5655_v14, %v3695_v16  ;;  %v3083_v34 = vmul.f32 %v5661_v0, %v3695_v16  ;;  %v3095_v20 = vmul.f32 %v5669_v8, %v3695_v16  ;;  %v3101_v0 = vmul.f32 %v5676_v48, %v3695_v16  ;;  %v6985_v48 = vld [vmem:[#allocation94_spill] sm:$0xff] }
0x23ec   :  { %1039 = vst.msk [vmem:[#allocation5] sm:$0xff] %vm1038_vm14, %v1036_v55  ;;  %v1525_v45 = vmul.f32 %v5705_v15, %v6985_v48  ;;  %vm1248_vm14 = vcmask 376168  }
0x23ed   :  { %v3090_v38 = vsel %vm165_vm1, %v3089_v27, 0.0  ;;  %v3084_v63 = vsel %vm165_vm1, %v3083_v34, 0.0  ;;  %v3096_v14 = vsel %vm165_vm1, %v3095_v20, 0.0  ;;  %v3102_v8 = vsel %vm165_vm1, %v3101_v0, 0.0  ;;  %v6988_v34 = vld [vmem:[#allocation88_spill] sm:$0xff]  ;;  %v6989_v20 = vld [vmem:[#allocation91_spill] sm:$0xff] }
0x23ee   :  { %3091 = vadd.xlane.f32.xlu1 %v3090_v38  ;;  %3085 = vadd.xlane.f32.xlu0 %v3084_v63  ;;  %v1526_v6 = vadd.f32 %v1525_v45, %v1519_v23  ;;  %v6990_v0 = vld [vmem:[#allocation80_spill] sm:$0xff]  ;;  %v6995_v45 = vld [vmem:[#allocation83_spill] sm:$0xff] }
0x23ef   :  { %v1046_v57 = vpop.permute.xlu0 %1045  ;;  %v6000_v32 = vpop.permute.xlu1 %3171 }
0x23f0   :  { %1049 = vst.msk [vmem:[#allocation3] sm:$0xff] %vm1048_vm15, %v1046_v57  ;;  %vm1253_vm15 = vcmask 384368  }
0x23f1   :  { %1054 = vst.msk [vmem:[#allocation3] sm:$0xff] %vm1053_vm0, %v1051_v56  ;;  %v1533_v56 = vadd.f32 %v1532_v61, %v1526_v6  ;;  %vm1258_vm0 = vcmask 392568   ;;  %v6997_v6 = vld [vmem:[#allocation100_spill] sm:$0xff]  ;;  %v6998_v61 = vld [vmem:[#allocation101_spill] sm:$0xff] }
0x23f2   :  { %3097 = vadd.xlane.f32.xlu0 %v3096_v14  ;;  %v1612_v33 = vmul.f32 %v5686_v36, %v6997_v6 }
0x23f3   :  { %v1056_v9 = vpop.permute.xlu0 %1055 }
0x23f4   :  { %1059 = vst.msk [vmem:[#allocation3] sm:$0xff] %vm1058_vm6, %v1056_v9  ;;  %v6004_v31 = vpop.permute.xlu1 %3177  ;;  %vm1343_vm6 = vcmask 400768   ;;  %v6991_v9 = vld [vmem:[#allocation108_spill] sm:$0xff] }
0x23f6   :  { %3103 = vadd.xlane.f32.xlu0 %v3102_v8  ;;  %v1712_v8 = vmul.f32 %v5686_v36, %v6991_v9  ;;  %v7004_v9 = vld [vmem:[#allocation104_spill] sm:$0xff] }
0x23f7   :  { %v1141_v37 = vpop.permute.xlu0 %1140 }
0x23f8   :  { %1144 = vst.msk [vmem:[#allocation3] sm:$0xff] %vm1143_vm7, %v1141_v37  ;;  %v1136_v24 = vpop.permute.xlu1 %1135  ;;  %vm1338_vm7 = vcmask 425344   ;;  %v6994_v37 = vld [vmem:[#allocation97_spill] sm:$0xff]  ;;  %v1719_v23 = vadd.f32 %v1718_v44, %v1712_v8  ;;  %v7005_v8 = vld [vmem:[#allocation96_spill] sm:$0xff]  ;;  %v7008_v44 = vld [vmem:[#allocation106_spill] sm:$0xff] }
0x23f9   :  { %1139 = vst.msk [vmem:[#allocation5] sm:$0xff] %vm1138_vm8, %v1136_v24  ;;  %vm1348_vm8 = vcmask 408968  }
0x23fb   :  { %v1151_v42 = vpop.permute.xlu0 %1150 }
0x23fc   :  { %v1146_v26 = vpop.permute.xlu1 %1145 }
0x23fd   :  { %1149 = vst.msk [vmem:[#allocation3] sm:$0xff] %vm1148_vm9, %v1146_v26  ;;  %vm1353_vm9 = vcmask 417168  }
0x23fe   :  { %1154 = vst.msk [vmem:[#allocation3] sm:$0xff] %vm1153_vm10, %v1151_v42  ;;  %v6996_v42 = vld [vmem:[#allocation111_spill] sm:$0xff]  ;;  %vm1438_vm10 = vcmask 458144  }
0x23ff   :  { %1450 = vrot.lane.b32.xlu1 %v6987_v62, %s3884_s1  ;;  %v1236_v28 = vpop.permute.xlu0 %1235  ;;  %v1732_v26 = vmul.f32 %v5719_v39, %v6996_v42  ;;  %v1618_v62 = vmul.f32 %v5693_v59, %v6998_v61  ;;  %v6074_v42 = vld [vmem:[%s6526_s7 + $0x1] ss:$0 sm:$0xff] }
0x2400   :  { %1239 = vst.msk [vmem:[#allocation5] sm:$0xff] %vm1238_vm11, %v1236_v28  ;;  %v1156_v16 = vpop.permute.xlu1 %1155  ;;  %vm1358_vm11 = vcmask 425368   ;;  %v1726_v28 = vadd.f32 %v1725_v50, %v1719_v23 }
0x2401   :  { %1159 = vst.msk [vmem:[#allocation3] sm:$0xff] %vm1158_vm12, %v1156_v16  ;;  %v6999_v16 = vld [vmem:[#allocation98_spill] sm:$0xff]  ;;  %v1619_v36 = vadd.f32 %v1618_v62, %v1612_v33  ;;  %vm1443_vm12 = vcmask 433568  }
0x2402   :  { %v6087_v62 = vld [vmem:[%s6526_s7 + $0x2] ss:$0 sm:$0xff] }
0x2403   :  { %1535 = vrot.lane.b32.xlu1 %v1533_v56, %s3885_s11  ;;  %v1246_v55 = vpop.permute.xlu0 %1245 }
0x2404   :  { %v1241_v27 = vpop.permute.xlu1 %1240 }
0x2405   :  { %1244 = vst.msk [vmem:[#allocation3] sm:$0xff] %vm1243_vm13, %v1241_v27  ;;  %vm1538_vm13 = vcmask 490944  }
0x2406   :  { %1249 = vst.msk [vmem:[#allocation3] sm:$0xff] %vm1248_vm14, %v1246_v55  ;;  %v7000_v55 = vld [vmem:[#allocation102_spill] sm:$0xff]  ;;  %vm1448_vm14 = vcmask 441768  }
0x2407   :  { %1545 = vrot.lane.b32.xlu1 %v6988_v34, %s3885_s11  ;;  %v1256_v38 = vpop.permute.xlu0 %1255  ;;  %v1625_v27 = vmul.f32 %v5705_v15, %v7000_v55 }
0x2408   :  { %v1251_v63 = vpop.permute.xlu1 %1250 }
0x2409   :  { %1254 = vst.msk [vmem:[#allocation3] sm:$0xff] %vm1253_vm15, %v1251_v63  ;;  %v1733_v63 = vadd.f32 %v1732_v26, %v1726_v28  ;;  %v7010_v26 = vld [vmem:[#allocation117_spill] sm:$0xff]  ;;  %v7011_v28 = vld [vmem:[#allocation118_spill] sm:$0xff]  ;;  %vm1453_vm15 = vcmask 449968  }
0x240a   :  { %1259 = vst.msk [vmem:[#allocation3] sm:$0xff] %vm1258_vm0, %v1256_v38  ;;  %v7001_v38 = vld [vmem:[#allocation89_spill] sm:$0xff]  ;;  %v1818_v6 = vmul.f32 %v6074_v42, %v7010_v26  ;;  %vm1458_vm0 = vcmask 458168  }
0x240b   :  { %1555 = vrot.lane.b32.xlu1 %v6989_v20, %s3885_s11  ;;  %v1341_v57 = vpop.permute.xlu0 %1340  ;;  %v7002_v20 = vld [vmem:[#allocation103_spill] sm:$0xff] }
0x240c   :  { %1344 = vst.msk [vmem:[#allocation3] sm:$0xff] %vm1343_vm6, %v1341_v57  ;;  %v1336_v14 = vpop.permute.xlu1 %1335  ;;  %1445 = vrot.lane.b32.xlu0 %v6990_v0, %s3884_s1  ;;  %v1632_v59 = vmul.f32 %v5719_v39, %v7002_v20  ;;  %v1626_v57 = vadd.f32 %v1625_v27, %v1619_v36  ;;  %v7003_v0 = vld [vmem:[#allocation90_spill] sm:$0xff]  ;;  %v7006_v39 = vld [vmem:[#allocation99_spill] sm:$0xff]  ;;  %vm1543_vm6 = vcmask 466368  }
0x240d   :  { %1339 = vst.msk [vmem:[#allocation5] sm:$0xff] %vm1338_vm7, %v1336_v14  ;;  %v6100_v36 = vld [vmem:[%s6526_s7 + $0x3] ss:$0 sm:$0xff]  ;;  %v7012_v20 = vld [vmem:[#allocation119_spill] sm:$0xff]  ;;  %vm1548_vm7 = vcmask 474568  }
0x240e   :  { %v1633_v15 = vadd.f32 %v1632_v59, %v1626_v57  ;;  %v1832_v59 = vmul.f32 %v6100_v36, %v7012_v20 }
0x240f   :  { %1640 = vrot.lane.b32.xlu1 %v6994_v37, %s3886_s12  ;;  %v1351_v24 = vpop.permute.xlu0 %1350 }
0x2410   :  { %v1346_v48 = vpop.permute.xlu1 %1345  ;;  %1455 = vrot.lane.b32.xlu0 %v6995_v45, %s3884_s1  ;;  %v7009_v45 = vld [vmem:[#allocation116_spill] sm:$0xff]  ;;  %s3903_s1 = smov 120  }
0x2411   :  { %1349 = vst.msk [vmem:[#allocation3] sm:$0xff] %vm1348_vm8, %v1346_v48  ;;  %v6067_v48 = vld [vmem:[%s6526_s7] ss:$0 sm:$0xff]  ;;  %vm1553_vm8 = vcmask 482768  }
0x2412   :  { %1354 = vst.msk [vmem:[#allocation3] sm:$0xff] %vm1353_vm9, %v1351_v24  ;;  %v1812_v23 = vmul.f32 %v6067_v48, %v7009_v45  ;;  %v7015_v45 = vld [vmem:[#allocation107_spill] sm:$0xff]  ;;  %vm1558_vm9 = vcmask 490968  }
0x2413   :  { %1650 = vrot.lane.b32.xlu1 %v6999_v16, %s3886_s12  ;;  %v1436_v56 = vpop.permute.xlu0 %1435  ;;  %v1825_v16 = vmul.f32 %v6087_v62, %v7011_v28  ;;  %v3890_v28 = vmov 124  }
0x2414   :  { %1439 = vst.msk [vmem:[#allocation5] sm:$0xff] %vm1438_vm10, %v1436_v56  ;;  %v1356_v34 = vpop.permute.xlu1 %1355  ;;  %1540 = vrot.lane.b32.xlu0 %v7001_v38, %s3885_s11  ;;  %vm1643_vm10 = vcmask 499168  }
0x2415   :  { %1359 = vst.msk [vmem:[#allocation3] sm:$0xff] %vm1358_vm11, %v1356_v34  ;;  %v1819_v34 = vadd.f32 %v1818_v6, %v1812_v23  ;;  %v7016_v23 = vld [vmem:[#allocation126_spill] sm:$0xff]  ;;  %v7017_v6 = vld [vmem:[#allocation113_spill] sm:$0xff]  ;;  %vm1638_vm11 = vcmask 523744  }
0x2416   :  { %v1925_v26 = vmul.f32 %v6087_v62, %v7016_v23  ;;  %v7025_v23 = vld [vmem:[#allocation121_spill] sm:$0xff] }
0x2417   :  { %1735 = vrot.lane.b32.xlu1 %v1733_v63, %s3887_s13  ;;  %v1826_v63 = vadd.f32 %v1825_v16, %v1819_v34 }
0x2418   :  { %v1441_v14 = vpop.permute.xlu1 %1440  ;;  %1550 = vrot.lane.b32.xlu0 %v7003_v0, %s3885_s11  ;;  %s3904_s11 = smov 124  }
0x2419   :  { %1444 = vst.msk [vmem:[#allocation3] sm:$0xff] %vm1443_vm12, %v1441_v14  ;;  %vm1738_vm12 = vcmask 556544  }
0x241b   :  { %1745 = vrot.lane.b32.xlu1 %v7004_v9, %s3887_s13  ;;  %v1833_v9 = vadd.f32 %v1832_v59, %v1826_v63  ;;  %v7019_v63 = vld [vmem:[#allocation112_spill] sm:$0xff]  ;;  %v7020_v59 = vld [vmem:[#allocation114_spill] sm:$0xff] }
0x241c   :  { %1635 = vrot.lane.b32.xlu0 %v1633_v15, %s3886_s12 }
0x2420   :  { %1645 = vrot.lane.b32.xlu0 %v7005_v8, %s3886_s12 }
0x2424   :  { %1655 = vrot.lane.b32.xlu0 %v7006_v39, %s3886_s12 }
0x2428   :  { %1740 = vrot.lane.b32.xlu0 %v7007_v52, %s3887_s13  ;;  %v3889_v52 = vmov 125  }
0x242c   :  { %1750 = vrot.lane.b32.xlu0 %v7008_v44, %s3887_s13  ;;  %v7013_v44 = vld [vmem:[#allocation124_spill] sm:$0xff] }
0x247b   :  { %v3092_v49 = vpop.xlane.xlu1 %3091  ;;  %v3086_v50 = vpop.xlane.xlu0 %3085 }
0x247c   :  { %v3093_v37 = vadd.f32 %v3092_v49, %v5874_v53  ;;  %v3087_v24 = vadd.f32 %v3086_v50, %v5877_v17  ;;  %v1912_v49 = vmul.f32 %v6067_v48, %v7013_v44  ;;  %v7023_v44 = vld [vmem:[#allocation133_spill] sm:$0xff] }
0x247e   :  { %v6079_v33 = vadd.f32 %v5743_v18, %v3093_v37  ;;  %v6082_v61 = vadd.f32 %v5743_v18, %v3087_v24 }
0x247f   :  { %v1451_v56 = vpop.permute.xlu1 %1450  ;;  %v3098_v55 = vpop.xlane.xlu0 %3097 }
0x2480   :  { %v3099_v27 = vadd.f32 %v3098_v55, %v5891_v60  ;;  %3115 = vperm.xlu1 %3626, %v6079_v33   ;;  %3109 = vperm.xlu0 %3625, %v6082_v61  }
0x2482   :  { %v6095_v38 = vadd.f32 %v5743_v18, %v3099_v27 }
0x2483   :  { %v1536_v57 = vpop.permute.xlu1 %1535  ;;  %v3104_v14 = vpop.xlane.xlu0 %3103 }
0x2484   :  { %1539 = vst.msk [vmem:[#allocation5] sm:$0xff] %vm1538_vm13, %v1536_v57  ;;  %v3105_v0 = vadd.f32 %v3104_v14, %v5898_v12  ;;  %3627 = vset.pattern.permute.xlu1 %v6739_v4  ;;  %3628 = vset.pattern.permute.xlu0 %v6741_v5  ;;  %vm1648_vm13 = vcmask 507368  }
0x2485   :  { %3122 = vperm.xlu1 %3627, %v6095_v38  }
0x2486   :  { %v6109_v15 = vadd.f32 %v5743_v18, %v3105_v0  ;;  %v7014_v18 = vld [vmem:[#allocation125_spill] sm:$0xff] }
0x2487   :  { %v1546_v8 = vpop.permute.xlu1 %1545  ;;  %v1446_v39 = vpop.permute.xlu0 %1445  ;;  %v1918_v50 = vmul.f32 %v6074_v42, %v7014_v18 }
0x2488   :  { %1449 = vst.msk [vmem:[#allocation3] sm:$0xff] %vm1448_vm14, %v1446_v39  ;;  %3129 = vperm.xlu0 %3628, %v6109_v15   ;;  %v7022_v39 = vld [vmem:[#allocation132_spill] sm:$0xff]  ;;  %vm1653_vm14 = vcmask 515568  }
0x2489   :  { %1454 = vst.msk [vmem:[#allocation3] sm:$0xff] %vm1453_vm15, %v1451_v56  ;;  %1835 = vrot.lane.b32.xlu1 %v1833_v9, %s3888_s22  ;;  %v1919_v16 = vadd.f32 %v1918_v50, %v1912_v49  ;;  %v7018_v56 = vld [vmem:[#allocation127_spill] sm:$0xff]  ;;  %v2018_v49 = vmul.f32 %v6074_v42, %v7023_v44  ;;  %vm1658_vm15 = vcmask 523768   ;;  %v7033_v44 = vld [vmem:[#allocation129_spill] sm:$0xff] }
0x248a   :  { %3630 = vset.pattern.permute.xlu1 %v3889_v52  ;;  %v1932_v55 = vmul.f32 %v6100_v36, %v7018_v56  ;;  %v7021_v9 = vld [vmem:[#allocation115_spill] sm:$0xff] }
0x248b   :  { %v1556_v37 = vpop.permute.xlu1 %1555  ;;  %v1456_v24 = vpop.permute.xlu0 %1455  ;;  %v1926_v20 = vadd.f32 %v1925_v26, %v1919_v16 }
0x248c   :  { %1459 = vst.msk [vmem:[#allocation3] sm:$0xff] %vm1458_vm0, %v1456_v24  ;;  %1755 = vrot.lane.b32.xlu0 %v7015_v45, %s3887_s13  ;;  %v7024_v24 = vld [vmem:[#allocation134_spill] sm:$0xff]  ;;  %vm1743_vm0 = vcmask 531968  }
0x248d   :  { %1840 = vrot.lane.b32.xlu1 %v7017_v6, %s3888_s22  ;;  %3629 = vset.pattern.permute.xlu0 %v3890_v28  ;;  %v1933_v57 = vadd.f32 %v1932_v55, %v1926_v20  ;;  %v2025_v45 = vmul.f32 %v6087_v62, %v7024_v24  ;;  %v7027_v6 = vld [vmem:[#allocation135_spill] sm:$0xff]  ;;  %v7028_v55 = vld [vmem:[#allocation122_spill] sm:$0xff] }
0x248e   :  { %v2032_v28 = vmul.f32 %v6100_v36, %v7027_v6  ;;  %v7037_v6 = vld [vmem:[#allocation131_spill] sm:$0xff] }
0x248f   :  { %v1641_v27 = vpop.permute.xlu1 %1640  ;;  %v1541_v34 = vpop.permute.xlu0 %1540 }
0x2490   :  { %1544 = vst.msk [vmem:[#allocation3] sm:$0xff] %vm1543_vm6, %v1541_v34  ;;  %1845 = vrot.lane.b32.xlu0 %v7019_v63, %s3888_s22  ;;  %v7030_v63 = vld [vmem:[#allocation141_spill] sm:$0xff]  ;;  %vm1748_vm6 = vcmask 540168  }
0x2491   :  { %1549 = vst.msk [vmem:[#allocation3] sm:$0xff] %vm1548_vm7, %v1546_v8  ;;  %1850 = vrot.lane.b32.xlu1 %v7020_v59, %s3888_s22  ;;  %v2012_v8 = vmul.f32 %v6067_v48, %v7022_v39  ;;  %v2118_v20 = vmul.f32 %v6074_v42, %v7030_v63  ;;  %v7031_v59 = vld [vmem:[#allocation123_spill] sm:$0xff]  ;;  %vm1753_vm7 = vcmask 548368   ;;  %v7041_v63 = vld [vmem:[#allocation137_spill] sm:$0xff] }
0x2493   :  { %v1651_v14 = vpop.permute.xlu1 %1650  ;;  %v1551_v0 = vpop.permute.xlu0 %1550  ;;  %v2019_v26 = vadd.f32 %v2018_v49, %v2012_v8 }
0x2494   :  { %1554 = vst.msk [vmem:[#allocation3] sm:$0xff] %vm1553_vm8, %v1551_v0  ;;  %1855 = vrot.lane.b32.xlu0 %v7021_v9, %s3888_s22  ;;  %v7032_v0 = vld [vmem:[#allocation142_spill] sm:$0xff]  ;;  %vm1838_vm8 = vcmask 589344  }
0x2495   :  { %1559 = vst.msk [vmem:[#allocation3] sm:$0xff] %vm1558_vm9, %v1556_v37  ;;  %1935 = vrot.lane.b32.xlu1 %v1933_v57, %s3891_s23  ;;  %v7026_v37 = vld [vmem:[#allocation120_spill] sm:$0xff]  ;;  %v2026_v56 = vadd.f32 %v2025_v45, %v2019_v26  ;;  %v2125_v9 = vmul.f32 %v6087_v62, %v7032_v0  ;;  %vm1758_vm9 = vcmask 556568  }
0x2496   :  { %1644 = vst.msk [vmem:[#allocation3] sm:$0xff] %vm1643_vm10, %v1641_v27  ;;  %v7029_v27 = vld [vmem:[#allocation140_spill] sm:$0xff]  ;;  %vm1843_vm10 = vcmask 564768  }
0x2497   :  { %v1736_v18 = vpop.permute.xlu1 %1735  ;;  %v1636_v50 = vpop.permute.xlu0 %1635  ;;  %v2112_v34 = vmul.f32 %v6067_v48, %v7029_v27  ;;  %v2033_v57 = vadd.f32 %v2032_v28, %v2026_v56  ;;  %v7035_v45 = vld [vmem:[#allocation128_spill] sm:$0xff]  ;;  %v7039_v56 = vld [vmem:[#allocation149_spill] sm:$0xff]  ;;  %v7040_v27 = vld [vmem:[#allocation150_spill] sm:$0xff] }
0x2498   :  { %1639 = vst.msk [vmem:[#allocation5] sm:$0xff] %vm1638_vm11, %v1636_v50  ;;  %1940 = vrot.lane.b32.xlu0 %v7025_v23, %s3891_s23  ;;  %v7036_v23 = vld [vmem:[#allocation130_spill] sm:$0xff]  ;;  %v7038_v28 = vld [vmem:[#allocation148_spill] sm:$0xff]  ;;  %vm1848_vm11 = vcmask 572968  }
0x2499   :  { %1945 = vrot.lane.b32.xlu1 %v7026_v37, %s3891_s23  ;;  %1739 = vst.msk [vmem:[#allocation5] sm:$0xff] %vm1738_vm12, %v1736_v18  ;;  %v2119_v8 = vadd.f32 %v2118_v20, %v2112_v34  ;;  %v7034_v18 = vld [vmem:[#allocation143_spill] sm:$0xff]  ;;  %v2225_v34 = vmul.f32 %v6087_v62, %v7040_v27  ;;  %v7042_v20 = vld [vmem:[#allocation136_spill] sm:$0xff]  ;;  %vm1853_vm12 = vcmask 581168  }
0x249b   :  { %v1646_v16 = vpop.permute.xlu0 %1645  ;;  %v2126_v49 = vadd.f32 %v2125_v9, %v2119_v8  ;;  %v1746_v24 = vpop.permute.xlu1 %1745  ;;  %v7045_v8 = vld [vmem:[#allocation139_spill] sm:$0xff] }
0x249c   :  { %1649 = vst.msk [vmem:[#allocation3] sm:$0xff] %vm1648_vm13, %v1646_v16  ;;  %1950 = vrot.lane.b32.xlu0 %v7028_v55, %s3891_s23  ;;  %v2212_v16 = vmul.f32 %v6067_v48, %v7038_v28  ;;  %v2218_v55 = vmul.f32 %v6074_v42, %v7039_v56  ;;  %vm1858_vm13 = vcmask 589368  }
0x249d   :  { %1654 = vst.msk [vmem:[#allocation3] sm:$0xff] %vm1653_vm14, %v1651_v14  ;;  %1955 = vrot.lane.b32.xlu1 %v7031_v59, %s3891_s23  ;;  %v2132_v14 = vmul.f32 %v6100_v36, %v7034_v18  ;;  %v7046_v18 = vld [vmem:[#allocation156_spill] sm:$0xff]  ;;  %vm1938_vm14 = vcmask 622144  }
0x249e   :  { %v2219_v59 = vadd.f32 %v2218_v55, %v2212_v16  ;;  %v7051_v16 = vld [vmem:[#allocation144_spill] sm:$0xff]  ;;  %v7052_v55 = vld [vmem:[#allocation146_spill] sm:$0xff] }
0x249f   :  { %v1656_v39 = vpop.permute.xlu0 %1655  ;;  %v2133_v37 = vadd.f32 %v2132_v14, %v2126_v49  ;;  %v3268_v49 = vld [vmem:[%s6519_s0] sm:$0xff]  ;;  %v2312_v14 = vmul.f32 %v6067_v48, %v7046_v18  ;;  %s3895_s0 = smov 88  }
0x24a0   :  { %1659 = vst.msk [vmem:[#allocation3] sm:$0xff] %vm1658_vm15, %v1656_v39  ;;  %2035 = vrot.lane.b32.xlu0 %v2033_v57, %s3892_s24  ;;  %v7043_v57 = vld [vmem:[#allocation151_spill] sm:$0xff]  ;;  %v2226_v9 = vadd.f32 %v2225_v34, %v2219_v59  ;;  %v7044_v39 = vld [vmem:[#allocation138_spill] sm:$0xff]  ;;  %vm1943_vm15 = vcmask 597568  }
0x24a1   :  { %2040 = vrot.lane.b32.xlu1 %v7033_v44, %s3892_s24  ;;  %v2232_v0 = vmul.f32 %v6100_v36, %v7043_v57  ;;  %v7053_v34 = vld [vmem:[#allocation147_spill] sm:$0xff]  ;;  %v6191_v57 = vld [vmem:[%s6521_s2] ss:$0 sm:$0xff] }
0x24a3   :  { %v1741_v50 = vpop.permute.xlu0 %1740  ;;  %v2233_v44 = vadd.f32 %v2232_v0, %v2226_v9 }
0x24a4   :  { %1744 = vst.msk [vmem:[#allocation3] sm:$0xff] %vm1743_vm0, %v1741_v50  ;;  %2045 = vrot.lane.b32.xlu0 %v7035_v45, %s3892_s24  ;;  %v7047_v50 = vld [vmem:[#allocation157_spill] sm:$0xff]  ;;  %v7048_v45 = vld [vmem:[#allocation158_spill] sm:$0xff]  ;;  %vm1948_vm0 = vcmask 605768  }
0x24a5   :  { %1749 = vst.msk [vmem:[#allocation3] sm:$0xff] %vm1748_vm6, %v1746_v24  ;;  %2050 = vrot.lane.b32.xlu1 %v7036_v23, %s3892_s24  ;;  %v2318_v24 = vmul.f32 %v6074_v42, %v7047_v50  ;;  %v2325_v23 = vmul.f32 %v6087_v62, %v7048_v45  ;;  %v6210_v50 = vld [vmem:[%s6521_s2 + $0x2] ss:$0 sm:$0xff]  ;;  %vm1953_vm6 = vcmask 613968  }
0x24a7   :  { %v1751_v26 = vpop.permute.xlu0 %1750 }
0x24a8   :  { %1754 = vst.msk [vmem:[#allocation3] sm:$0xff] %vm1753_vm7, %v1751_v26  ;;  %2055 = vrot.lane.b32.xlu0 %v7037_v6, %s3892_s24  ;;  %v2319_v26 = vadd.f32 %v2318_v24, %v2312_v14  ;;  %v7050_v6 = vld [vmem:[#allocation159_spill] sm:$0xff]  ;;  %vm1958_vm7 = vcmask 622168   ;;  %s3896_s24 = smov 92  }
0x24a9   :  { %2135 = vrot.lane.b32.xlu1 %v2133_v37, %s3893_s25  ;;  %v7049_v37 = vld [vmem:[#allocation145_spill] sm:$0xff]  ;;  %v2332_v28 = vmul.f32 %v6100_v36, %v7050_v6  ;;  %v6217_v6 = vld [vmem:[%s6521_s2 + $0x3] ss:$0 sm:$0xff] }
0x24aa   :  { %v2326_v56 = vadd.f32 %v2325_v23, %v2319_v26 }
0x24ac   :  { %2140 = vrot.lane.b32.xlu0 %v7041_v63, %s3893_s25  ;;  %v2333_v27 = vadd.f32 %v2332_v28, %v2326_v56  ;;  %v6223_v56 = vld [vmem:[%s6522_s3] ss:$0 sm:$0xff] }
0x24ad   :  { %2145 = vrot.lane.b32.xlu1 %v7042_v20, %s3893_s25 }
0x24b0   :  { %2150 = vrot.lane.b32.xlu0 %v7044_v39, %s3893_s25 }
0x24b1   :  { %2155 = vrot.lane.b32.xlu1 %v7045_v8, %s3893_s25  ;;  %v6203_v8 = vld [vmem:[%s6523_s4] ss:$0 sm:$0xff]  ;;  %s3897_s25 = smov 96  }
0x24b4   :  { %2235 = vrot.lane.b32.xlu0 %v2233_v44, %s3894_s28 }
0x24b5   :  { %3277 = vperm.xlu1 %3630, %v3268_v49  }
0x24b8   :  { %3271 = vperm.xlu0 %3629, %v3268_v49  }
0x24b9   :  { %2240 = vrot.lane.b32.xlu1 %v7049_v37, %s3894_s28 }
0x24ba   :  { %3631 = vset.pattern.permute.xlu1 %v6731_v41 }
0x24bc   :  { %2245 = vrot.lane.b32.xlu0 %v7051_v16, %s3894_s28 }
0x24bd   :  { %2250 = vrot.lane.b32.xlu1 %v7052_v55, %s3894_s28  ;;  %3632 = vset.pattern.permute.xlu0 %v6746_v35  ;;  %v6197_v35 = vld [vmem:[%s6521_s2 + $0x1] ss:$0 sm:$0xff]  ;;  %v3174_v55 = vmul.f32 %v6223_v56, %v6000_v32 }
0x24c0   :  { %2255 = vrot.lane.b32.xlu0 %v7053_v34, %s3894_s28  ;;  %s3898_s28 = smov 100  }
0x24c1   :  { %2335 = vrot.lane.b32.xlu1 %v2333_v27, %s3895_s0 }
0x24ff   :  { %v3116_v63 = vpop.permute.xlu1 %3115  ;;  %v3110_v20 = vpop.permute.xlu0 %3109 }
0x2500   :  { %v3118_v41 = vmul.f32 %v6074_v42, %v3116_v63  ;;  %v3112_v59 = vmul.f32 %v6067_v48, %v3110_v20  ;;  %v3160_v0 = vmul.f32 %v6191_v57, %v3110_v20  ;;  %v3162_v9 = vmul.f32 %v6197_v35, %v3116_v63  ;;  %v6232_v20 = vld [vmem:[%s6522_s3 + $0x1] ss:$0 sm:$0xff] }
0x2502   :  { %v3119_v39 = vadd.f32 %v3118_v41, %v3112_v59  ;;  %v3161_v44 = vadd.f32 %v6203_v8, %v3160_v0  ;;  %v3180_v41 = vmul.f32 %v6232_v20, %v6004_v31 }
0x2504   :  { %v3123_v49 = vpop.permute.xlu1 %3122  ;;  %v3163_v18 = vadd.f32 %v3162_v9, %v3161_v44 }
0x2505   :  { %v3125_v14 = vmul.f32 %v6087_v62, %v3123_v49  ;;  %v3164_v24 = vmul.f32 %v6210_v50, %v3123_v49 }
0x2507   :  { %v3126_v45 = vadd.f32 %v3125_v14, %v3119_v39  ;;  %v3165_v23 = vadd.f32 %v3164_v24, %v3163_v18  ;;  %v3130_v37 = vpop.permute.xlu0 %3129 }
0x2508   :  { %v3132_v26 = vmul.f32 %v6100_v36, %v3130_v37  ;;  %v3166_v28 = vmul.f32 %v6217_v6, %v3130_v37  ;;  %v1836_v16 = vpop.permute.xlu1 %1835  ;;  %v6248_v37 = vld [vmem:[%s6524_s5] ss:$0 sm:$0xff] }
0x2509   :  { %1839 = vst.msk [vmem:[#allocation5] sm:$0xff] %vm1838_vm8, %v1836_v16  ;;  %vm2038_vm8 = vcmask 654944  }
0x250a   :  { %v6227_v27 = vadd.f32 %v3132_v26, %v3126_v45  ;;  %v3167_v34 = vadd.f32 %v3166_v28, %v3165_v23  ;;  %v6241_v45 = vld [vmem:[%s6524_s5 + $0x1] ss:$0 sm:$0xff] }
0x250b   :  { %v1756_v63 = vpop.permute.xlu0 %1755 }
0x250c   :  { %v3175_v59 = vadd.f32 %v3174_v55, %v3167_v34  ;;  %1759 = vst.msk [vmem:[#allocation3] sm:$0xff] %vm1758_vm9, %v1756_v63  ;;  %v1841_v0 = vpop.permute.xlu1 %1840  ;;  %v6257_v34 = vld [vmem:[%s6524_s5 + $0x2] ss:$0 sm:$0xff]  ;;  %vm2043_vm9 = vcmask 630368  }
0x250d   :  { %1844 = vst.msk [vmem:[#allocation3] sm:$0xff] %vm1843_vm10, %v1841_v0  ;;  %vm2048_vm10 = vcmask 638568  }
0x250e   :  { %v3181_v9 = vadd.f32 %v3180_v41, %v3175_v59 }
0x250f   :  { %v1846_v32 = vpop.permute.xlu0 %1845 }
0x2510   :  { %3696 = vtanh.f32 %v3181_v9  ;;  %1849 = vst.msk [vmem:[#allocation3] sm:$0xff] %vm1848_vm11, %v1846_v32  ;;  %v1851_v39 = vpop.permute.xlu1 %1850  ;;  %vm2053_vm11 = vcmask 646768  }
0x2511   :  { %1854 = vst.msk [vmem:[#allocation3] sm:$0xff] %vm1853_vm12, %v1851_v39  ;;  %vm2058_vm12 = vcmask 654968  }
0x2513   :  { %v1856_v44 = vpop.permute.xlu0 %1855 }
0x2514   :  { %1859 = vst.msk [vmem:[#allocation3] sm:$0xff] %vm1858_vm13, %v1856_v44  ;;  %v1936_v49 = vpop.permute.xlu1 %1935  ;;  %vm2138_vm13 = vcmask 687744  }
0x2515   :  { %1939 = vst.msk [vmem:[#allocation5] sm:$0xff] %vm1938_vm14, %v1936_v49  ;;  %vm2143_vm14 = vcmask 663168  }
0x2517   :  { %v1941_v31 = vpop.permute.xlu0 %1940 }
0x2518   :  { %1944 = vst.msk [vmem:[#allocation3] sm:$0xff] %vm1943_vm15, %v1941_v31  ;;  %v1946_v18 = vpop.permute.xlu1 %1945  ;;  %vm2148_vm15 = vcmask 671368  }
0x2519   :  { %1949 = vst.msk [vmem:[#allocation3] sm:$0xff] %vm1948_vm0, %v1946_v18  ;;  %vm2153_vm0 = vcmask 679568   ;;  %v7054_v18 = vld [vmem:[#allocation152_spill] sm:$0xff] }
0x251a   :  { %v6236_v14 = vpop.eup %3696 }
0x251b   :  { %v1951_v24 = vpop.permute.xlu0 %1950  ;;  %v3189_v23 = vmul.f32 %v6241_v45, %v6236_v14  ;;  %v3183_v26 = vmul.f32 %v6248_v37, %v6236_v14  ;;  %v3195_v63 = vmul.f32 %v6257_v34, %v6236_v14 }
0x251c   :  { %1954 = vst.msk [vmem:[#allocation3] sm:$0xff] %vm1953_vm6, %v1951_v24  ;;  %v1956_v28 = vpop.permute.xlu1 %1955  ;;  %vm2158_vm6 = vcmask 687768  }
0x251d   :  { %1959 = vst.msk [vmem:[#allocation3] sm:$0xff] %vm1958_vm7, %v1956_v28  ;;  %v3190_v16 = vsel %vm165_vm1, %v3189_v23, 0.0  ;;  %v3184_v55 = vsel %vm165_vm1, %v3183_v26, 0.0  ;;  %v3196_v0 = vsel %vm165_vm1, %v3195_v63, 0.0  ;;  %vm2238_vm7 = vcmask 720544   ;;  %v7055_v26 = vld [vmem:[#allocation155_spill] sm:$0xff] }
0x251e   :  { %3191 = vadd.xlane.f32.xlu0 %v3190_v16  ;;  %3185 = vadd.xlane.f32.xlu1 %v3184_v55  ;;  %v7056_v16 = vld [vmem:[#allocation164_spill] sm:$0xff]  ;;  %v7057_v63 = vld [vmem:[#allocation165_spill] sm:$0xff] }
0x251f   :  { %v2036_v41 = vpop.permute.xlu0 %2035  ;;  %v2412_v55 = vmul.f32 %v6067_v48, %v7056_v16 }
0x2520   :  { %2039 = vst.msk [vmem:[#allocation5] sm:$0xff] %vm2038_vm8, %v2036_v41  ;;  %v2041_v59 = vpop.permute.xlu1 %2040  ;;  %v2418_v41 = vmul.f32 %v6074_v42, %v7057_v63  ;;  %vm2243_vm8 = vcmask 695968  }
0x2521   :  { %2044 = vst.msk [vmem:[#allocation3] sm:$0xff] %vm2043_vm9, %v2041_v59  ;;  %vm2248_vm9 = vcmask 704168  }
0x2522   :  { %3197 = vadd.xlane.f32.xlu0 %v3196_v0  ;;  %v7058_v0 = vld [vmem:[#allocation166_spill] sm:$0xff] }
0x2523   :  { %v2046_v9 = vpop.permute.xlu0 %2045 }
0x2524   :  { %2049 = vst.msk [vmem:[#allocation3] sm:$0xff] %vm2048_vm10, %v2046_v9  ;;  %v2051_v32 = vpop.permute.xlu1 %2050  ;;  %v2425_v9 = vmul.f32 %v6087_v62, %v7058_v0  ;;  %vm2253_vm10 = vcmask 712368   ;;  %v7063_v0 = vld [vmem:[#allocation163_spill] sm:$0xff] }
0x2525   :  { %2054 = vst.msk [vmem:[#allocation3] sm:$0xff] %vm2053_vm11, %v2051_v32  ;;  %vm2258_vm11 = vcmask 720568  }
0x2527   :  { %v2056_v39 = vpop.permute.xlu0 %2055 }
0x2528   :  { %2059 = vst.msk [vmem:[#allocation3] sm:$0xff] %vm2058_vm12, %v2056_v39  ;;  %v2136_v44 = vpop.permute.xlu1 %2135  ;;  %v2419_v39 = vadd.f32 %v2418_v41, %v2412_v55  ;;  %vm2338_vm12 = vcmask 753344   ;;  %v7062_v41 = vld [vmem:[#allocation160_spill] sm:$0xff] }
0x2529   :  { %2139 = vst.msk [vmem:[#allocation5] sm:$0xff] %vm2138_vm13, %v2136_v44  ;;  %vm2343_vm13 = vcmask 728768  }
0x252b   :  { %v2141_v49 = vpop.permute.xlu0 %2140 }
0x252c   :  { %2144 = vst.msk [vmem:[#allocation3] sm:$0xff] %vm2143_vm14, %v2141_v49  ;;  %v2146_v31 = vpop.permute.xlu1 %2145  ;;  %v7059_v49 = vld [vmem:[#allocation153_spill] sm:$0xff]  ;;  %vm2348_vm14 = vcmask 736968  }
0x252d   :  { %2149 = vst.msk [vmem:[#allocation3] sm:$0xff] %vm2148_vm15, %v2146_v31  ;;  %v2426_v31 = vadd.f32 %v2425_v9, %v2419_v39  ;;  %v2612_v9 = vmul.f32 %v6067_v48, %v5488_v29  ;;  %v2618_v39 = vmul.f32 %v6074_v42, %v5490_v22  ;;  %v6300_v29 = vld [vmem:[%s6524_s5 + $0x3] ss:$0 sm:$0xff]  ;;  %vm2353_vm15 = vcmask 745168  }
0x252e   :  { %v3201_v22 = vmul.f32 %v6300_v29, %v6236_v14  ;;  %v7070_v14 = vld [vmem:[#allocation174_spill] sm:$0xff] }
0x252f   :  { %2345 = vrot.lane.b32.xlu1 %v7054_v18, %s3895_s0  ;;  %v2151_v24 = vpop.permute.xlu0 %2150  ;;  %v7060_v18 = vld [vmem:[#allocation167_spill] sm:$0xff] }
0x2530   :  { %2154 = vst.msk [vmem:[#allocation3] sm:$0xff] %vm2153_vm0, %v2151_v24  ;;  %v2156_v23 = vpop.permute.xlu1 %2155  ;;  %v2432_v24 = vmul.f32 %v6100_v36, %v7060_v18  ;;  %v2619_v18 = vadd.f32 %v2618_v39, %v2612_v9  ;;  %v2525_v9 = vmul.f32 %v6087_v62, %v7070_v14  ;;  %v7071_v39 = vld [vmem:[#allocation161_spill] sm:$0xff]  ;;  %vm2358_vm0 = vcmask 753368  }
0x2531   :  { %2159 = vst.msk [vmem:[#allocation3] sm:$0xff] %vm2158_vm6, %v2156_v23  ;;  %vm2438_vm6 = vcmask 786144  }
0x2532   :  { %v2433_v16 = vadd.f32 %v2432_v24, %v2426_v31  ;;  %v7065_v31 = vld [vmem:[#allocation169_spill] sm:$0xff]  ;;  %v2632_v24 = vmul.f32 %v6100_v36, %v5501_v21  ;;  %v7067_v21 = vld [vmem:[#allocation178_spill] sm:$0xff] }
0x2533   :  { %2355 = vrot.lane.b32.xlu1 %v7055_v26, %s3895_s0  ;;  %v2236_v28 = vpop.permute.xlu0 %2235 }
0x2534   :  { %2239 = vst.msk [vmem:[#allocation5] sm:$0xff] %vm2238_vm7, %v2236_v28  ;;  %v6270_v59 = vpop.permute.xlu1 %3277  ;;  %v7061_v28 = vld [vmem:[#allocation154_spill] sm:$0xff]  ;;  %vm2443_vm7 = vcmask 761568  }
0x2537   :  { %v6274_v32 = vpop.permute.xlu0 %3271 }
0x2538   :  { %v2241_v44 = vpop.permute.xlu1 %2240  ;;  %2340 = vrot.lane.b32.xlu0 %v7059_v49, %s3895_s0 }
0x2539   :  { %2244 = vst.msk [vmem:[#allocation3] sm:$0xff] %vm2243_vm8, %v2241_v44  ;;  %v7064_v44 = vld [vmem:[#allocation179_spill] sm:$0xff]  ;;  %vm2448_vm8 = vcmask 769768  }
0x253a   :  { %v2625_v49 = vmul.f32 %v6087_v62, %v7064_v44 }
0x253b   :  { %v2246_v23 = vpop.permute.xlu0 %2245 }
0x253c   :  { %2249 = vst.msk [vmem:[#allocation3] sm:$0xff] %vm2248_vm9, %v2246_v23  ;;  %v2251_v26 = vpop.permute.xlu1 %2250  ;;  %2350 = vrot.lane.b32.xlu0 %v7061_v28, %s3895_s0  ;;  %v2626_v23 = vadd.f32 %v2625_v49, %v2619_v18  ;;  %s3899_s0 = smov 104   ;;  %v7073_v18 = vld [vmem:[#allocation162_spill] sm:$0xff]  ;;  %vm2453_vm9 = vcmask 777968  }
0x253d   :  { %2254 = vst.msk [vmem:[#allocation3] sm:$0xff] %vm2253_vm10, %v2251_v26  ;;  %v7066_v26 = vld [vmem:[#allocation170_spill] sm:$0xff]  ;;  %vm2458_vm10 = vcmask 786168  }
0x253e   :  { %v2633_v28 = vadd.f32 %v2632_v24, %v2626_v23  ;;  %v7074_v24 = vld [vmem:[#allocation168_spill] sm:$0xff]  ;;  %v2712_v23 = vmul.f32 %v6067_v48, %v5546_v51 }
0x253f   :  { %v2256_v55 = vpop.permute.xlu0 %2255 }
0x2540   :  { %2259 = vst.msk [vmem:[#allocation3] sm:$0xff] %vm2258_vm11, %v2256_v55  ;;  %v2336_v63 = vpop.permute.xlu1 %2335  ;;  %2435 = vrot.lane.b32.xlu0 %v2433_v16, %s3896_s24  ;;  %v3202_v16 = vsel %vm165_vm1, %v3201_v22, 0.0  ;;  %v7068_v55 = vld [vmem:[#allocation172_spill] sm:$0xff]  ;;  %v7076_v22 = vld [vmem:[#allocation171_spill] sm:$0xff]  ;;  %vm2543_vm11 = vcmask 794368  }
0x2541   :  { %2339 = vst.msk [vmem:[#allocation5] sm:$0xff] %vm2338_vm12, %v2336_v63  ;;  %v2512_v63 = vmul.f32 %v6067_v48, %v7068_v55  ;;  %v7077_v55 = vld [vmem:[#allocation176_spill] sm:$0xff]  ;;  %vm2538_vm12 = vcmask 818944  }
0x2544   :  { %2445 = vrot.lane.b32.xlu0 %v7062_v41, %s3896_s24  ;;  %v7069_v41 = vld [vmem:[#allocation173_spill] sm:$0xff] }
0x2548   :  { %2455 = vrot.lane.b32.xlu0 %v7063_v0, %s3896_s24  ;;  %v2518_v0 = vmul.f32 %v6074_v42, %v7069_v41  ;;  %v2732_v41 = vmul.f32 %v6100_v36, %v5559_v11  ;;  %v6343_v11 = vld [vmem:[%s6525_s6] ss:$0 sm:$0xff]  ;;  %s3900_s6 = smov 108  }
0x254a   :  { %v2519_v44 = vadd.f32 %v2518_v0, %v2512_v63  ;;  %v7078_v0 = vld [vmem:[#allocation177_spill] sm:$0xff] }
0x254c   :  { %2540 = vrot.lane.b32.xlu0 %v7065_v31, %s3897_s25  ;;  %v2526_v31 = vadd.f32 %v2525_v9, %v2519_v44 }
0x2550   :  { %2550 = vrot.lane.b32.xlu0 %v7066_v26, %s3897_s25  ;;  %v7075_v26 = vld [vmem:[#allocation183_spill] sm:$0xff] }
0x2554   :  { %2635 = vrot.lane.b32.xlu0 %v2633_v28, %s3898_s28  ;;  %v2718_v28 = vmul.f32 %v6074_v42, %v7075_v26 }
0x2557   :  { %3203 = vadd.xlane.f32.xlu1 %v3202_v16  ;;  %v2725_v16 = vmul.f32 %v6087_v62, %v5555_v25  ;;  %v2812_v25 = vmul.f32 %v6067_v48, %v5598_v58 }
0x2558   :  { %2645 = vrot.lane.b32.xlu0 %v5467_v30, %s3898_s28  ;;  %v7072_v30 = vld [vmem:[#allocation175_spill] sm:$0xff] }
0x2559   :  { %v2532_v49 = vmul.f32 %v6100_v36, %v7072_v30  ;;  %v2818_v30 = vmul.f32 %v6074_v42, %v5607_v54 }
0x255b   :  { %v2819_v54 = vadd.f32 %v2818_v30, %v2812_v25 }
0x255c   :  { %2655 = vrot.lane.b32.xlu0 %v7067_v21, %s3898_s28  ;;  %v2719_v21 = vadd.f32 %v2718_v28, %v2712_v23  ;;  %v7080_v23 = vld [vmem:[#allocation189_spill] sm:$0xff] }
0x255d   :  { %v2832_v26 = vmul.f32 %v6100_v36, %v7080_v23 }
0x255e   :  { %v2726_v63 = vadd.f32 %v2725_v16, %v2719_v21 }
0x2560   :  { %2740 = vrot.lane.b32.xlu0 %v5521_v1, %s3899_s0  ;;  %v2533_v1 = vadd.f32 %v2532_v49, %v2526_v31  ;;  %v2733_v14 = vadd.f32 %v2732_v41, %v2726_v63 }
0x2568   :  { %2440 = vrot.lane.b32.xlu1 %v7071_v39, %s3896_s24 }
0x256c   :  { %2450 = vrot.lane.b32.xlu1 %v7073_v18, %s3896_s24 }
0x2570   :  { %2535 = vrot.lane.b32.xlu1 %v2533_v1, %s3897_s25  ;;  %v7079_v1 = vld [vmem:[#allocation188_spill] sm:$0xff] }
0x2574   :  { %2545 = vrot.lane.b32.xlu1 %v7074_v24, %s3897_s25  ;;  %v2825_v24 = vmul.f32 %v6087_v62, %v7079_v1  ;;  %v7086_v1 = vld [vmem:[#allocation190_spill] sm:$0xff] }
0x2576   :  { %v2826_v21 = vadd.f32 %v2825_v24, %v2819_v54  ;;  %v2912_v24 = vmul.f32 %v6067_v48, %v7086_v1 }
0x2578   :  { %2555 = vrot.lane.b32.xlu1 %v7076_v22, %s3897_s25  ;;  %v2833_v63 = vadd.f32 %v2832_v26, %v2826_v21  ;;  %v2925_v26 = vmul.f32 %v6087_v62, %v5788_v2 }
0x257c   :  { %2640 = vrot.lane.b32.xlu1 %v7077_v55, %s3898_s28  ;;  %v7081_v55 = vld [vmem:[#allocation181_spill] sm:$0xff] }
0x2580   :  { %2650 = vrot.lane.b32.xlu1 %v7078_v0, %s3898_s28 }
0x2584   :  { %2735 = vrot.lane.b32.xlu1 %v2733_v14, %s3899_s0  ;;  %v7082_v14 = vld [vmem:[#allocation184_spill] sm:$0xff] }
0x25ab   :  { %v3186_v51 = vpop.xlane.xlu1 %3185  ;;  %v3192_v9 = vpop.xlane.xlu0 %3191 }
0x25ac   :  { %v3187_v39 = vadd.f32 %v3186_v51, %v6082_v61  ;;  %v3193_v44 = vadd.f32 %v3192_v9, %v6079_v33  ;;  %v7083_v51 = vld [vmem:[#allocation187_spill] sm:$0xff] }
0x25ae   :  { %v6346_v49 = vadd.f32 %v6343_v11, %v3187_v39  ;;  %v6349_v31 = vadd.f32 %v6343_v11, %v3193_v44  ;;  %v7084_v44 = vld [vmem:[#allocation180_spill] sm:$0xff] }
0x25af   :  { %v3198_v18 = vpop.xlane.xlu0 %3197  ;;  %v2346_v28 = vpop.permute.xlu1 %2345 }
0x25b0   :  { %v3199_v58 = vadd.f32 %v3198_v18, %v6095_v38  ;;  %3209 = vperm.xlu1 %3631, %v6346_v49   ;;  %3215 = vperm.xlu0 %3632, %v6349_v31   ;;  %v7085_v18 = vld [vmem:[#allocation182_spill] sm:$0xff] }
0x25b2   :  { %v6359_v22 = vadd.f32 %v6343_v11, %v3199_v58  ;;  %v7087_v58 = vld [vmem:[#allocation191_spill] sm:$0xff] }
0x25b3   :  { %v2341_v16 = vpop.permute.xlu0 %2340  ;;  %v2356_v0 = vpop.permute.xlu1 %2355  ;;  %v2918_v54 = vmul.f32 %v6074_v42, %v7087_v58 }
0x25b4   :  { %2344 = vst.msk [vmem:[#allocation3] sm:$0xff] %vm2343_vm13, %v2341_v16  ;;  %3633 = vset.pattern.permute.xlu1 %v6739_v4  ;;  %2750 = vrot.lane.b32.xlu0 %v7081_v55, %s3899_s0  ;;  %vm2638_vm13 = vcmask 851744   ;;  %v2932_v55 = vmul.f32 %v6100_v36, %v5792_v13 }
0x25b5   :  { %3222 = vperm.xlu1 %3633, %v6359_v22   ;;  %2349 = vst.msk [vmem:[#allocation3] sm:$0xff] %vm2348_vm14, %v2346_v28  ;;  %3635 = vset.pattern.permute.xlu0 %v3889_v52  ;;  %vm2548_vm14 = vcmask 802568   ;;  %v7088_v28 = vld [vmem:[#allocation185_spill] sm:$0xff]  ;;  %v2919_v21 = vadd.f32 %v2918_v54, %v2912_v24 }
0x25b7   :  { %v2351_v41 = vpop.permute.xlu0 %2350 }
0x25b8   :  { %2354 = vst.msk [vmem:[#allocation3] sm:$0xff] %vm2353_vm15, %v2351_v41  ;;  %2835 = vrot.lane.b32.xlu0 %v2833_v63, %s3900_s6  ;;  %vm2553_vm15 = vcmask 810768   ;;  %v2926_v41 = vadd.f32 %v2925_v26, %v2919_v21  ;;  %v3756_v21 = vld [vmem:[%s6526_s7] ss:$0 sm:$0xff] }
0x25b9   :  { %2359 = vst.msk [vmem:[#allocation3] sm:$0xff] %vm2358_vm0, %v2356_v0  ;;  %3634 = vset.pattern.permute.xlu1 %v6741_v5  ;;  %vm2558_vm0 = vcmask 818968   ;;  %v7089_v0 = vld [vmem:[#allocation186_spill] sm:$0xff] }
0x25bb   :  { %v2436_v4 = vpop.permute.xlu0 %2435 }
0x25bc   :  { %2439 = vst.msk [vmem:[#allocation5] sm:$0xff] %vm2438_vm6, %v2436_v4  ;;  %2845 = vrot.lane.b32.xlu0 %v7082_v14, %s3900_s6  ;;  %vm2643_vm6 = vcmask 827168   ;;  %v2933_v4 = vadd.f32 %v2932_v55, %v2926_v41  ;;  %v3757_v55 = vld [vmem:[%s6526_s7 + $0x1] ss:$0 sm:$0xff] }
0x25bf   :  { %v2446_v5 = vpop.permute.xlu0 %2445 }
0x25c0   :  { %2855 = vrot.lane.b32.xlu0 %v7083_v51, %s3900_s6 }
0x25c4   :  { %2945 = vrot.lane.b32.xlu0 %v5746_v19, %s3901_s30  ;;  %v2456_v19 = vpop.permute.xlu0 %2455 }
0x25c8   :  { %3040 = vrot.lane.b32.xlu0 %v5877_v17, %s3902_s10  ;;  %v2541_v17 = vpop.permute.xlu0 %2540 }
0x25cc   :  { %3050 = vrot.lane.b32.xlu0 %v5891_v60, %s3902_s10  ;;  %v2551_v9 = vpop.permute.xlu0 %2550 }
0x25d0   :  { %3140 = vrot.lane.b32.xlu0 %v6082_v61, %s3903_s1  ;;  %v2636_v25 = vpop.permute.xlu0 %2635 }
0x25d4   :  { %3150 = vrot.lane.b32.xlu0 %v6095_v38, %s3903_s1  ;;  %v2646_v16 = vpop.permute.xlu0 %2645 }
0x25d8   :  { %3240 = vrot.lane.b32.xlu0 %v6346_v49, %s3904_s11  ;;  %v2656_v2 = vpop.permute.xlu0 %2655 }
0x25dc   :  { %3245 = vrot.lane.b32.xlu0 %v6349_v31, %s3904_s11  ;;  %v2741_v13 = vpop.permute.xlu0 %2740 }
0x25e0   :  { %3250 = vrot.lane.b32.xlu0 %v6359_v22, %s3904_s11 }
0x25e4   :  { %v3204_v60 = vpop.xlane.xlu1 %3203 }
0x25e5   :  { %v3205_v52 = vadd.f32 %v3204_v60, %v6109_v15 }
0x25e7   :  { %v6390_v61 = vadd.f32 %v6343_v11, %v3205_v52 }
0x25e8   :  { %v2441_v38 = vpop.permute.xlu1 %2440 }
0x25e9   :  { %2444 = vst.msk [vmem:[#allocation3] sm:$0xff] %vm2443_vm7, %v2441_v38  ;;  %3229 = vperm.xlu1 %3634, %v6390_v61   ;;  %vm2648_vm7 = vcmask 835368  }
0x25ea   :  { %2449 = vst.msk [vmem:[#allocation3] sm:$0xff] %vm2448_vm8, %v2446_v5  ;;  %vm2653_vm8 = vcmask 843568  }
0x25ec   :  { %v2451_v39 = vpop.permute.xlu1 %2450 }
0x25ed   :  { %2454 = vst.msk [vmem:[#allocation3] sm:$0xff] %vm2453_vm9, %v2451_v39  ;;  %2745 = vrot.lane.b32.xlu1 %v7084_v44, %s3899_s0  ;;  %vm2658_vm9 = vcmask 851768  }
0x25ee   :  { %2459 = vst.msk [vmem:[#allocation3] sm:$0xff] %vm2458_vm10, %v2456_v19  ;;  %vm2743_vm10 = vcmask 859968   ;;  %v3012_v19 = vmul.f32 %v6067_v48, %v5974_v40 }
0x25ef   :  { %2544 = vst.msk [vmem:[#allocation3] sm:$0xff] %vm2543_vm11, %v2541_v17  ;;  %vm2738_vm11 = vcmask 884544   ;;  %v3025_v17 = vmul.f32 %v6087_v62, %v5981_v46 }
0x25f0   :  { %v2536_v30 = vpop.permute.xlu1 %2535 }
0x25f1   :  { %2539 = vst.msk [vmem:[#allocation5] sm:$0xff] %vm2538_vm12, %v2536_v30  ;;  %2755 = vrot.lane.b32.xlu1 %v7085_v18, %s3899_s0  ;;  %vm2838_vm12 = vcmask 917344  }
0x25f2   :  { %2639 = vst.msk [vmem:[#allocation5] sm:$0xff] %vm2638_vm13, %v2636_v25  ;;  %vm2748_vm13 = vcmask 868168  }
0x25f4   :  { %v2546_v23 = vpop.permute.xlu1 %2545 }
0x25f5   :  { %2549 = vst.msk [vmem:[#allocation3] sm:$0xff] %vm2548_vm14, %v2546_v23  ;;  %2840 = vrot.lane.b32.xlu1 %v7088_v28, %s3900_s6  ;;  %vm2753_vm14 = vcmask 876368  }
0x25f6   :  { %2554 = vst.msk [vmem:[#allocation3] sm:$0xff] %vm2553_vm15, %v2551_v9  ;;  %vm2758_vm15 = vcmask 884568  }
0x25f8   :  { %v2556_v63 = vpop.permute.xlu1 %2555 }
0x25f9   :  { %2559 = vst.msk [vmem:[#allocation3] sm:$0xff] %vm2558_vm0, %v2556_v63  ;;  %2850 = vrot.lane.b32.xlu1 %v7089_v0, %s3900_s6  ;;  %vm2843_vm0 = vcmask 892768  }
0x25fc   :  { %v2641_v14 = vpop.permute.xlu1 %2640 }
0x25fd   :  { %2644 = vst.msk [vmem:[#allocation3] sm:$0xff] %vm2643_vm6, %v2641_v14  ;;  %2935 = vrot.lane.b32.xlu1 %v2933_v4, %s3901_s30  ;;  %vm2848_vm6 = vcmask 900968  }
0x25fe   :  { %2649 = vst.msk [vmem:[#allocation3] sm:$0xff] %vm2648_vm7, %v2646_v16  ;;  %vm2853_vm7 = vcmask 909168  }
0x2600   :  { %v2651_v51 = vpop.permute.xlu1 %2650 }
0x2601   :  { %2654 = vst.msk [vmem:[#allocation3] sm:$0xff] %vm2653_vm8, %v2651_v51  ;;  %2940 = vrot.lane.b32.xlu1 %v5749_v7, %s3901_s30  ;;  %v3018_v7 = vmul.f32 %v6074_v42, %v5978_v47  ;;  %vm2858_vm8 = vcmask 917368   ;;  %v3759_v51 = vld [vmem:[%s6526_s7 + $0x3] ss:$0 sm:$0xff] }
0x2602   :  { %2659 = vst.msk [vmem:[#allocation3] sm:$0xff] %vm2658_vm9, %v2656_v2  ;;  %vm2938_vm9 = vcmask 950144  }
0x2603   :  { %2744 = vst.msk [vmem:[#allocation3] sm:$0xff] %vm2743_vm10, %v2741_v13  ;;  %vm2943_vm10 = vcmask 925568  }
0x2604   :  { %v2736_v5 = vpop.permute.xlu1 %2735 }
0x2605   :  { %2739 = vst.msk [vmem:[#allocation5] sm:$0xff] %vm2738_vm11, %v2736_v5  ;;  %2950 = vrot.lane.b32.xlu1 %v5755_v3, %s3901_s30  ;;  %v3019_v3 = vadd.f32 %v3018_v7, %v3012_v19  ;;  %vm2948_vm11 = vcmask 933768  }
0x2609   :  { %2955 = vrot.lane.b32.xlu1 %v5762_v43, %s3901_s30  ;;  %v3032_v43 = vmul.f32 %v6100_v36, %v5987_v10 }
0x260d   :  { %3045 = vrot.lane.b32.xlu1 %v5874_v53, %s3902_s10  ;;  %v3026_v53 = vadd.f32 %v3025_v17, %v3019_v3 }
0x2611   :  { %3055 = vrot.lane.b32.xlu1 %v5898_v12, %s3902_s10  ;;  %v3033_v12 = vadd.f32 %v3032_v43, %v3026_v53 }
0x2615   :  { %3145 = vrot.lane.b32.xlu1 %v6079_v33, %s3903_s1 }
0x2619   :  { %3155 = vrot.lane.b32.xlu1 %v6109_v15, %s3903_s1 }
0x261d   :  { %3035 = vrot.lane.b32.xlu1 %v3033_v12, %s3902_s10 }
0x2621   :  { %3135 = vrot.lane.b32.xlu1 %v6227_v27, %s3903_s1 }
0x262f   :  { %v6435_v40 = vpop.permute.xlu0 %3215  ;;  %v6437_v48 = vpop.permute.xlu1 %3209 }
0x2630   :  { %v3260_v10 = vmul.f32 %v6191_v57, %v6437_v48  ;;  %v3262_v62 = vmul.f32 %v6197_v35, %v6435_v40  ;;  %v3274_v57 = vmul.f32 %v6223_v56, %v6274_v32  ;;  %v3280_v35 = vmul.f32 %v6232_v20, %v6270_v59 }
0x2631   :  { %v3218_v63 = vmul.f32 %v3757_v55, %v6435_v40 }
0x2632   :  { %v3261_v42 = vadd.f32 %v6203_v8, %v3260_v10 }
0x2633   :  { %v2751_v47 = vpop.permute.xlu0 %2750 }
0x2634   :  { %v6442_v33 = vpop.permute.xlu1 %3222  ;;  %v3263_v36 = vadd.f32 %v3262_v62, %v3261_v42 }
0x2635   :  { %v3264_v15 = vmul.f32 %v6210_v50, %v6442_v33 }
0x2637   :  { %v2836_v46 = vpop.permute.xlu0 %2835  ;;  %v3265_v52 = vadd.f32 %v3264_v15, %v3263_v36 }
0x2638   :  { %2839 = vst.msk [vmem:[#allocation5] sm:$0xff] %vm2838_vm12, %v2836_v46  ;;  %vm2953_vm12 = vcmask 941968  }
0x263b   :  { %v2846_v27 = vpop.permute.xlu0 %2845 }
0x263f   :  { %v2856_v8 = vpop.permute.xlu0 %2855 }
0x2643   :  { %v2946_v30 = vpop.permute.xlu0 %2945 }
0x2647   :  { %v3041_v56 = vpop.permute.xlu0 %3040 }
0x264b   :  { %v3051_v24 = vpop.permute.xlu0 %3050 }
0x2668   :  { %v6448_v60 = vpop.permute.xlu1 %3229 }
0x2669   :  { %v3266_v38 = vmul.f32 %v6217_v6, %v6448_v60  ;;  %v3232_v13 = vmul.f32 %v3759_v51, %v6448_v60 }
0x266b   :  { %v3267_v9 = vadd.f32 %v3266_v38, %v3265_v52 }
0x266c   :  { %v2746_v39 = vpop.permute.xlu1 %2745 }
0x266d   :  { %v3275_v44 = vadd.f32 %v3274_v57, %v3267_v9  ;;  %2749 = vst.msk [vmem:[#allocation3] sm:$0xff] %vm2748_vm13, %v2746_v39  ;;  %vm2958_vm13 = vcmask 950168  }
0x266e   :  { %2754 = vst.msk [vmem:[#allocation3] sm:$0xff] %vm2753_vm14, %v2751_v47  ;;  %vm3043_vm14 = vcmask 958368  }
0x266f   :  { %v3281_v50 = vadd.f32 %v3280_v35, %v3275_v44 }
0x2670   :  { %v2756_v25 = vpop.permute.xlu1 %2755 }
0x2671   :  { %3698 = vtanh.f32 %v3281_v50  ;;  %2759 = vst.msk [vmem:[#allocation3] sm:$0xff] %vm2758_vm15, %v2756_v25  ;;  %vm3053_vm15 = vcmask 974768  }
0x2674   :  { %v2841_v6 = vpop.permute.xlu1 %2840 }
0x2675   :  { %2844 = vst.msk [vmem:[#allocation3] sm:$0xff] %vm2843_vm0, %v2841_v6  ;;  %vm3058_vm0 = vcmask 982968  }
0x2676   :  { %2849 = vst.msk [vmem:[#allocation3] sm:$0xff] %vm2848_vm6, %v2846_v27  ;;  %vm3143_vm6 = vcmask 991168  }
0x2678   :  { %v2851_v32 = vpop.permute.xlu1 %2850 }
0x2679   :  { %2854 = vst.msk [vmem:[#allocation3] sm:$0xff] %vm2853_vm7, %v2851_v32  ;;  %vm3148_vm7 = vcmask 999368  }
0x267a   :  { %2859 = vst.msk [vmem:[#allocation3] sm:$0xff] %vm2858_vm8, %v2856_v8  ;;  %vm3153_vm8 = vcmask 1007568  }
0x267b   :  { %v3699_v20 = vpop.eup %3698 }
0x267c   :  { %v2936_v59 = vpop.permute.xlu1 %2935  ;;  %v3289_v18 = vmul.f32 %v6241_v45, %v3699_v20  ;;  %v3283_v1 = vmul.f32 %v6248_v37, %v3699_v20  ;;  %v3295_v23 = vmul.f32 %v6257_v34, %v3699_v20  ;;  %v3301_v45 = vmul.f32 %v6300_v29, %v3699_v20  ;;  %v3141_v37 = vpop.permute.xlu0 %3140  ;;  %v3758_v29 = vld [vmem:[%s6526_s7 + $0x2] ss:$0 sm:$0xff]  ;;  %s3905_s7 = smov [#allocation5]  }
0x267d   :  { %2939 = vst.msk [vmem:[#allocation5] sm:$0xff] %vm2938_vm9, %v2936_v59  ;;  %v3212_v34 = vmul.f32 %v3756_v21, %v6437_v48  ;;  %v3225_v0 = vmul.f32 %v3758_v29, %v6442_v33  ;;  %vm3158_vm9 = vcmask 1015768   ;;  %s3327_s18 = sshll.u32 %s3905_s7, 4  ;;  %s3328_s18 = int_to_ptr.vmem [resolvable:$true] %s3327_s18 }
0x267e   :  { %v3290_v58 = vsel %vm165_vm1, %v3289_v18, 0.0  ;;  %v3284_v54 = vsel %vm165_vm1, %v3283_v1, 0.0  ;;  %v3296_v28 = vsel %vm165_vm1, %v3295_v23, 0.0  ;;  %v3302_v41 = vsel %vm165_vm1, %v3301_v45, 0.0  ;;  %s3760_s3 = scalar_lea.vmem %s3328_s18, 128  ;;  %p3765_p1 = scmp.lt.s32.totalorder %s3328_s18, %s3328_s18 }
0x267f   :  { %3291 = vadd.xlane.f32.xlu1 %v3290_v58  ;;  %3285 = vadd.xlane.f32.xlu0 %v3284_v54  ;;  %v3219_v14 = vadd.f32 %v3218_v63, %v3212_v34  ;;  %vm3048_vm1 = vcmask 966568   ;;  %p3761_p0 = scmp.ne.s32.totalorder %s3328_s18, %s3760_s3  ;;  %p3766_p2 = scmp.lt.s32.totalorder %s3760_s3, %s3760_s3 }
0x2680   :  { %v2941_v26 = vpop.permute.xlu1 %2940  ;;  %v3151_v2 = vpop.permute.xlu0 %3150 }
0x2681   :  { %2944 = vst.msk [vmem:[#allocation3] sm:$0xff] %vm2943_vm10, %v2941_v26  ;;  %v3226_v5 = vadd.f32 %v3225_v0, %v3219_v14  ;;  %vm3243_vm10 = vcmask 1023968   ;;  %p3767_p3 = por %p3766_p2, %p3765_p1 }
0x2682   :  { %2949 = vst.msk [vmem:[#allocation3] sm:$0xff] %vm2948_vm11, %v2946_v30  ;;  %vm3248_vm11 = vcmask 1032168  }
0x2683   :  { %3297 = vadd.xlane.f32.xlu0 %v3296_v28  ;;  %v3233_v19 = vadd.f32 %v3232_v13, %v3226_v5  ;;  %p3768_p4 = pnand %p3767_p3, %p3761_p0 }
0x2684   :  { %v2951_v16 = vpop.permute.xlu1 %2950  ;;  %v3241_v17 = vpop.permute.xlu0 %3240 }
0x2685   :  { %2954 = vst.msk [vmem:[#allocation3] sm:$0xff] %vm2953_vm12, %v2951_v16  ;;  %vm3253_vm12 = vcmask 1040368  }
0x2687   :  { %3303 = vadd.xlane.f32.xlu0 %v3302_v41 }
0x2688   :  { %v2956_v4 = vpop.permute.xlu1 %2955  ;;  %v3246_v53 = vpop.permute.xlu0 %3245 }
0x2689   :  { %2959 = vst.msk [vmem:[#allocation3] sm:$0xff] %vm2958_vm13, %v2956_v4  ;;  %vm3038_vm13 = vcmask 982944  }
0x268a   :  { %3044 = vst.msk [vmem:[#allocation3] sm:$0xff] %vm3043_vm14, %v3041_v56  ;;  %vm3138_vm14 = vcmask 1015744  }
0x268c   :  { %v3046_v7 = vpop.permute.xlu1 %3045  ;;  %v3251_v40 = vpop.permute.xlu0 %3250 }
0x268d   :  { %3049 = vst.msk [vmem:[#allocation3] sm:$0xff] %vm3048_vm1, %v3046_v7  ;;  %vm3238_vm1 = vcmask 1048544  }
0x268e   :  { %3054 = vst.msk [vmem:[#allocation3] sm:$0xff] %vm3053_vm15, %v3051_v24 }
0x2690   :  { %v3056_v3 = vpop.permute.xlu1 %3055  ;;  %3235 = vrot.lane.b32.xlu1 %v3233_v19, %s3904_s11 }
0x2691   :  { %3059 = vst.msk [vmem:[#allocation3] sm:$0xff] %vm3058_vm0, %v3056_v3 }
0x2692   :  { %3144 = vst.msk [vmem:[#allocation3] sm:$0xff] %vm3143_vm6, %v3141_v37 }
0x2694   :  { %v3146_v43 = vpop.permute.xlu1 %3145 }
0x2695   :  { %3149 = vst.msk [vmem:[#allocation3] sm:$0xff] %vm3148_vm7, %v3146_v43 }
0x2696   :  { %3154 = vst.msk [vmem:[#allocation3] sm:$0xff] %vm3153_vm8, %v3151_v2 }
0x2698   :  { %v3156_v12 = vpop.permute.xlu1 %3155 }
0x2699   :  { %3159 = vst.msk [vmem:[#allocation3] sm:$0xff] %vm3158_vm9, %v3156_v12 }
0x269a   :  { %3244 = vst.msk [vmem:[#allocation3] sm:$0xff] %vm3243_vm10, %v3241_v17 }
0x269b   :  { %3249 = vst.msk [vmem:[#allocation3] sm:$0xff] %vm3248_vm11, %v3246_v53 }
0x269c   :  { %v3036_v47 = vpop.permute.xlu1 %3035  ;;  %3254 = vst.msk [vmem:[#allocation3] sm:$0xff] %vm3253_vm12, %v3251_v40 }
0x269d   :  { %3039 = vst.msk [vmem:[#allocation5] sm:$0xff] %vm3038_vm13, %v3036_v47  ;;  %3255 = vrot.lane.b32.xlu0 %v6390_v61, %s3904_s11 }
0x26a0   :  { %v3136_v46 = vpop.permute.xlu1 %3135 }
0x26a1   :  { %3139 = vst.msk [vmem:[#allocation5] sm:$0xff] %vm3138_vm14, %v3136_v46 }
0x270c   :  { %v3292_v48 = vpop.xlane.xlu1 %3291  ;;  %v3286_v10 = vpop.xlane.xlu0 %3285 }
0x270d   :  { %v3293_v42 = vadd.f32 %v3292_v48, %v6349_v31  ;;  %v3287_v33 = vadd.f32 %v3286_v10, %v6346_v49 }
0x270f   :  { %v3294_v62 = vadd.f32 %v6343_v11, %v3293_v42  ;;  %v3288_v36 = vadd.f32 %v6343_v11, %v3287_v33 }
0x2710   :  { %v3236_v15 = vpop.permute.xlu1 %3235  ;;  %v3298_v27 = vpop.xlane.xlu0 %3297 }
0x2711   :  { %3307 = vst.msk [vmem:[#allocation2] sm:$0xff] %vm99_vm2, %v3288_v36  ;;  %v3299_v60 = vadd.f32 %v3298_v27, %v6359_v22 }
0x2712   :  { %3239 = vst.msk [vmem:[#allocation5] sm:$0xff] %vm3238_vm1, %v3236_v15 }
0x2713   :  { %3308 = vst.msk [vmem:[#allocation2] sm:$0xff] %vm101_vm3, %v3294_v62 }
0x2714   :  { %3771 = shalt.err (!%p3768_p4)
}
0x2715   :  { %s3772_s21 = scalar_lea.hbm %s6528_s9, 128 }
0x2716   :  { %p3773_p5 = scmp.ne.s32.totalorder %s6528_s9, %s3772_s21  ;;  %p3776_p6 = scmp.lt.u32.totalorder %s3772_s21, %s6528_s9 }
0x2718   :  { %p3778_p7 = pnand %p3776_p6, %p3773_p5 }
0x271a   :  { %3781 = shalt.err (!%p3778_p7)
}
0x271b   :  { %3330 = dma.vmem_to_hbm [thread:$0]  %s3328_s18, 128, %s6528_s9, [#allocation6]   ;;  %v3300_v49 = vadd.f32 %v6343_v11, %v3299_v60  ;;  %v3304_v31 = vpop.xlane.xlu0 %3303  ;;  %vm3258_vm2 = vcmask 1048568  }
0x271c   :  { %s3906_s28 = smov [#allocation3]   ;;  %v3305_v22 = vadd.f32 %v3304_v31, %v6390_v61 }
0x271d   :  { %s3317_s0 = sshll.u32 %s3906_s28, 4  ;;  %3309 = vst.msk [vmem:[#allocation2] sm:$0xff] %vm103_vm4, %v3300_v49  ;;  %s3318_s0 = int_to_ptr.vmem [resolvable:$true] %s3317_s0 }
0x271e   :  { %v3306_v52 = vadd.f32 %v6343_v11, %v3305_v22  ;;  %s3782_s5 = scalar_lea.vmem %s3318_s0, 128  ;;  %p3787_p9 = scmp.lt.s32.totalorder %s3318_s0, %s3318_s0 }
0x271f   :  { %v3256_v38 = vpop.permute.xlu0 %3255  ;;  %p3783_p8 = scmp.ne.s32.totalorder %s3318_s0, %s3782_s5  ;;  %p3788_p10 = scmp.lt.s32.totalorder %s3782_s5, %s3782_s5 }
0x2720   :  { %3310 = vst.msk [vmem:[#allocation2] sm:$0xff] %vm105_vm5, %v3306_v52 }
0x2721   :  { %3259 = vst.msk [vmem:[#allocation3] sm:$0xff] %vm3258_vm2, %v3256_v38  ;;  %p3789_p11 = por %p3788_p10, %p3787_p9 }
0x2723   :  { %p3790_p12 = pnand %p3789_p11, %p3783_p8 }
0x2725   :  { %3793 = shalt.err (!%p3790_p12)
}
0x2726   :  { %s3794_s6 = scalar_lea.hbm %s6527_s8, 128 }
0x2727   :  { %p3795_p13 = scmp.ne.s32.totalorder %s6527_s8, %s3794_s6  ;;  %p3798_p0 = scmp.lt.u32.totalorder %s3794_s6, %s6527_s8 }
0x2729   :  { %p3800_p1 = pnand %p3798_p0, %p3795_p13 }
0x272b   :  { %3803 = shalt.err (!%p3800_p1)
}
0x272c   :  { %3320 = dma.vmem_to_hbm [thread:$0]  %s3318_s0, 128, %s6527_s8, [#allocation4]  }
0x272d   :  { %3804 = dma.done.wait [#allocation4], 128  }
0x272e   :  { %3805 = vsyncadd [#allocation4], 4294967168 }
0x272f   :  { %3806 = dma.done.wait [#allocation6], 128  }
0x2730   :  { %3807 = vsyncadd [#allocation6], 4294967168 }
0x2731   :  { %3337 = vsyncpa [#allocation4], 1 }
0x2732   :  { %3338 = vsyncpa [#allocation6], 1 }

</bundles_post_ra>
